<compile_context>
chip_gen: v6e
topology: v6e:2x2x1
jax: 0.10.0
libtpu: 0.0.40
codegen_flags: <defaults>
</compile_context>

<pallas_src>
import functools
import random

import jax
import jax.numpy as jnp
from jax import lax
from jax.experimental import pallas as pl
from jax.experimental.pallas import tpu as pltpu


# ------------------------------ helpers ------------------------------------ #

def _rup(x, m):
    return ((x + m - 1) // m) * m


def _pad_to(x, shape):
    return jnp.pad(x, [(0, t - s) for s, t in zip(x.shape, shape)])


_VMEM = pl.BlockSpec(memory_space=pltpu.MemorySpace.VMEM)
_SMEM = pl.BlockSpec(memory_space=pltpu.MemorySpace.SMEM)


# ------------------------------ fused kernel ------------------------------- #

def _seq2seq_kernel(tf_ref, tok_ref, emb_ref, gw_ref, gb_ref, wfc_ref, bfc_ref,
                    out_ref):
    """Whole Seq2Seq forward in one kernel invocation (everything VMEM-resident).

    Shapes (all padded, K = Hp = padded hidden/emb dim, VCp = padded vocab):
      tf_ref:  SMEM int32 [trg_len]              (teacher-forcing coin flips)
      tok_ref: int32 [src_len+trg_len, Bp, 1]    (src tokens then trg tokens)
      emb_ref: [2, VCp, K]                        (0: enc embedding, 1: dec embedding)
      gw_ref:  [5, K, 3*Hp]   fused-gate weights  (enc_wi, enc_wh, dec_wie, dec_wic, dec_wh)
      gb_ref:  [4, 1, 3*Hp]   fused-gate biases   (enc_bi, enc_bh, dec_bi, dec_bh)
      wfc_ref: [3*K, VCp]     fc_out rows: [emb | hidden | context] parts
      bfc_ref: [1, VCp]       fc_out bias, padded cols = -1e30 (bakes argmax mask)
      out_ref: [trg_len, Bp, VCp]
    """
    f32 = jnp.float32
    trg_len, b_pad, vc_pad = out_ref.shape
    src_len = tok_ref.shape[0] - trg_len
    h_pad = gw_ref.shape[2] // 3

    def dotf(a, b):
        return jnp.dot(a, b, preferred_element_type=f32)

    col_v = lax.broadcasted_iota(jnp.int32, (b_pad, vc_pad), 1)

    def onehot(t):
        # [Bp, 1] token ids broadcast-compared against lane iota -> [Bp, VCp] one-hot
        return (tok_ref[t] == col_v).astype(f32)

    def gru(gi, gh, h):
        # gi, gh: [Bp, 3*Hp] fused gates, static lane slices (r, z, n — PyTorch order)
        r = jax.nn.sigmoid(gi[:, 0:h_pad] + gh[:, 0:h_pad])
        z = jax.nn.sigmoid(gi[:, h_pad:2 * h_pad] + gh[:, h_pad:2 * h_pad])
        n = jnp.tanh(gi[:, 2 * h_pad:] + r * gh[:, 2 * h_pad:])
        return (1.0 - z) * n + z * h

    # ---------------- encoder: GRU over src ---------------- #
    h = jnp.zeros((b_pad, h_pad), f32)
    for t in range(src_len):
        x = dotf(onehot(t), emb_ref[0])                       # one-hot gather on MXU
        gi = dotf(x, gw_ref[0]) + gb_ref[0]                   # fused input gates
        gh = dotf(h, gw_ref[1]) + gb_ref[1]                   # fused hidden gates
        h = gru(gi, gh, h)
    context = h

    # ---------------- decoder: teacher-forced / greedy loop ---------------- #
    out_ref[0] = jnp.zeros((b_pad, vc_pad), f32)              # only row 0 needs zeroing

    # hoisted loop-invariant context contributions
    gi_ctx = dotf(context, gw_ref[3]) + gb_ref[2]             # dec input gates: ctx part + b_ih
    logits_ctx = dotf(context, wfc_ref[2 * h_pad:3 * h_pad, :]) + bfc_ref[...]

    hdec = context
    x_oh = onehot(src_len)                                    # trg[0] (<sos>) one-hot
    for t in range(1, trg_len):
        emb = dotf(x_oh, emb_ref[1])
        gi = dotf(emb, gw_ref[2]) + gi_ctx
        gh = dotf(hdec, gw_ref[4]) + gb_ref[3]
        hdec = gru(gi, gh, hdec)
        logits = dotf(jnp.concatenate([emb, hdec], axis=1),
                      wfc_ref[0:2 * h_pad, :]) + logits_ctx
        out_ref[t] = logits                                   # lane-dense slab write

        # greedy top-1 (first max; padded cols are -1e30 via baked bias) as one-hot
        row_max = jnp.max(logits, axis=1, keepdims=True)
        first_idx = jnp.min(jnp.where(logits == row_max, col_v, vc_pad),
                            axis=1, keepdims=True)
        top1_oh = (col_v == first_idx).astype(f32)

        tf = (tf_ref[t] != 0).astype(f32)                     # scalar from SMEM
        x_oh = tf * onehot(src_len + t) + (1.0 - tf) * top1_oh


# ------------------------------ params ------------------------------------- #

def init_params(key, input_dim, output_dim, enc_emb_dim, dec_emb_dim, hid_dim):
    keys = jax.random.split(key, 12)
    s = 0.1
    f32 = jnp.float32
    enc = dict(
        embedding=(jax.random.normal(keys[0], (input_dim, enc_emb_dim)) * s).astype(f32),
        wih_t=(jax.random.normal(keys[1], (enc_emb_dim, 3 * hid_dim)) * s).astype(f32),
        whh_t=(jax.random.normal(keys[2], (hid_dim, 3 * hid_dim)) * s).astype(f32),
        bih=(jax.random.normal(keys[3], (1, 3 * hid_dim)) * s).astype(f32),
        bhh=(jax.random.normal(keys[4], (1, 3 * hid_dim)) * s).astype(f32),
    )
    dec = dict(
        embedding=(jax.random.normal(keys[5], (output_dim, dec_emb_dim)) * s).astype(f32),
        wih_t=(jax.random.normal(keys[6], (dec_emb_dim + hid_dim, 3 * hid_dim)) * s).astype(f32),
        whh_t=(jax.random.normal(keys[7], (hid_dim, 3 * hid_dim)) * s).astype(f32),
        bih=(jax.random.normal(keys[8], (1, 3 * hid_dim)) * s).astype(f32),
        bhh=(jax.random.normal(keys[9], (1, 3 * hid_dim)) * s).astype(f32),
        wfc_t=(jax.random.normal(keys[10], (dec_emb_dim + 2 * hid_dim, output_dim)) * s).astype(f32),
        bfc=(jax.random.normal(keys[11], (1, output_dim)) * s).astype(f32),
    )
    return {"enc": enc, "dec": dec, "hid_dim": hid_dim}


def pack_params(params):
    """Fuse GRU gates along lanes, pack weights into few slabs, pad to (8,128) tiles."""
    enc, dec = params["enc"], params["dec"]
    H = params["hid_dim"]
    in_v, e_enc = enc["embedding"].shape
    out_v, e_dec = dec["embedding"].shape
    Hp = _rup(H, 128)
    Eep = _rup(e_enc, 128)
    Edp = _rup(e_dec, 128)
    VCp = _rup(max(in_v, out_v), 128)
    assert Eep == Hp == Edp, (
        "toy-size packing assumes padded emb dims == padded hid dim; "
        "generalize K padding before scaling")
    K = Hp

    def fuse_gates(w, rows):
        # w: [rows_real, 3H], PyTorch gate order (r, z, n) along columns -> [rows, 3*Hp]
        return jnp.concatenate(
            [_pad_to(w[:, g * H:(g + 1) * H], (rows, Hp)) for g in range(3)], axis=1)

    gw = jnp.stack([
        fuse_gates(enc["wih_t"], K),               # 0: enc input gates
        fuse_gates(enc["whh_t"], K),               # 1: enc hidden gates
        fuse_gates(dec["wih_t"][:e_dec], K),       # 2: dec input gates (emb part)
        fuse_gates(dec["wih_t"][e_dec:], K),       # 3: dec input gates (context part)
        fuse_gates(dec["whh_t"], K),               # 4: dec hidden gates
    ], axis=0)
    gb = jnp.stack([
        fuse_gates(enc["bih"], 1),
        fuse_gates(enc["bhh"], 1),
        fuse_gates(dec["bih"], 1),
        fuse_gates(dec["bhh"], 1),
    ], axis=0)
    emb = jnp.stack([
        _pad_to(enc["embedding"], (VCp, K)),
        _pad_to(dec["embedding"], (VCp, K)),
    ], axis=0)
    wfc = jnp.concatenate([
        _pad_to(dec["wfc_t"][0:e_dec], (K, VCp)),                  # emb part
        _pad_to(dec["wfc_t"][e_dec:e_dec + H], (K, VCp)),          # hidden part
        _pad_to(dec["wfc_t"][e_dec + H:e_dec + 2 * H], (K, VCp)),  # context part
    ], axis=0)
    # bake the "real vocab" mask into the padded bias columns (argmax never picks them)
    bfc = jnp.pad(dec["bfc"], ((0, 0), (0, VCp - out_v)), constant_values=-1e30)
    return dict(emb=emb, gw=gw, gb=gb, wfc=wfc, bfc=bfc)


# ------------------------------ forward ------------------------------------ #

@functools.partial(jax.jit, static_argnums=(4,))
def _forward_impl(packed, src, trg, tf_sched, out_dim):
    src_len, b = src.shape
    trg_len = trg.shape[0]
    vc_pad = packed["emb"].shape[1]
    b_pad = max(8, _rup(b, 8))

    # int32 token ids only (one-hots built in-kernel); single small DMA
    tokens = jnp.concatenate([src, trg], axis=0).astype(jnp.int32)   # [L, b]
    tokens = jnp.pad(tokens, ((0, 0), (0, b_pad - b)))[..., None]    # [L, Bp, 1]

    out_padded = pl.pallas_call(
        _seq2seq_kernel,
        out_shape=jax.ShapeDtypeStruct((trg_len, b_pad, vc_pad), jnp.float32),
        in_specs=[_SMEM] + [_VMEM] * 6,
        out_specs=_VMEM,
    )(tf_sched.astype(jnp.int32), tokens,
      packed["emb"], packed["gw"], packed["gb"], packed["wfc"], packed["bfc"])

    return out_padded[:, :b, :out_dim]


def seq2seq_forward(params, src, trg, teacher_forcing_ratio=0.5, py_seed=0):
    """Matches Seq2Seq.forward; coin flips precomputed host-side and passed as data."""
    trg_len = trg.shape[0]
    rng = random.Random(py_seed)
    flips = [0] + [int(rng.random() < teacher_forcing_ratio) for _ in range(1, trg_len)]
    tf_sched = jnp.asarray(flips, dtype=jnp.int32)
    packed = pack_params(params)
    out_dim = int(params["dec"]["wfc_t"].shape[1])
    return _forward_impl(packed, src, trg, tf_sched, out_dim)


# ------------------------------ pure-JAX reference -------------------------- #

def _reference_forward(params, src, trg, tf_flags):
    enc, dec = params["enc"], params["dec"]
    H = params["hid_dim"]
    hp = lax.Precision.HIGHEST

    def gru_cell(x, h, wih_t, whh_t, bih, bhh):
        gi = jnp.dot(x, wih_t, precision=hp) + bih
        gh = jnp.dot(h, whh_t, precision=hp) + bhh
        r = jax.nn.sigmoid(gi[:, :H] + gh[:, :H])
        z = jax.nn.sigmoid(gi[:, H:2 * H] + gh[:, H:2 * H])
        n = jnp.tanh(gi[:, 2 * H:] + r * gh[:, 2 * H:])
        return (1.0 - z) * n + z * h

    src_len, B = src.shape
    emb_src = jnp.take(enc["embedding"], src, axis=0)
    h = jnp.zeros((B, H), jnp.float32)
    for t in range(src_len):
        h = gru_cell(emb_src[t], h, enc["wih_t"], enc["whh_t"], enc["bih"], enc["bhh"])
    context = h
    hidden = context
    trg_len = trg.shape[0]
    V = dec["wfc_t"].shape[1]
    outs = [jnp.zeros((B, V), jnp.float32)]
    inp = trg[0]
    for t in range(1, trg_len):
        e = jnp.take(dec["embedding"], inp, axis=0)
        x = jnp.concatenate([e, context], axis=1)
        hidden = gru_cell(x, hidden, dec["wih_t"], dec["whh_t"], dec["bih"], dec["bhh"])
        logits = jnp.dot(jnp.concatenate([e, hidden, context], axis=1),
                         dec["wfc_t"], precision=hp) + dec["bfc"]
        outs.append(logits)
        top1 = jnp.argmax(logits, axis=1).astype(trg.dtype)
        inp = trg[t] if tf_flags[t] else top1
    return jnp.stack(outs, axis=0)


# ------------------------------ main ---------------------------------------- #

if __name__ == "__main__":
    INPUT_DIM = 24     # src vocab
    OUTPUT_DIM = 20    # trg vocab
    ENC_EMB_DIM = 32
    DEC_EMB_DIM = 32
    HID_DIM = 32
    SRC_LEN = 7
    TRG_LEN = 8
    BATCH = 2

    key = jax.random.PRNGKey(0)
    kp, ks, kt = jax.random.split(key, 3)
    params = init_params(kp, INPUT_DIM, OUTPUT_DIM, ENC_EMB_DIM, DEC_EMB_DIM, HID_DIM)

    src = jax.random.randint(ks, (SRC_LEN, BATCH), 0, INPUT_DIM, dtype=jnp.int32)
    trg = jax.random.randint(kt, (TRG_LEN, BATCH), 0, OUTPUT_DIM, dtype=jnp.int32)

    outputs = seq2seq_forward(params, src, trg, teacher_forcing_ratio=0.5, py_seed=0)
    outputs = jax.block_until_ready(outputs)

    assert outputs.shape == (TRG_LEN, BATCH, OUTPUT_DIM)
    assert outputs.dtype == jnp.float32
    assert bool(jnp.all(outputs[0] == 0.0))

    # numerical check vs pure-JAX reference under full teacher forcing
    out_tf = jax.block_until_ready(
        seq2seq_forward(params, src, trg, teacher_forcing_ratio=1.0, py_seed=0))
    ref_tf = _reference_forward(params, src, trg, [0] + [1] * (TRG_LEN - 1))
    assert bool(jnp.allclose(out_tf, ref_tf, atol=2e-2, rtol=2e-2)), (
        "max abs diff = %f" % float(jnp.max(jnp.abs(out_tf - ref_tf))))

    print("KERNEL_OK")
</pallas_src>

<mosaic_0001>
module attributes {stable_mosaic.version = 11 : i64} {
  func.func @_seq2seq_kernel(%arg0: memref<8xi32, #tpu.memory_space<smem>>, %arg1: memref<15x8x1xi32, #tpu.memory_space<vmem>>, %arg2: memref<2x128x128xf32, #tpu.memory_space<vmem>>, %arg3: memref<5x128x384xf32, #tpu.memory_space<vmem>>, %arg4: memref<4x1x384xf32, #tpu.memory_space<vmem>>, %arg5: memref<384x128xf32, #tpu.memory_space<vmem>>, %arg6: memref<1x128xf32, #tpu.memory_space<vmem>>, %arg7: memref<8x8x128xf32, #tpu.memory_space<vmem>>) attributes {dimension_semantics = [], scalar_prefetch = 0 : i64, scratch_operands = 0 : i64, tpu.core_type = #tpu.core_type<tc>} {
    %0 = tpu.iota {dimensions = array<i32: 1>} : vector<8x128xi32>
    %cst = arith.constant 0.000000e+00 : f32
    %1 = vector.broadcast %cst : f32 to vector<8x128xf32>
    %c0 = arith.constant 0 : index
    %c0_0 = arith.constant 0 : index
    %c0_1 = arith.constant 0 : index
    %2 = vector.load %arg1[%c0, %c0_0, %c0_1] : memref<15x8x1xi32, #tpu.memory_space<vmem>>, vector<1x8x1xi32>
    %3 = vector.shape_cast %2 : vector<1x8x1xi32> to vector<8x1xi32>
    %4 = vector.broadcast %3 : vector<8x1xi32> to vector<8x128xi32>
    %5 = arith.cmpi eq, %4, %0 : vector<8x128xi32>
    %6 = arith.extui %5 : vector<8x128xi1> to vector<8x128xi32>
    %7 = arith.sitofp %6 : vector<8x128xi32> to vector<8x128xf32>
    %c0_2 = arith.constant 0 : index
    %c0_3 = arith.constant 0 : index
    %c0_4 = arith.constant 0 : index
    %8 = vector.load %arg2[%c0_2, %c0_3, %c0_4] : memref<2x128x128xf32, #tpu.memory_space<vmem>>, vector<1x128x128xf32>
    %9 = vector.shape_cast %8 : vector<1x128x128xf32> to vector<128x128xf32>
    %cst_5 = arith.constant dense<0.000000e+00> : vector<8x128xf32>
    %10 = tpu.matmul %7, %9, %cst_5 {dimension_numbers = #tpu.dot_dimension_numbers<[1], [0], [0], [1], [0, 0, 1, 1], [], []>} : vector<8x128xf32>, vector<128x128xf32>, vector<8x128xf32> -> vector<8x128xf32>
    %c0_6 = arith.constant 0 : index
    %c0_7 = arith.constant 0 : index
    %c0_8 = arith.constant 0 : index
    %11 = vector.load %arg3[%c0_6, %c0_7, %c0_8] : memref<5x128x384xf32, #tpu.memory_space<vmem>>, vector<1x128x384xf32>
    %12 = vector.shape_cast %11 : vector<1x128x384xf32> to vector<128x384xf32>
    %cst_9 = arith.constant dense<0.000000e+00> : vector<8x384xf32>
    %13 = tpu.matmul %10, %12, %cst_9 {dimension_numbers = #tpu.dot_dimension_numbers<[1], [0], [0], [1], [0, 0, 1, 1], [], []>} : vector<8x128xf32>, vector<128x384xf32>, vector<8x384xf32> -> vector<8x384xf32>
    %c0_10 = arith.constant 0 : index
    %c0_11 = arith.constant 0 : index
    %c0_12 = arith.constant 0 : index
    %14 = vector.load %arg4[%c0_10, %c0_11, %c0_12] : memref<4x1x384xf32, #tpu.memory_space<vmem>>, vector<1x1x384xf32>
    %15 = vector.shape_cast %14 : vector<1x1x384xf32> to vector<1x384xf32>
    %16 = vector.broadcast %15 : vector<1x384xf32> to vector<8x384xf32>
    %17 = arith.addf %13, %16 : vector<8x384xf32>
    %c1 = arith.constant 1 : index
    %c0_13 = arith.constant 0 : index
    %c0_14 = arith.constant 0 : index
    %18 = vector.load %arg3[%c1, %c0_13, %c0_14] : memref<5x128x384xf32, #tpu.memory_space<vmem>>, vector<1x128x384xf32>
    %19 = vector.shape_cast %18 : vector<1x128x384xf32> to vector<128x384xf32>
    %cst_15 = arith.constant dense<0.000000e+00> : vector<8x384xf32>
    %20 = tpu.matmul %1, %19, %cst_15 {dimension_numbers = #tpu.dot_dimension_numbers<[1], [0], [0], [1], [0, 0, 1, 1], [], []>} : vector<8x128xf32>, vector<128x384xf32>, vector<8x384xf32> -> vector<8x384xf32>
    %c1_16 = arith.constant 1 : index
    %c0_17 = arith.constant 0 : index
    %c0_18 = arith.constant 0 : index
    %21 = vector.load %arg4[%c1_16, %c0_17, %c0_18] : memref<4x1x384xf32, #tpu.memory_space<vmem>>, vector<1x1x384xf32>
    %22 = vector.shape_cast %21 : vector<1x1x384xf32> to vector<1x384xf32>
    %23 = vector.broadcast %22 : vector<1x384xf32> to vector<8x384xf32>
    %24 = arith.addf %20, %23 : vector<8x384xf32>
    %25 = vector.extract_strided_slice %17 {offsets = [0, 0], sizes = [8, 128], strides = [1, 1]} : vector<8x384xf32> to vector<8x128xf32>
    %26 = vector.extract_strided_slice %24 {offsets = [0, 0], sizes = [8, 128], strides = [1, 1]} : vector<8x384xf32> to vector<8x128xf32>
    %27 = arith.addf %25, %26 : vector<8x128xf32>
    %28 = arith.negf %27 : vector<8x128xf32>
    %29 = math.exp %28 : vector<8x128xf32>
    %cst_19 = arith.constant 1.000000e+00 : f32
    %30 = vector.broadcast %cst_19 : f32 to vector<8x128xf32>
    %31 = arith.addf %30, %29 : vector<8x128xf32>
    %32 = arith.divf %30, %31 : vector<8x128xf32>
    %33 = vector.extract_strided_slice %17 {offsets = [0, 128], sizes = [8, 128], strides = [1, 1]} : vector<8x384xf32> to vector<8x128xf32>
    %34 = vector.extract_strided_slice %24 {offsets = [0, 128], sizes = [8, 128], strides = [1, 1]} : vector<8x384xf32> to vector<8x128xf32>
    %35 = arith.addf %33, %34 : vector<8x128xf32>
    %36 = arith.negf %35 : vector<8x128xf32>
    %37 = math.exp %36 : vector<8x128xf32>
    %cst_20 = arith.constant 1.000000e+00 : f32
    %38 = vector.broadcast %cst_20 : f32 to vector<8x128xf32>
    %39 = arith.addf %38, %37 : vector<8x128xf32>
    %40 = arith.divf %38, %39 : vector<8x128xf32>
    %41 = vector.extract_strided_slice %17 {offsets = [0, 256], sizes = [8, 128], strides = [1, 1]} : vector<8x384xf32> to vector<8x128xf32>
    %42 = vector.extract_strided_slice %24 {offsets = [0, 256], sizes = [8, 128], strides = [1, 1]} : vector<8x384xf32> to vector<8x128xf32>
    %43 = arith.mulf %32, %42 : vector<8x128xf32>
    %44 = arith.addf %41, %43 : vector<8x128xf32>
    %45 = math.tanh %44 : vector<8x128xf32>
    %cst_21 = arith.constant 1.000000e+00 : f32
    %46 = vector.broadcast %cst_21 : f32 to vector<8x128xf32>
    %47 = arith.subf %46, %40 : vector<8x128xf32>
    %48 = arith.mulf %47, %45 : vector<8x128xf32>
    %49 = arith.mulf %40, %1 : vector<8x128xf32>
    %50 = arith.addf %48, %49 : vector<8x128xf32>
    %c1_22 = arith.constant 1 : index
    %c0_23 = arith.constant 0 : index
    %c0_24 = arith.constant 0 : index
    %51 = vector.load %arg1[%c1_22, %c0_23, %c0_24] : memref<15x8x1xi32, #tpu.memory_space<vmem>>, vector<1x8x1xi32>
    %52 = vector.shape_cast %51 : vector<1x8x1xi32> to vector<8x1xi32>
    %53 = vector.broadcast %52 : vector<8x1xi32> to vector<8x128xi32>
    %54 = arith.cmpi eq, %53, %0 : vector<8x128xi32>
    %55 = arith.extui %54 : vector<8x128xi1> to vector<8x128xi32>
    %56 = arith.sitofp %55 : vector<8x128xi32> to vector<8x128xf32>
    %c0_25 = arith.constant 0 : index
    %c0_26 = arith.constant 0 : index
    %c0_27 = arith.constant 0 : index
    %57 = vector.load %arg2[%c0_25, %c0_26, %c0_27] : memref<2x128x128xf32, #tpu.memory_space<vmem>>, vector<1x128x128xf32>
    %58 = vector.shape_cast %57 : vector<1x128x128xf32> to vector<128x128xf32>
    %cst_28 = arith.constant dense<0.000000e+00> : vector<8x128xf32>
    %59 = tpu.matmul %56, %58, %cst_28 {dimension_numbers = #tpu.dot_dimension_numbers<[1], [0], [0], [1], [0, 0, 1, 1], [], []>} : vector<8x128xf32>, vector<128x128xf32>, vector<8x128xf32> -> vector<8x128xf32>
    %c0_29 = arith.constant 0 : index
    %c0_30 = arith.constant 0 : index
    %c0_31 = arith.constant 0 : index
    %60 = vector.load %arg3[%c0_29, %c0_30, %c0_31] : memref<5x128x384xf32, #tpu.memory_space<vmem>>, vector<1x128x384xf32>
    %61 = vector.shape_cast %60 : vector<1x128x384xf32> to vector<128x384xf32>
    %cst_32 = arith.constant dense<0.000000e+00> : vector<8x384xf32>
    %62 = tpu.matmul %59, %61, %cst_32 {dimension_numbers = #tpu.dot_dimension_numbers<[1], [0], [0], [1], [0, 0, 1, 1], [], []>} : vector<8x128xf32>, vector<128x384xf32>, vector<8x384xf32> -> vector<8x384xf32>
    %c0_33 = arith.constant 0 : index
    %c0_34 = arith.constant 0 : index
    %c0_35 = arith.constant 0 : index
    %63 = vector.load %arg4[%c0_33, %c0_34, %c0_35] : memref<4x1x384xf32, #tpu.memory_space<vmem>>, vector<1x1x384xf32>
    %64 = vector.shape_cast %63 : vector<1x1x384xf32> to vector<1x384xf32>
    %65 = vector.broadcast %64 : vector<1x384xf32> to vector<8x384xf32>
    %66 = arith.addf %62, %65 : vector<8x384xf32>
    %c1_36 = arith.constant 1 : index
    %c0_37 = arith.constant 0 : index
    %c0_38 = arith.constant 0 : index
    %67 = vector.load %arg3[%c1_36, %c0_37, %c0_38] : memref<5x128x384xf32, #tpu.memory_space<vmem>>, vector<1x128x384xf32>
    %68 = vector.shape_cast %67 : vector<1x128x384xf32> to vector<128x384xf32>
    %cst_39 = arith.constant dense<0.000000e+00> : vector<8x384xf32>
    %69 = tpu.matmul %50, %68, %cst_39 {dimension_numbers = #tpu.dot_dimension_numbers<[1], [0], [0], [1], [0, 0, 1, 1], [], []>} : vector<8x128xf32>, vector<128x384xf32>, vector<8x384xf32> -> vector<8x384xf32>
    %c1_40 = arith.constant 1 : index
    %c0_41 = arith.constant 0 : index
    %c0_42 = arith.constant 0 : index
    %70 = vector.load %arg4[%c1_40, %c0_41, %c0_42] : memref<4x1x384xf32, #tpu.memory_space<vmem>>, vector<1x1x384xf32>
    %71 = vector.shape_cast %70 : vector<1x1x384xf32> to vector<1x384xf32>
    %72 = vector.broadcast %71 : vector<1x384xf32> to vector<8x384xf32>
    %73 = arith.addf %69, %72 : vector<8x384xf32>
    %74 = vector.extract_strided_slice %66 {offsets = [0, 0], sizes = [8, 128], strides = [1, 1]} : vector<8x384xf32> to vector<8x128xf32>
    %75 = vector.extract_strided_slice %73 {offsets = [0, 0], sizes = [8, 128], strides = [1, 1]} : vector<8x384xf32> to vector<8x128xf32>
    %76 = arith.addf %74, %75 : vector<8x128xf32>
    %77 = arith.negf %76 : vector<8x128xf32>
    %78 = math.exp %77 : vector<8x128xf32>
    %cst_43 = arith.constant 1.000000e+00 : f32
    %79 = vector.broadcast %cst_43 : f32 to vector<8x128xf32>
    %80 = arith.addf %79, %78 : vector<8x128xf32>
    %81 = arith.divf %79, %80 : vector<8x128xf32>
    %82 = vector.extract_strided_slice %66 {offsets = [0, 128], sizes = [8, 128], strides = [1, 1]} : vector<8x384xf32> to vector<8x128xf32>
    %83 = vector.extract_strided_slice %73 {offsets = [0, 128], sizes = [8, 128], strides = [1, 1]} : vector<8x384xf32> to vector<8x128xf32>
    %84 = arith.addf %82, %83 : vector<8x128xf32>
    %85 = arith.negf %84 : vector<8x128xf32>
    %86 = math.exp %85 : vector<8x128xf32>
    %cst_44 = arith.constant 1.000000e+00 : f32
    %87 = vector.broadcast %cst_44 : f32 to vector<8x128xf32>
    %88 = arith.addf %87, %86 : vector<8x128xf32>
    %89 = arith.divf %87, %88 : vector<8x128xf32>
    %90 = vector.extract_strided_slice %66 {offsets = [0, 256], sizes = [8, 128], strides = [1, 1]} : vector<8x384xf32> to vector<8x128xf32>
    %91 = vector.extract_strided_slice %73 {offsets = [0, 256], sizes = [8, 128], strides = [1, 1]} : vector<8x384xf32> to vector<8x128xf32>
    %92 = arith.mulf %81, %91 : vector<8x128xf32>
    %93 = arith.addf %90, %92 : vector<8x128xf32>
    %94 = math.tanh %93 : vector<8x128xf32>
    %cst_45 = arith.constant 1.000000e+00 : f32
    %95 = vector.broadcast %cst_45 : f32 to vector<8x128xf32>
    %96 = arith.subf %95, %89 : vector<8x128xf32>
    %97 = arith.mulf %96, %94 : vector<8x128xf32>
    %98 = arith.mulf %89, %50 : vector<8x128xf32>
    %99 = arith.addf %97, %98 : vector<8x128xf32>
    %c2 = arith.constant 2 : index
    %c0_46 = arith.constant 0 : index
    %c0_47 = arith.constant 0 : index
    %100 = vector.load %arg1[%c2, %c0_46, %c0_47] : memref<15x8x1xi32, #tpu.memory_space<vmem>>, vector<1x8x1xi32>
    %101 = vector.shape_cast %100 : vector<1x8x1xi32> to vector<8x1xi32>
    %102 = vector.broadcast %101 : vector<8x1xi32> to vector<8x128xi32>
    %103 = arith.cmpi eq, %102, %0 : vector<8x128xi32>
    %104 = arith.extui %103 : vector<8x128xi1> to vector<8x128xi32>
    %105 = arith.sitofp %104 : vector<8x128xi32> to vector<8x128xf32>
    %c0_48 = arith.constant 0 : index
    %c0_49 = arith.constant 0 : index
    %c0_50 = arith.constant 0 : index
    %106 = vector.load %arg2[%c0_48, %c0_49, %c0_50] : memref<2x128x128xf32, #tpu.memory_space<vmem>>, vector<1x128x128xf32>
    %107 = vector.shape_cast %106 : vector<1x128x128xf32> to vector<128x128xf32>
    %cst_51 = arith.constant dense<0.000000e+00> : vector<8x128xf32>
    %108 = tpu.matmul %105, %107, %cst_51 {dimension_numbers = #tpu.dot_dimension_numbers<[1], [0], [0], [1], [0, 0, 1, 1], [], []>} : vector<8x128xf32>, vector<128x128xf32>, vector<8x128xf32> -> vector<8x128xf32>
    %c0_52 = arith.constant 0 : index
    %c0_53 = arith.constant 0 : index
    %c0_54 = arith.constant 0 : index
    %109 = vector.load %arg3[%c0_52, %c0_53, %c0_54] : memref<5x128x384xf32, #tpu.memory_space<vmem>>, vector<1x128x384xf32>
    %110 = vector.shape_cast %109 : vector<1x128x384xf32> to vector<128x384xf32>
    %cst_55 = arith.constant dense<0.000000e+00> : vector<8x384xf32>
    %111 = tpu.matmul %108, %110, %cst_55 {dimension_numbers = #tpu.dot_dimension_numbers<[1], [0], [0], [1], [0, 0, 1, 1], [], []>} : vector<8x128xf32>, vector<128x384xf32>, vector<8x384xf32> -> vector<8x384xf32>
    %c0_56 = arith.constant 0 : index
    %c0_57 = arith.constant 0 : index
    %c0_58 = arith.constant 0 : index
    %112 = vector.load %arg4[%c0_56, %c0_57, %c0_58] : memref<4x1x384xf32, #tpu.memory_space<vmem>>, vector<1x1x384xf32>
    %113 = vector.shape_cast %112 : vector<1x1x384xf32> to vector<1x384xf32>
    %114 = vector.broadcast %113 : vector<1x384xf32> to vector<8x384xf32>
    %115 = arith.addf %111, %114 : vector<8x384xf32>
    %c1_59 = arith.constant 1 : index
    %c0_60 = arith.constant 0 : index
    %c0_61 = arith.constant 0 : index
    %116 = vector.load %arg3[%c1_59, %c0_60, %c0_61] : memref<5x128x384xf32, #tpu.memory_space<vmem>>, vector<1x128x384xf32>
    %117 = vector.shape_cast %116 : vector<1x128x384xf32> to vector<128x384xf32>
    %cst_62 = arith.constant dense<0.000000e+00> : vector<8x384xf32>
    %118 = tpu.matmul %99, %117, %cst_62 {dimension_numbers = #tpu.dot_dimension_numbers<[1], [0], [0], [1], [0, 0, 1, 1], [], []>} : vector<8x128xf32>, vector<128x384xf32>, vector<8x384xf32> -> vector<8x384xf32>
    %c1_63 = arith.constant 1 : index
    %c0_64 = arith.constant 0 : index
    %c0_65 = arith.constant 0 : index
    %119 = vector.load %arg4[%c1_63, %c0_64, %c0_65] : memref<4x1x384xf32, #tpu.memory_space<vmem>>, vector<1x1x384xf32>
    %120 = vector.shape_cast %119 : vector<1x1x384xf32> to vector<1x384xf32>
    %121 = vector.broadcast %120 : vector<1x384xf32> to vector<8x384xf32>
    %122 = arith.addf %118, %121 : vector<8x384xf32>
    %123 = vector.extract_strided_slice %115 {offsets = [0, 0], sizes = [8, 128], strides = [1, 1]} : vector<8x384xf32> to vector<8x128xf32>
    %124 = vector.extract_strided_slice %122 {offsets = [0, 0], sizes = [8, 128], strides = [1, 1]} : vector<8x384xf32> to vector<8x128xf32>
    %125 = arith.addf %123, %124 : vector<8x128xf32>
    %126 = arith.negf %125 : vector<8x128xf32>
    %127 = math.exp %126 : vector<8x128xf32>
    %cst_66 = arith.constant 1.000000e+00 : f32
    %128 = vector.broadcast %cst_66 : f32 to vector<8x128xf32>
    %129 = arith.addf %128, %127 : vector<8x128xf32>
    %130 = arith.divf %128, %129 : vector<8x128xf32>
    %131 = vector.extract_strided_slice %115 {offsets = [0, 128], sizes = [8, 128], strides = [1, 1]} : vector<8x384xf32> to vector<8x128xf32>
    %132 = vector.extract_strided_slice %122 {offsets = [0, 128], sizes = [8, 128], strides = [1, 1]} : vector<8x384xf32> to vector<8x128xf32>
    %133 = arith.addf %131, %132 : vector<8x128xf32>
    %134 = arith.negf %133 : vector<8x128xf32>
    %135 = math.exp %134 : vector<8x128xf32>
    %cst_67 = arith.constant 1.000000e+00 : f32
    %136 = vector.broadcast %cst_67 : f32 to vector<8x128xf32>
    %137 = arith.addf %136, %135 : vector<8x128xf32>
    %138 = arith.divf %136, %137 : vector<8x128xf32>
    %139 = vector.extract_strided_slice %115 {offsets = [0, 256], sizes = [8, 128], strides = [1, 1]} : vector<8x384xf32> to vector<8x128xf32>
    %140 = vector.extract_strided_slice %122 {offsets = [0, 256], sizes = [8, 128], strides = [1, 1]} : vector<8x384xf32> to vector<8x128xf32>
    %141 = arith.mulf %130, %140 : vector<8x128xf32>
    %142 = arith.addf %139, %141 : vector<8x128xf32>
    %143 = math.tanh %142 : vector<8x128xf32>
    %cst_68 = arith.constant 1.000000e+00 : f32
    %144 = vector.broadcast %cst_68 : f32 to vector<8x128xf32>
    %145 = arith.subf %144, %138 : vector<8x128xf32>
    %146 = arith.mulf %145, %143 : vector<8x128xf32>
    %147 = arith.mulf %138, %99 : vector<8x128xf32>
    %148 = arith.addf %146, %147 : vector<8x128xf32>
    %c3 = arith.constant 3 : index
    %c0_69 = arith.constant 0 : index
    %c0_70 = arith.constant 0 : index
    %149 = vector.load %arg1[%c3, %c0_69, %c0_70] : memref<15x8x1xi32, #tpu.memory_space<vmem>>, vector<1x8x1xi32>
    %150 = vector.shape_cast %149 : vector<1x8x1xi32> to vector<8x1xi32>
    %151 = vector.broadcast %150 : vector<8x1xi32> to vector<8x128xi32>
    %152 = arith.cmpi eq, %151, %0 : vector<8x128xi32>
    %153 = arith.extui %152 : vector<8x128xi1> to vector<8x128xi32>
    %154 = arith.sitofp %153 : vector<8x128xi32> to vector<8x128xf32>
    %c0_71 = arith.constant 0 : index
    %c0_72 = arith.constant 0 : index
    %c0_73 = arith.constant 0 : index
    %155 = vector.load %arg2[%c0_71, %c0_72, %c0_73] : memref<2x128x128xf32, #tpu.memory_space<vmem>>, vector<1x128x128xf32>
    %156 = vector.shape_cast %155 : vector<1x128x128xf32> to vector<128x128xf32>
    %cst_74 = arith.constant dense<0.000000e+00> : vector<8x128xf32>
    %157 = tpu.matmul %154, %156, %cst_74 {dimension_numbers = #tpu.dot_dimension_numbers<[1], [0], [0], [1], [0, 0, 1, 1], [], []>} : vector<8x128xf32>, vector<128x128xf32>, vector<8x128xf32> -> vector<8x128xf32>
    %c0_75 = arith.constant 0 : index
    %c0_76 = arith.constant 0 : index
    %c0_77 = arith.constant 0 : index
    %158 = vector.load %arg3[%c0_75, %c0_76, %c0_77] : memref<5x128x384xf32, #tpu.memory_space<vmem>>, vector<1x128x384xf32>
    %159 = vector.shape_cast %158 : vector<1x128x384xf32> to vector<128x384xf32>
    %cst_78 = arith.constant dense<0.000000e+00> : vector<8x384xf32>
    %160 = tpu.matmul %157, %159, %cst_78 {dimension_numbers = #tpu.dot_dimension_numbers<[1], [0], [0], [1], [0, 0, 1, 1], [], []>} : vector<8x128xf32>, vector<128x384xf32>, vector<8x384xf32> -> vector<8x384xf32>
    %c0_79 = arith.constant 0 : index
    %c0_80 = arith.constant 0 : index
    %c0_81 = arith.constant 0 : index
    %161 = vector.load %arg4[%c0_79, %c0_80, %c0_81] : memref<4x1x384xf32, #tpu.memory_space<vmem>>, vector<1x1x384xf32>
    %162 = vector.shape_cast %161 : vector<1x1x384xf32> to vector<1x384xf32>
    %163 = vector.broadcast %162 : vector<1x384xf32> to vector<8x384xf32>
    %164 = arith.addf %160, %163 : vector<8x384xf32>
    %c1_82 = arith.constant 1 : index
    %c0_83 = arith.constant 0 : index
    %c0_84 = arith.constant 0 : index
    %165 = vector.load %arg3[%c1_82, %c0_83, %c0_84] : memref<5x128x384xf32, #tpu.memory_space<vmem>>, vector<1x128x384xf32>
    %166 = vector.shape_cast %165 : vector<1x128x384xf32> to vector<128x384xf32>
    %cst_85 = arith.constant dense<0.000000e+00> : vector<8x384xf32>
    %167 = tpu.matmul %148, %166, %cst_85 {dimension_numbers = #tpu.dot_dimension_numbers<[1], [0], [0], [1], [0, 0, 1, 1], [], []>} : vector<8x128xf32>, vector<128x384xf32>, vector<8x384xf32> -> vector<8x384xf32>
    %c1_86 = arith.constant 1 : index
    %c0_87 = arith.constant 0 : index
    %c0_88 = arith.constant 0 : index
    %168 = vector.load %arg4[%c1_86, %c0_87, %c0_88] : memref<4x1x384xf32, #tpu.memory_space<vmem>>, vector<1x1x384xf32>
    %169 = vector.shape_cast %168 : vector<1x1x384xf32> to vector<1x384xf32>
    %170 = vector.broadcast %169 : vector<1x384xf32> to vector<8x384xf32>
    %171 = arith.addf %167, %170 : vector<8x384xf32>
    %172 = vector.extract_strided_slice %164 {offsets = [0, 0], sizes = [8, 128], strides = [1, 1]} : vector<8x384xf32> to vector<8x128xf32>
    %173 = vector.extract_strided_slice %171 {offsets = [0, 0], sizes = [8, 128], strides = [1, 1]} : vector<8x384xf32> to vector<8x128xf32>
    %174 = arith.addf %172, %173 : vector<8x128xf32>
    %175 = arith.negf %174 : vector<8x128xf32>
    %176 = math.exp %175 : vector<8x128xf32>
    %cst_89 = arith.constant 1.000000e+00 : f32
    %177 = vector.broadcast %cst_89 : f32 to vector<8x128xf32>
    %178 = arith.addf %177, %176 : vector<8x128xf32>
    %179 = arith.divf %177, %178 : vector<8x128xf32>
    %180 = vector.extract_strided_slice %164 {offsets = [0, 128], sizes = [8, 128], strides = [1, 1]} : vector<8x384xf32> to vector<8x128xf32>
    %181 = vector.extract_strided_slice %171 {offsets = [0, 128], sizes = [8, 128], strides = [1, 1]} : vector<8x384xf32> to vector<8x128xf32>
    %182 = arith.addf %180, %181 : vector<8x128xf32>
    %183 = arith.negf %182 : vector<8x128xf32>
    %184 = math.exp %183 : vector<8x128xf32>
    %cst_90 = arith.constant 1.000000e+00 : f32
    %185 = vector.broadcast %cst_90 : f32 to vector<8x128xf32>
    %186 = arith.addf %185, %184 : vector<8x128xf32>
    %187 = arith.divf %185, %186 : vector<8x128xf32>
    %188 = vector.extract_strided_slice %164 {offsets = [0, 256], sizes = [8, 128], strides = [1, 1]} : vector<8x384xf32> to vector<8x128xf32>
    %189 = vector.extract_strided_slice %171 {offsets = [0, 256], sizes = [8, 128], strides = [1, 1]} : vector<8x384xf32> to vector<8x128xf32>
    %190 = arith.mulf %179, %189 : vector<8x128xf32>
    %191 = arith.addf %188, %190 : vector<8x128xf32>
    %192 = math.tanh %191 : vector<8x128xf32>
    %cst_91 = arith.constant 1.000000e+00 : f32
    %193 = vector.broadcast %cst_91 : f32 to vector<8x128xf32>
    %194 = arith.subf %193, %187 : vector<8x128xf32>
    %195 = arith.mulf %194, %192 : vector<8x128xf32>
    %196 = arith.mulf %187, %148 : vector<8x128xf32>
    %197 = arith.addf %195, %196 : vector<8x128xf32>
    %c4 = arith.constant 4 : index
    %c0_92 = arith.constant 0 : index
    %c0_93 = arith.constant 0 : index
    %198 = vector.load %arg1[%c4, %c0_92, %c0_93] : memref<15x8x1xi32, #tpu.memory_space<vmem>>, vector<1x8x1xi32>
    %199 = vector.shape_cast %198 : vector<1x8x1xi32> to vector<8x1xi32>
    %200 = vector.broadcast %199 : vector<8x1xi32> to vector<8x128xi32>
    %201 = arith.cmpi eq, %200, %0 : vector<8x128xi32>
    %202 = arith.extui %201 : vector<8x128xi1> to vector<8x128xi32>
    %203 = arith.sitofp %202 : vector<8x128xi32> to vector<8x128xf32>
    %c0_94 = arith.constant 0 : index
    %c0_95 = arith.constant 0 : index
    %c0_96 = arith.constant 0 : index
    %204 = vector.load %arg2[%c0_94, %c0_95, %c0_96] : memref<2x128x128xf32, #tpu.memory_space<vmem>>, vector<1x128x128xf32>
    %205 = vector.shape_cast %204 : vector<1x128x128xf32> to vector<128x128xf32>
    %cst_97 = arith.constant dense<0.000000e+00> : vector<8x128xf32>
    %206 = tpu.matmul %203, %205, %cst_97 {dimension_numbers = #tpu.dot_dimension_numbers<[1], [0], [0], [1], [0, 0, 1, 1], [], []>} : vector<8x128xf32>, vector<128x128xf32>, vector<8x128xf32> -> vector<8x128xf32>
    %c0_98 = arith.constant 0 : index
    %c0_99 = arith.constant 0 : index
    %c0_100 = arith.constant 0 : index
    %207 = vector.load %arg3[%c0_98, %c0_99, %c0_100] : memref<5x128x384xf32, #tpu.memory_space<vmem>>, vector<1x128x384xf32>
    %208 = vector.shape_cast %207 : vector<1x128x384xf32> to vector<128x384xf32>
    %cst_101 = arith.constant dense<0.000000e+00> : vector<8x384xf32>
    %209 = tpu.matmul %206, %208, %cst_101 {dimension_numbers = #tpu.dot_dimension_numbers<[1], [0], [0], [1], [0, 0, 1, 1], [], []>} : vector<8x128xf32>, vector<128x384xf32>, vector<8x384xf32> -> vector<8x384xf32>
    %c0_102 = arith.constant 0 : index
    %c0_103 = arith.constant 0 : index
    %c0_104 = arith.constant 0 : index
    %210 = vector.load %arg4[%c0_102, %c0_103, %c0_104] : memref<4x1x384xf32, #tpu.memory_space<vmem>>, vector<1x1x384xf32>
    %211 = vector.shape_cast %210 : vector<1x1x384xf32> to vector<1x384xf32>
    %212 = vector.broadcast %211 : vector<1x384xf32> to vector<8x384xf32>
    %213 = arith.addf %209, %212 : vector<8x384xf32>
    %c1_105 = arith.constant 1 : index
    %c0_106 = arith.constant 0 : index
    %c0_107 = arith.constant 0 : index
    %214 = vector.load %arg3[%c1_105, %c0_106, %c0_107] : memref<5x128x384xf32, #tpu.memory_space<vmem>>, vector<1x128x384xf32>
    %215 = vector.shape_cast %214 : vector<1x128x384xf32> to vector<128x384xf32>
    %cst_108 = arith.constant dense<0.000000e+00> : vector<8x384xf32>
    %216 = tpu.matmul %197, %215, %cst_108 {dimension_numbers = #tpu.dot_dimension_numbers<[1], [0], [0], [1], [0, 0, 1, 1], [], []>} : vector<8x128xf32>, vector<128x384xf32>, vector<8x384xf32> -> vector<8x384xf32>
    %c1_109 = arith.constant 1 : index
    %c0_110 = arith.constant 0 : index
    %c0_111 = arith.constant 0 : index
    %217 = vector.load %arg4[%c1_109, %c0_110, %c0_111] : memref<4x1x384xf32, #tpu.memory_space<vmem>>, vector<1x1x384xf32>
    %218 = vector.shape_cast %217 : vector<1x1x384xf32> to vector<1x384xf32>
    %219 = vector.broadcast %218 : vector<1x384xf32> to vector<8x384xf32>
    %220 = arith.addf %216, %219 : vector<8x384xf32>
    %221 = vector.extract_strided_slice %213 {offsets = [0, 0], sizes = [8, 128], strides = [1, 1]} : vector<8x384xf32> to vector<8x128xf32>
    %222 = vector.extract_strided_slice %220 {offsets = [0, 0], sizes = [8, 128], strides = [1, 1]} : vector<8x384xf32> to vector<8x128xf32>
    %223 = arith.addf %221, %222 : vector<8x128xf32>
    %224 = arith.negf %223 : vector<8x128xf32>
    %225 = math.exp %224 : vector<8x128xf32>
    %cst_112 = arith.constant 1.000000e+00 : f32
    %226 = vector.broadcast %cst_112 : f32 to vector<8x128xf32>
    %227 = arith.addf %226, %225 : vector<8x128xf32>
    %228 = arith.divf %226, %227 : vector<8x128xf32>
    %229 = vector.extract_strided_slice %213 {offsets = [0, 128], sizes = [8, 128], strides = [1, 1]} : vector<8x384xf32> to vector<8x128xf32>
    %230 = vector.extract_strided_slice %220 {offsets = [0, 128], sizes = [8, 128], strides = [1, 1]} : vector<8x384xf32> to vector<8x128xf32>
    %231 = arith.addf %229, %230 : vector<8x128xf32>
    %232 = arith.negf %231 : vector<8x128xf32>
    %233 = math.exp %232 : vector<8x128xf32>
    %cst_113 = arith.constant 1.000000e+00 : f32
    %234 = vector.broadcast %cst_113 : f32 to vector<8x128xf32>
    %235 = arith.addf %234, %233 : vector<8x128xf32>
    %236 = arith.divf %234, %235 : vector<8x128xf32>
    %237 = vector.extract_strided_slice %213 {offsets = [0, 256], sizes = [8, 128], strides = [1, 1]} : vector<8x384xf32> to vector<8x128xf32>
    %238 = vector.extract_strided_slice %220 {offsets = [0, 256], sizes = [8, 128], strides = [1, 1]} : vector<8x384xf32> to vector<8x128xf32>
    %239 = arith.mulf %228, %238 : vector<8x128xf32>
    %240 = arith.addf %237, %239 : vector<8x128xf32>
    %241 = math.tanh %240 : vector<8x128xf32>
    %cst_114 = arith.constant 1.000000e+00 : f32
    %242 = vector.broadcast %cst_114 : f32 to vector<8x128xf32>
    %243 = arith.subf %242, %236 : vector<8x128xf32>
    %244 = arith.mulf %243, %241 : vector<8x128xf32>
    %245 = arith.mulf %236, %197 : vector<8x128xf32>
    %246 = arith.addf %244, %245 : vector<8x128xf32>
    %c5 = arith.constant 5 : index
    %c0_115 = arith.constant 0 : index
    %c0_116 = arith.constant 0 : index
    %247 = vector.load %arg1[%c5, %c0_115, %c0_116] : memref<15x8x1xi32, #tpu.memory_space<vmem>>, vector<1x8x1xi32>
    %248 = vector.shape_cast %247 : vector<1x8x1xi32> to vector<8x1xi32>
    %249 = vector.broadcast %248 : vector<8x1xi32> to vector<8x128xi32>
    %250 = arith.cmpi eq, %249, %0 : vector<8x128xi32>
    %251 = arith.extui %250 : vector<8x128xi1> to vector<8x128xi32>
    %252 = arith.sitofp %251 : vector<8x128xi32> to vector<8x128xf32>
    %c0_117 = arith.constant 0 : index
    %c0_118 = arith.constant 0 : index
    %c0_119 = arith.constant 0 : index
    %253 = vector.load %arg2[%c0_117, %c0_118, %c0_119] : memref<2x128x128xf32, #tpu.memory_space<vmem>>, vector<1x128x128xf32>
    %254 = vector.shape_cast %253 : vector<1x128x128xf32> to vector<128x128xf32>
    %cst_120 = arith.constant dense<0.000000e+00> : vector<8x128xf32>
    %255 = tpu.matmul %252, %254, %cst_120 {dimension_numbers = #tpu.dot_dimension_numbers<[1], [0], [0], [1], [0, 0, 1, 1], [], []>} : vector<8x128xf32>, vector<128x128xf32>, vector<8x128xf32> -> vector<8x128xf32>
    %c0_121 = arith.constant 0 : index
    %c0_122 = arith.constant 0 : index
    %c0_123 = arith.constant 0 : index
    %256 = vector.load %arg3[%c0_121, %c0_122, %c0_123] : memref<5x128x384xf32, #tpu.memory_space<vmem>>, vector<1x128x384xf32>
    %257 = vector.shape_cast %256 : vector<1x128x384xf32> to vector<128x384xf32>
    %cst_124 = arith.constant dense<0.000000e+00> : vector<8x384xf32>
    %258 = tpu.matmul %255, %257, %cst_124 {dimension_numbers = #tpu.dot_dimension_numbers<[1], [0], [0], [1], [0, 0, 1, 1], [], []>} : vector<8x128xf32>, vector<128x384xf32>, vector<8x384xf32> -> vector<8x384xf32>
    %c0_125 = arith.constant 0 : index
    %c0_126 = arith.constant 0 : index
    %c0_127 = arith.constant 0 : index
    %259 = vector.load %arg4[%c0_125, %c0_126, %c0_127] : memref<4x1x384xf32, #tpu.memory_space<vmem>>, vector<1x1x384xf32>
    %260 = vector.shape_cast %259 : vector<1x1x384xf32> to vector<1x384xf32>
    %261 = vector.broadcast %260 : vector<1x384xf32> to vector<8x384xf32>
    %262 = arith.addf %258, %261 : vector<8x384xf32>
    %c1_128 = arith.constant 1 : index
    %c0_129 = arith.constant 0 : index
    %c0_130 = arith.constant 0 : index
    %263 = vector.load %arg3[%c1_128, %c0_129, %c0_130] : memref<5x128x384xf32, #tpu.memory_space<vmem>>, vector<1x128x384xf32>
    %264 = vector.shape_cast %263 : vector<1x128x384xf32> to vector<128x384xf32>
    %cst_131 = arith.constant dense<0.000000e+00> : vector<8x384xf32>
    %265 = tpu.matmul %246, %264, %cst_131 {dimension_numbers = #tpu.dot_dimension_numbers<[1], [0], [0], [1], [0, 0, 1, 1], [], []>} : vector<8x128xf32>, vector<128x384xf32>, vector<8x384xf32> -> vector<8x384xf32>
    %c1_132 = arith.constant 1 : index
    %c0_133 = arith.constant 0 : index
    %c0_134 = arith.constant 0 : index
    %266 = vector.load %arg4[%c1_132, %c0_133, %c0_134] : memref<4x1x384xf32, #tpu.memory_space<vmem>>, vector<1x1x384xf32>
    %267 = vector.shape_cast %266 : vector<1x1x384xf32> to vector<1x384xf32>
    %268 = vector.broadcast %267 : vector<1x384xf32> to vector<8x384xf32>
    %269 = arith.addf %265, %268 : vector<8x384xf32>
    %270 = vector.extract_strided_slice %262 {offsets = [0, 0], sizes = [8, 128], strides = [1, 1]} : vector<8x384xf32> to vector<8x128xf32>
    %271 = vector.extract_strided_slice %269 {offsets = [0, 0], sizes = [8, 128], strides = [1, 1]} : vector<8x384xf32> to vector<8x128xf32>
    %272 = arith.addf %270, %271 : vector<8x128xf32>
    %273 = arith.negf %272 : vector<8x128xf32>
    %274 = math.exp %273 : vector<8x128xf32>
    %cst_135 = arith.constant 1.000000e+00 : f32
    %275 = vector.broadcast %cst_135 : f32 to vector<8x128xf32>
    %276 = arith.addf %275, %274 : vector<8x128xf32>
    %277 = arith.divf %275, %276 : vector<8x128xf32>
    %278 = vector.extract_strided_slice %262 {offsets = [0, 128], sizes = [8, 128], strides = [1, 1]} : vector<8x384xf32> to vector<8x128xf32>
    %279 = vector.extract_strided_slice %269 {offsets = [0, 128], sizes = [8, 128], strides = [1, 1]} : vector<8x384xf32> to vector<8x128xf32>
    %280 = arith.addf %278, %279 : vector<8x128xf32>
    %281 = arith.negf %280 : vector<8x128xf32>
    %282 = math.exp %281 : vector<8x128xf32>
    %cst_136 = arith.constant 1.000000e+00 : f32
    %283 = vector.broadcast %cst_136 : f32 to vector<8x128xf32>
    %284 = arith.addf %283, %282 : vector<8x128xf32>
    %285 = arith.divf %283, %284 : vector<8x128xf32>
    %286 = vector.extract_strided_slice %262 {offsets = [0, 256], sizes = [8, 128], strides = [1, 1]} : vector<8x384xf32> to vector<8x128xf32>
    %287 = vector.extract_strided_slice %269 {offsets = [0, 256], sizes = [8, 128], strides = [1, 1]} : vector<8x384xf32> to vector<8x128xf32>
    %288 = arith.mulf %277, %287 : vector<8x128xf32>
    %289 = arith.addf %286, %288 : vector<8x128xf32>
    %290 = math.tanh %289 : vector<8x128xf32>
    %cst_137 = arith.constant 1.000000e+00 : f32
    %291 = vector.broadcast %cst_137 : f32 to vector<8x128xf32>
    %292 = arith.subf %291, %285 : vector<8x128xf32>
    %293 = arith.mulf %292, %290 : vector<8x128xf32>
    %294 = arith.mulf %285, %246 : vector<8x128xf32>
    %295 = arith.addf %293, %294 : vector<8x128xf32>
    %c6 = arith.constant 6 : index
    %c0_138 = arith.constant 0 : index
    %c0_139 = arith.constant 0 : index
    %296 = vector.load %arg1[%c6, %c0_138, %c0_139] : memref<15x8x1xi32, #tpu.memory_space<vmem>>, vector<1x8x1xi32>
    %297 = vector.shape_cast %296 : vector<1x8x1xi32> to vector<8x1xi32>
    %298 = vector.broadcast %297 : vector<8x1xi32> to vector<8x128xi32>
    %299 = arith.cmpi eq, %298, %0 : vector<8x128xi32>
    %300 = arith.extui %299 : vector<8x128xi1> to vector<8x128xi32>
    %301 = arith.sitofp %300 : vector<8x128xi32> to vector<8x128xf32>
    %c0_140 = arith.constant 0 : index
    %c0_141 = arith.constant 0 : index
    %c0_142 = arith.constant 0 : index
    %302 = vector.load %arg2[%c0_140, %c0_141, %c0_142] : memref<2x128x128xf32, #tpu.memory_space<vmem>>, vector<1x128x128xf32>
    %303 = vector.shape_cast %302 : vector<1x128x128xf32> to vector<128x128xf32>
    %cst_143 = arith.constant dense<0.000000e+00> : vector<8x128xf32>
    %304 = tpu.matmul %301, %303, %cst_143 {dimension_numbers = #tpu.dot_dimension_numbers<[1], [0], [0], [1], [0, 0, 1, 1], [], []>} : vector<8x128xf32>, vector<128x128xf32>, vector<8x128xf32> -> vector<8x128xf32>
    %c0_144 = arith.constant 0 : index
    %c0_145 = arith.constant 0 : index
    %c0_146 = arith.constant 0 : index
    %305 = vector.load %arg3[%c0_144, %c0_145, %c0_146] : memref<5x128x384xf32, #tpu.memory_space<vmem>>, vector<1x128x384xf32>
    %306 = vector.shape_cast %305 : vector<1x128x384xf32> to vector<128x384xf32>
    %cst_147 = arith.constant dense<0.000000e+00> : vector<8x384xf32>
    %307 = tpu.matmul %304, %306, %cst_147 {dimension_numbers = #tpu.dot_dimension_numbers<[1], [0], [0], [1], [0, 0, 1, 1], [], []>} : vector<8x128xf32>, vector<128x384xf32>, vector<8x384xf32> -> vector<8x384xf32>
    %c0_148 = arith.constant 0 : index
    %c0_149 = arith.constant 0 : index
    %c0_150 = arith.constant 0 : index
    %308 = vector.load %arg4[%c0_148, %c0_149, %c0_150] : memref<4x1x384xf32, #tpu.memory_space<vmem>>, vector<1x1x384xf32>
    %309 = vector.shape_cast %308 : vector<1x1x384xf32> to vector<1x384xf32>
    %310 = vector.broadcast %309 : vector<1x384xf32> to vector<8x384xf32>
    %311 = arith.addf %307, %310 : vector<8x384xf32>
    %c1_151 = arith.constant 1 : index
    %c0_152 = arith.constant 0 : index
    %c0_153 = arith.constant 0 : index
    %312 = vector.load %arg3[%c1_151, %c0_152, %c0_153] : memref<5x128x384xf32, #tpu.memory_space<vmem>>, vector<1x128x384xf32>
    %313 = vector.shape_cast %312 : vector<1x128x384xf32> to vector<128x384xf32>
    %cst_154 = arith.constant dense<0.000000e+00> : vector<8x384xf32>
    %314 = tpu.matmul %295, %313, %cst_154 {dimension_numbers = #tpu.dot_dimension_numbers<[1], [0], [0], [1], [0, 0, 1, 1], [], []>} : vector<8x128xf32>, vector<128x384xf32>, vector<8x384xf32> -> vector<8x384xf32>
    %c1_155 = arith.constant 1 : index
    %c0_156 = arith.constant 0 : index
    %c0_157 = arith.constant 0 : index
    %315 = vector.load %arg4[%c1_155, %c0_156, %c0_157] : memref<4x1x384xf32, #tpu.memory_space<vmem>>, vector<1x1x384xf32>
    %316 = vector.shape_cast %315 : vector<1x1x384xf32> to vector<1x384xf32>
    %317 = vector.broadcast %316 : vector<1x384xf32> to vector<8x384xf32>
    %318 = arith.addf %314, %317 : vector<8x384xf32>
    %319 = vector.extract_strided_slice %311 {offsets = [0, 0], sizes = [8, 128], strides = [1, 1]} : vector<8x384xf32> to vector<8x128xf32>
    %320 = vector.extract_strided_slice %318 {offsets = [0, 0], sizes = [8, 128], strides = [1, 1]} : vector<8x384xf32> to vector<8x128xf32>
    %321 = arith.addf %319, %320 : vector<8x128xf32>
    %322 = arith.negf %321 : vector<8x128xf32>
    %323 = math.exp %322 : vector<8x128xf32>
    %cst_158 = arith.constant 1.000000e+00 : f32
    %324 = vector.broadcast %cst_158 : f32 to vector<8x128xf32>
    %325 = arith.addf %324, %323 : vector<8x128xf32>
    %326 = arith.divf %324, %325 : vector<8x128xf32>
    %327 = vector.extract_strided_slice %311 {offsets = [0, 128], sizes = [8, 128], strides = [1, 1]} : vector<8x384xf32> to vector<8x128xf32>
    %328 = vector.extract_strided_slice %318 {offsets = [0, 128], sizes = [8, 128], strides = [1, 1]} : vector<8x384xf32> to vector<8x128xf32>
    %329 = arith.addf %327, %328 : vector<8x128xf32>
    %330 = arith.negf %329 : vector<8x128xf32>
    %331 = math.exp %330 : vector<8x128xf32>
    %cst_159 = arith.constant 1.000000e+00 : f32
    %332 = vector.broadcast %cst_159 : f32 to vector<8x128xf32>
    %333 = arith.addf %332, %331 : vector<8x128xf32>
    %334 = arith.divf %332, %333 : vector<8x128xf32>
    %335 = vector.extract_strided_slice %311 {offsets = [0, 256], sizes = [8, 128], strides = [1, 1]} : vector<8x384xf32> to vector<8x128xf32>
    %336 = vector.extract_strided_slice %318 {offsets = [0, 256], sizes = [8, 128], strides = [1, 1]} : vector<8x384xf32> to vector<8x128xf32>
    %337 = arith.mulf %326, %336 : vector<8x128xf32>
    %338 = arith.addf %335, %337 : vector<8x128xf32>
    %339 = math.tanh %338 : vector<8x128xf32>
    %cst_160 = arith.constant 1.000000e+00 : f32
    %340 = vector.broadcast %cst_160 : f32 to vector<8x128xf32>
    %341 = arith.subf %340, %334 : vector<8x128xf32>
    %342 = arith.mulf %341, %339 : vector<8x128xf32>
    %343 = arith.mulf %334, %295 : vector<8x128xf32>
    %344 = arith.addf %342, %343 : vector<8x128xf32>
    %cst_161 = arith.constant 0.000000e+00 : f32
    %345 = vector.broadcast %cst_161 : f32 to vector<8x128xf32>
    %c0_162 = arith.constant 0 : index
    %c0_163 = arith.constant 0 : index
    %c0_164 = arith.constant 0 : index
    %346 = vector.load %arg7[%c0_162, %c0_163, %c0_164] : memref<8x8x128xf32, #tpu.memory_space<vmem>>, vector<1x8x128xf32>
    %347 = vector.shape_cast %346 : vector<1x8x128xf32> to vector<8x128xf32>
    %348 = vector.shape_cast %345 : vector<8x128xf32> to vector<1x8x128xf32>
    tpu.vector_store %arg7[%c0_162, %c0_163, %c0_164], %348 {strides = array<i32>} : memref<8x8x128xf32, #tpu.memory_space<vmem>>, vector<1x8x128xf32>,
    %c3_165 = arith.constant 3 : index
    %c0_166 = arith.constant 0 : index
    %c0_167 = arith.constant 0 : index
    %349 = vector.load %arg3[%c3_165, %c0_166, %c0_167] : memref<5x128x384xf32, #tpu.memory_space<vmem>>, vector<1x128x384xf32>
    %350 = vector.shape_cast %349 : vector<1x128x384xf32> to vector<128x384xf32>
    %cst_168 = arith.constant dense<0.000000e+00> : vector<8x384xf32>
    %351 = tpu.matmul %344, %350, %cst_168 {dimension_numbers = #tpu.dot_dimension_numbers<[1], [0], [0], [1], [0, 0, 1, 1], [], []>} : vector<8x128xf32>, vector<128x384xf32>, vector<8x384xf32> -> vector<8x384xf32>
    %c2_169 = arith.constant 2 : index
    %c0_170 = arith.constant 0 : index
    %c0_171 = arith.constant 0 : index
    %352 = vector.load %arg4[%c2_169, %c0_170, %c0_171] : memref<4x1x384xf32, #tpu.memory_space<vmem>>, vector<1x1x384xf32>
    %353 = vector.shape_cast %352 : vector<1x1x384xf32> to vector<1x384xf32>
    %354 = vector.broadcast %353 : vector<1x384xf32> to vector<8x384xf32>
    %355 = arith.addf %351, %354 : vector<8x384xf32>
    %c256 = arith.constant 256 : index
    %c0_172 = arith.constant 0 : index
    %356 = vector.load %arg5[%c256, %c0_172] : memref<384x128xf32, #tpu.memory_space<vmem>>, vector<128x128xf32>
    %cst_173 = arith.constant dense<0.000000e+00> : vector<8x128xf32>
    %357 = tpu.matmul %344, %356, %cst_173 {dimension_numbers = #tpu.dot_dimension_numbers<[1], [0], [0], [1], [0, 0, 1, 1], [], []>} : vector<8x128xf32>, vector<128x128xf32>, vector<8x128xf32> -> vector<8x128xf32>
    %c0_174 = arith.constant 0 : index
    %c0_175 = arith.constant 0 : index
    %358 = vector.load %arg6[%c0_174, %c0_175] : memref<1x128xf32, #tpu.memory_space<vmem>>, vector<1x128xf32>
    %359 = vector.broadcast %358 : vector<1x128xf32> to vector<8x128xf32>
    %360 = arith.addf %357, %359 : vector<8x128xf32>
    %c7 = arith.constant 7 : index
    %c0_176 = arith.constant 0 : index
    %c0_177 = arith.constant 0 : index
    %361 = vector.load %arg1[%c7, %c0_176, %c0_177] : memref<15x8x1xi32, #tpu.memory_space<vmem>>, vector<1x8x1xi32>
    %362 = vector.shape_cast %361 : vector<1x8x1xi32> to vector<8x1xi32>
    %363 = vector.broadcast %362 : vector<8x1xi32> to vector<8x128xi32>
    %364 = arith.cmpi eq, %363, %0 : vector<8x128xi32>
    %365 = arith.extui %364 : vector<8x128xi1> to vector<8x128xi32>
    %366 = arith.sitofp %365 : vector<8x128xi32> to vector<8x128xf32>
    %c1_178 = arith.constant 1 : index
    %c0_179 = arith.constant 0 : index
    %c0_180 = arith.constant 0 : index
    %367 = vector.load %arg2[%c1_178, %c0_179, %c0_180] : memref<2x128x128xf32, #tpu.memory_space<vmem>>, vector<1x128x128xf32>
    %368 = vector.shape_cast %367 : vector<1x128x128xf32> to vector<128x128xf32>
    %cst_181 = arith.constant dense<0.000000e+00> : vector<8x128xf32>
    %369 = tpu.matmul %366, %368, %cst_181 {dimension_numbers = #tpu.dot_dimension_numbers<[1], [0], [0], [1], [0, 0, 1, 1], [], []>} : vector<8x128xf32>, vector<128x128xf32>, vector<8x128xf32> -> vector<8x128xf32>
    %c2_182 = arith.constant 2 : index
    %c0_183 = arith.constant 0 : index
    %c0_184 = arith.constant 0 : index
    %370 = vector.load %arg3[%c2_182, %c0_183, %c0_184] : memref<5x128x384xf32, #tpu.memory_space<vmem>>, vector<1x128x384xf32>
    %371 = vector.shape_cast %370 : vector<1x128x384xf32> to vector<128x384xf32>
    %cst_185 = arith.constant dense<0.000000e+00> : vector<8x384xf32>
    %372 = tpu.matmul %369, %371, %cst_185 {dimension_numbers = #tpu.dot_dimension_numbers<[1], [0], [0], [1], [0, 0, 1, 1], [], []>} : vector<8x128xf32>, vector<128x384xf32>, vector<8x384xf32> -> vector<8x384xf32>
    %373 = arith.addf %372, %355 : vector<8x384xf32>
    %c4_186 = arith.constant 4 : index
    %c0_187 = arith.constant 0 : index
    %c0_188 = arith.constant 0 : index
    %374 = vector.load %arg3[%c4_186, %c0_187, %c0_188] : memref<5x128x384xf32, #tpu.memory_space<vmem>>, vector<1x128x384xf32>
    %375 = vector.shape_cast %374 : vector<1x128x384xf32> to vector<128x384xf32>
    %cst_189 = arith.constant dense<0.000000e+00> : vector<8x384xf32>
    %376 = tpu.matmul %344, %375, %cst_189 {dimension_numbers = #tpu.dot_dimension_numbers<[1], [0], [0], [1], [0, 0, 1, 1], [], []>} : vector<8x128xf32>, vector<128x384xf32>, vector<8x384xf32> -> vector<8x384xf32>
    %c3_190 = arith.constant 3 : index
    %c0_191 = arith.constant 0 : index
    %c0_192 = arith.constant 0 : index
    %377 = vector.load %arg4[%c3_190, %c0_191, %c0_192] : memref<4x1x384xf32, #tpu.memory_space<vmem>>, vector<1x1x384xf32>
    %378 = vector.shape_cast %377 : vector<1x1x384xf32> to vector<1x384xf32>
    %379 = vector.broadcast %378 : vector<1x384xf32> to vector<8x384xf32>
    %380 = arith.addf %376, %379 : vector<8x384xf32>
    %381 = vector.extract_strided_slice %373 {offsets = [0, 0], sizes = [8, 128], strides = [1, 1]} : vector<8x384xf32> to vector<8x128xf32>
    %382 = vector.extract_strided_slice %380 {offsets = [0, 0], sizes = [8, 128], strides = [1, 1]} : vector<8x384xf32> to vector<8x128xf32>
    %383 = arith.addf %381, %382 : vector<8x128xf32>
    %384 = arith.negf %383 : vector<8x128xf32>
    %385 = math.exp %384 : vector<8x128xf32>
    %cst_193 = arith.constant 1.000000e+00 : f32
    %386 = vector.broadcast %cst_193 : f32 to vector<8x128xf32>
    %387 = arith.addf %386, %385 : vector<8x128xf32>
    %388 = arith.divf %386, %387 : vector<8x128xf32>
    %389 = vector.extract_strided_slice %373 {offsets = [0, 128], sizes = [8, 128], strides = [1, 1]} : vector<8x384xf32> to vector<8x128xf32>
    %390 = vector.extract_strided_slice %380 {offsets = [0, 128], sizes = [8, 128], strides = [1, 1]} : vector<8x384xf32> to vector<8x128xf32>
    %391 = arith.addf %389, %390 : vector<8x128xf32>
    %392 = arith.negf %391 : vector<8x128xf32>
    %393 = math.exp %392 : vector<8x128xf32>
    %cst_194 = arith.constant 1.000000e+00 : f32
    %394 = vector.broadcast %cst_194 : f32 to vector<8x128xf32>
    %395 = arith.addf %394, %393 : vector<8x128xf32>
    %396 = arith.divf %394, %395 : vector<8x128xf32>
    %397 = vector.extract_strided_slice %373 {offsets = [0, 256], sizes = [8, 128], strides = [1, 1]} : vector<8x384xf32> to vector<8x128xf32>
    %398 = vector.extract_strided_slice %380 {offsets = [0, 256], sizes = [8, 128], strides = [1, 1]} : vector<8x384xf32> to vector<8x128xf32>
    %399 = arith.mulf %388, %398 : vector<8x128xf32>
    %400 = arith.addf %397, %399 : vector<8x128xf32>
    %401 = math.tanh %400 : vector<8x128xf32>
    %cst_195 = arith.constant 1.000000e+00 : f32
    %402 = vector.broadcast %cst_195 : f32 to vector<8x128xf32>
    %403 = arith.subf %402, %396 : vector<8x128xf32>
    %404 = arith.mulf %403, %401 : vector<8x128xf32>
    %405 = arith.mulf %396, %344 : vector<8x128xf32>
    %406 = arith.addf %404, %405 : vector<8x128xf32>
    %407 = tpu.concatenate %369, %406 in 1 : vector<8x128xf32>, vector<8x128xf32> -> vector<8x256xf32>
    %c0_196 = arith.constant 0 : index
    %c0_197 = arith.constant 0 : index
    %408 = vector.load %arg5[%c0_196, %c0_197] : memref<384x128xf32, #tpu.memory_space<vmem>>, vector<256x128xf32>
    %cst_198 = arith.constant dense<0.000000e+00> : vector<8x128xf32>
    %409 = tpu.matmul %407, %408, %cst_198 {dimension_numbers = #tpu.dot_dimension_numbers<[1], [0], [0], [1], [0, 0, 1, 1], [], []>} : vector<8x256xf32>, vector<256x128xf32>, vector<8x128xf32> -> vector<8x128xf32>
    %410 = arith.addf %409, %360 : vector<8x128xf32>
    %c1_199 = arith.constant 1 : index
    %c0_200 = arith.constant 0 : index
    %c0_201 = arith.constant 0 : index
    %411 = vector.load %arg7[%c1_199, %c0_200, %c0_201] : memref<8x8x128xf32, #tpu.memory_space<vmem>>, vector<1x8x128xf32>
    %412 = vector.shape_cast %411 : vector<1x8x128xf32> to vector<8x128xf32>
    %413 = vector.shape_cast %410 : vector<8x128xf32> to vector<1x8x128xf32>
    tpu.vector_store %arg7[%c1_199, %c0_200, %c0_201], %413 {strides = array<i32>} : memref<8x8x128xf32, #tpu.memory_space<vmem>>, vector<1x8x128xf32>,
    %cst_202 = arith.constant dense<0xFF800000> : vector<8xf32>
    %414 = vector.multi_reduction <maximumf>, %410, %cst_202 [1] : vector<8x128xf32> to vector<8xf32>
    %415 = vector.shape_cast %414 : vector<8xf32> to vector<8x1xf32>
    %416 = vector.broadcast %415 : vector<8x1xf32> to vector<8x128xf32>
    %417 = arith.cmpf oeq, %410, %416 : vector<8x128xf32>
    %c128_i32 = arith.constant 128 : i32
    %418 = vector.broadcast %c128_i32 : i32 to vector<8x128xi32>
    %419 = arith.select %417, %0, %418 : vector<8x128xi1>, vector<8x128xi32>
    %cst_203 = arith.constant dense<2147483647> : vector<8xi32>
    %420 = vector.multi_reduction <minsi>, %419, %cst_203 [1] : vector<8x128xi32> to vector<8xi32>
    %421 = vector.shape_cast %420 : vector<8xi32> to vector<8x1xi32>
    %422 = vector.broadcast %421 : vector<8x1xi32> to vector<8x128xi32>
    %423 = arith.cmpi eq, %0, %422 : vector<8x128xi32>
    %424 = arith.extui %423 : vector<8x128xi1> to vector<8x128xi32>
    %425 = arith.sitofp %424 : vector<8x128xi32> to vector<8x128xf32>
    %c1_204 = arith.constant 1 : index
    %426 = memref.load %arg0[%c1_204] : memref<8xi32, #tpu.memory_space<smem>>
    %c0_i32 = arith.constant 0 : i32
    %427 = arith.cmpi ne, %426, %c0_i32 : i32
    %428 = arith.extui %427 : i1 to i32
    %429 = arith.sitofp %428 : i32 to f32
    %c8 = arith.constant 8 : index
    %c0_205 = arith.constant 0 : index
    %c0_206 = arith.constant 0 : index
    %430 = vector.load %arg1[%c8, %c0_205, %c0_206] : memref<15x8x1xi32, #tpu.memory_space<vmem>>, vector<1x8x1xi32>
    %431 = vector.shape_cast %430 : vector<1x8x1xi32> to vector<8x1xi32>
    %432 = vector.broadcast %431 : vector<8x1xi32> to vector<8x128xi32>
    %433 = arith.cmpi eq, %432, %0 : vector<8x128xi32>
    %434 = arith.extui %433 : vector<8x128xi1> to vector<8x128xi32>
    %435 = arith.sitofp %434 : vector<8x128xi32> to vector<8x128xf32>
    %436 = vector.broadcast %429 : f32 to vector<8x128xf32>
    %437 = arith.mulf %436, %435 : vector<8x128xf32>
    %cst_207 = arith.constant 1.000000e+00 : f32
    %438 = arith.subf %cst_207, %429 : f32
    %439 = vector.broadcast %438 : f32 to vector<8x128xf32>
    %440 = arith.mulf %439, %425 : vector<8x128xf32>
    %441 = arith.addf %437, %440 : vector<8x128xf32>
    %c1_208 = arith.constant 1 : index
    %c0_209 = arith.constant 0 : index
    %c0_210 = arith.constant 0 : index
    %442 = vector.load %arg2[%c1_208, %c0_209, %c0_210] : memref<2x128x128xf32, #tpu.memory_space<vmem>>, vector<1x128x128xf32>
    %443 = vector.shape_cast %442 : vector<1x128x128xf32> to vector<128x128xf32>
    %cst_211 = arith.constant dense<0.000000e+00> : vector<8x128xf32>
    %444 = tpu.matmul %441, %443, %cst_211 {dimension_numbers = #tpu.dot_dimension_numbers<[1], [0], [0], [1], [0, 0, 1, 1], [], []>} : vector<8x128xf32>, vector<128x128xf32>, vector<8x128xf32> -> vector<8x128xf32>
    %c2_212 = arith.constant 2 : index
    %c0_213 = arith.constant 0 : index
    %c0_214 = arith.constant 0 : index
    %445 = vector.load %arg3[%c2_212, %c0_213, %c0_214] : memref<5x128x384xf32, #tpu.memory_space<vmem>>, vector<1x128x384xf32>
    %446 = vector.shape_cast %445 : vector<1x128x384xf32> to vector<128x384xf32>
    %cst_215 = arith.constant dense<0.000000e+00> : vector<8x384xf32>
    %447 = tpu.matmul %444, %446, %cst_215 {dimension_numbers = #tpu.dot_dimension_numbers<[1], [0], [0], [1], [0, 0, 1, 1], [], []>} : vector<8x128xf32>, vector<128x384xf32>, vector<8x384xf32> -> vector<8x384xf32>
    %448 = arith.addf %447, %355 : vector<8x384xf32>
    %c4_216 = arith.constant 4 : index
    %c0_217 = arith.constant 0 : index
    %c0_218 = arith.constant 0 : index
    %449 = vector.load %arg3[%c4_216, %c0_217, %c0_218] : memref<5x128x384xf32, #tpu.memory_space<vmem>>, vector<1x128x384xf32>
    %450 = vector.shape_cast %449 : vector<1x128x384xf32> to vector<128x384xf32>
    %cst_219 = arith.constant dense<0.000000e+00> : vector<8x384xf32>
    %451 = tpu.matmul %406, %450, %cst_219 {dimension_numbers = #tpu.dot_dimension_numbers<[1], [0], [0], [1], [0, 0, 1, 1], [], []>} : vector<8x128xf32>, vector<128x384xf32>, vector<8x384xf32> -> vector<8x384xf32>
    %c3_220 = arith.constant 3 : index
    %c0_221 = arith.constant 0 : index
    %c0_222 = arith.constant 0 : index
    %452 = vector.load %arg4[%c3_220, %c0_221, %c0_222] : memref<4x1x384xf32, #tpu.memory_space<vmem>>, vector<1x1x384xf32>
    %453 = vector.shape_cast %452 : vector<1x1x384xf32> to vector<1x384xf32>
    %454 = vector.broadcast %453 : vector<1x384xf32> to vector<8x384xf32>
    %455 = arith.addf %451, %454 : vector<8x384xf32>
    %456 = vector.extract_strided_slice %448 {offsets = [0, 0], sizes = [8, 128], strides = [1, 1]} : vector<8x384xf32> to vector<8x128xf32>
    %457 = vector.extract_strided_slice %455 {offsets = [0, 0], sizes = [8, 128], strides = [1, 1]} : vector<8x384xf32> to vector<8x128xf32>
    %458 = arith.addf %456, %457 : vector<8x128xf32>
    %459 = arith.negf %458 : vector<8x128xf32>
    %460 = math.exp %459 : vector<8x128xf32>
    %cst_223 = arith.constant 1.000000e+00 : f32
    %461 = vector.broadcast %cst_223 : f32 to vector<8x128xf32>
    %462 = arith.addf %461, %460 : vector<8x128xf32>
    %463 = arith.divf %461, %462 : vector<8x128xf32>
    %464 = vector.extract_strided_slice %448 {offsets = [0, 128], sizes = [8, 128], strides = [1, 1]} : vector<8x384xf32> to vector<8x128xf32>
    %465 = vector.extract_strided_slice %455 {offsets = [0, 128], sizes = [8, 128], strides = [1, 1]} : vector<8x384xf32> to vector<8x128xf32>
    %466 = arith.addf %464, %465 : vector<8x128xf32>
    %467 = arith.negf %466 : vector<8x128xf32>
    %468 = math.exp %467 : vector<8x128xf32>
    %cst_224 = arith.constant 1.000000e+00 : f32
    %469 = vector.broadcast %cst_224 : f32 to vector<8x128xf32>
    %470 = arith.addf %469, %468 : vector<8x128xf32>
    %471 = arith.divf %469, %470 : vector<8x128xf32>
    %472 = vector.extract_strided_slice %448 {offsets = [0, 256], sizes = [8, 128], strides = [1, 1]} : vector<8x384xf32> to vector<8x128xf32>
    %473 = vector.extract_strided_slice %455 {offsets = [0, 256], sizes = [8, 128], strides = [1, 1]} : vector<8x384xf32> to vector<8x128xf32>
    %474 = arith.mulf %463, %473 : vector<8x128xf32>
    %475 = arith.addf %472, %474 : vector<8x128xf32>
    %476 = math.tanh %475 : vector<8x128xf32>
    %cst_225 = arith.constant 1.000000e+00 : f32
    %477 = vector.broadcast %cst_225 : f32 to vector<8x128xf32>
    %478 = arith.subf %477, %471 : vector<8x128xf32>
    %479 = arith.mulf %478, %476 : vector<8x128xf32>
    %480 = arith.mulf %471, %406 : vector<8x128xf32>
    %481 = arith.addf %479, %480 : vector<8x128xf32>
    %482 = tpu.concatenate %444, %481 in 1 : vector<8x128xf32>, vector<8x128xf32> -> vector<8x256xf32>
    %c0_226 = arith.constant 0 : index
    %c0_227 = arith.constant 0 : index
    %483 = vector.load %arg5[%c0_226, %c0_227] : memref<384x128xf32, #tpu.memory_space<vmem>>, vector<256x128xf32>
    %cst_228 = arith.constant dense<0.000000e+00> : vector<8x128xf32>
    %484 = tpu.matmul %482, %483, %cst_228 {dimension_numbers = #tpu.dot_dimension_numbers<[1], [0], [0], [1], [0, 0, 1, 1], [], []>} : vector<8x256xf32>, vector<256x128xf32>, vector<8x128xf32> -> vector<8x128xf32>
    %485 = arith.addf %484, %360 : vector<8x128xf32>
    %c2_229 = arith.constant 2 : index
    %c0_230 = arith.constant 0 : index
    %c0_231 = arith.constant 0 : index
    %486 = vector.load %arg7[%c2_229, %c0_230, %c0_231] : memref<8x8x128xf32, #tpu.memory_space<vmem>>, vector<1x8x128xf32>
    %487 = vector.shape_cast %486 : vector<1x8x128xf32> to vector<8x128xf32>
    %488 = vector.shape_cast %485 : vector<8x128xf32> to vector<1x8x128xf32>
    tpu.vector_store %arg7[%c2_229, %c0_230, %c0_231], %488 {strides = array<i32>} : memref<8x8x128xf32, #tpu.memory_space<vmem>>, vector<1x8x128xf32>,
    %cst_232 = arith.constant dense<0xFF800000> : vector<8xf32>
    %489 = vector.multi_reduction <maximumf>, %485, %cst_232 [1] : vector<8x128xf32> to vector<8xf32>
    %490 = vector.shape_cast %489 : vector<8xf32> to vector<8x1xf32>
    %491 = vector.broadcast %490 : vector<8x1xf32> to vector<8x128xf32>
    %492 = arith.cmpf oeq, %485, %491 : vector<8x128xf32>
    %c128_i32_233 = arith.constant 128 : i32
    %493 = vector.broadcast %c128_i32_233 : i32 to vector<8x128xi32>
    %494 = arith.select %492, %0, %493 : vector<8x128xi1>, vector<8x128xi32>
    %cst_234 = arith.constant dense<2147483647> : vector<8xi32>
    %495 = vector.multi_reduction <minsi>, %494, %cst_234 [1] : vector<8x128xi32> to vector<8xi32>
    %496 = vector.shape_cast %495 : vector<8xi32> to vector<8x1xi32>
    %497 = vector.broadcast %496 : vector<8x1xi32> to vector<8x128xi32>
    %498 = arith.cmpi eq, %0, %497 : vector<8x128xi32>
    %499 = arith.extui %498 : vector<8x128xi1> to vector<8x128xi32>
    %500 = arith.sitofp %499 : vector<8x128xi32> to vector<8x128xf32>
    %c2_235 = arith.constant 2 : index
    %501 = memref.load %arg0[%c2_235] : memref<8xi32, #tpu.memory_space<smem>>
    %c0_i32_236 = arith.constant 0 : i32
    %502 = arith.cmpi ne, %501, %c0_i32_236 : i32
    %503 = arith.extui %502 : i1 to i32
    %504 = arith.sitofp %503 : i32 to f32
    %c9 = arith.constant 9 : index
    %c0_237 = arith.constant 0 : index
    %c0_238 = arith.constant 0 : index
    %505 = vector.load %arg1[%c9, %c0_237, %c0_238] : memref<15x8x1xi32, #tpu.memory_space<vmem>>, vector<1x8x1xi32>
    %506 = vector.shape_cast %505 : vector<1x8x1xi32> to vector<8x1xi32>
    %507 = vector.broadcast %506 : vector<8x1xi32> to vector<8x128xi32>
    %508 = arith.cmpi eq, %507, %0 : vector<8x128xi32>
    %509 = arith.extui %508 : vector<8x128xi1> to vector<8x128xi32>
    %510 = arith.sitofp %509 : vector<8x128xi32> to vector<8x128xf32>
    %511 = vector.broadcast %504 : f32 to vector<8x128xf32>
    %512 = arith.mulf %511, %510 : vector<8x128xf32>
    %cst_239 = arith.constant 1.000000e+00 : f32
    %513 = arith.subf %cst_239, %504 : f32
    %514 = vector.broadcast %513 : f32 to vector<8x128xf32>
    %515 = arith.mulf %514, %500 : vector<8x128xf32>
    %516 = arith.addf %512, %515 : vector<8x128xf32>
    %c1_240 = arith.constant 1 : index
    %c0_241 = arith.constant 0 : index
    %c0_242 = arith.constant 0 : index
    %517 = vector.load %arg2[%c1_240, %c0_241, %c0_242] : memref<2x128x128xf32, #tpu.memory_space<vmem>>, vector<1x128x128xf32>
    %518 = vector.shape_cast %517 : vector<1x128x128xf32> to vector<128x128xf32>
    %cst_243 = arith.constant dense<0.000000e+00> : vector<8x128xf32>
    %519 = tpu.matmul %516, %518, %cst_243 {dimension_numbers = #tpu.dot_dimension_numbers<[1], [0], [0], [1], [0, 0, 1, 1], [], []>} : vector<8x128xf32>, vector<128x128xf32>, vector<8x128xf32> -> vector<8x128xf32>
    %c2_244 = arith.constant 2 : index
    %c0_245 = arith.constant 0 : index
    %c0_246 = arith.constant 0 : index
    %520 = vector.load %arg3[%c2_244, %c0_245, %c0_246] : memref<5x128x384xf32, #tpu.memory_space<vmem>>, vector<1x128x384xf32>
    %521 = vector.shape_cast %520 : vector<1x128x384xf32> to vector<128x384xf32>
    %cst_247 = arith.constant dense<0.000000e+00> : vector<8x384xf32>
    %522 = tpu.matmul %519, %521, %cst_247 {dimension_numbers = #tpu.dot_dimension_numbers<[1], [0], [0], [1], [0, 0, 1, 1], [], []>} : vector<8x128xf32>, vector<128x384xf32>, vector<8x384xf32> -> vector<8x384xf32>
    %523 = arith.addf %522, %355 : vector<8x384xf32>
    %c4_248 = arith.constant 4 : index
    %c0_249 = arith.constant 0 : index
    %c0_250 = arith.constant 0 : index
    %524 = vector.load %arg3[%c4_248, %c0_249, %c0_250] : memref<5x128x384xf32, #tpu.memory_space<vmem>>, vector<1x128x384xf32>
    %525 = vector.shape_cast %524 : vector<1x128x384xf32> to vector<128x384xf32>
    %cst_251 = arith.constant dense<0.000000e+00> : vector<8x384xf32>
    %526 = tpu.matmul %481, %525, %cst_251 {dimension_numbers = #tpu.dot_dimension_numbers<[1], [0], [0], [1], [0, 0, 1, 1], [], []>} : vector<8x128xf32>, vector<128x384xf32>, vector<8x384xf32> -> vector<8x384xf32>
    %c3_252 = arith.constant 3 : index
    %c0_253 = arith.constant 0 : index
    %c0_254 = arith.constant 0 : index
    %527 = vector.load %arg4[%c3_252, %c0_253, %c0_254] : memref<4x1x384xf32, #tpu.memory_space<vmem>>, vector<1x1x384xf32>
    %528 = vector.shape_cast %527 : vector<1x1x384xf32> to vector<1x384xf32>
    %529 = vector.broadcast %528 : vector<1x384xf32> to vector<8x384xf32>
    %530 = arith.addf %526, %529 : vector<8x384xf32>
    %531 = vector.extract_strided_slice %523 {offsets = [0, 0], sizes = [8, 128], strides = [1, 1]} : vector<8x384xf32> to vector<8x128xf32>
    %532 = vector.extract_strided_slice %530 {offsets = [0, 0], sizes = [8, 128], strides = [1, 1]} : vector<8x384xf32> to vector<8x128xf32>
    %533 = arith.addf %531, %532 : vector<8x128xf32>
    %534 = arith.negf %533 : vector<8x128xf32>
    %535 = math.exp %534 : vector<8x128xf32>
    %cst_255 = arith.constant 1.000000e+00 : f32
    %536 = vector.broadcast %cst_255 : f32 to vector<8x128xf32>
    %537 = arith.addf %536, %535 : vector<8x128xf32>
    %538 = arith.divf %536, %537 : vector<8x128xf32>
    %539 = vector.extract_strided_slice %523 {offsets = [0, 128], sizes = [8, 128], strides = [1, 1]} : vector<8x384xf32> to vector<8x128xf32>
    %540 = vector.extract_strided_slice %530 {offsets = [0, 128], sizes = [8, 128], strides = [1, 1]} : vector<8x384xf32> to vector<8x128xf32>
    %541 = arith.addf %539, %540 : vector<8x128xf32>
    %542 = arith.negf %541 : vector<8x128xf32>
    %543 = math.exp %542 : vector<8x128xf32>
    %cst_256 = arith.constant 1.000000e+00 : f32
    %544 = vector.broadcast %cst_256 : f32 to vector<8x128xf32>
    %545 = arith.addf %544, %543 : vector<8x128xf32>
    %546 = arith.divf %544, %545 : vector<8x128xf32>
    %547 = vector.extract_strided_slice %523 {offsets = [0, 256], sizes = [8, 128], strides = [1, 1]} : vector<8x384xf32> to vector<8x128xf32>
    %548 = vector.extract_strided_slice %530 {offsets = [0, 256], sizes = [8, 128], strides = [1, 1]} : vector<8x384xf32> to vector<8x128xf32>
    %549 = arith.mulf %538, %548 : vector<8x128xf32>
    %550 = arith.addf %547, %549 : vector<8x128xf32>
    %551 = math.tanh %550 : vector<8x128xf32>
    %cst_257 = arith.constant 1.000000e+00 : f32
    %552 = vector.broadcast %cst_257 : f32 to vector<8x128xf32>
    %553 = arith.subf %552, %546 : vector<8x128xf32>
    %554 = arith.mulf %553, %551 : vector<8x128xf32>
    %555 = arith.mulf %546, %481 : vector<8x128xf32>
    %556 = arith.addf %554, %555 : vector<8x128xf32>
    %557 = tpu.concatenate %519, %556 in 1 : vector<8x128xf32>, vector<8x128xf32> -> vector<8x256xf32>
    %c0_258 = arith.constant 0 : index
    %c0_259 = arith.constant 0 : index
    %558 = vector.load %arg5[%c0_258, %c0_259] : memref<384x128xf32, #tpu.memory_space<vmem>>, vector<256x128xf32>
    %cst_260 = arith.constant dense<0.000000e+00> : vector<8x128xf32>
    %559 = tpu.matmul %557, %558, %cst_260 {dimension_numbers = #tpu.dot_dimension_numbers<[1], [0], [0], [1], [0, 0, 1, 1], [], []>} : vector<8x256xf32>, vector<256x128xf32>, vector<8x128xf32> -> vector<8x128xf32>
    %560 = arith.addf %559, %360 : vector<8x128xf32>
    %c3_261 = arith.constant 3 : index
    %c0_262 = arith.constant 0 : index
    %c0_263 = arith.constant 0 : index
    %561 = vector.load %arg7[%c3_261, %c0_262, %c0_263] : memref<8x8x128xf32, #tpu.memory_space<vmem>>, vector<1x8x128xf32>
    %562 = vector.shape_cast %561 : vector<1x8x128xf32> to vector<8x128xf32>
    %563 = vector.shape_cast %560 : vector<8x128xf32> to vector<1x8x128xf32>
    tpu.vector_store %arg7[%c3_261, %c0_262, %c0_263], %563 {strides = array<i32>} : memref<8x8x128xf32, #tpu.memory_space<vmem>>, vector<1x8x128xf32>,
    %cst_264 = arith.constant dense<0xFF800000> : vector<8xf32>
    %564 = vector.multi_reduction <maximumf>, %560, %cst_264 [1] : vector<8x128xf32> to vector<8xf32>
    %565 = vector.shape_cast %564 : vector<8xf32> to vector<8x1xf32>
    %566 = vector.broadcast %565 : vector<8x1xf32> to vector<8x128xf32>
    %567 = arith.cmpf oeq, %560, %566 : vector<8x128xf32>
    %c128_i32_265 = arith.constant 128 : i32
    %568 = vector.broadcast %c128_i32_265 : i32 to vector<8x128xi32>
    %569 = arith.select %567, %0, %568 : vector<8x128xi1>, vector<8x128xi32>
    %cst_266 = arith.constant dense<2147483647> : vector<8xi32>
    %570 = vector.multi_reduction <minsi>, %569, %cst_266 [1] : vector<8x128xi32> to vector<8xi32>
    %571 = vector.shape_cast %570 : vector<8xi32> to vector<8x1xi32>
    %572 = vector.broadcast %571 : vector<8x1xi32> to vector<8x128xi32>
    %573 = arith.cmpi eq, %0, %572 : vector<8x128xi32>
    %574 = arith.extui %573 : vector<8x128xi1> to vector<8x128xi32>
    %575 = arith.sitofp %574 : vector<8x128xi32> to vector<8x128xf32>
    %c3_267 = arith.constant 3 : index
    %576 = memref.load %arg0[%c3_267] : memref<8xi32, #tpu.memory_space<smem>>
    %c0_i32_268 = arith.constant 0 : i32
    %577 = arith.cmpi ne, %576, %c0_i32_268 : i32
    %578 = arith.extui %577 : i1 to i32
    %579 = arith.sitofp %578 : i32 to f32
    %c10 = arith.constant 10 : index
    %c0_269 = arith.constant 0 : index
    %c0_270 = arith.constant 0 : index
    %580 = vector.load %arg1[%c10, %c0_269, %c0_270] : memref<15x8x1xi32, #tpu.memory_space<vmem>>, vector<1x8x1xi32>
    %581 = vector.shape_cast %580 : vector<1x8x1xi32> to vector<8x1xi32>
    %582 = vector.broadcast %581 : vector<8x1xi32> to vector<8x128xi32>
    %583 = arith.cmpi eq, %582, %0 : vector<8x128xi32>
    %584 = arith.extui %583 : vector<8x128xi1> to vector<8x128xi32>
    %585 = arith.sitofp %584 : vector<8x128xi32> to vector<8x128xf32>
    %586 = vector.broadcast %579 : f32 to vector<8x128xf32>
    %587 = arith.mulf %586, %585 : vector<8x128xf32>
    %cst_271 = arith.constant 1.000000e+00 : f32
    %588 = arith.subf %cst_271, %579 : f32
    %589 = vector.broadcast %588 : f32 to vector<8x128xf32>
    %590 = arith.mulf %589, %575 : vector<8x128xf32>
    %591 = arith.addf %587, %590 : vector<8x128xf32>
    %c1_272 = arith.constant 1 : index
    %c0_273 = arith.constant 0 : index
    %c0_274 = arith.constant 0 : index
    %592 = vector.load %arg2[%c1_272, %c0_273, %c0_274] : memref<2x128x128xf32, #tpu.memory_space<vmem>>, vector<1x128x128xf32>
    %593 = vector.shape_cast %592 : vector<1x128x128xf32> to vector<128x128xf32>
    %cst_275 = arith.constant dense<0.000000e+00> : vector<8x128xf32>
    %594 = tpu.matmul %591, %593, %cst_275 {dimension_numbers = #tpu.dot_dimension_numbers<[1], [0], [0], [1], [0, 0, 1, 1], [], []>} : vector<8x128xf32>, vector<128x128xf32>, vector<8x128xf32> -> vector<8x128xf32>
    %c2_276 = arith.constant 2 : index
    %c0_277 = arith.constant 0 : index
    %c0_278 = arith.constant 0 : index
    %595 = vector.load %arg3[%c2_276, %c0_277, %c0_278] : memref<5x128x384xf32, #tpu.memory_space<vmem>>, vector<1x128x384xf32>
    %596 = vector.shape_cast %595 : vector<1x128x384xf32> to vector<128x384xf32>
    %cst_279 = arith.constant dense<0.000000e+00> : vector<8x384xf32>
    %597 = tpu.matmul %594, %596, %cst_279 {dimension_numbers = #tpu.dot_dimension_numbers<[1], [0], [0], [1], [0, 0, 1, 1], [], []>} : vector<8x128xf32>, vector<128x384xf32>, vector<8x384xf32> -> vector<8x384xf32>
    %598 = arith.addf %597, %355 : vector<8x384xf32>
    %c4_280 = arith.constant 4 : index
    %c0_281 = arith.constant 0 : index
    %c0_282 = arith.constant 0 : index
    %599 = vector.load %arg3[%c4_280, %c0_281, %c0_282] : memref<5x128x384xf32, #tpu.memory_space<vmem>>, vector<1x128x384xf32>
    %600 = vector.shape_cast %599 : vector<1x128x384xf32> to vector<128x384xf32>
    %cst_283 = arith.constant dense<0.000000e+00> : vector<8x384xf32>
    %601 = tpu.matmul %556, %600, %cst_283 {dimension_numbers = #tpu.dot_dimension_numbers<[1], [0], [0], [1], [0, 0, 1, 1], [], []>} : vector<8x128xf32>, vector<128x384xf32>, vector<8x384xf32> -> vector<8x384xf32>
    %c3_284 = arith.constant 3 : index
    %c0_285 = arith.constant 0 : index
    %c0_286 = arith.constant 0 : index
    %602 = vector.load %arg4[%c3_284, %c0_285, %c0_286] : memref<4x1x384xf32, #tpu.memory_space<vmem>>, vector<1x1x384xf32>
    %603 = vector.shape_cast %602 : vector<1x1x384xf32> to vector<1x384xf32>
    %604 = vector.broadcast %603 : vector<1x384xf32> to vector<8x384xf32>
    %605 = arith.addf %601, %604 : vector<8x384xf32>
    %606 = vector.extract_strided_slice %598 {offsets = [0, 0], sizes = [8, 128], strides = [1, 1]} : vector<8x384xf32> to vector<8x128xf32>
    %607 = vector.extract_strided_slice %605 {offsets = [0, 0], sizes = [8, 128], strides = [1, 1]} : vector<8x384xf32> to vector<8x128xf32>
    %608 = arith.addf %606, %607 : vector<8x128xf32>
    %609 = arith.negf %608 : vector<8x128xf32>
    %610 = math.exp %609 : vector<8x128xf32>
    %cst_287 = arith.constant 1.000000e+00 : f32
    %611 = vector.broadcast %cst_287 : f32 to vector<8x128xf32>
    %612 = arith.addf %611, %610 : vector<8x128xf32>
    %613 = arith.divf %611, %612 : vector<8x128xf32>
    %614 = vector.extract_strided_slice %598 {offsets = [0, 128], sizes = [8, 128], strides = [1, 1]} : vector<8x384xf32> to vector<8x128xf32>
    %615 = vector.extract_strided_slice %605 {offsets = [0, 128], sizes = [8, 128], strides = [1, 1]} : vector<8x384xf32> to vector<8x128xf32>
    %616 = arith.addf %614, %615 : vector<8x128xf32>
    %617 = arith.negf %616 : vector<8x128xf32>
    %618 = math.exp %617 : vector<8x128xf32>
    %cst_288 = arith.constant 1.000000e+00 : f32
    %619 = vector.broadcast %cst_288 : f32 to vector<8x128xf32>
    %620 = arith.addf %619, %618 : vector<8x128xf32>
    %621 = arith.divf %619, %620 : vector<8x128xf32>
    %622 = vector.extract_strided_slice %598 {offsets = [0, 256], sizes = [8, 128], strides = [1, 1]} : vector<8x384xf32> to vector<8x128xf32>
    %623 = vector.extract_strided_slice %605 {offsets = [0, 256], sizes = [8, 128], strides = [1, 1]} : vector<8x384xf32> to vector<8x128xf32>
    %624 = arith.mulf %613, %623 : vector<8x128xf32>
    %625 = arith.addf %622, %624 : vector<8x128xf32>
    %626 = math.tanh %625 : vector<8x128xf32>
    %cst_289 = arith.constant 1.000000e+00 : f32
    %627 = vector.broadcast %cst_289 : f32 to vector<8x128xf32>
    %628 = arith.subf %627, %621 : vector<8x128xf32>
    %629 = arith.mulf %628, %626 : vector<8x128xf32>
    %630 = arith.mulf %621, %556 : vector<8x128xf32>
    %631 = arith.addf %629, %630 : vector<8x128xf32>
    %632 = tpu.concatenate %594, %631 in 1 : vector<8x128xf32>, vector<8x128xf32> -> vector<8x256xf32>
    %c0_290 = arith.constant 0 : index
    %c0_291 = arith.constant 0 : index
    %633 = vector.load %arg5[%c0_290, %c0_291] : memref<384x128xf32, #tpu.memory_space<vmem>>, vector<256x128xf32>
    %cst_292 = arith.constant dense<0.000000e+00> : vector<8x128xf32>
    %634 = tpu.matmul %632, %633, %cst_292 {dimension_numbers = #tpu.dot_dimension_numbers<[1], [0], [0], [1], [0, 0, 1, 1], [], []>} : vector<8x256xf32>, vector<256x128xf32>, vector<8x128xf32> -> vector<8x128xf32>
    %635 = arith.addf %634, %360 : vector<8x128xf32>
    %c4_293 = arith.constant 4 : index
    %c0_294 = arith.constant 0 : index
    %c0_295 = arith.constant 0 : index
    %636 = vector.load %arg7[%c4_293, %c0_294, %c0_295] : memref<8x8x128xf32, #tpu.memory_space<vmem>>, vector<1x8x128xf32>
    %637 = vector.shape_cast %636 : vector<1x8x128xf32> to vector<8x128xf32>
    %638 = vector.shape_cast %635 : vector<8x128xf32> to vector<1x8x128xf32>
    tpu.vector_store %arg7[%c4_293, %c0_294, %c0_295], %638 {strides = array<i32>} : memref<8x8x128xf32, #tpu.memory_space<vmem>>, vector<1x8x128xf32>,
    %cst_296 = arith.constant dense<0xFF800000> : vector<8xf32>
    %639 = vector.multi_reduction <maximumf>, %635, %cst_296 [1] : vector<8x128xf32> to vector<8xf32>
    %640 = vector.shape_cast %639 : vector<8xf32> to vector<8x1xf32>
    %641 = vector.broadcast %640 : vector<8x1xf32> to vector<8x128xf32>
    %642 = arith.cmpf oeq, %635, %641 : vector<8x128xf32>
    %c128_i32_297 = arith.constant 128 : i32
    %643 = vector.broadcast %c128_i32_297 : i32 to vector<8x128xi32>
    %644 = arith.select %642, %0, %643 : vector<8x128xi1>, vector<8x128xi32>
    %cst_298 = arith.constant dense<2147483647> : vector<8xi32>
    %645 = vector.multi_reduction <minsi>, %644, %cst_298 [1] : vector<8x128xi32> to vector<8xi32>
    %646 = vector.shape_cast %645 : vector<8xi32> to vector<8x1xi32>
    %647 = vector.broadcast %646 : vector<8x1xi32> to vector<8x128xi32>
    %648 = arith.cmpi eq, %0, %647 : vector<8x128xi32>
    %649 = arith.extui %648 : vector<8x128xi1> to vector<8x128xi32>
    %650 = arith.sitofp %649 : vector<8x128xi32> to vector<8x128xf32>
    %c4_299 = arith.constant 4 : index
    %651 = memref.load %arg0[%c4_299] : memref<8xi32, #tpu.memory_space<smem>>
    %c0_i32_300 = arith.constant 0 : i32
    %652 = arith.cmpi ne, %651, %c0_i32_300 : i32
    %653 = arith.extui %652 : i1 to i32
    %654 = arith.sitofp %653 : i32 to f32
    %c11 = arith.constant 11 : index
    %c0_301 = arith.constant 0 : index
    %c0_302 = arith.constant 0 : index
    %655 = vector.load %arg1[%c11, %c0_301, %c0_302] : memref<15x8x1xi32, #tpu.memory_space<vmem>>, vector<1x8x1xi32>
    %656 = vector.shape_cast %655 : vector<1x8x1xi32> to vector<8x1xi32>
    %657 = vector.broadcast %656 : vector<8x1xi32> to vector<8x128xi32>
    %658 = arith.cmpi eq, %657, %0 : vector<8x128xi32>
    %659 = arith.extui %658 : vector<8x128xi1> to vector<8x128xi32>
    %660 = arith.sitofp %659 : vector<8x128xi32> to vector<8x128xf32>
    %661 = vector.broadcast %654 : f32 to vector<8x128xf32>
    %662 = arith.mulf %661, %660 : vector<8x128xf32>
    %cst_303 = arith.constant 1.000000e+00 : f32
    %663 = arith.subf %cst_303, %654 : f32
    %664 = vector.broadcast %663 : f32 to vector<8x128xf32>
    %665 = arith.mulf %664, %650 : vector<8x128xf32>
    %666 = arith.addf %662, %665 : vector<8x128xf32>
    %c1_304 = arith.constant 1 : index
    %c0_305 = arith.constant 0 : index
    %c0_306 = arith.constant 0 : index
    %667 = vector.load %arg2[%c1_304, %c0_305, %c0_306] : memref<2x128x128xf32, #tpu.memory_space<vmem>>, vector<1x128x128xf32>
    %668 = vector.shape_cast %667 : vector<1x128x128xf32> to vector<128x128xf32>
    %cst_307 = arith.constant dense<0.000000e+00> : vector<8x128xf32>
    %669 = tpu.matmul %666, %668, %cst_307 {dimension_numbers = #tpu.dot_dimension_numbers<[1], [0], [0], [1], [0, 0, 1, 1], [], []>} : vector<8x128xf32>, vector<128x128xf32>, vector<8x128xf32> -> vector<8x128xf32>
    %c2_308 = arith.constant 2 : index
    %c0_309 = arith.constant 0 : index
    %c0_310 = arith.constant 0 : index
    %670 = vector.load %arg3[%c2_308, %c0_309, %c0_310] : memref<5x128x384xf32, #tpu.memory_space<vmem>>, vector<1x128x384xf32>
    %671 = vector.shape_cast %670 : vector<1x128x384xf32> to vector<128x384xf32>
    %cst_311 = arith.constant dense<0.000000e+00> : vector<8x384xf32>
    %672 = tpu.matmul %669, %671, %cst_311 {dimension_numbers = #tpu.dot_dimension_numbers<[1], [0], [0], [1], [0, 0, 1, 1], [], []>} : vector<8x128xf32>, vector<128x384xf32>, vector<8x384xf32> -> vector<8x384xf32>
    %673 = arith.addf %672, %355 : vector<8x384xf32>
    %c4_312 = arith.constant 4 : index
    %c0_313 = arith.constant 0 : index
    %c0_314 = arith.constant 0 : index
    %674 = vector.load %arg3[%c4_312, %c0_313, %c0_314] : memref<5x128x384xf32, #tpu.memory_space<vmem>>, vector<1x128x384xf32>
    %675 = vector.shape_cast %674 : vector<1x128x384xf32> to vector<128x384xf32>
    %cst_315 = arith.constant dense<0.000000e+00> : vector<8x384xf32>
    %676 = tpu.matmul %631, %675, %cst_315 {dimension_numbers = #tpu.dot_dimension_numbers<[1], [0], [0], [1], [0, 0, 1, 1], [], []>} : vector<8x128xf32>, vector<128x384xf32>, vector<8x384xf32> -> vector<8x384xf32>
    %c3_316 = arith.constant 3 : index
    %c0_317 = arith.constant 0 : index
    %c0_318 = arith.constant 0 : index
    %677 = vector.load %arg4[%c3_316, %c0_317, %c0_318] : memref<4x1x384xf32, #tpu.memory_space<vmem>>, vector<1x1x384xf32>
    %678 = vector.shape_cast %677 : vector<1x1x384xf32> to vector<1x384xf32>
    %679 = vector.broadcast %678 : vector<1x384xf32> to vector<8x384xf32>
    %680 = arith.addf %676, %679 : vector<8x384xf32>
    %681 = vector.extract_strided_slice %673 {offsets = [0, 0], sizes = [8, 128], strides = [1, 1]} : vector<8x384xf32> to vector<8x128xf32>
    %682 = vector.extract_strided_slice %680 {offsets = [0, 0], sizes = [8, 128], strides = [1, 1]} : vector<8x384xf32> to vector<8x128xf32>
    %683 = arith.addf %681, %682 : vector<8x128xf32>
    %684 = arith.negf %683 : vector<8x128xf32>
    %685 = math.exp %684 : vector<8x128xf32>
    %cst_319 = arith.constant 1.000000e+00 : f32
    %686 = vector.broadcast %cst_319 : f32 to vector<8x128xf32>
    %687 = arith.addf %686, %685 : vector<8x128xf32>
    %688 = arith.divf %686, %687 : vector<8x128xf32>
    %689 = vector.extract_strided_slice %673 {offsets = [0, 128], sizes = [8, 128], strides = [1, 1]} : vector<8x384xf32> to vector<8x128xf32>
    %690 = vector.extract_strided_slice %680 {offsets = [0, 128], sizes = [8, 128], strides = [1, 1]} : vector<8x384xf32> to vector<8x128xf32>
    %691 = arith.addf %689, %690 : vector<8x128xf32>
    %692 = arith.negf %691 : vector<8x128xf32>
    %693 = math.exp %692 : vector<8x128xf32>
    %cst_320 = arith.constant 1.000000e+00 : f32
    %694 = vector.broadcast %cst_320 : f32 to vector<8x128xf32>
    %695 = arith.addf %694, %693 : vector<8x128xf32>
    %696 = arith.divf %694, %695 : vector<8x128xf32>
    %697 = vector.extract_strided_slice %673 {offsets = [0, 256], sizes = [8, 128], strides = [1, 1]} : vector<8x384xf32> to vector<8x128xf32>
    %698 = vector.extract_strided_slice %680 {offsets = [0, 256], sizes = [8, 128], strides = [1, 1]} : vector<8x384xf32> to vector<8x128xf32>
    %699 = arith.mulf %688, %698 : vector<8x128xf32>
    %700 = arith.addf %697, %699 : vector<8x128xf32>
    %701 = math.tanh %700 : vector<8x128xf32>
    %cst_321 = arith.constant 1.000000e+00 : f32
    %702 = vector.broadcast %cst_321 : f32 to vector<8x128xf32>
    %703 = arith.subf %702, %696 : vector<8x128xf32>
    %704 = arith.mulf %703, %701 : vector<8x128xf32>
    %705 = arith.mulf %696, %631 : vector<8x128xf32>
    %706 = arith.addf %704, %705 : vector<8x128xf32>
    %707 = tpu.concatenate %669, %706 in 1 : vector<8x128xf32>, vector<8x128xf32> -> vector<8x256xf32>
    %c0_322 = arith.constant 0 : index
    %c0_323 = arith.constant 0 : index
    %708 = vector.load %arg5[%c0_322, %c0_323] : memref<384x128xf32, #tpu.memory_space<vmem>>, vector<256x128xf32>
    %cst_324 = arith.constant dense<0.000000e+00> : vector<8x128xf32>
    %709 = tpu.matmul %707, %708, %cst_324 {dimension_numbers = #tpu.dot_dimension_numbers<[1], [0], [0], [1], [0, 0, 1, 1], [], []>} : vector<8x256xf32>, vector<256x128xf32>, vector<8x128xf32> -> vector<8x128xf32>
    %710 = arith.addf %709, %360 : vector<8x128xf32>
    %c5_325 = arith.constant 5 : index
    %c0_326 = arith.constant 0 : index
    %c0_327 = arith.constant 0 : index
    %711 = vector.load %arg7[%c5_325, %c0_326, %c0_327] : memref<8x8x128xf32, #tpu.memory_space<vmem>>, vector<1x8x128xf32>
    %712 = vector.shape_cast %711 : vector<1x8x128xf32> to vector<8x128xf32>
    %713 = vector.shape_cast %710 : vector<8x128xf32> to vector<1x8x128xf32>
    tpu.vector_store %arg7[%c5_325, %c0_326, %c0_327], %713 {strides = array<i32>} : memref<8x8x128xf32, #tpu.memory_space<vmem>>, vector<1x8x128xf32>,
    %cst_328 = arith.constant dense<0xFF800000> : vector<8xf32>
    %714 = vector.multi_reduction <maximumf>, %710, %cst_328 [1] : vector<8x128xf32> to vector<8xf32>
    %715 = vector.shape_cast %714 : vector<8xf32> to vector<8x1xf32>
    %716 = vector.broadcast %715 : vector<8x1xf32> to vector<8x128xf32>
    %717 = arith.cmpf oeq, %710, %716 : vector<8x128xf32>
    %c128_i32_329 = arith.constant 128 : i32
    %718 = vector.broadcast %c128_i32_329 : i32 to vector<8x128xi32>
    %719 = arith.select %717, %0, %718 : vector<8x128xi1>, vector<8x128xi32>
    %cst_330 = arith.constant dense<2147483647> : vector<8xi32>
    %720 = vector.multi_reduction <minsi>, %719, %cst_330 [1] : vector<8x128xi32> to vector<8xi32>
    %721 = vector.shape_cast %720 : vector<8xi32> to vector<8x1xi32>
    %722 = vector.broadcast %721 : vector<8x1xi32> to vector<8x128xi32>
    %723 = arith.cmpi eq, %0, %722 : vector<8x128xi32>
    %724 = arith.extui %723 : vector<8x128xi1> to vector<8x128xi32>
    %725 = arith.sitofp %724 : vector<8x128xi32> to vector<8x128xf32>
    %c5_331 = arith.constant 5 : index
    %726 = memref.load %arg0[%c5_331] : memref<8xi32, #tpu.memory_space<smem>>
    %c0_i32_332 = arith.constant 0 : i32
    %727 = arith.cmpi ne, %726, %c0_i32_332 : i32
    %728 = arith.extui %727 : i1 to i32
    %729 = arith.sitofp %728 : i32 to f32
    %c12 = arith.constant 12 : index
    %c0_333 = arith.constant 0 : index
    %c0_334 = arith.constant 0 : index
    %730 = vector.load %arg1[%c12, %c0_333, %c0_334] : memref<15x8x1xi32, #tpu.memory_space<vmem>>, vector<1x8x1xi32>
    %731 = vector.shape_cast %730 : vector<1x8x1xi32> to vector<8x1xi32>
    %732 = vector.broadcast %731 : vector<8x1xi32> to vector<8x128xi32>
    %733 = arith.cmpi eq, %732, %0 : vector<8x128xi32>
    %734 = arith.extui %733 : vector<8x128xi1> to vector<8x128xi32>
    %735 = arith.sitofp %734 : vector<8x128xi32> to vector<8x128xf32>
    %736 = vector.broadcast %729 : f32 to vector<8x128xf32>
    %737 = arith.mulf %736, %735 : vector<8x128xf32>
    %cst_335 = arith.constant 1.000000e+00 : f32
    %738 = arith.subf %cst_335, %729 : f32
    %739 = vector.broadcast %738 : f32 to vector<8x128xf32>
    %740 = arith.mulf %739, %725 : vector<8x128xf32>
    %741 = arith.addf %737, %740 : vector<8x128xf32>
    %c1_336 = arith.constant 1 : index
    %c0_337 = arith.constant 0 : index
    %c0_338 = arith.constant 0 : index
    %742 = vector.load %arg2[%c1_336, %c0_337, %c0_338] : memref<2x128x128xf32, #tpu.memory_space<vmem>>, vector<1x128x128xf32>
    %743 = vector.shape_cast %742 : vector<1x128x128xf32> to vector<128x128xf32>
    %cst_339 = arith.constant dense<0.000000e+00> : vector<8x128xf32>
    %744 = tpu.matmul %741, %743, %cst_339 {dimension_numbers = #tpu.dot_dimension_numbers<[1], [0], [0], [1], [0, 0, 1, 1], [], []>} : vector<8x128xf32>, vector<128x128xf32>, vector<8x128xf32> -> vector<8x128xf32>
    %c2_340 = arith.constant 2 : index
    %c0_341 = arith.constant 0 : index
    %c0_342 = arith.constant 0 : index
    %745 = vector.load %arg3[%c2_340, %c0_341, %c0_342] : memref<5x128x384xf32, #tpu.memory_space<vmem>>, vector<1x128x384xf32>
    %746 = vector.shape_cast %745 : vector<1x128x384xf32> to vector<128x384xf32>
    %cst_343 = arith.constant dense<0.000000e+00> : vector<8x384xf32>
    %747 = tpu.matmul %744, %746, %cst_343 {dimension_numbers = #tpu.dot_dimension_numbers<[1], [0], [0], [1], [0, 0, 1, 1], [], []>} : vector<8x128xf32>, vector<128x384xf32>, vector<8x384xf32> -> vector<8x384xf32>
    %748 = arith.addf %747, %355 : vector<8x384xf32>
    %c4_344 = arith.constant 4 : index
    %c0_345 = arith.constant 0 : index
    %c0_346 = arith.constant 0 : index
    %749 = vector.load %arg3[%c4_344, %c0_345, %c0_346] : memref<5x128x384xf32, #tpu.memory_space<vmem>>, vector<1x128x384xf32>
    %750 = vector.shape_cast %749 : vector<1x128x384xf32> to vector<128x384xf32>
    %cst_347 = arith.constant dense<0.000000e+00> : vector<8x384xf32>
    %751 = tpu.matmul %706, %750, %cst_347 {dimension_numbers = #tpu.dot_dimension_numbers<[1], [0], [0], [1], [0, 0, 1, 1], [], []>} : vector<8x128xf32>, vector<128x384xf32>, vector<8x384xf32> -> vector<8x384xf32>
    %c3_348 = arith.constant 3 : index
    %c0_349 = arith.constant 0 : index
    %c0_350 = arith.constant 0 : index
    %752 = vector.load %arg4[%c3_348, %c0_349, %c0_350] : memref<4x1x384xf32, #tpu.memory_space<vmem>>, vector<1x1x384xf32>
    %753 = vector.shape_cast %752 : vector<1x1x384xf32> to vector<1x384xf32>
    %754 = vector.broadcast %753 : vector<1x384xf32> to vector<8x384xf32>
    %755 = arith.addf %751, %754 : vector<8x384xf32>
    %756 = vector.extract_strided_slice %748 {offsets = [0, 0], sizes = [8, 128], strides = [1, 1]} : vector<8x384xf32> to vector<8x128xf32>
    %757 = vector.extract_strided_slice %755 {offsets = [0, 0], sizes = [8, 128], strides = [1, 1]} : vector<8x384xf32> to vector<8x128xf32>
    %758 = arith.addf %756, %757 : vector<8x128xf32>
    %759 = arith.negf %758 : vector<8x128xf32>
    %760 = math.exp %759 : vector<8x128xf32>
    %cst_351 = arith.constant 1.000000e+00 : f32
    %761 = vector.broadcast %cst_351 : f32 to vector<8x128xf32>
    %762 = arith.addf %761, %760 : vector<8x128xf32>
    %763 = arith.divf %761, %762 : vector<8x128xf32>
    %764 = vector.extract_strided_slice %748 {offsets = [0, 128], sizes = [8, 128], strides = [1, 1]} : vector<8x384xf32> to vector<8x128xf32>
    %765 = vector.extract_strided_slice %755 {offsets = [0, 128], sizes = [8, 128], strides = [1, 1]} : vector<8x384xf32> to vector<8x128xf32>
    %766 = arith.addf %764, %765 : vector<8x128xf32>
    %767 = arith.negf %766 : vector<8x128xf32>
    %768 = math.exp %767 : vector<8x128xf32>
    %cst_352 = arith.constant 1.000000e+00 : f32
    %769 = vector.broadcast %cst_352 : f32 to vector<8x128xf32>
    %770 = arith.addf %769, %768 : vector<8x128xf32>
    %771 = arith.divf %769, %770 : vector<8x128xf32>
    %772 = vector.extract_strided_slice %748 {offsets = [0, 256], sizes = [8, 128], strides = [1, 1]} : vector<8x384xf32> to vector<8x128xf32>
    %773 = vector.extract_strided_slice %755 {offsets = [0, 256], sizes = [8, 128], strides = [1, 1]} : vector<8x384xf32> to vector<8x128xf32>
    %774 = arith.mulf %763, %773 : vector<8x128xf32>
    %775 = arith.addf %772, %774 : vector<8x128xf32>
    %776 = math.tanh %775 : vector<8x128xf32>
    %cst_353 = arith.constant 1.000000e+00 : f32
    %777 = vector.broadcast %cst_353 : f32 to vector<8x128xf32>
    %778 = arith.subf %777, %771 : vector<8x128xf32>
    %779 = arith.mulf %778, %776 : vector<8x128xf32>
    %780 = arith.mulf %771, %706 : vector<8x128xf32>
    %781 = arith.addf %779, %780 : vector<8x128xf32>
    %782 = tpu.concatenate %744, %781 in 1 : vector<8x128xf32>, vector<8x128xf32> -> vector<8x256xf32>
    %c0_354 = arith.constant 0 : index
    %c0_355 = arith.constant 0 : index
    %783 = vector.load %arg5[%c0_354, %c0_355] : memref<384x128xf32, #tpu.memory_space<vmem>>, vector<256x128xf32>
    %cst_356 = arith.constant dense<0.000000e+00> : vector<8x128xf32>
    %784 = tpu.matmul %782, %783, %cst_356 {dimension_numbers = #tpu.dot_dimension_numbers<[1], [0], [0], [1], [0, 0, 1, 1], [], []>} : vector<8x256xf32>, vector<256x128xf32>, vector<8x128xf32> -> vector<8x128xf32>
    %785 = arith.addf %784, %360 : vector<8x128xf32>
    %c6_357 = arith.constant 6 : index
    %c0_358 = arith.constant 0 : index
    %c0_359 = arith.constant 0 : index
    %786 = vector.load %arg7[%c6_357, %c0_358, %c0_359] : memref<8x8x128xf32, #tpu.memory_space<vmem>>, vector<1x8x128xf32>
    %787 = vector.shape_cast %786 : vector<1x8x128xf32> to vector<8x128xf32>
    %788 = vector.shape_cast %785 : vector<8x128xf32> to vector<1x8x128xf32>
    tpu.vector_store %arg7[%c6_357, %c0_358, %c0_359], %788 {strides = array<i32>} : memref<8x8x128xf32, #tpu.memory_space<vmem>>, vector<1x8x128xf32>,
    %cst_360 = arith.constant dense<0xFF800000> : vector<8xf32>
    %789 = vector.multi_reduction <maximumf>, %785, %cst_360 [1] : vector<8x128xf32> to vector<8xf32>
    %790 = vector.shape_cast %789 : vector<8xf32> to vector<8x1xf32>
    %791 = vector.broadcast %790 : vector<8x1xf32> to vector<8x128xf32>
    %792 = arith.cmpf oeq, %785, %791 : vector<8x128xf32>
    %c128_i32_361 = arith.constant 128 : i32
    %793 = vector.broadcast %c128_i32_361 : i32 to vector<8x128xi32>
    %794 = arith.select %792, %0, %793 : vector<8x128xi1>, vector<8x128xi32>
    %cst_362 = arith.constant dense<2147483647> : vector<8xi32>
    %795 = vector.multi_reduction <minsi>, %794, %cst_362 [1] : vector<8x128xi32> to vector<8xi32>
    %796 = vector.shape_cast %795 : vector<8xi32> to vector<8x1xi32>
    %797 = vector.broadcast %796 : vector<8x1xi32> to vector<8x128xi32>
    %798 = arith.cmpi eq, %0, %797 : vector<8x128xi32>
    %799 = arith.extui %798 : vector<8x128xi1> to vector<8x128xi32>
    %800 = arith.sitofp %799 : vector<8x128xi32> to vector<8x128xf32>
    %c6_363 = arith.constant 6 : index
    %801 = memref.load %arg0[%c6_363] : memref<8xi32, #tpu.memory_space<smem>>
    %c0_i32_364 = arith.constant 0 : i32
    %802 = arith.cmpi ne, %801, %c0_i32_364 : i32
    %803 = arith.extui %802 : i1 to i32
    %804 = arith.sitofp %803 : i32 to f32
    %c13 = arith.constant 13 : index
    %c0_365 = arith.constant 0 : index
    %c0_366 = arith.constant 0 : index
    %805 = vector.load %arg1[%c13, %c0_365, %c0_366] : memref<15x8x1xi32, #tpu.memory_space<vmem>>, vector<1x8x1xi32>
    %806 = vector.shape_cast %805 : vector<1x8x1xi32> to vector<8x1xi32>
    %807 = vector.broadcast %806 : vector<8x1xi32> to vector<8x128xi32>
    %808 = arith.cmpi eq, %807, %0 : vector<8x128xi32>
    %809 = arith.extui %808 : vector<8x128xi1> to vector<8x128xi32>
    %810 = arith.sitofp %809 : vector<8x128xi32> to vector<8x128xf32>
    %811 = vector.broadcast %804 : f32 to vector<8x128xf32>
    %812 = arith.mulf %811, %810 : vector<8x128xf32>
    %cst_367 = arith.constant 1.000000e+00 : f32
    %813 = arith.subf %cst_367, %804 : f32
    %814 = vector.broadcast %813 : f32 to vector<8x128xf32>
    %815 = arith.mulf %814, %800 : vector<8x128xf32>
    %816 = arith.addf %812, %815 : vector<8x128xf32>
    %c1_368 = arith.constant 1 : index
    %c0_369 = arith.constant 0 : index
    %c0_370 = arith.constant 0 : index
    %817 = vector.load %arg2[%c1_368, %c0_369, %c0_370] : memref<2x128x128xf32, #tpu.memory_space<vmem>>, vector<1x128x128xf32>
    %818 = vector.shape_cast %817 : vector<1x128x128xf32> to vector<128x128xf32>
    %cst_371 = arith.constant dense<0.000000e+00> : vector<8x128xf32>
    %819 = tpu.matmul %816, %818, %cst_371 {dimension_numbers = #tpu.dot_dimension_numbers<[1], [0], [0], [1], [0, 0, 1, 1], [], []>} : vector<8x128xf32>, vector<128x128xf32>, vector<8x128xf32> -> vector<8x128xf32>
    %c2_372 = arith.constant 2 : index
    %c0_373 = arith.constant 0 : index
    %c0_374 = arith.constant 0 : index
    %820 = vector.load %arg3[%c2_372, %c0_373, %c0_374] : memref<5x128x384xf32, #tpu.memory_space<vmem>>, vector<1x128x384xf32>
    %821 = vector.shape_cast %820 : vector<1x128x384xf32> to vector<128x384xf32>
    %cst_375 = arith.constant dense<0.000000e+00> : vector<8x384xf32>
    %822 = tpu.matmul %819, %821, %cst_375 {dimension_numbers = #tpu.dot_dimension_numbers<[1], [0], [0], [1], [0, 0, 1, 1], [], []>} : vector<8x128xf32>, vector<128x384xf32>, vector<8x384xf32> -> vector<8x384xf32>
    %823 = arith.addf %822, %355 : vector<8x384xf32>
    %c4_376 = arith.constant 4 : index
    %c0_377 = arith.constant 0 : index
    %c0_378 = arith.constant 0 : index
    %824 = vector.load %arg3[%c4_376, %c0_377, %c0_378] : memref<5x128x384xf32, #tpu.memory_space<vmem>>, vector<1x128x384xf32>
    %825 = vector.shape_cast %824 : vector<1x128x384xf32> to vector<128x384xf32>
    %cst_379 = arith.constant dense<0.000000e+00> : vector<8x384xf32>
    %826 = tpu.matmul %781, %825, %cst_379 {dimension_numbers = #tpu.dot_dimension_numbers<[1], [0], [0], [1], [0, 0, 1, 1], [], []>} : vector<8x128xf32>, vector<128x384xf32>, vector<8x384xf32> -> vector<8x384xf32>
    %c3_380 = arith.constant 3 : index
    %c0_381 = arith.constant 0 : index
    %c0_382 = arith.constant 0 : index
    %827 = vector.load %arg4[%c3_380, %c0_381, %c0_382] : memref<4x1x384xf32, #tpu.memory_space<vmem>>, vector<1x1x384xf32>
    %828 = vector.shape_cast %827 : vector<1x1x384xf32> to vector<1x384xf32>
    %829 = vector.broadcast %828 : vector<1x384xf32> to vector<8x384xf32>
    %830 = arith.addf %826, %829 : vector<8x384xf32>
    %831 = vector.extract_strided_slice %823 {offsets = [0, 0], sizes = [8, 128], strides = [1, 1]} : vector<8x384xf32> to vector<8x128xf32>
    %832 = vector.extract_strided_slice %830 {offsets = [0, 0], sizes = [8, 128], strides = [1, 1]} : vector<8x384xf32> to vector<8x128xf32>
    %833 = arith.addf %831, %832 : vector<8x128xf32>
    %834 = arith.negf %833 : vector<8x128xf32>
    %835 = math.exp %834 : vector<8x128xf32>
    %cst_383 = arith.constant 1.000000e+00 : f32
    %836 = vector.broadcast %cst_383 : f32 to vector<8x128xf32>
    %837 = arith.addf %836, %835 : vector<8x128xf32>
    %838 = arith.divf %836, %837 : vector<8x128xf32>
    %839 = vector.extract_strided_slice %823 {offsets = [0, 128], sizes = [8, 128], strides = [1, 1]} : vector<8x384xf32> to vector<8x128xf32>
    %840 = vector.extract_strided_slice %830 {offsets = [0, 128], sizes = [8, 128], strides = [1, 1]} : vector<8x384xf32> to vector<8x128xf32>
    %841 = arith.addf %839, %840 : vector<8x128xf32>
    %842 = arith.negf %841 : vector<8x128xf32>
    %843 = math.exp %842 : vector<8x128xf32>
    %cst_384 = arith.constant 1.000000e+00 : f32
    %844 = vector.broadcast %cst_384 : f32 to vector<8x128xf32>
    %845 = arith.addf %844, %843 : vector<8x128xf32>
    %846 = arith.divf %844, %845 : vector<8x128xf32>
    %847 = vector.extract_strided_slice %823 {offsets = [0, 256], sizes = [8, 128], strides = [1, 1]} : vector<8x384xf32> to vector<8x128xf32>
    %848 = vector.extract_strided_slice %830 {offsets = [0, 256], sizes = [8, 128], strides = [1, 1]} : vector<8x384xf32> to vector<8x128xf32>
    %849 = arith.mulf %838, %848 : vector<8x128xf32>
    %850 = arith.addf %847, %849 : vector<8x128xf32>
    %851 = math.tanh %850 : vector<8x128xf32>
    %cst_385 = arith.constant 1.000000e+00 : f32
    %852 = vector.broadcast %cst_385 : f32 to vector<8x128xf32>
    %853 = arith.subf %852, %846 : vector<8x128xf32>
    %854 = arith.mulf %853, %851 : vector<8x128xf32>
    %855 = arith.mulf %846, %781 : vector<8x128xf32>
    %856 = arith.addf %854, %855 : vector<8x128xf32>
    %857 = tpu.concatenate %819, %856 in 1 : vector<8x128xf32>, vector<8x128xf32> -> vector<8x256xf32>
    %c0_386 = arith.constant 0 : index
    %c0_387 = arith.constant 0 : index
    %858 = vector.load %arg5[%c0_386, %c0_387] : memref<384x128xf32, #tpu.memory_space<vmem>>, vector<256x128xf32>
    %cst_388 = arith.constant dense<0.000000e+00> : vector<8x128xf32>
    %859 = tpu.matmul %857, %858, %cst_388 {dimension_numbers = #tpu.dot_dimension_numbers<[1], [0], [0], [1], [0, 0, 1, 1], [], []>} : vector<8x256xf32>, vector<256x128xf32>, vector<8x128xf32> -> vector<8x128xf32>
    %860 = arith.addf %859, %360 : vector<8x128xf32>
    %c7_389 = arith.constant 7 : index
    %c0_390 = arith.constant 0 : index
    %c0_391 = arith.constant 0 : index
    %861 = vector.load %arg7[%c7_389, %c0_390, %c0_391] : memref<8x8x128xf32, #tpu.memory_space<vmem>>, vector<1x8x128xf32>
    %862 = vector.shape_cast %861 : vector<1x8x128xf32> to vector<8x128xf32>
    %863 = vector.shape_cast %860 : vector<8x128xf32> to vector<1x8x128xf32>
    tpu.vector_store %arg7[%c7_389, %c0_390, %c0_391], %863 {strides = array<i32>} : memref<8x8x128xf32, #tpu.memory_space<vmem>>, vector<1x8x128xf32>,
    return
  }
}

</mosaic_0001>

<bundles_post_ra>
// kernel: _forward_impl.1
= control target key start
LH: loop header
LB: loop body
LE: loop exit
PB: predicated region body
PF: predicated region fallthrough
CT: control target
= control target key end

     0   :  { %12 = vsyncpa [#allocation4], 0  ;;  %s14993_s0 = inlined_call_operand.vmem [shape: s32[8], index: 0, kind: input, shape index: {}]   ;;  %s14994_s1 = inlined_call_operand.vmem [shape: s32[15,8,1], index: 1, kind: input, shape index: {}]   ;;  %s14995_s2 = inlined_call_operand.hbm [shape: f32[2,128,128], index: 2, kind: input, shape index: {}]   ;;  %s14996_s3 = inlined_call_operand.hbm [shape: f32[5,128,384], index: 3, kind: input, shape index: {}]   ;;  %s14997_s4 = inlined_call_operand.vmem [shape: f32[4,1,384], index: 4, kind: input, shape index: {}]   ;;  %s14998_s5 = inlined_call_operand.hbm [shape: f32[384,128], index: 5, kind: input, shape index: {}]   ;;  %s14999_s6 = inlined_call_operand.vmem [shape: f32[1,128], index: 6, kind: input, shape index: {}]   ;;  %s15000_s7 = inlined_call_operand.vmem [shape: f32[8,8,128], index: 7, kind: output, shape index: {}]  }
   0x1   :  { %13 = vsyncpa [#allocation3], 0 }
   0x2   :  { %14 = vsyncpa [#allocation7], 0  ;;  %s10781_s24 = smov [#allocation6]   ;;  %s21_s28 = sshll.u32 %s14993_s0, 4  ;;  %s22_s28 = int_to_ptr.vmem [resolvable:$true] %s21_s28 }
   0x3   :  { %s44_s25 = sshll.u32 %s10781_s24, 4  ;;  %s45_s25 = int_to_ptr.vmem [resolvable:$true] %s44_s25 }
   0x4   :  { %s10711_s29 = scalar_lea.vmem %s45_s25, 30720  ;;  %p10716_p1 = scmp.lt.s32.totalorder %s45_s25, %s45_s25 }
   0x5   :  { %p10712_p0 = scmp.ne.s32.totalorder %s45_s25, %s10711_s29  ;;  %p10717_p2 = scmp.lt.s32.totalorder %s10711_s29, %s10711_s29 }
   0x7   :  { %p10718_p3 = por %p10717_p2, %p10716_p1 }
   0x9   :  { %p10719_p4 = pnand %p10718_p3, %p10712_p0 }
   0xb   :  { %10722 = shalt.err (!%p10719_p4)
}
   0xc   :  { %s10782_s30 = smov 384   ;;  %s10783_s8 = smov 24  }
   0xd   :  { %50 = dma.hbm_to_vmem [thread:$0]  %s14996_s3, 30720, %s45_s25, [#allocation7], %s10782_s30, %s10782_s30, %s10783_s8  }
   0xe   :  { %s10723_s11 = scalar_lea.vmem %s22_s28, 16  ;;  %p10728_p6 = scmp.lt.s32.totalorder %s22_s28, %s22_s28 }
   0xf   :  { %p10724_p5 = scmp.ne.s32.totalorder %s22_s28, %s10723_s11  ;;  %p10729_p7 = scmp.lt.s32.totalorder %s10723_s11, %s10723_s11 }
  0x11   :  { %p10730_p8 = por %p10729_p7, %p10728_p6 }
  0x13   :  { %p10731_p9 = pnand %p10730_p8, %p10724_p5 }
  0x15   :  { %10734 = shalt.err (!%p10731_p9)
}
  0x16   :  { %s10784_s0 = smov [#allocation2]   ;;  %s10785_s12 = smov [#allocation5]  }
  0x17   :  { %24 = dma.vmem_to_smem %s22_s28, 16, %s10784_s0, [#allocation4]  }
  0x18   :  { %s32_s13 = sshll.u32 %s10785_s12, 4  ;;  %s33_s13 = int_to_ptr.vmem [resolvable:$true] %s32_s13 }
  0x19   :  { %s10743_s14 = scalar_lea.vmem %s33_s13, 4096  ;;  %p10748_p11 = scmp.lt.s32.totalorder %s33_s13, %s33_s13 }
  0x1a   :  { %p10744_p10 = scmp.ne.s32.totalorder %s33_s13, %s10743_s14  ;;  %p10749_p12 = scmp.lt.s32.totalorder %s10743_s14, %s10743_s14 }
  0x1c   :  { %p10750_p13 = por %p10749_p12, %p10748_p11 }
  0x1e   :  { %p10751_p0 = pnand %p10750_p13, %p10744_p10 }
  0x20   :  { %10754 = shalt.err (!%p10751_p0)
}
  0x21   :  { %s10786_s3 = smov 128   ;;  %s10787_s15 = smov 8  }
  0x22   :  { %38 = dma.hbm_to_vmem [thread:$0]  %s14995_s2, 4096, %s33_s13, [#allocation3], %s10786_s3, %s10786_s3, %s10787_s15  }
  0x23   :  { %s10788_s18 = smov [#allocation8]  }
  0x24   :  { %s58_s19 = sshll.u32 %s10788_s18, 4  ;;  %s59_s19 = int_to_ptr.vmem [resolvable:$true] %s58_s19 }
  0x25   :  { %s10763_s20 = scalar_lea.vmem %s59_s19, 6144  ;;  %p10768_p2 = scmp.lt.s32.totalorder %s59_s19, %s59_s19 }
  0x26   :  { %p10764_p1 = scmp.ne.s32.totalorder %s59_s19, %s10763_s20  ;;  %p10769_p3 = scmp.lt.s32.totalorder %s10763_s20, %s10763_s20 }
  0x28   :  { %p10770_p4 = por %p10769_p3, %p10768_p2 }
  0x2a   :  { %p10771_p5 = pnand %p10770_p4, %p10764_p1 }
  0x2c   :  { %10774 = shalt.err (!%p10771_p5)
}
  0x2d   :  { %64 = dma.hbm_to_vmem [thread:$0]  %s14998_s5, 6144, %s59_s19, [#allocation7], %s10786_s3, %s10786_s3, %s10787_s15  }
  0x2e   :  { %10775 = dma.done.wait [#allocation4], 16  }
  0x2f   :  { %10776 = vsyncadd [#allocation4], 4294967280 }
  0x30   :  { %10777 = dma.done.wait [#allocation3], 4096  }
  0x31   :  { %10778 = vsyncadd [#allocation3], 4294963200 }
  0x32   :  { %10779 = dma.done.wait [#allocation7], 36864  }
  0x33   :  { %10780 = vsyncadd [#allocation7], 4294930432 }
  0x34   :  { %79 = sfence }
  0x35   :  { %v82_v0 = vld [vmem:[%s14994_s1] sm:$0xff]  ;;  %v10789_v1 = vmov 0   ;;  %v15022_v2 = vmov 0.0   ;;  %v10853_v3 = vld [vmem:[#allocation5 + $0x78] sm:$0xff]  ;;  %v10855_v4 = vld [vmem:[#allocation5 + $0x70] sm:$0xff]  ;;  %vm10791_vm0 = vmmov 0   ;;  %v15001_v54 = vlaneseq }
  0x36   :  { %10330 = vset.pattern.permute.xlu0 %v10789_v1  ;;  %8778 = vmatprep.subr.mxu0 %v15022_v2  ;;  %2896 = vst [vmem:[%s15000_s7] sm:$0xff] %v15022_v2  ;;  %v7698_v5 = vld [vmem:[%s14994_s1 + $0x8] sm:$0xff]  ;;  %v10869_v7 = vld [vmem:[#allocation5 + $0x60] sm:$0xff]  ;;  %v10876_v9 = vld [vmem:[#allocation5 + $0x58] sm:$0xff]  ;;  %v15002_v58 = vmov 1.0   ;;  %s7738_s10 = sld [smem:[#allocation2 + $0x1]] }
  0x37   :  { %84 = vperm.xlu0 %10330, %v82_v0   ;;  %8779 = vmatpush3.msra.mxu0 %v10853_v3  ;;  %v10862_v6 = vld [vmem:[#allocation5 + $0x68] sm:$0xff]  ;;  %v7713_v8 = vld [vmem:[%s14994_s1 + $0x20] sm:$0xff]  ;;  %v10880_v10 = vld [vmem:[#allocation5 + $0x50] sm:$0xff]  ;;  %v11026_v55 = vand.u32 127, %v15001_v54  ;;  %s7746_s18 = sld [smem:[#allocation2 + $0x2]] }
  0x38   :  { %8780 = vmatprep.subr.mxu0 %v15022_v2  ;;  %8810 = vmatprep.mubr.msk.f32.mxu0 %vm10791_vm0, %v15022_v2  ;;  %v10883_v11 = vld [vmem:[#allocation6 + $0x170] sm:$0xff]  ;;  %v10885_v12 = vld [vmem:[#allocation6 + $0x168] sm:$0xff]  ;;  %v10887_v13 = vld [vmem:[#allocation6 + $0x158] sm:$0xff]  ;;  %s7754_s28 = sld [smem:[#allocation2 + $0x3]] }
  0x39   :  { %8781 = vmatpush3.msra.mxu0 %v10855_v4  ;;  %304 = vmatprep.mubr.f32.mxu1 %v15022_v2  ;;  %v7723_v14 = vld [vmem:[%s14994_s1 + $0x30] sm:$0xff]  ;;  %v10893_v15 = vld [vmem:[#allocation5 + $0x48] sm:$0xff]  ;;  %v10901_v17 = vld [vmem:[#allocation5 + $0x40] sm:$0xff]  ;;  %15545 = vst [vmem:[#allocation16_spill] sm:$0xff] %v11026_v55  ;;  %s7762_s3 = sld [smem:[#allocation2 + $0x4]] }
  0x3a   :  { %8782 = vmatprep.subr.mxu0 %v15022_v2  ;;  %10331 = vset.pattern.permute.xlu1 %v10789_v1  ;;  %v10898_v16 = vld [vmem:[#allocation6 + $0x150] sm:$0xff]  ;;  %v10904_v18 = vld [vmem:[#allocation6 + $0x140] sm:$0xff]  ;;  %v10907_v19 = vld [vmem:[#allocation6 + $0x138] sm:$0xff]  ;;  %s7770_s23 = sld [smem:[#allocation2 + $0x5]] }
  0x3b   :  { %613 = vperm.xlu0 %10330, %v7698_v5   ;;  %8783 = vmatpush3.msra.mxu0 %v10862_v6  ;;  %v10910_v20 = vld [vmem:[#allocation5 + $0x38] sm:$0xff]  ;;  %v10913_v21 = vld [vmem:[#allocation6 + $0x128] sm:$0xff]  ;;  %v10917_v22 = vld [vmem:[#allocation6 + $0x120] sm:$0xff] }
  0x3c   :  { %8784 = vmatprep.subr.mxu0 %v15022_v2  ;;  %240 = vmatprep.subr.mxu1 %v10883_v11  ;;  %v10920_v23 = vld [vmem:[#allocation5 + $0x30] sm:$0xff]  ;;  %v10927_v25 = vld [vmem:[#allocation6 + $0x108] sm:$0xff]  ;;  %v10933_v27 = vld [vmem:[#allocation6 + $0xf8] sm:$0xff]  ;;  %p3838_p6 = scmp.ne.s32.totalorder %s7738_s10, 0 }
  0x3d   :  { %8785 = vmatpush3.msra.mxu0 %v10869_v7  ;;  %241 = vmatpush1.msra.mxu1 %v10885_v12  ;;  %v10923_v24 = vld [vmem:[#allocation6 + $0x110] sm:$0xff]  ;;  %v10930_v26 = vld [vmem:[#allocation5 + $0x28] sm:$0xff]  ;;  %v10940_v29 = vld [vmem:[#allocation5 + $0x20] sm:$0xff]  ;;  %p4483_p7 = scmp.ne.s32.totalorder %s7746_s18, 0 }
  0x3e   :  { %8786 = vmatprep.subr.mxu0 %v15022_v2  ;;  %242 = vmatprep.subr.mxu1 %v10887_v13  ;;  %v10937_v28 = vld [vmem:[#allocation6 + $0xf0] sm:$0xff]  ;;  %v10943_v30 = vld [vmem:[#allocation6 + $0xe0] sm:$0xff]  ;;  %v10947_v31 = vld [vmem:[#allocation6 + $0xd8] sm:$0xff]  ;;  %s3839_s11 = scalar_select %p3838_p6, 1, 0 }
  0x3f   :  { %1756 = vperm.xlu0 %10330, %v7713_v8   ;;  %8787 = vmatpush3.msra.mxu0 %v10876_v9  ;;  %v10950_v32 = vld [vmem:[#allocation5 + $0x18] sm:$0xff]  ;;  %v10953_v33 = vld [vmem:[#allocation6 + $0xc8] sm:$0xff]  ;;  %v10957_v34 = vld [vmem:[#allocation6 + $0xc0] sm:$0xff]  ;;  %s4484_s19 = scalar_select %p4483_p7, 1, 0 }
  0x40   :  { %8788 = vmatprep.subr.mxu0 %v15022_v2  ;;  %243 = vmatpush1.msra.mxu1 %v10898_v16  ;;  %v10960_v35 = vld [vmem:[#allocation5 + $0x10] sm:$0xff]  ;;  %v10967_v37 = vld [vmem:[#allocation6 + $0xa8] sm:$0xff]  ;;  %v10973_v39 = vld [vmem:[#allocation6 + $0x98] sm:$0xff]  ;;  %s3840_s0 = scvt.s32.f32 %s3839_s11  ;;  %p5128_p8 = scmp.ne.s32.totalorder %s7754_s28, 0 }
  0x41   :  { %8789 = vmatpush3.msra.mxu0 %v10880_v10  ;;  %244 = vmatprep.subr.mxu1 %v10904_v18  ;;  %v10963_v36 = vld [vmem:[#allocation6 + $0xb0] sm:$0xff]  ;;  %v10970_v38 = vld [vmem:[#allocation5 + $0x8] sm:$0xff]  ;;  %v10980_v41 = vld [vmem:[#allocation5] sm:$0xff]  ;;  %s4485_s20 = scvt.s32.f32 %s4484_s19  ;;  %p5773_p9 = scmp.ne.s32.totalorder %s7762_s3, 0 }
  0x42   :  { %8790 = vmatprep.subr.mxu0 %v15022_v2  ;;  %245 = vmatpush1.msra.mxu1 %v10907_v19  ;;  %v10977_v40 = vld [vmem:[#allocation6 + $0x90] sm:$0xff]  ;;  %15541 = vst [vmem:[#allocation12_spill] sm:$0xff] %v10980_v41  ;;  %v10983_v42 = vld [vmem:[#allocation6 + $0x80] sm:$0xff]  ;;  %v10987_v43 = vld [vmem:[#allocation6 + $0x78] sm:$0xff]  ;;  %s3851_s12 = ssub.f32 1.0, %s3840_s0  ;;  %p6418_p10 = scmp.ne.s32.totalorder %s7770_s23, 0 }
  0x43   :  { %2518 = vperm.xlu0 %10330, %v7723_v14   ;;  %8791 = vmatpush3.msra.mxu0 %v10893_v15  ;;  %v10991_v44 = vld [vmem:[#allocation6 + $0x68] sm:$0xff]  ;;  %v10995_v45 = vld [vmem:[#allocation6 + $0x60] sm:$0xff]  ;;  %v10999_v46 = vld [vmem:[#allocation6 + $0x50] sm:$0xff]  ;;  %s4496_s21 = ssub.f32 1.0, %s4485_s20 }
  0x44   :  { %8792 = vmatprep.subr.mxu0 %v15022_v2  ;;  %246 = vmatprep.subr.mxu1 %v10913_v21  ;;  %v11002_v47 = vld [vmem:[#allocation6 + $0x48] sm:$0xff]  ;;  %v11005_v48 = vld [vmem:[#allocation6 + $0x38] sm:$0xff]  ;;  %v11008_v49 = vld [vmem:[#allocation6 + $0x30] sm:$0xff]  ;;  %s5129_s29 = scalar_select %p5128_p8, 1, 0 }
  0x45   :  { %8793 = vmatpush3.msra.mxu0 %v10901_v17  ;;  %247 = vmatpush1.msra.mxu1 %v10917_v22  ;;  %v11011_v50 = vld [vmem:[#allocation6 + $0x20] sm:$0xff]  ;;  %v11014_v51 = vld [vmem:[#allocation6 + $0x18] sm:$0xff]  ;;  %v11017_v52 = vld [vmem:[#allocation6 + $0x8] sm:$0xff]  ;;  %s5774_s15 = scalar_select %p5773_p9, 1, 0 }
  0x46   :  { %8794 = vmatprep.subr.mxu0 %v15022_v2  ;;  %248 = vmatprep.subr.mxu1 %v10923_v24  ;;  %15542 = vst [vmem:[#allocation13_spill] sm:$0xff] %v11014_v51  ;;  %15543 = vst [vmem:[#allocation14_spill] sm:$0xff] %v11017_v52  ;;  %v11020_v53 = vld [vmem:[#allocation6] sm:$0xff]  ;;  %v11028_v57 = vld [vmem:[#allocation6 + $0x178] sm:$0xff]  ;;  %s5130_s30 = scvt.s32.f32 %s5129_s29 }
  0x47   :  { %8795 = vmatpush3.msra.mxu0 %v10910_v20  ;;  %249 = vmatpush1.msra.mxu1 %v10927_v25  ;;  %15544 = vst [vmem:[#allocation15_spill] sm:$0xff] %v11020_v53  ;;  %15546 = vst [vmem:[#allocation17_spill] sm:$0xff] %v11028_v57  ;;  %v11032_v59 = vld [vmem:[#allocation6 + $0x160] sm:$0xff]  ;;  %v11038_v60 = vld [vmem:[#allocation6 + $0x148] sm:$0xff]  ;;  %s5775_s16 = scvt.s32.f32 %s5774_s15 }
  0x48   :  { %8796 = vmatprep.subr.mxu0 %v15022_v2  ;;  %250 = vmatprep.subr.mxu1 %v10933_v27  ;;  %15547 = vst [vmem:[#allocation18_spill] sm:$0xff] %v11032_v59  ;;  %15548 = vst [vmem:[#allocation19_spill] sm:$0xff] %v11038_v60  ;;  %v11042_v61 = vld [vmem:[#allocation6 + $0x130] sm:$0xff]  ;;  %v11046_v62 = vld [vmem:[#allocation6 + $0x118] sm:$0xff]  ;;  %s5141_s8 = ssub.f32 1.0, %s5130_s30 }
  0x49   :  { %8797 = vmatpush3.msra.mxu0 %v10920_v23  ;;  %251 = vmatpush1.msra.mxu1 %v10937_v28  ;;  %15549 = vst [vmem:[#allocation20_spill] sm:$0xff] %v11042_v61  ;;  %15550 = vst [vmem:[#allocation21_spill] sm:$0xff] %v11046_v62  ;;  %v11050_v63 = vld [vmem:[#allocation6 + $0x100] sm:$0xff]  ;;  %v11054_v0 = vld [vmem:[#allocation6 + $0xe8] sm:$0xff]  ;;  %s5786_s17 = ssub.f32 1.0, %s5775_s16 }
  0x4a   :  { %8798 = vmatprep.subr.mxu0 %v15022_v2  ;;  %252 = vmatprep.subr.mxu1 %v10943_v30  ;;  %15551 = vst [vmem:[#allocation22_spill] sm:$0xff] %v11050_v63  ;;  %15552 = vst [vmem:[#allocation23_spill] sm:$0xff] %v11054_v0  ;;  %v11058_v1 = vld [vmem:[#allocation6 + $0xd0] sm:$0xff]  ;;  %v11062_v5 = vld [vmem:[#allocation6 + $0xb8] sm:$0xff]  ;;  %s6419_s24 = scalar_select %p6418_p10, 1, 0 }
  0x4b   :  { %8799 = vmatpush3.msra.mxu0 %v10930_v26  ;;  %253 = vmatpush1.msra.mxu1 %v10947_v31  ;;  %15553 = vst [vmem:[#allocation24_spill] sm:$0xff] %v11058_v1  ;;  %15554 = vst [vmem:[#allocation25_spill] sm:$0xff] %v11062_v5  ;;  %v11066_v8 = vld [vmem:[#allocation6 + $0xa0] sm:$0xff]  ;;  %v11070_v14 = vld [vmem:[#allocation6 + $0x88] sm:$0xff] }
  0x4c   :  { %8800 = vmatprep.subr.mxu0 %v15022_v2  ;;  %254 = vmatprep.subr.mxu1 %v10953_v33  ;;  %15555 = vst [vmem:[#allocation26_spill] sm:$0xff] %v11066_v8  ;;  %15556 = vst [vmem:[#allocation27_spill] sm:$0xff] %v11070_v14  ;;  %v11078_v54 = vld [vmem:[#allocation6 + $0x58] sm:$0xff]  ;;  %s6420_s25 = scvt.s32.f32 %s6419_s24 }
  0x4d   :  { %8801 = vmatpush3.msra.mxu0 %v10940_v29  ;;  %255 = vmatpush1.msra.mxu1 %v10957_v34  ;;  %15558 = vst [vmem:[#allocation29_spill] sm:$0xff] %v11078_v54 }
  0x4e   :  { %8802 = vmatprep.subr.mxu0 %v15022_v2  ;;  %256 = vmatprep.subr.mxu1 %v10963_v36  ;;  %s6431_s5 = ssub.f32 1.0, %s6420_s25 }
  0x4f   :  { %8803 = vmatpush3.msra.mxu0 %v10950_v32  ;;  %257 = vmatpush1.msra.mxu1 %v10967_v37 }
  0x50   :  { %8804 = vmatprep.subr.mxu0 %v15022_v2  ;;  %258 = vmatprep.subr.mxu1 %v10973_v39 }
  0x51   :  { %8805 = vmatpush3.msra.mxu0 %v10960_v35  ;;  %259 = vmatpush1.msra.mxu1 %v10977_v40 }
  0x52   :  { %8806 = vmatprep.subr.mxu0 %v15022_v2  ;;  %260 = vmatprep.subr.mxu1 %v10983_v42 }
  0x53   :  { %8807 = vmatpush3.msra.mxu0 %v10970_v38  ;;  %261 = vmatpush1.msra.mxu1 %v10987_v43 }
  0x54   :  { %8808 = vmatprep.subr.mxu0 %v15022_v2  ;;  %262 = vmatprep.subr.mxu1 %v10991_v44 }
  0x55   :  { %8809 = vmatpush3.msra.mxu0 %v10980_v41  ;;  %263 = vmatpush1.msra.mxu1 %v10995_v45 }
  0x56   :  { %8813 = vmatprep.subr.mxu0 %v15022_v2  ;;  %264 = vmatprep.subr.mxu1 %v10999_v46 }
  0x57   :  { %265 = vmatpush1.msra.mxu1 %v11002_v47 }
  0x58   :  { %266 = vmatprep.subr.mxu1 %v11005_v48 }
  0x59   :  { %267 = vmatpush1.msra.mxu1 %v11008_v49 }
  0x5a   :  { %268 = vmatprep.subr.mxu1 %v11011_v50 }
  0x5b   :  { %269 = vmatpush1.msra.mxu1 %v11014_v51 }
  0x5c   :  { %270 = vmatprep.subr.mxu1 %v11017_v52 }
  0x5d   :  { %271 = vmatpush1.msra.mxu1 %v11020_v53 }
  0xb2   :  { %v85_v56 = vpop.permute.xlu0 %84 }
  0xb3   :  { %vm86_vm1 = vcmp.eq.s32.totalorder %v85_v56, %v11026_v55  ;;  %v11074_v56 = vld [vmem:[#allocation6 + $0x70] sm:$0xff] }
  0xb4   :  { %8811 = vmatmul.mubr.msk.f32.vlgmr.msra.gmra.mxu0 %vm86_vm1, %v15002_v58  ;;  %15557 = vst [vmem:[#allocation28_spill] sm:$0xff] %v11074_v56  ;;  %v11082_v58 = vld [vmem:[#allocation6 + $0x40] sm:$0xff] }
  0xb5   :  { %8814 = vmatpush3.msra.mxu0 %v11028_v57  ;;  %8845 = vmatprep.mubr.msk.f32.mxu0 %vm10791_vm0, %v15022_v2  ;;  %15559 = vst [vmem:[#allocation30_spill] sm:$0xff] %v11082_v58 }
  0xb6   :  { %8815 = vmatprep.subr.mxu0 %v15022_v2 }
  0xb7   :  { %8816 = vmatpush3.msra.mxu0 %v11032_v59 }
  0xb8   :  { %8817 = vmatprep.subr.mxu0 %v15022_v2 }
  0xb9   :  { %8818 = vmatpush3.msra.mxu0 %v11038_v60 }
  0xba   :  { %8819 = vmatprep.subr.mxu0 %v15022_v2 }
  0xbb   :  { %8820 = vmatpush3.msra.mxu0 %v11042_v61 }
  0xbc   :  { %8821 = vmatprep.subr.mxu0 %v15022_v2 }
  0xbd   :  { %8822 = vmatpush3.msra.mxu0 %v11046_v62 }
  0xbe   :  { %8823 = vmatprep.subr.mxu0 %v15022_v2 }
  0xbf   :  { %8824 = vmatpush3.msra.mxu0 %v11050_v63  ;;  %v15568_v63 = vmov 0.0  }
  0xc0   :  { %8825 = vmatprep.subr.mxu0 %v15022_v2 }
  0xc1   :  { %8826 = vmatpush3.msra.mxu0 %v11054_v0 }
  0xc2   :  { %8827 = vmatprep.subr.mxu0 %v15022_v2 }
  0xc3   :  { %8828 = vmatpush3.msra.mxu0 %v11058_v1  ;;  %v11110_v1 = vld [vmem:[#allocation6 + $0x2d8] sm:$0xff] }
  0xc4   :  { %8829 = vmatprep.subr.mxu0 %v15022_v2  ;;  %15564 = vst [vmem:[#allocation35_spill] sm:$0xff] %v11110_v1 }
  0xc5   :  { %8830 = vmatpush3.msra.mxu0 %v11062_v5 }
  0xc6   :  { %8831 = vmatprep.subr.mxu0 %v15022_v2 }
  0xc7   :  { %8832 = vmatpush3.msra.mxu0 %v11066_v8  ;;  %v11086_v8 = vld [vmem:[#allocation6 + $0x28] sm:$0xff] }
  0xc8   :  { %8833 = vmatprep.subr.mxu0 %v15022_v2  ;;  %15560 = vst [vmem:[#allocation31_spill] sm:$0xff] %v11086_v8 }
  0xc9   :  { %8834 = vmatpush3.msra.mxu0 %v11070_v14  ;;  %v11092_v14 = vld [vmem:[#allocation6 + $0x10] sm:$0xff] }
  0xca   :  { %8835 = vmatprep.subr.mxu0 %v15022_v2  ;;  %15561 = vst [vmem:[#allocation32_spill] sm:$0xff] %v11092_v14 }
  0xcb   :  { %8836 = vmatpush3.msra.mxu0 %v11074_v56  ;;  %v11094_v56 = vld [vmem:[#allocation6 + $0x2f0] sm:$0xff] }
  0xcc   :  { %8837 = vmatprep.subr.mxu0 %v15022_v2  ;;  %15562 = vst [vmem:[#allocation33_spill] sm:$0xff] %v11094_v56  ;;  %448 = vmatprep.subr.mxu1 %v11094_v56  ;;  %v11120_v56 = vld [vmem:[#allocation6 + $0x2e0] sm:$0xff] }
  0xcd   :  { %8838 = vmatpush3.msra.mxu0 %v11078_v54  ;;  %v7718_v54 = vld [vmem:[%s14994_s1 + $0x28] sm:$0xff]  ;;  %15569 = vst [vmem:[#allocation39_spill] sm:$0xff] %v11120_v56 }
  0xce   :  { %8839 = vmatprep.subr.mxu0 %v15022_v2 }
  0xcf   :  { %8840 = vmatpush3.msra.mxu0 %v11082_v58  ;;  %v7703_v58 = vld [vmem:[%s14994_s1 + $0x10] sm:$0xff] }
  0xd0   :  { %8841 = vmatprep.subr.mxu0 %v15022_v2  ;;  %994 = vperm.xlu1 %10331, %v7703_v58   ;;  %v11114_v58 = vld [vmem:[#allocation6 + $0x2d0] sm:$0xff] }
  0xd1   :  { %8842 = vmatpush3.msra.mxu0 %v11086_v8  ;;  %v7708_v8 = vld [vmem:[%s14994_s1 + $0x18] sm:$0xff]  ;;  %15566 = vst [vmem:[#allocation37_spill] sm:$0xff] %v11114_v58 }
  0xd2   :  { %8843 = vmatprep.subr.mxu0 %v15022_v2 }
  0xd3   :  { %8844 = vmatpush3.msra.mxu0 %v11092_v14  ;;  %v11108_v14 = vld [vmem:[#allocation6 + $0x2e8] sm:$0xff] }
  0xd4   :  { %8848 = vmatprep.subr.mxu0 %v15022_v2  ;;  %1375 = vperm.xlu1 %10331, %v7708_v8   ;;  %15563 = vst [vmem:[#allocation34_spill] sm:$0xff] %v11108_v14  ;;  %v11112_v2 = vld [vmem:[#allocation6 + $0x2f8] sm:$0xff]  ;;  %v11117_v8 = vld [vmem:[#allocation6 + $0x2c0] sm:$0xff] }
  0xd5   :  { %15565 = vst [vmem:[#allocation36_spill] sm:$0xff] %v11112_v2  ;;  %15567 = vst [vmem:[#allocation38_spill] sm:$0xff] %v11117_v8 }
  0xd8   :  { %2137 = vperm.xlu1 %10331, %v7718_v54   ;;  %v11123_v54 = vld [vmem:[#allocation6 + $0x2b8] sm:$0xff] }
  0xd9   :  { %15570 = vst [vmem:[#allocation40_spill] sm:$0xff] %v11123_v54 }
 0x174   :  { %v171_v5 = vpop.f32.mrf.mxu0 }
 0x175   :  { %305 = vmatmul.mubr.f32.vlgmr.msra.gmra.mxu1 %v171_v5  ;;  %8846 = vmatmul.mubr.f32.vlgmr.msra.gmra.mxu0 %v171_v5  ;;  %v11127_v5 = vld [vmem:[#allocation6 + $0x2a8] sm:$0xff] }
 0x176   :  { %449 = vmatpush1.msra.mxu1 %v11108_v14  ;;  %v8812_v0 = vpop.f32.mrf.mxu0  ;;  %512 = vmatprep.mubr.f32.mxu1 %v15568_v63  ;;  %15571 = vst [vmem:[#allocation41_spill] sm:$0xff] %v11127_v5  ;;  %v11130_v14 = vld [vmem:[#allocation6 + $0x2c8] sm:$0xff] }
 0x177   :  { %450 = vmatprep.subr.mxu1 %v11110_v1  ;;  %8849 = vmatpush3.msra.mxu0 %v11112_v2  ;;  %15572 = vst [vmem:[#allocation42_spill] sm:$0xff] %v11130_v14  ;;  %v11133_v0 = vld [vmem:[#allocation6 + $0x2a0] sm:$0xff]  ;;  %v11137_v1 = vld [vmem:[#allocation6 + $0x290] sm:$0xff] }
 0x178   :  { %451 = vmatpush1.msra.mxu1 %v11114_v58  ;;  %8850 = vmatprep.subr.mxu0 %v15568_v63  ;;  %15573 = vst [vmem:[#allocation43_spill] sm:$0xff] %v11133_v0  ;;  %15574 = vst [vmem:[#allocation44_spill] sm:$0xff] %v11137_v1  ;;  %v11140_v2 = vld [vmem:[#allocation6 + $0x2b0] sm:$0xff]  ;;  %v11143_v58 = vld [vmem:[#allocation6 + $0x288] sm:$0xff] }
 0x179   :  { %452 = vmatprep.subr.mxu1 %v11117_v8  ;;  %8851 = vmatpush3.msra.mxu0 %v11120_v56  ;;  %15575 = vst [vmem:[#allocation45_spill] sm:$0xff] %v11140_v2  ;;  %15576 = vst [vmem:[#allocation46_spill] sm:$0xff] %v11143_v58  ;;  %v11147_v8 = vld [vmem:[#allocation6 + $0x278] sm:$0xff] }
 0x17a   :  { %453 = vmatpush1.msra.mxu1 %v11123_v54  ;;  %8852 = vmatprep.subr.mxu0 %v15568_v63  ;;  %15577 = vst [vmem:[#allocation47_spill] sm:$0xff] %v11147_v8  ;;  %v11150_v56 = vld [vmem:[#allocation6 + $0x298] sm:$0xff]  ;;  %v11153_v54 = vld [vmem:[#allocation6 + $0x270] sm:$0xff] }
 0x17b   :  { %454 = vmatprep.subr.mxu1 %v11127_v5  ;;  %8853 = vmatpush3.msra.mxu0 %v11130_v14  ;;  %15578 = vst [vmem:[#allocation48_spill] sm:$0xff] %v11150_v56  ;;  %15579 = vst [vmem:[#allocation49_spill] sm:$0xff] %v11153_v54  ;;  %v11157_v5 = vld [vmem:[#allocation6 + $0x260] sm:$0xff] }
 0x17c   :  { %455 = vmatpush1.msra.mxu1 %v11133_v0  ;;  %8854 = vmatprep.subr.mxu0 %v15568_v63  ;;  %15580 = vst [vmem:[#allocation50_spill] sm:$0xff] %v11157_v5  ;;  %v11160_v14 = vld [vmem:[#allocation6 + $0x280] sm:$0xff]  ;;  %v11163_v0 = vld [vmem:[#allocation6 + $0x258] sm:$0xff] }
 0x17d   :  { %456 = vmatprep.subr.mxu1 %v11137_v1  ;;  %8855 = vmatpush3.msra.mxu0 %v11140_v2  ;;  %15581 = vst [vmem:[#allocation51_spill] sm:$0xff] %v11160_v14  ;;  %15582 = vst [vmem:[#allocation52_spill] sm:$0xff] %v11163_v0  ;;  %v11167_v1 = vld [vmem:[#allocation6 + $0x248] sm:$0xff] }
 0x17e   :  { %457 = vmatpush1.msra.mxu1 %v11143_v58  ;;  %8856 = vmatprep.subr.mxu0 %v15568_v63  ;;  %15583 = vst [vmem:[#allocation53_spill] sm:$0xff] %v11167_v1  ;;  %v11170_v2 = vld [vmem:[#allocation6 + $0x268] sm:$0xff]  ;;  %v11173_v58 = vld [vmem:[#allocation6 + $0x240] sm:$0xff] }
 0x17f   :  { %458 = vmatprep.subr.mxu1 %v11147_v8  ;;  %8857 = vmatpush3.msra.mxu0 %v11150_v56  ;;  %15584 = vst [vmem:[#allocation54_spill] sm:$0xff] %v11170_v2  ;;  %15585 = vst [vmem:[#allocation55_spill] sm:$0xff] %v11173_v58  ;;  %v11177_v8 = vld [vmem:[#allocation6 + $0x230] sm:$0xff] }
 0x180   :  { %459 = vmatpush1.msra.mxu1 %v11153_v54  ;;  %8858 = vmatprep.subr.mxu0 %v15568_v63  ;;  %15586 = vst [vmem:[#allocation56_spill] sm:$0xff] %v11177_v8  ;;  %v11180_v56 = vld [vmem:[#allocation6 + $0x250] sm:$0xff]  ;;  %v11183_v54 = vld [vmem:[#allocation6 + $0x228] sm:$0xff] }
 0x181   :  { %460 = vmatprep.subr.mxu1 %v11157_v5  ;;  %8859 = vmatpush3.msra.mxu0 %v11160_v14  ;;  %15587 = vst [vmem:[#allocation57_spill] sm:$0xff] %v11180_v56  ;;  %15588 = vst [vmem:[#allocation58_spill] sm:$0xff] %v11183_v54  ;;  %v11187_v5 = vld [vmem:[#allocation6 + $0x218] sm:$0xff] }
 0x182   :  { %461 = vmatpush1.msra.mxu1 %v11163_v0  ;;  %8860 = vmatprep.subr.mxu0 %v15568_v63  ;;  %15589 = vst [vmem:[#allocation59_spill] sm:$0xff] %v11187_v5  ;;  %v11190_v14 = vld [vmem:[#allocation6 + $0x238] sm:$0xff]  ;;  %v11193_v0 = vld [vmem:[#allocation6 + $0x210] sm:$0xff] }
 0x183   :  { %462 = vmatprep.subr.mxu1 %v11167_v1  ;;  %8861 = vmatpush3.msra.mxu0 %v11170_v2  ;;  %15590 = vst [vmem:[#allocation60_spill] sm:$0xff] %v11190_v14  ;;  %15591 = vst [vmem:[#allocation61_spill] sm:$0xff] %v11193_v0  ;;  %v11197_v1 = vld [vmem:[#allocation6 + $0x200] sm:$0xff] }
 0x184   :  { %463 = vmatpush1.msra.mxu1 %v11173_v58  ;;  %8862 = vmatprep.subr.mxu0 %v15568_v63  ;;  %15592 = vst [vmem:[#allocation62_spill] sm:$0xff] %v11197_v1  ;;  %v11200_v2 = vld [vmem:[#allocation6 + $0x220] sm:$0xff]  ;;  %v11203_v58 = vld [vmem:[#allocation6 + $0x1f8] sm:$0xff] }
 0x185   :  { %464 = vmatprep.subr.mxu1 %v11177_v8  ;;  %8863 = vmatpush3.msra.mxu0 %v11180_v56  ;;  %15593 = vst [vmem:[#allocation63_spill] sm:$0xff] %v11200_v2  ;;  %15594 = vst [vmem:[#allocation64_spill] sm:$0xff] %v11203_v58  ;;  %v11207_v8 = vld [vmem:[#allocation6 + $0x1e8] sm:$0xff] }
 0x186   :  { %465 = vmatpush1.msra.mxu1 %v11183_v54  ;;  %8864 = vmatprep.subr.mxu0 %v15568_v63  ;;  %15595 = vst [vmem:[#allocation65_spill] sm:$0xff] %v11207_v8  ;;  %v11210_v56 = vld [vmem:[#allocation6 + $0x208] sm:$0xff]  ;;  %v11213_v54 = vld [vmem:[#allocation6 + $0x1e0] sm:$0xff] }
 0x187   :  { %466 = vmatprep.subr.mxu1 %v11187_v5  ;;  %8865 = vmatpush3.msra.mxu0 %v11190_v14  ;;  %15596 = vst [vmem:[#allocation66_spill] sm:$0xff] %v11210_v56  ;;  %15597 = vst [vmem:[#allocation67_spill] sm:$0xff] %v11213_v54  ;;  %v11217_v5 = vld [vmem:[#allocation6 + $0x1d0] sm:$0xff] }
 0x188   :  { %467 = vmatpush1.msra.mxu1 %v11193_v0  ;;  %8866 = vmatprep.subr.mxu0 %v15568_v63  ;;  %15598 = vst [vmem:[#allocation68_spill] sm:$0xff] %v11217_v5  ;;  %v11220_v14 = vld [vmem:[#allocation6 + $0x1f0] sm:$0xff]  ;;  %v11223_v0 = vld [vmem:[#allocation6 + $0x1c8] sm:$0xff] }
 0x189   :  { %468 = vmatprep.subr.mxu1 %v11197_v1  ;;  %8867 = vmatpush3.msra.mxu0 %v11200_v2  ;;  %15599 = vst [vmem:[#allocation69_spill] sm:$0xff] %v11220_v14  ;;  %15600 = vst [vmem:[#allocation70_spill] sm:$0xff] %v11223_v0  ;;  %v11227_v1 = vld [vmem:[#allocation6 + $0x1b8] sm:$0xff] }
 0x18a   :  { %469 = vmatpush1.msra.mxu1 %v11203_v58  ;;  %8868 = vmatprep.subr.mxu0 %v15568_v63  ;;  %15601 = vst [vmem:[#allocation71_spill] sm:$0xff] %v11227_v1  ;;  %v11230_v2 = vld [vmem:[#allocation6 + $0x1d8] sm:$0xff]  ;;  %v11233_v58 = vld [vmem:[#allocation6 + $0x1b0] sm:$0xff] }
 0x18b   :  { %470 = vmatprep.subr.mxu1 %v11207_v8  ;;  %8869 = vmatpush3.msra.mxu0 %v11210_v56  ;;  %15602 = vst [vmem:[#allocation72_spill] sm:$0xff] %v11233_v58  ;;  %v11237_v8 = vld [vmem:[#allocation6 + $0x1a0] sm:$0xff] }
 0x18c   :  { %471 = vmatpush1.msra.mxu1 %v11213_v54  ;;  %8870 = vmatprep.subr.mxu0 %v15568_v63  ;;  %v11240_v56 = vld [vmem:[#allocation6 + $0x1c0] sm:$0xff]  ;;  %v11243_v54 = vld [vmem:[#allocation6 + $0x198] sm:$0xff] }
 0x18d   :  { %472 = vmatprep.subr.mxu1 %v11217_v5  ;;  %8871 = vmatpush3.msra.mxu0 %v11220_v14  ;;  %v11247_v5 = vld [vmem:[#allocation6 + $0x188] sm:$0xff] }
 0x18e   :  { %473 = vmatpush1.msra.mxu1 %v11223_v0  ;;  %8872 = vmatprep.subr.mxu0 %v15568_v63  ;;  %v11250_v14 = vld [vmem:[#allocation6 + $0x1a8] sm:$0xff]  ;;  %v11253_v0 = vld [vmem:[#allocation6 + $0x180] sm:$0xff] }
 0x18f   :  { %474 = vmatprep.subr.mxu1 %v11227_v1  ;;  %8873 = vmatpush3.msra.mxu0 %v11230_v2 }
 0x190   :  { %475 = vmatpush1.msra.mxu1 %v11233_v58  ;;  %8874 = vmatprep.subr.mxu0 %v15568_v63  ;;  %v11262_v58 = vld [vmem:[#allocation6 + $0x190] sm:$0xff] }
 0x191   :  { %476 = vmatprep.subr.mxu1 %v11237_v8  ;;  %8875 = vmatpush3.msra.mxu0 %v11240_v56 }
 0x192   :  { %477 = vmatpush1.msra.mxu1 %v11243_v54  ;;  %8876 = vmatprep.subr.mxu0 %v15568_v63 }
 0x193   :  { %478 = vmatprep.subr.mxu1 %v11247_v5  ;;  %8877 = vmatpush3.msra.mxu0 %v11250_v14 }
 0x194   :  { %479 = vmatpush1.msra.mxu1 %v11253_v0  ;;  %8878 = vmatprep.subr.mxu0 %v15568_v63 }
 0x195   :  { %513 = vmatmul.mubr.f32.vlgmr.msra.gmra.mxu1 %v15568_v63  ;;  %8883 = vmatprep.subr.mxu1 %v15568_v63 }
 0x196   :  { %8884 = vmatpush3.msra.mxu1 %v10853_v3  ;;  %8915 = vmatprep.mubr.msk.f32.mxu1 %vm10791_vm0, %v15568_v63  ;;  %v614_v3 = vpop.permute.xlu0 %613 }
 0x197   :  { %8885 = vmatprep.subr.mxu1 %v15568_v63  ;;  %8879 = vmatpush3.msra.mxu0 %v11262_v58  ;;  %vm615_vm2 = vcmp.eq.s32.totalorder %v614_v3, %v11026_v55  ;;  %v15612_v3 = vld [vmem:[#allocation29_spill] sm:$0xff] }
 0x198   :  { %8886 = vmatpush3.msra.mxu1 %v10855_v4  ;;  %8880 = vmatprep.mubr.msk.f32.mxu0 %vm10791_vm0, %v15568_v63  ;;  %v15603_v4 = vmov 1.0  }
 0x199   :  { %8887 = vmatprep.subr.mxu1 %v15568_v63  ;;  %8881 = vmatmul.mubr.f32.vlgmr.msra.gmra.mxu0 %v15568_v63 }
 0x19a   :  { %8888 = vmatpush3.msra.mxu1 %v10862_v6  ;;  %688 = vmatprep.subr.mxu0 %v10883_v11  ;;  %v7730_v6 = vld [vmem:[%s14994_s1 + $0x38] sm:$0xff] }
 0x19b   :  { %8889 = vmatprep.subr.mxu1 %v15568_v63  ;;  %689 = vmatpush1.msra.mxu0 %v10885_v12 }
 0x19c   :  { %8890 = vmatpush3.msra.mxu1 %v10869_v7  ;;  %690 = vmatprep.subr.mxu0 %v10887_v13  ;;  %v15604_v7 = vld [vmem:[#allocation33_spill] sm:$0xff] }
 0x19d   :  { %8891 = vmatprep.subr.mxu1 %v15568_v63  ;;  %691 = vmatpush1.msra.mxu0 %v10898_v16 }
 0x19e   :  { %8892 = vmatpush3.msra.mxu1 %v10876_v9  ;;  %692 = vmatprep.subr.mxu0 %v10904_v18  ;;  %v15605_v9 = vld [vmem:[#allocation22_spill] sm:$0xff] }
 0x19f   :  { %8893 = vmatprep.subr.mxu1 %v15568_v63  ;;  %693 = vmatpush1.msra.mxu0 %v10907_v19 }
 0x1a0   :  { %8894 = vmatpush3.msra.mxu1 %v10880_v10  ;;  %694 = vmatprep.subr.mxu0 %v10913_v21  ;;  %v15606_v10 = vld [vmem:[#allocation23_spill] sm:$0xff] }
 0x1a1   :  { %8895 = vmatprep.subr.mxu1 %v15568_v63  ;;  %695 = vmatpush1.msra.mxu0 %v10917_v22 }
 0x1a2   :  { %8896 = vmatpush3.msra.mxu1 %v10893_v15  ;;  %696 = vmatprep.subr.mxu0 %v10923_v24  ;;  %v15607_v15 = vld [vmem:[#allocation24_spill] sm:$0xff] }
 0x1a3   :  { %8897 = vmatprep.subr.mxu1 %v15568_v63  ;;  %697 = vmatpush1.msra.mxu0 %v10927_v25 }
 0x1a4   :  { %8898 = vmatpush3.msra.mxu1 %v10901_v17  ;;  %698 = vmatprep.subr.mxu0 %v10933_v27  ;;  %v15608_v17 = vld [vmem:[#allocation25_spill] sm:$0xff] }
 0x1a5   :  { %8899 = vmatprep.subr.mxu1 %v15568_v63  ;;  %699 = vmatpush1.msra.mxu0 %v10937_v28 }
 0x1a6   :  { %8900 = vmatpush3.msra.mxu1 %v10910_v20  ;;  %700 = vmatprep.subr.mxu0 %v10943_v30  ;;  %v15609_v20 = vld [vmem:[#allocation26_spill] sm:$0xff] }
 0x1a7   :  { %8901 = vmatprep.subr.mxu1 %v15568_v63  ;;  %701 = vmatpush1.msra.mxu0 %v10947_v31 }
 0x1a8   :  { %8902 = vmatpush3.msra.mxu1 %v10920_v23  ;;  %702 = vmatprep.subr.mxu0 %v10953_v33  ;;  %v15610_v23 = vld [vmem:[#allocation27_spill] sm:$0xff] }
 0x1a9   :  { %8903 = vmatprep.subr.mxu1 %v15568_v63  ;;  %703 = vmatpush1.msra.mxu0 %v10957_v34 }
 0x1aa   :  { %8904 = vmatpush3.msra.mxu1 %v10930_v26  ;;  %704 = vmatprep.subr.mxu0 %v10963_v36  ;;  %v15611_v26 = vld [vmem:[#allocation28_spill] sm:$0xff] }
 0x1ab   :  { %8905 = vmatprep.subr.mxu1 %v15568_v63  ;;  %705 = vmatpush1.msra.mxu0 %v10967_v37 }
 0x1ac   :  { %8906 = vmatpush3.msra.mxu1 %v10940_v29  ;;  %706 = vmatprep.subr.mxu0 %v10973_v39 }
 0x1ad   :  { %8907 = vmatprep.subr.mxu1 %v15568_v63  ;;  %707 = vmatpush1.msra.mxu0 %v10977_v40 }
 0x1ae   :  { %8908 = vmatpush3.msra.mxu1 %v10950_v32  ;;  %708 = vmatprep.subr.mxu0 %v10983_v42 }
 0x1af   :  { %8909 = vmatprep.subr.mxu1 %v15568_v63  ;;  %709 = vmatpush1.msra.mxu0 %v10987_v43 }
 0x1b0   :  { %8910 = vmatpush3.msra.mxu1 %v10960_v35  ;;  %710 = vmatprep.subr.mxu0 %v10991_v44 }
 0x1b1   :  { %8911 = vmatprep.subr.mxu1 %v15568_v63  ;;  %711 = vmatpush1.msra.mxu0 %v10995_v45 }
 0x1b2   :  { %8912 = vmatpush3.msra.mxu1 %v10970_v38  ;;  %712 = vmatprep.subr.mxu0 %v10999_v46 }
 0x1b3   :  { %8913 = vmatprep.subr.mxu1 %v15568_v63  ;;  %713 = vmatpush1.msra.mxu0 %v11002_v47 }
 0x1b4   :  { %8914 = vmatpush3.msra.mxu1 %v10980_v41  ;;  %714 = vmatprep.subr.mxu0 %v11005_v48 }
 0x1b5   :  { %8916 = vmatmul.mubr.msk.f32.vlgmr.msra.gmra.mxu1 %vm615_vm2, %v15603_v4  ;;  %8918 = vmatprep.subr.mxu1 %v15568_v63 }
 0x1b6   :  { %8919 = vmatpush3.msra.mxu1 %v11028_v57  ;;  %715 = vmatpush1.msra.mxu0 %v11008_v49 }
 0x1b7   :  { %3201 = vperm.xlu1 %10331, %v7730_v6   ;;  %8920 = vmatprep.subr.mxu1 %v15568_v63  ;;  %v15613_v6 = vld [vmem:[#allocation30_spill] sm:$0xff] }
 0x1b8   :  { %8921 = vmatpush3.msra.mxu1 %v11032_v59  ;;  %716 = vmatprep.subr.mxu0 %v11011_v50 }
 0x1b9   :  { %8922 = vmatprep.subr.mxu1 %v15568_v63  ;;  %717 = vmatpush1.msra.mxu0 %v11014_v51 }
 0x1ba   :  { %8923 = vmatpush3.msra.mxu1 %v11038_v60  ;;  %718 = vmatprep.subr.mxu0 %v11017_v52 }
 0x1bb   :  { %8924 = vmatprep.subr.mxu1 %v15568_v63  ;;  %719 = vmatpush1.msra.mxu0 %v11020_v53 }
 0x1bc   :  { %8925 = vmatpush3.msra.mxu1 %v11042_v61  ;;  %752 = vmatprep.mubr.f32.mxu0 %v15568_v63 }
 0x1bd   :  { %8926 = vmatprep.subr.mxu1 %v15568_v63  ;;  %8950 = vmatprep.mubr.msk.f32.mxu1 %vm10791_vm0, %v15568_v63 }
 0x1be   :  { %8927 = vmatpush3.msra.mxu1 %v11046_v62  ;;  %829 = vmatprep.subr.mxu0 %v15604_v7 }
 0x1bf   :  { %8928 = vmatprep.subr.mxu1 %v15568_v63 }
 0x1c0   :  { %8929 = vmatpush3.msra.mxu1 %v15605_v9 }
 0x1c1   :  { %8930 = vmatprep.subr.mxu1 %v15568_v63 }
 0x1c2   :  { %8931 = vmatpush3.msra.mxu1 %v15606_v10 }
 0x1c3   :  { %8932 = vmatprep.subr.mxu1 %v15568_v63 }
 0x1c4   :  { %8933 = vmatpush3.msra.mxu1 %v15607_v15  ;;  %v15616_v15 = vlaneseq }
 0x1c5   :  { %8934 = vmatprep.subr.mxu1 %v15568_v63 }
 0x1c6   :  { %8935 = vmatpush3.msra.mxu1 %v15608_v17  ;;  %v15614_v17 = vld [vmem:[#allocation31_spill] sm:$0xff]  ;;  %v226_v10 = vshrl.u32 %v15616_v15, 7 }
 0x1c7   :  { %8936 = vmatprep.subr.mxu1 %v15568_v63 }
 0x1c8   :  { %8937 = vmatpush3.msra.mxu1 %v15609_v20  ;;  %v15615_v20 = vld [vmem:[#allocation32_spill] sm:$0xff]  ;;  %v11378_v9 = vsub.s32 0, %v226_v10  ;;  %v11394_v59 = vsub.s32 1, %v226_v10 }
 0x1c9   :  { %8938 = vmatprep.subr.mxu1 %v15568_v63 }
 0x1ca   :  { %8939 = vmatpush3.msra.mxu1 %v15610_v23  ;;  %15617 = vst [vmem:[#allocation73_spill] sm:$0xff] %v11378_v9  ;;  %15620 = vst [vmem:[#allocation76_spill] sm:$0xff] %v11394_v59 }
 0x1cb   :  { %8940 = vmatprep.subr.mxu1 %v15568_v63 }
 0x1cc   :  { %8941 = vmatpush3.msra.mxu1 %v15611_v26 }
 0x1cd   :  { %8942 = vmatprep.subr.mxu1 %v15568_v63 }
 0x1ce   :  { %8943 = vmatpush3.msra.mxu1 %v15612_v3 }
 0x1cf   :  { %8944 = vmatprep.subr.mxu1 %v15568_v63 }
 0x1d0   :  { %8945 = vmatpush3.msra.mxu1 %v15613_v6  ;;  %v223_v6 = vld [vmem:[%s14997_s4] sm:$0x7] }
 0x1d1   :  { %8946 = vmatprep.subr.mxu1 %v15568_v63  ;;  %v11387_v62 = vrot.slane %v223_v6, %v11378_v9 }
 0x1d2   :  { %8947 = vmatpush3.msra.mxu1 %v15614_v17  ;;  %v7695_v17 = vld [vmem:[%s14997_s4 + $0x3] sm:$0x7] }
 0x1d3   :  { %8948 = vmatprep.subr.mxu1 %v15568_v63  ;;  %15618 = vst [vmem:[#allocation74_spill] sm:$0xff] %v11387_v62  ;;  %v11397_v4 = vrot.slane %v7695_v17, %v11394_v59 }
 0x1d4   :  { %8949 = vmatpush3.msra.mxu1 %v15615_v20  ;;  %v11390_v20 = vrot.slane %v7695_v17, %v11378_v9  ;;  %v11400_v9 = vrot.slane %v223_v6, %v11394_v59  ;;  %v15630_v59 = vld [vmem:[#allocation41_spill] sm:$0xff] }
 0x1d5   :  { %8953 = vmatprep.subr.mxu1 %v15568_v63 }
 0x1d6   :  { %15619 = vst [vmem:[#allocation75_spill] sm:$0xff] %v11390_v20 }
 0x235   :  { %v377_v23 = vpop.f32.mrf.mxu0  ;;  %v306_v3 = vpop.f32.mrf.mxu1 }
 0x236   :  { %v307_v15 = vadd.f32 %v306_v3, %v11387_v62 }
 0x237   :  { %v8847_v26 = vpop.f32.mrf.mxu0 }
 0x238   :  { %v308_v26 = vpop.f32.mrf.mxu1 }
 0x239   :  { %v309_v3 = vadd.f32 %v308_v26, %v11400_v9  ;;  %v15622_v26 = vld [vmem:[#allocation34_spill] sm:$0xff] }
 0x255   :  { %v514_v61 = vpop.f32.mrf.mxu1 }
 0x256   :  { %v515_v60 = vadd.f32 %v514_v61, %v11390_v20 }
 0x257   :  { %v516_v41 = vpop.f32.mrf.mxu1 }
 0x258   :  { %v589_v7 = vadd.f32 %v515_v60, %v307_v15  ;;  %v517_v51 = vadd.f32 %v516_v41, %v11397_v4 }
 0x259   :  { %v585_v53 = vpop.f32.mrf.mxu0 }
 0x25a   :  { %v7696_v57 = vmul.f32 -1.442695, %v589_v7  ;;  %v596_v62 = vadd.f32 %v517_v51, %v309_v3  ;;  %v11404_v7 = vsub.s32 2, %v226_v10  ;;  %v15623_v51 = vld [vmem:[#allocation36_spill] sm:$0xff] }
 0x25b   :  { %v8882_v52 = vpop.f32.mrf.mxu0 }
 0x25c   :  { %10332 = vpow2.f32 %v7696_v57  ;;  %v7697_v61 = vmul.f32 -1.442695, %v596_v62  ;;  %15621 = vst [vmem:[#allocation77_spill] sm:$0xff] %v11404_v7  ;;  %v11407_v20 = vrot.slane %v7695_v17, %v11404_v7  ;;  %v11411_v41 = vrot.slane %v223_v6, %v11404_v7  ;;  %v15625_v17 = vld [vmem:[#allocation37_spill] sm:$0xff]  ;;  %v15628_v7 = vld [vmem:[#allocation40_spill] sm:$0xff] }
 0x25e   :  { %10334 = vpow2.f32 %v7697_v61  ;;  %v586_v57 = vadd.f32 %v585_v53, %v11407_v20  ;;  %v15624_v61 = vld [vmem:[#allocation35_spill] sm:$0xff]  ;;  %v15627_v53 = vld [vmem:[#allocation38_spill] sm:$0xff]  ;;  %v378_v6 = vadd.f32 %v377_v23, %v11411_v41 }
 0x25f   :  { %v15634_v23 = vld [vmem:[#allocation46_spill] sm:$0xff] }
 0x269   :  { %v10333_v60 = vpop.eup %10332 }
 0x26a   :  { %v593_v15 = vadd.f32 1.0, %v10333_v60  ;;  %v15626_v60 = vld [vmem:[#allocation39_spill] sm:$0xff] }
 0x26b   :  { %v10335_v3 = vpop.eup %10334 }
 0x26c   :  { %10336 = vrcp.f32 %v593_v15 }
 0x275   :  { %v684_v52 = vpop.f32.mrf.mxu1 }
 0x276   :  { %753 = vmatmul.mubr.f32.vlgmr.msra.gmra.mxu0 %v684_v52  ;;  %8951 = vmatmul.mubr.f32.vlgmr.msra.gmra.mxu1 %v684_v52  ;;  %v600_v52 = vadd.f32 1.0, %v10335_v3  ;;  %v15635_v3 = vld [vmem:[#allocation48_spill] sm:$0xff] }
 0x277   :  { %830 = vmatpush1.msra.mxu0 %v15622_v26  ;;  %8954 = vmatpush3.msra.mxu1 %v15623_v51  ;;  %v8917_v62 = vpop.f32.mrf.mxu1 }
 0x278   :  { %831 = vmatprep.subr.mxu0 %v15624_v61  ;;  %8955 = vmatprep.subr.mxu1 %v15568_v63  ;;  %v15629_v62 = vld [vmem:[#allocation42_spill] sm:$0xff]  ;;  %10338 = vrcp.f32 %v600_v52 }
 0x279   :  { %v10337_v10 = vpop.eup %10336  ;;  %832 = vmatpush1.msra.mxu0 %v15625_v17  ;;  %8956 = vmatpush3.msra.mxu1 %v15626_v60  ;;  %v15631_v17 = vld [vmem:[#allocation43_spill] sm:$0xff]  ;;  %v15632_v60 = vld [vmem:[#allocation45_spill] sm:$0xff]  ;;  %v15641_v52 = vld [vmem:[#allocation54_spill] sm:$0xff] }
 0x27a   :  { %v603_v15 = vmul.f32 %v10337_v10, %v586_v57  ;;  %833 = vmatprep.subr.mxu0 %v15627_v53  ;;  %8957 = vmatprep.subr.mxu1 %v15568_v63  ;;  %v15633_v57 = vld [vmem:[#allocation44_spill] sm:$0xff]  ;;  %v15636_v10 = vld [vmem:[#allocation47_spill] sm:$0xff] }
 0x27b   :  { %834 = vmatpush1.msra.mxu0 %v15628_v7  ;;  %8958 = vmatpush3.msra.mxu1 %v15629_v62 }
 0x27c   :  { %835 = vmatprep.subr.mxu0 %v15630_v59  ;;  %8959 = vmatprep.subr.mxu1 %v15568_v63  ;;  %v604_v61 = vadd.f32 %v603_v15, %v378_v6  ;;  %v15637_v59 = vld [vmem:[#allocation49_spill] sm:$0xff]  ;;  %v15638_v15 = vld [vmem:[#allocation51_spill] sm:$0xff]  ;;  %v15639_v6 = vld [vmem:[#allocation50_spill] sm:$0xff] }
 0x27d   :  { %836 = vmatpush1.msra.mxu0 %v15631_v17  ;;  %8960 = vmatpush3.msra.mxu1 %v15632_v60  ;;  %v15657_v60 = vld [vmem:[#allocation68_spill] sm:$0xff] }
 0x27e   :  { %837 = vmatprep.subr.mxu0 %v15633_v57  ;;  %8961 = vmatprep.subr.mxu1 %v15568_v63  ;;  %10340 = vtanh.f32 %v604_v61  ;;  %v15640_v57 = vld [vmem:[#allocation52_spill] sm:$0xff] }
 0x27f   :  { %838 = vmatpush1.msra.mxu0 %v15634_v23  ;;  %8962 = vmatpush3.msra.mxu1 %v15635_v3  ;;  %v15642_v23 = vld [vmem:[#allocation53_spill] sm:$0xff]  ;;  %v15645_v61 = vld [vmem:[#allocation56_spill] sm:$0xff] }
 0x280   :  { %839 = vmatprep.subr.mxu0 %v15636_v10  ;;  %8963 = vmatprep.subr.mxu1 %v15568_v63  ;;  %v15643_v10 = vld [vmem:[#allocation55_spill] sm:$0xff]  ;;  %v15644_v3 = vld [vmem:[#allocation57_spill] sm:$0xff] }
 0x281   :  { %840 = vmatpush1.msra.mxu0 %v15637_v59  ;;  %8964 = vmatpush3.msra.mxu1 %v15638_v15  ;;  %v15646_v15 = vld [vmem:[#allocation58_spill] sm:$0xff]  ;;  %v15648_v59 = vld [vmem:[#allocation59_spill] sm:$0xff] }
 0x282   :  { %841 = vmatprep.subr.mxu0 %v15639_v6  ;;  %8965 = vmatprep.subr.mxu1 %v15568_v63  ;;  %v15647_v6 = vld [vmem:[#allocation60_spill] sm:$0xff] }
 0x283   :  { %842 = vmatpush1.msra.mxu0 %v15640_v57  ;;  %8966 = vmatpush3.msra.mxu1 %v15641_v52  ;;  %v15649_v52 = vld [vmem:[#allocation61_spill] sm:$0xff]  ;;  %v15651_v57 = vld [vmem:[#allocation62_spill] sm:$0xff] }
 0x284   :  { %843 = vmatprep.subr.mxu0 %v15642_v23  ;;  %8967 = vmatprep.subr.mxu1 %v15568_v63  ;;  %v15650_v23 = vld [vmem:[#allocation63_spill] sm:$0xff] }
 0x285   :  { %844 = vmatpush1.msra.mxu0 %v15643_v10  ;;  %8968 = vmatpush3.msra.mxu1 %v15644_v3  ;;  %v15652_v3 = vld [vmem:[#allocation64_spill] sm:$0xff]  ;;  %v10339_v10 = vpop.eup %10338 }
 0x286   :  { %845 = vmatprep.subr.mxu0 %v15645_v61  ;;  %8969 = vmatprep.subr.mxu1 %v15568_v63  ;;  %v15653_v61 = vld [vmem:[#allocation66_spill] sm:$0xff] }
 0x287   :  { %846 = vmatpush1.msra.mxu0 %v15646_v15  ;;  %8970 = vmatpush3.msra.mxu1 %v15647_v6  ;;  %v15654_v15 = vld [vmem:[#allocation65_spill] sm:$0xff] }
 0x288   :  { %847 = vmatprep.subr.mxu0 %v15648_v59  ;;  %8971 = vmatprep.subr.mxu1 %v15568_v63  ;;  %v15655_v59 = vld [vmem:[#allocation67_spill] sm:$0xff]  ;;  %v15656_v6 = vld [vmem:[#allocation69_spill] sm:$0xff] }
 0x289   :  { %848 = vmatpush1.msra.mxu0 %v15649_v52  ;;  %8972 = vmatpush3.msra.mxu1 %v15650_v23 }
 0x28a   :  { %849 = vmatprep.subr.mxu0 %v15651_v57  ;;  %8973 = vmatprep.subr.mxu1 %v15568_v63  ;;  %v15658_v57 = vld [vmem:[#allocation70_spill] sm:$0xff] }
 0x28b   :  { %850 = vmatpush1.msra.mxu0 %v15652_v3  ;;  %8974 = vmatpush3.msra.mxu1 %v15653_v61  ;;  %v10341_v52 = vpop.eup %10340  ;;  %v606_v3 = vsub.f32 1.0, %v10339_v10 }
 0x28c   :  { %851 = vmatprep.subr.mxu0 %v15654_v15  ;;  %8975 = vmatprep.subr.mxu1 %v15568_v63  ;;  %v15659_v15 = vld [vmem:[#allocation72_spill] sm:$0xff] }
 0x28d   :  { %852 = vmatpush1.msra.mxu0 %v15655_v59  ;;  %8976 = vmatpush3.msra.mxu1 %v15656_v6  ;;  %v607_v59 = vmul.f32 %v10341_v52, %v606_v3  ;;  %v11491_v3 = vld [vmem:[#allocation5 + $0x78] sm:$0xff] }
 0x28e   :  { %853 = vmatprep.subr.mxu0 %v15657_v60  ;;  %8977 = vmatprep.subr.mxu1 %v15568_v63  ;;  %v11472_v60 = vld [vmem:[%s15000_s7] sm:$0xff] }
 0x28f   :  { %854 = vmatpush1.msra.mxu0 %v15658_v57  ;;  %8978 = vmatpush3.msra.mxu1 %v11230_v2 }
 0x290   :  { %855 = vmatprep.subr.mxu0 %v11227_v1  ;;  %8979 = vmatprep.subr.mxu1 %v15568_v63  ;;  %v608_v1 = vmul.f32 0.0, %v10339_v10 }
 0x291   :  { %856 = vmatpush1.msra.mxu0 %v15659_v15  ;;  %8980 = vmatpush3.msra.mxu1 %v11240_v56 }
 0x292   :  { %857 = vmatprep.subr.mxu0 %v11237_v8  ;;  %8981 = vmatprep.subr.mxu1 %v11472_v60  ;;  %v11481_v63 = vadd.f32 %v608_v1, %v607_v59  ;;  %v11497_v59 = vld [vmem:[#allocation5 + $0x70] sm:$0xff]  ;;  %v11503_v1 = vld [vmem:[#allocation5 + $0x68] sm:$0xff] }
 0x293   :  { %858 = vmatpush1.msra.mxu0 %v11243_v54  ;;  %8982 = vmatpush3.msra.mxu1 %v11250_v14 }
 0x294   :  { %859 = vmatprep.subr.mxu0 %v11247_v5  ;;  %8983 = vmatprep.subr.mxu1 %v11472_v60 }
 0x295   :  { %860 = vmatpush1.msra.mxu0 %v11253_v0  ;;  %893 = vmatprep.mubr.f32.mxu0 %v11472_v60 }
 0x296   :  { %8984 = vmatpush3.msra.mxu1 %v11262_v58  ;;  %8985 = vmatprep.mubr.msk.f32.mxu1 %vm10791_vm0, %v11472_v60 }
 0x297   :  { %894 = vmatmul.mubr.f32.vlgmr.msra.gmra.mxu0 %v11481_v63  ;;  %8986 = vmatmul.mubr.f32.vlgmr.msra.gmra.mxu1 %v11481_v63 }
 0x298   :  { %8988 = vmatprep.subr.mxu0 %v11472_v60  ;;  %9020 = vmatprep.mubr.msk.f32.mxu0 %vm10791_vm0, %v11472_v60 }
 0x299   :  { %8989 = vmatpush3.msra.mxu0 %v11491_v3  ;;  %1069 = vmatprep.subr.mxu1 %v10883_v11  ;;  %v11509_v11 = vld [vmem:[#allocation5 + $0x60] sm:$0xff] }
 0x29a   :  { %8990 = vmatprep.subr.mxu0 %v11472_v60  ;;  %1070 = vmatpush1.msra.mxu1 %v10885_v12  ;;  %v11515_v12 = vld [vmem:[#allocation5 + $0x58] sm:$0xff] }
 0x29b   :  { %8991 = vmatpush3.msra.mxu0 %v11497_v59  ;;  %1071 = vmatprep.subr.mxu1 %v10887_v13  ;;  %v11521_v13 = vld [vmem:[#allocation5 + $0x50] sm:$0xff] }
 0x29c   :  { %8992 = vmatprep.subr.mxu0 %v11472_v60  ;;  %1072 = vmatpush1.msra.mxu1 %v10898_v16  ;;  %v11527_v16 = vld [vmem:[#allocation5 + $0x48] sm:$0xff] }
 0x29d   :  { %8993 = vmatpush3.msra.mxu0 %v11503_v1  ;;  %1073 = vmatprep.subr.mxu1 %v10904_v18  ;;  %v11533_v18 = vld [vmem:[#allocation5 + $0x40] sm:$0xff] }
 0x29e   :  { %8994 = vmatprep.subr.mxu0 %v11472_v60  ;;  %1074 = vmatpush1.msra.mxu1 %v10907_v19  ;;  %v11539_v19 = vld [vmem:[#allocation5 + $0x38] sm:$0xff] }
 0x29f   :  { %8995 = vmatpush3.msra.mxu0 %v11509_v11  ;;  %1075 = vmatprep.subr.mxu1 %v10913_v21  ;;  %v11545_v21 = vld [vmem:[#allocation5 + $0x30] sm:$0xff] }
 0x2a0   :  { %8996 = vmatprep.subr.mxu0 %v11472_v60  ;;  %1076 = vmatpush1.msra.mxu1 %v10917_v22  ;;  %v11551_v22 = vld [vmem:[#allocation5 + $0x28] sm:$0xff] }
 0x2a1   :  { %8997 = vmatpush3.msra.mxu0 %v11515_v12  ;;  %1077 = vmatprep.subr.mxu1 %v10923_v24  ;;  %v995_v24 = vpop.permute.xlu1 %994 }
 0x2a2   :  { %8998 = vmatprep.subr.mxu0 %v11472_v60  ;;  %1078 = vmatpush1.msra.mxu1 %v10927_v25  ;;  %vm996_vm3 = vcmp.eq.s32.totalorder %v995_v24, %v11026_v55  ;;  %v15660_v25 = vld [vmem:[#allocation13_spill] sm:$0xff] }
 0x2a3   :  { %8999 = vmatpush3.msra.mxu0 %v11521_v13  ;;  %1079 = vmatprep.subr.mxu1 %v10933_v27  ;;  %v15661_v27 = vld [vmem:[#allocation12_spill] sm:$0xff] }
 0x2a4   :  { %9000 = vmatprep.subr.mxu0 %v11472_v60  ;;  %1080 = vmatpush1.msra.mxu1 %v10937_v28  ;;  %v15662_v28 = vld [vmem:[#allocation14_spill] sm:$0xff] }
 0x2a5   :  { %9001 = vmatpush3.msra.mxu0 %v11527_v16  ;;  %1081 = vmatprep.subr.mxu1 %v10943_v30  ;;  %v15664_v30 = vld [vmem:[#allocation17_spill] sm:$0xff] }
 0x2a6   :  { %9002 = vmatprep.subr.mxu0 %v11472_v60  ;;  %1082 = vmatpush1.msra.mxu1 %v10947_v31  ;;  %v15665_v31 = vld [vmem:[#allocation15_spill] sm:$0xff] }
 0x2a7   :  { %9003 = vmatpush3.msra.mxu0 %v11533_v18  ;;  %1083 = vmatprep.subr.mxu1 %v10953_v33  ;;  %v15667_v33 = vld [vmem:[#allocation33_spill] sm:$0xff] }
 0x2a8   :  { %9004 = vmatprep.subr.mxu0 %v11472_v60  ;;  %1084 = vmatpush1.msra.mxu1 %v10957_v34  ;;  %v15668_v34 = vld [vmem:[#allocation19_spill] sm:$0xff] }
 0x2a9   :  { %9005 = vmatpush3.msra.mxu0 %v11539_v19  ;;  %1085 = vmatprep.subr.mxu1 %v10963_v36  ;;  %v15670_v36 = vld [vmem:[#allocation21_spill] sm:$0xff] }
 0x2aa   :  { %9006 = vmatprep.subr.mxu0 %v11472_v60  ;;  %1086 = vmatpush1.msra.mxu1 %v10967_v37  ;;  %v15671_v37 = vld [vmem:[#allocation22_spill] sm:$0xff] }
 0x2ab   :  { %9007 = vmatpush3.msra.mxu0 %v11545_v21  ;;  %1087 = vmatprep.subr.mxu1 %v10973_v39  ;;  %v15673_v39 = vld [vmem:[#allocation24_spill] sm:$0xff] }
 0x2ac   :  { %9008 = vmatprep.subr.mxu0 %v11472_v60  ;;  %1088 = vmatpush1.msra.mxu1 %v10977_v40  ;;  %v15674_v40 = vld [vmem:[#allocation25_spill] sm:$0xff] }
 0x2ad   :  { %9009 = vmatpush3.msra.mxu0 %v11551_v22  ;;  %1089 = vmatprep.subr.mxu1 %v10983_v42  ;;  %v15675_v42 = vld [vmem:[#allocation26_spill] sm:$0xff] }
 0x2ae   :  { %9010 = vmatprep.subr.mxu0 %v11472_v60  ;;  %1090 = vmatpush1.msra.mxu1 %v10987_v43  ;;  %v15676_v43 = vld [vmem:[#allocation27_spill] sm:$0xff] }
 0x2af   :  { %9011 = vmatpush3.msra.mxu0 %v10940_v29  ;;  %1091 = vmatprep.subr.mxu1 %v10991_v44  ;;  %v15663_v29 = vmov 1.0   ;;  %v15677_v44 = vld [vmem:[#allocation28_spill] sm:$0xff] }
 0x2b0   :  { %9012 = vmatprep.subr.mxu0 %v11472_v60  ;;  %1092 = vmatpush1.msra.mxu1 %v10995_v45  ;;  %v15678_v45 = vld [vmem:[#allocation29_spill] sm:$0xff] }
 0x2b1   :  { %9013 = vmatpush3.msra.mxu0 %v10950_v32  ;;  %1093 = vmatprep.subr.mxu1 %v10999_v46  ;;  %v15666_v32 = vld [vmem:[#allocation18_spill] sm:$0xff] }
 0x2b2   :  { %9014 = vmatprep.subr.mxu0 %v11472_v60  ;;  %1094 = vmatpush1.msra.mxu1 %v11002_v47  ;;  %v15679_v46 = vld [vmem:[#allocation30_spill] sm:$0xff]  ;;  %v15680_v47 = vld [vmem:[#allocation31_spill] sm:$0xff] }
 0x2b3   :  { %9015 = vmatpush3.msra.mxu0 %v10960_v35  ;;  %1095 = vmatprep.subr.mxu1 %v11005_v48  ;;  %v15669_v35 = vld [vmem:[#allocation20_spill] sm:$0xff] }
 0x2b4   :  { %9016 = vmatprep.subr.mxu0 %v11472_v60  ;;  %1096 = vmatpush1.msra.mxu1 %v11008_v49  ;;  %v15681_v48 = vld [vmem:[#allocation32_spill] sm:$0xff] }
 0x2b5   :  { %9017 = vmatpush3.msra.mxu0 %v10970_v38  ;;  %1097 = vmatprep.subr.mxu1 %v11011_v50  ;;  %v15672_v38 = vld [vmem:[#allocation23_spill] sm:$0xff] }
 0x2b6   :  { %9018 = vmatprep.subr.mxu0 %v11472_v60  ;;  %1098 = vmatpush1.msra.mxu1 %v15660_v25 }
 0x2b7   :  { %9019 = vmatpush3.msra.mxu0 %v15661_v27  ;;  %1099 = vmatprep.subr.mxu1 %v15662_v28  ;;  %v15682_v27 = vld [vmem:[#allocation74_spill] sm:$0xff] }
 0x2b8   :  { %9021 = vmatmul.mubr.msk.f32.vlgmr.msra.gmra.mxu0 %vm996_vm3, %v15663_v29  ;;  %9023 = vmatprep.subr.mxu0 %v11472_v60 }
 0x2b9   :  { %9024 = vmatpush3.msra.mxu0 %v15664_v30  ;;  %1100 = vmatpush1.msra.mxu1 %v15665_v31  ;;  %v15683_v30 = vld [vmem:[#allocation75_spill] sm:$0xff] }
 0x2ba   :  { %9025 = vmatprep.subr.mxu0 %v11472_v60  ;;  %1133 = vmatprep.mubr.f32.mxu1 %v11472_v60 }
 0x2bb   :  { %9026 = vmatpush3.msra.mxu0 %v15666_v32  ;;  %9055 = vmatprep.mubr.msk.f32.mxu0 %vm10791_vm0, %v11472_v60 }
 0x2bc   :  { %9027 = vmatprep.subr.mxu0 %v11472_v60  ;;  %1210 = vmatprep.subr.mxu1 %v15667_v33 }
 0x2bd   :  { %9028 = vmatpush3.msra.mxu0 %v15668_v34 }
 0x2be   :  { %9029 = vmatprep.subr.mxu0 %v11472_v60 }
 0x2bf   :  { %9030 = vmatpush3.msra.mxu0 %v15669_v35 }
 0x2c0   :  { %9031 = vmatprep.subr.mxu0 %v11472_v60 }
 0x2c1   :  { %9032 = vmatpush3.msra.mxu0 %v15670_v36 }
 0x2c2   :  { %9033 = vmatprep.subr.mxu0 %v11472_v60 }
 0x2c3   :  { %9034 = vmatpush3.msra.mxu0 %v15671_v37 }
 0x2c4   :  { %9035 = vmatprep.subr.mxu0 %v11472_v60 }
 0x2c5   :  { %9036 = vmatpush3.msra.mxu0 %v15672_v38 }
 0x2c6   :  { %9037 = vmatprep.subr.mxu0 %v11472_v60 }
 0x2c7   :  { %9038 = vmatpush3.msra.mxu0 %v15673_v39 }
 0x2c8   :  { %9039 = vmatprep.subr.mxu0 %v11472_v60 }
 0x2c9   :  { %9040 = vmatpush3.msra.mxu0 %v15674_v40 }
 0x2ca   :  { %9041 = vmatprep.subr.mxu0 %v11472_v60 }
 0x2cb   :  { %9042 = vmatpush3.msra.mxu0 %v15675_v42 }
 0x2cc   :  { %9043 = vmatprep.subr.mxu0 %v11472_v60 }
 0x2cd   :  { %9044 = vmatpush3.msra.mxu0 %v15676_v43 }
 0x2ce   :  { %9045 = vmatprep.subr.mxu0 %v11472_v60 }
 0x2cf   :  { %9046 = vmatpush3.msra.mxu0 %v15677_v44 }
 0x2d0   :  { %9047 = vmatprep.subr.mxu0 %v11472_v60 }
 0x2d1   :  { %9048 = vmatpush3.msra.mxu0 %v15678_v45 }
 0x2d2   :  { %9049 = vmatprep.subr.mxu0 %v11472_v60 }
 0x2d3   :  { %9050 = vmatpush3.msra.mxu0 %v15679_v46 }
 0x2d4   :  { %9051 = vmatprep.subr.mxu0 %v11472_v60 }
 0x2d5   :  { %9052 = vmatpush3.msra.mxu0 %v15680_v47 }
 0x2d6   :  { %9053 = vmatprep.subr.mxu0 %v11472_v60 }
 0x2d7   :  { %9054 = vmatpush3.msra.mxu0 %v15681_v48  ;;  %v15684_v48 = vld [vmem:[#allocation35_spill] sm:$0xff] }
 0x2d8   :  { %9058 = vmatprep.subr.mxu0 %v11472_v60 }
 0x336   :  { %v825_v49 = vpop.f32.mrf.mxu1  ;;  %v754_v10 = vpop.f32.mrf.mxu0 }
 0x337   :  { %v755_v28 = vadd.f32 %v754_v10, %v15682_v27  ;;  %v15685_v10 = vld [vmem:[#allocation37_spill] sm:$0xff] }
 0x338   :  { %v8952_v50 = vpop.f32.mrf.mxu1  ;;  %v756_v52 = vpop.f32.mrf.mxu0 }
 0x339   :  { %v757_v37 = vadd.f32 %v756_v52, %v11400_v9  ;;  %v15686_v52 = vld [vmem:[#allocation39_spill] sm:$0xff] }
 0x357   :  { %v895_v24 = vpop.f32.mrf.mxu0  ;;  %v966_v25 = vpop.f32.mrf.mxu1 }
 0x358   :  { %v896_v31 = vadd.f32 %v895_v24, %v15683_v30  ;;  %v967_v45 = vadd.f32 %v966_v25, %v11407_v20  ;;  %v826_v24 = vadd.f32 %v825_v49, %v11411_v41  ;;  %v15691_v49 = vld [vmem:[#allocation48_spill] sm:$0xff] }
 0x359   :  { %v8987_v32 = vpop.f32.mrf.mxu1  ;;  %v897_v35 = vpop.f32.mrf.mxu0 }
 0x35a   :  { %v970_v33 = vadd.f32 %v896_v31, %v755_v28  ;;  %v898_v36 = vadd.f32 %v897_v35, %v11397_v4  ;;  %v15688_v28 = vld [vmem:[#allocation45_spill] sm:$0xff]  ;;  %v15689_v31 = vld [vmem:[#allocation44_spill] sm:$0xff]  ;;  %v15694_v32 = vld [vmem:[#allocation51_spill] sm:$0xff] }
 0x35b   :  { %v15698_v35 = vld [vmem:[#allocation53_spill] sm:$0xff] }
 0x35c   :  { %v7701_v34 = vmul.f32 -1.442695, %v970_v33  ;;  %v977_v38 = vadd.f32 %v898_v36, %v757_v37  ;;  %v15696_v33 = vld [vmem:[#allocation52_spill] sm:$0xff]  ;;  %v15699_v36 = vld [vmem:[#allocation55_spill] sm:$0xff]  ;;  %v15700_v37 = vld [vmem:[#allocation57_spill] sm:$0xff] }
 0x35e   :  { %10342 = vpow2.f32 %v7701_v34  ;;  %v7702_v39 = vmul.f32 -1.442695, %v977_v38  ;;  %v15697_v34 = vld [vmem:[#allocation54_spill] sm:$0xff]  ;;  %v15701_v38 = vld [vmem:[#allocation56_spill] sm:$0xff] }
 0x360   :  { %10344 = vpow2.f32 %v7702_v39  ;;  %v15702_v39 = vld [vmem:[#allocation58_spill] sm:$0xff] }
 0x36b   :  { %v10343_v40 = vpop.eup %10342 }
 0x36c   :  { %v974_v42 = vadd.f32 1.0, %v10343_v40  ;;  %v15703_v40 = vld [vmem:[#allocation60_spill] sm:$0xff] }
 0x36d   :  { %v10345_v44 = vpop.eup %10344 }
 0x36e   :  { %10346 = vrcp.f32 %v974_v42  ;;  %v15704_v42 = vld [vmem:[#allocation59_spill] sm:$0xff] }
 0x378   :  { %v1065_v43 = vpop.f32.mrf.mxu0 }
 0x379   :  { %1134 = vmatmul.mubr.f32.vlgmr.msra.gmra.mxu1 %v1065_v43  ;;  %9056 = vmatmul.mubr.f32.vlgmr.msra.gmra.mxu0 %v1065_v43  ;;  %v15705_v43 = vld [vmem:[#allocation61_spill] sm:$0xff] }
 0x37a   :  { %1211 = vmatpush1.msra.mxu1 %v15622_v26  ;;  %9059 = vmatpush3.msra.mxu0 %v15623_v51  ;;  %v9022_v46 = vpop.f32.mrf.mxu0  ;;  %v981_v26 = vadd.f32 1.0, %v10345_v44  ;;  %v15687_v51 = vld [vmem:[#allocation41_spill] sm:$0xff]  ;;  %v15706_v44 = vld [vmem:[#allocation62_spill] sm:$0xff] }
 0x37b   :  { %v10347_v47 = vpop.eup %10346  ;;  %1212 = vmatprep.subr.mxu1 %v15684_v48  ;;  %9060 = vmatprep.subr.mxu0 %v11472_v60  ;;  %v15709_v48 = vld [vmem:[#allocation67_spill] sm:$0xff] }
 0x37c   :  { %v984_v50 = vmul.f32 %v10347_v47, %v967_v45  ;;  %1213 = vmatpush1.msra.mxu1 %v15685_v10  ;;  %9061 = vmatpush3.msra.mxu0 %v15686_v52  ;;  %10348 = vrcp.f32 %v981_v26  ;;  %v15707_v45 = vld [vmem:[#allocation64_spill] sm:$0xff]  ;;  %v15708_v47 = vld [vmem:[#allocation65_spill] sm:$0xff]  ;;  %v11739_v26 = vld [vmem:[#allocation6 + $0xf0] sm:$0xff] }
 0x37d   :  { %1214 = vmatprep.subr.mxu1 %v15627_v53  ;;  %9062 = vmatprep.subr.mxu0 %v11472_v60  ;;  %v15690_v53 = vld [vmem:[#allocation46_spill] sm:$0xff]  ;;  %v15710_v10 = vld [vmem:[#allocation68_spill] sm:$0xff] }
 0x37e   :  { %1215 = vmatpush1.msra.mxu1 %v15628_v7  ;;  %9063 = vmatpush3.msra.mxu0 %v15629_v62  ;;  %v985_v25 = vadd.f32 %v984_v50, %v826_v24  ;;  %v15692_v7 = vld [vmem:[#allocation47_spill] sm:$0xff]  ;;  %v15693_v62 = vld [vmem:[#allocation49_spill] sm:$0xff] }
 0x37f   :  { %1216 = vmatprep.subr.mxu1 %v15687_v51  ;;  %9064 = vmatprep.subr.mxu0 %v11472_v60  ;;  %v11735_v24 = vld [vmem:[#allocation6 + $0xf8] sm:$0xff]  ;;  %v11743_v51 = vld [vmem:[#allocation6 + $0xe0] sm:$0xff] }
 0x380   :  { %1217 = vmatpush1.msra.mxu1 %v15631_v17  ;;  %9065 = vmatpush3.msra.mxu0 %v15688_v28  ;;  %10350 = vtanh.f32 %v985_v25  ;;  %v15695_v17 = vld [vmem:[#allocation50_spill] sm:$0xff]  ;;  %v11747_v25 = vld [vmem:[#allocation6 + $0xd8] sm:$0xff]  ;;  %v11751_v28 = vld [vmem:[#allocation6 + $0xc8] sm:$0xff] }
 0x381   :  { %1218 = vmatprep.subr.mxu1 %v15689_v31  ;;  %9066 = vmatprep.subr.mxu0 %v11472_v60  ;;  %v11755_v31 = vld [vmem:[#allocation6 + $0xc0] sm:$0xff] }
 0x382   :  { %1219 = vmatpush1.msra.mxu1 %v15690_v53  ;;  %9067 = vmatpush3.msra.mxu0 %v15691_v49  ;;  %v11759_v53 = vld [vmem:[#allocation6 + $0xb0] sm:$0xff]  ;;  %v11763_v49 = vld [vmem:[#allocation6 + $0xa8] sm:$0xff] }
 0x383   :  { %1220 = vmatprep.subr.mxu1 %v15692_v7  ;;  %9068 = vmatprep.subr.mxu0 %v11472_v60  ;;  %v11767_v7 = vld [vmem:[#allocation6 + $0x98] sm:$0xff] }
 0x384   :  { %1221 = vmatpush1.msra.mxu1 %v15693_v62  ;;  %9069 = vmatpush3.msra.mxu0 %v15694_v32  ;;  %v11771_v62 = vld [vmem:[#allocation6 + $0x90] sm:$0xff]  ;;  %v11775_v32 = vld [vmem:[#allocation6 + $0x80] sm:$0xff] }
 0x385   :  { %1222 = vmatprep.subr.mxu1 %v15695_v17  ;;  %9070 = vmatprep.subr.mxu0 %v11472_v60  ;;  %v11779_v17 = vld [vmem:[#allocation6 + $0x78] sm:$0xff] }
 0x386   :  { %1223 = vmatpush1.msra.mxu1 %v15696_v33  ;;  %9071 = vmatpush3.msra.mxu0 %v15697_v34  ;;  %v11782_v33 = vld [vmem:[#allocation5 + $0x20] sm:$0xff]  ;;  %v11785_v34 = vld [vmem:[#allocation6 + $0x68] sm:$0xff] }
 0x387   :  { %1224 = vmatprep.subr.mxu1 %v15698_v35  ;;  %9072 = vmatprep.subr.mxu0 %v11472_v60  ;;  %v11789_v35 = vld [vmem:[#allocation6 + $0x60] sm:$0xff] }
 0x388   :  { %1225 = vmatpush1.msra.mxu1 %v15699_v36  ;;  %9073 = vmatpush3.msra.mxu0 %v15700_v37  ;;  %15712 = vst [vmem:[#allocation34_spill] sm:$0xff] %v11789_v35  ;;  %v11792_v36 = vld [vmem:[#allocation5 + $0x18] sm:$0xff]  ;;  %v11795_v37 = vld [vmem:[#allocation6 + $0x50] sm:$0xff] }
 0x389   :  { %1226 = vmatprep.subr.mxu1 %v15701_v38  ;;  %9074 = vmatprep.subr.mxu0 %v11472_v60  ;;  %v10349_v46 = vpop.eup %10348  ;;  %15713 = vst [vmem:[#allocation36_spill] sm:$0xff] %v11792_v36  ;;  %15714 = vst [vmem:[#allocation38_spill] sm:$0xff] %v11795_v37  ;;  %v11799_v38 = vld [vmem:[#allocation6 + $0x48] sm:$0xff] }
 0x38a   :  { %1227 = vmatpush1.msra.mxu1 %v15702_v39  ;;  %9075 = vmatpush3.msra.mxu0 %v15703_v40  ;;  %15715 = vst [vmem:[#allocation40_spill] sm:$0xff] %v11799_v38  ;;  %v11802_v39 = vld [vmem:[#allocation5 + $0x10] sm:$0xff]  ;;  %v11805_v40 = vld [vmem:[#allocation6 + $0x38] sm:$0xff] }
 0x38b   :  { %1228 = vmatprep.subr.mxu1 %v15704_v42  ;;  %9076 = vmatprep.subr.mxu0 %v11472_v60  ;;  %15716 = vst [vmem:[#allocation42_spill] sm:$0xff] %v11802_v39  ;;  %15717 = vst [vmem:[#allocation43_spill] sm:$0xff] %v11805_v40  ;;  %v11809_v42 = vld [vmem:[#allocation6 + $0x30] sm:$0xff] }
 0x38c   :  { %1229 = vmatpush1.msra.mxu1 %v15705_v43  ;;  %9077 = vmatpush3.msra.mxu0 %v15650_v23  ;;  %v987_v23 = vsub.f32 1.0, %v10349_v46  ;;  %15718 = vst [vmem:[#allocation63_spill] sm:$0xff] %v11809_v42  ;;  %v11812_v43 = vld [vmem:[#allocation5 + $0x8] sm:$0xff] }
 0x38d   :  { %1230 = vmatprep.subr.mxu1 %v15706_v44  ;;  %9078 = vmatprep.subr.mxu0 %v11472_v60  ;;  %v10351_v50 = vpop.eup %10350  ;;  %15719 = vst [vmem:[#allocation66_spill] sm:$0xff] %v11812_v43  ;;  %v11815_v44 = vld [vmem:[#allocation6 + $0x20] sm:$0xff] }
 0x38e   :  { %1231 = vmatpush1.msra.mxu1 %v15707_v45  ;;  %9079 = vmatpush3.msra.mxu0 %v15653_v61  ;;  %v15711_v61 = vld [vmem:[#allocation71_spill] sm:$0xff]  ;;  %v988_v52 = vmul.f32 %v10351_v50, %v987_v23  ;;  %15720 = vst [vmem:[#allocation69_spill] sm:$0xff] %v11815_v44  ;;  %v1376_v45 = vpop.permute.xlu1 %1375  ;;  %v11839_v23 = vld [vmem:[#allocation6 + $0x160] sm:$0xff] }
 0x38f   :  { %1232 = vmatprep.subr.mxu1 %v15708_v47  ;;  %9080 = vmatprep.subr.mxu0 %v11472_v60  ;;  %vm1377_vm4 = vcmp.eq.s32.totalorder %v1376_v45, %v11026_v55  ;;  %v11823_v47 = vld [vmem:[#allocation5] sm:$0xff]  ;;  %v11831_v50 = vld [vmem:[#allocation6 + $0x178] sm:$0xff]  ;;  %15726 = vst [vmem:[#allocation17_spill] sm:$0xff] %v11839_v23 }
 0x390   :  { %1233 = vmatpush1.msra.mxu1 %v15709_v48  ;;  %9081 = vmatpush3.msra.mxu0 %v15656_v6  ;;  %v11727_v6 = vld [vmem:[#allocation6 + $0x110] sm:$0xff]  ;;  %15722 = vst [vmem:[#allocation72_spill] sm:$0xff] %v11823_v47  ;;  %v11826_v48 = vld [vmem:[#allocation6 + $0x8] sm:$0xff]  ;;  %15724 = vst [vmem:[#allocation12_spill] sm:$0xff] %v11831_v50 }
 0x391   :  { %1234 = vmatprep.subr.mxu1 %v15710_v10  ;;  %9082 = vmatprep.subr.mxu0 %v11472_v60  ;;  %15723 = vst [vmem:[#allocation13_spill] sm:$0xff] %v11826_v48  ;;  %v11834_v10 = vld [vmem:[#allocation6] sm:$0xff]  ;;  %v11856_v45 = vld [vmem:[#allocation6 + $0x118] sm:$0xff] }
 0x392   :  { %1235 = vmatpush1.msra.mxu1 %v15658_v57  ;;  %9083 = vmatpush3.msra.mxu0 %v11230_v2  ;;  %v989_v2 = vmul.f32 %v10349_v46, %v11481_v63  ;;  %v11719_v57 = vld [vmem:[#allocation6 + $0x128] sm:$0xff]  ;;  %v11819_v46 = vld [vmem:[#allocation6 + $0x18] sm:$0xff]  ;;  %15725 = vst [vmem:[#allocation14_spill] sm:$0xff] %v11834_v10  ;;  %15730 = vst [vmem:[#allocation19_spill] sm:$0xff] %v11856_v45 }
 0x393   :  { %1236 = vmatprep.subr.mxu1 %v15711_v61  ;;  %9084 = vmatprep.subr.mxu0 %v11472_v60  ;;  %v11731_v63 = vld [vmem:[#allocation6 + $0x108] sm:$0xff]  ;;  %15721 = vst [vmem:[#allocation70_spill] sm:$0xff] %v11819_v46  ;;  %v11845_v61 = vld [vmem:[#allocation6 + $0x2f0] sm:$0xff] }
 0x394   :  { %1237 = vmatpush1.msra.mxu1 %v15659_v15  ;;  %9085 = vmatpush3.msra.mxu0 %v11240_v56  ;;  %v11684_v56 = vadd.f32 %v989_v2, %v988_v52  ;;  %v11723_v15 = vld [vmem:[#allocation6 + $0x120] sm:$0xff]  ;;  %15727 = vst [vmem:[#allocation15_spill] sm:$0xff] %v11845_v61  ;;  %v11848_v52 = vld [vmem:[#allocation6 + $0x148] sm:$0xff]  ;;  %v11852_v2 = vld [vmem:[#allocation6 + $0x130] sm:$0xff] }
 0x395   :  { %1238 = vmatprep.subr.mxu1 %v11237_v8  ;;  %9086 = vmatprep.subr.mxu0 %v11472_v60  ;;  %v11703_v8 = vld [vmem:[#allocation6 + $0x158] sm:$0xff]  ;;  %15728 = vst [vmem:[#allocation18_spill] sm:$0xff] %v11848_v52  ;;  %15729 = vst [vmem:[#allocation33_spill] sm:$0xff] %v11852_v2 }
 0x396   :  { %1239 = vmatpush1.msra.mxu1 %v11243_v54  ;;  %9087 = vmatpush3.msra.mxu0 %v11250_v14  ;;  %v11695_v14 = vld [vmem:[#allocation6 + $0x170] sm:$0xff] }
 0x397   :  { %1240 = vmatprep.subr.mxu1 %v11247_v5  ;;  %9088 = vmatprep.subr.mxu0 %v11472_v60  ;;  %v11707_v54 = vld [vmem:[#allocation6 + $0x150] sm:$0xff]  ;;  %v11711_v5 = vld [vmem:[#allocation6 + $0x140] sm:$0xff] }
 0x398   :  { %1241 = vmatpush1.msra.mxu1 %v11253_v0  ;;  %1274 = vmatprep.mubr.f32.mxu1 %v11472_v60  ;;  %v11715_v0 = vld [vmem:[#allocation6 + $0x138] sm:$0xff] }
 0x399   :  { %9089 = vmatpush3.msra.mxu0 %v11262_v58  ;;  %9090 = vmatprep.mubr.msk.f32.mxu0 %vm10791_vm0, %v11472_v60  ;;  %v11699_v58 = vld [vmem:[#allocation6 + $0x168] sm:$0xff] }
 0x39a   :  { %1275 = vmatmul.mubr.f32.vlgmr.msra.gmra.mxu1 %v11684_v56  ;;  %9091 = vmatmul.mubr.f32.vlgmr.msra.gmra.mxu0 %v11684_v56 }
 0x39b   :  { %9093 = vmatprep.subr.mxu1 %v11472_v60  ;;  %9125 = vmatprep.mubr.msk.f32.mxu1 %vm10791_vm0, %v11472_v60 }
 0x39c   :  { %9094 = vmatpush3.msra.mxu1 %v11491_v3  ;;  %1450 = vmatprep.subr.mxu0 %v11695_v14 }
 0x39d   :  { %9095 = vmatprep.subr.mxu1 %v11472_v60  ;;  %1451 = vmatpush1.msra.mxu0 %v11699_v58 }
 0x39e   :  { %9096 = vmatpush3.msra.mxu1 %v11497_v59  ;;  %1452 = vmatprep.subr.mxu0 %v11703_v8 }
 0x39f   :  { %9097 = vmatprep.subr.mxu1 %v11472_v60  ;;  %1453 = vmatpush1.msra.mxu0 %v11707_v54 }
 0x3a0   :  { %9098 = vmatpush3.msra.mxu1 %v11503_v1  ;;  %1454 = vmatprep.subr.mxu0 %v11711_v5 }
 0x3a1   :  { %9099 = vmatprep.subr.mxu1 %v11472_v60  ;;  %1455 = vmatpush1.msra.mxu0 %v11715_v0 }
 0x3a2   :  { %9100 = vmatpush3.msra.mxu1 %v11509_v11  ;;  %1456 = vmatprep.subr.mxu0 %v11719_v57 }
 0x3a3   :  { %9101 = vmatprep.subr.mxu1 %v11472_v60  ;;  %1457 = vmatpush1.msra.mxu0 %v11723_v15 }
 0x3a4   :  { %9102 = vmatpush3.msra.mxu1 %v11515_v12  ;;  %1458 = vmatprep.subr.mxu0 %v11727_v6 }
 0x3a5   :  { %9103 = vmatprep.subr.mxu1 %v11472_v60  ;;  %1459 = vmatpush1.msra.mxu0 %v11731_v63 }
 0x3a6   :  { %9104 = vmatpush3.msra.mxu1 %v11521_v13  ;;  %1460 = vmatprep.subr.mxu0 %v11735_v24 }
 0x3a7   :  { %9105 = vmatprep.subr.mxu1 %v11472_v60  ;;  %1461 = vmatpush1.msra.mxu0 %v11739_v26 }
 0x3a8   :  { %9106 = vmatpush3.msra.mxu1 %v11527_v16  ;;  %1462 = vmatprep.subr.mxu0 %v11743_v51 }
 0x3a9   :  { %9107 = vmatprep.subr.mxu1 %v11472_v60  ;;  %1463 = vmatpush1.msra.mxu0 %v11747_v25 }
 0x3aa   :  { %9108 = vmatpush3.msra.mxu1 %v11533_v18  ;;  %1464 = vmatprep.subr.mxu0 %v11751_v28 }
 0x3ab   :  { %9109 = vmatprep.subr.mxu1 %v11472_v60  ;;  %1465 = vmatpush1.msra.mxu0 %v11755_v31 }
 0x3ac   :  { %9110 = vmatpush3.msra.mxu1 %v11539_v19  ;;  %1466 = vmatprep.subr.mxu0 %v11759_v53 }
 0x3ad   :  { %9111 = vmatprep.subr.mxu1 %v11472_v60  ;;  %1467 = vmatpush1.msra.mxu0 %v11763_v49 }
 0x3ae   :  { %9112 = vmatpush3.msra.mxu1 %v11545_v21  ;;  %1468 = vmatprep.subr.mxu0 %v11767_v7 }
 0x3af   :  { %9113 = vmatprep.subr.mxu1 %v11472_v60  ;;  %1469 = vmatpush1.msra.mxu0 %v11771_v62 }
 0x3b0   :  { %9114 = vmatpush3.msra.mxu1 %v11551_v22  ;;  %1470 = vmatprep.subr.mxu0 %v11775_v32 }
 0x3b1   :  { %9115 = vmatprep.subr.mxu1 %v11472_v60  ;;  %1471 = vmatpush1.msra.mxu0 %v11779_v17 }
 0x3b2   :  { %9116 = vmatpush3.msra.mxu1 %v11782_v33  ;;  %1472 = vmatprep.subr.mxu0 %v11785_v34 }
 0x3b3   :  { %9117 = vmatprep.subr.mxu1 %v11472_v60  ;;  %1473 = vmatpush1.msra.mxu0 %v11789_v35 }
 0x3b4   :  { %9118 = vmatpush3.msra.mxu1 %v11792_v36  ;;  %1474 = vmatprep.subr.mxu0 %v11795_v37 }
 0x3b5   :  { %9119 = vmatprep.subr.mxu1 %v11472_v60  ;;  %1475 = vmatpush1.msra.mxu0 %v11799_v38 }
 0x3b6   :  { %9120 = vmatpush3.msra.mxu1 %v11802_v39  ;;  %1476 = vmatprep.subr.mxu0 %v11805_v40 }
 0x3b7   :  { %9121 = vmatprep.subr.mxu1 %v11472_v60  ;;  %1477 = vmatpush1.msra.mxu0 %v11809_v42 }
 0x3b8   :  { %9122 = vmatpush3.msra.mxu1 %v11812_v43  ;;  %1478 = vmatprep.subr.mxu0 %v11815_v44 }
 0x3b9   :  { %9123 = vmatprep.subr.mxu1 %v11472_v60  ;;  %1479 = vmatpush1.msra.mxu0 %v11819_v46 }
 0x3ba   :  { %9124 = vmatpush3.msra.mxu1 %v11823_v47  ;;  %1480 = vmatprep.subr.mxu0 %v11826_v48 }
 0x3bb   :  { %9126 = vmatmul.mubr.msk.f32.vlgmr.msra.gmra.mxu1 %vm1377_vm4, %v15663_v29  ;;  %9128 = vmatprep.subr.mxu1 %v11472_v60 }
 0x3bc   :  { %9129 = vmatpush3.msra.mxu1 %v11831_v50  ;;  %1481 = vmatpush1.msra.mxu0 %v11834_v10 }
 0x3bd   :  { %9130 = vmatprep.subr.mxu1 %v11472_v60  ;;  %1514 = vmatprep.mubr.f32.mxu0 %v11472_v60 }
 0x3be   :  { %9131 = vmatpush3.msra.mxu1 %v11839_v23  ;;  %9160 = vmatprep.mubr.msk.f32.mxu1 %vm10791_vm0, %v11472_v60  ;;  %v11860_v23 = vld [vmem:[#allocation6 + $0x100] sm:$0xff] }
 0x3bf   :  { %9132 = vmatprep.subr.mxu1 %v11472_v60  ;;  %1591 = vmatprep.subr.mxu0 %v11845_v61  ;;  %15731 = vst [vmem:[#allocation20_spill] sm:$0xff] %v11860_v23 }
 0x3c0   :  { %9133 = vmatpush3.msra.mxu1 %v11848_v52  ;;  %v11864_v52 = vld [vmem:[#allocation6 + $0xe8] sm:$0xff] }
 0x3c1   :  { %9134 = vmatprep.subr.mxu1 %v11472_v60  ;;  %15732 = vst [vmem:[#allocation21_spill] sm:$0xff] %v11864_v52 }
 0x3c2   :  { %9135 = vmatpush3.msra.mxu1 %v11852_v2  ;;  %v11868_v2 = vld [vmem:[#allocation6 + $0xd0] sm:$0xff] }
 0x3c3   :  { %9136 = vmatprep.subr.mxu1 %v11472_v60  ;;  %15733 = vst [vmem:[#allocation22_spill] sm:$0xff] %v11868_v2 }
 0x3c4   :  { %9137 = vmatpush3.msra.mxu1 %v11856_v45  ;;  %v11872_v45 = vld [vmem:[#allocation6 + $0xb8] sm:$0xff] }
 0x3c5   :  { %9138 = vmatprep.subr.mxu1 %v11472_v60  ;;  %15734 = vst [vmem:[#allocation23_spill] sm:$0xff] %v11872_v45 }
 0x3c6   :  { %9139 = vmatpush3.msra.mxu1 %v11860_v23  ;;  %v11876_v23 = vld [vmem:[#allocation6 + $0xa0] sm:$0xff] }
 0x3c7   :  { %9140 = vmatprep.subr.mxu1 %v11472_v60  ;;  %15735 = vst [vmem:[#allocation24_spill] sm:$0xff] %v11876_v23 }
 0x3c8   :  { %9141 = vmatpush3.msra.mxu1 %v11864_v52  ;;  %v11880_v52 = vld [vmem:[#allocation6 + $0x88] sm:$0xff] }
 0x3c9   :  { %9142 = vmatprep.subr.mxu1 %v11472_v60  ;;  %15736 = vst [vmem:[#allocation25_spill] sm:$0xff] %v11880_v52 }
 0x3ca   :  { %9143 = vmatpush3.msra.mxu1 %v11868_v2  ;;  %v11884_v2 = vld [vmem:[#allocation6 + $0x70] sm:$0xff] }
 0x3cb   :  { %9144 = vmatprep.subr.mxu1 %v11472_v60  ;;  %15737 = vst [vmem:[#allocation26_spill] sm:$0xff] %v11884_v2 }
 0x3cc   :  { %9145 = vmatpush3.msra.mxu1 %v11872_v45  ;;  %v11888_v45 = vld [vmem:[#allocation6 + $0x58] sm:$0xff] }
 0x3cd   :  { %9146 = vmatprep.subr.mxu1 %v11472_v60  ;;  %15738 = vst [vmem:[#allocation27_spill] sm:$0xff] %v11888_v45 }
 0x3ce   :  { %9147 = vmatpush3.msra.mxu1 %v11876_v23  ;;  %v11892_v23 = vld [vmem:[#allocation6 + $0x40] sm:$0xff] }
 0x3cf   :  { %9148 = vmatprep.subr.mxu1 %v11472_v60  ;;  %15739 = vst [vmem:[#allocation28_spill] sm:$0xff] %v11892_v23 }
 0x3d0   :  { %9149 = vmatpush3.msra.mxu1 %v11880_v52  ;;  %v11896_v52 = vld [vmem:[#allocation6 + $0x28] sm:$0xff] }
 0x3d1   :  { %9150 = vmatprep.subr.mxu1 %v11472_v60  ;;  %15740 = vst [vmem:[#allocation29_spill] sm:$0xff] %v11896_v52 }
 0x3d2   :  { %9151 = vmatpush3.msra.mxu1 %v11884_v2  ;;  %v11900_v2 = vld [vmem:[#allocation6 + $0x10] sm:$0xff] }
 0x3d3   :  { %9152 = vmatprep.subr.mxu1 %v11472_v60  ;;  %15741 = vst [vmem:[#allocation30_spill] sm:$0xff] %v11900_v2 }
 0x3d4   :  { %9153 = vmatpush3.msra.mxu1 %v11888_v45 }
 0x3d5   :  { %9154 = vmatprep.subr.mxu1 %v11472_v60 }
 0x3d6   :  { %9155 = vmatpush3.msra.mxu1 %v11892_v23 }
 0x3d7   :  { %9156 = vmatprep.subr.mxu1 %v11472_v60 }
 0x3d8   :  { %9157 = vmatpush3.msra.mxu1 %v11896_v52 }
 0x3d9   :  { %9158 = vmatprep.subr.mxu1 %v11472_v60 }
 0x3da   :  { %9159 = vmatpush3.msra.mxu1 %v11900_v2 }
 0x3db   :  { %9163 = vmatprep.subr.mxu1 %v11472_v60 }
 0x439   :  { %v1206_v45 = vpop.f32.mrf.mxu0  ;;  %v1135_v10 = vpop.f32.mrf.mxu1 }
 0x43a   :  { %v1136_v48 = vadd.f32 %v1135_v10, %v15682_v27 }
 0x43b   :  { %v9057_v61 = vpop.f32.mrf.mxu0  ;;  %v1137_v50 = vpop.f32.mrf.mxu1 }
 0x43c   :  { %v1138_v2 = vadd.f32 %v1137_v50, %v11400_v9 }
 0x45a   :  { %v1276_v29 = vpop.f32.mrf.mxu1  ;;  %v1347_v23 = vpop.f32.mrf.mxu0 }
 0x45b   :  { %v1277_v47 = vadd.f32 %v1276_v29, %v15683_v30  ;;  %v11909_v29 = vld [vmem:[#allocation6 + $0x2e8] sm:$0xff] }
 0x45c   :  { %v9092_v55 = vpop.f32.mrf.mxu0  ;;  %v1278_v44 = vpop.f32.mrf.mxu1 }
 0x45d   :  { %v1351_v52 = vadd.f32 %v1277_v47, %v1136_v48  ;;  %v1279_v43 = vadd.f32 %v1278_v44, %v11397_v4  ;;  %v1348_v55 = vadd.f32 %v1347_v23, %v11407_v20  ;;  %v11915_v44 = vld [vmem:[#allocation6 + $0x2d8] sm:$0xff]  ;;  %v11925_v47 = vld [vmem:[#allocation6 + $0x2c0] sm:$0xff]  ;;  %v1207_v48 = vadd.f32 %v1206_v45, %v11411_v41  ;;  %v11943_v45 = vld [vmem:[#allocation6 + $0x2b0] sm:$0xff] }
 0x45e   :  { %v11930_v23 = vld [vmem:[#allocation6 + $0x2b8] sm:$0xff]  ;;  %15744 = vst [vmem:[#allocation74_spill] sm:$0xff] %v11943_v45 }
 0x45f   :  { %v7706_v46 = vmul.f32 -1.442695, %v1351_v52  ;;  %v1358_v42 = vadd.f32 %v1279_v43, %v1138_v2  ;;  %v11933_v52 = vld [vmem:[#allocation6 + $0x2c8] sm:$0xff] }
 0x460   :  { %v11936_v2 = vld [vmem:[#allocation6 + $0x2a8] sm:$0xff] }
 0x461   :  { %10352 = vpow2.f32 %v7706_v46  ;;  %v7707_v40 = vmul.f32 -1.442695, %v1358_v42  ;;  %v11912_v46 = vld [vmem:[#allocation6 + $0x2f8] sm:$0xff]  ;;  %15742 = vst [vmem:[#allocation31_spill] sm:$0xff] %v11936_v2 }
 0x463   :  { %10354 = vpow2.f32 %v7707_v40  ;;  %v11922_v40 = vld [vmem:[#allocation6 + $0x2e0] sm:$0xff] }
 0x46e   :  { %v10353_v61 = vpop.eup %10352 }
 0x46f   :  { %v1355_v39 = vadd.f32 1.0, %v10353_v61 }
 0x470   :  { %v10355_v10 = vpop.eup %10354 }
 0x471   :  { %10356 = vrcp.f32 %v1355_v39  ;;  %v11919_v39 = vld [vmem:[#allocation6 + $0x2d0] sm:$0xff]  ;;  %v1362_v50 = vadd.f32 1.0, %v10355_v10 }
 0x472   :  { %v11946_v10 = vld [vmem:[#allocation6 + $0x290] sm:$0xff] }
 0x473   :  { %15745 = vst [vmem:[#allocation75_spill] sm:$0xff] %v11946_v10  ;;  %10358 = vrcp.f32 %v1362_v50  ;;  %v11963_v50 = vld [vmem:[#allocation6 + $0x280] sm:$0xff] }
 0x474   :  { %15750 = vst [vmem:[#allocation45_spill] sm:$0xff] %v11963_v50 }
 0x47b   :  { %v1446_v38 = vpop.f32.mrf.mxu1 }
 0x47c   :  { %1515 = vmatmul.mubr.f32.vlgmr.msra.gmra.mxu0 %v1446_v38  ;;  %9161 = vmatmul.mubr.f32.vlgmr.msra.gmra.mxu1 %v1446_v38 }
 0x47d   :  { %1592 = vmatpush1.msra.mxu0 %v11909_v29  ;;  %9164 = vmatpush3.msra.mxu1 %v11912_v46  ;;  %v9127_v43 = vpop.f32.mrf.mxu1 }
 0x47e   :  { %v10357_v42 = vpop.eup %10356  ;;  %1593 = vmatprep.subr.mxu0 %v11915_v44  ;;  %9165 = vmatprep.subr.mxu1 %v11472_v60  ;;  %v11950_v43 = vld [vmem:[#allocation6 + $0x288] sm:$0xff] }
 0x47f   :  { %v1365_v38 = vmul.f32 %v10357_v42, %v1348_v55  ;;  %1594 = vmatpush1.msra.mxu0 %v11919_v39  ;;  %9166 = vmatpush3.msra.mxu1 %v11922_v40  ;;  %v11940_v55 = vld [vmem:[#allocation6 + $0x2a0] sm:$0xff]  ;;  %15746 = vst [vmem:[#allocation35_spill] sm:$0xff] %v11950_v43  ;;  %v11953_v42 = vld [vmem:[#allocation6 + $0x298] sm:$0xff] }
 0x480   :  { %1595 = vmatprep.subr.mxu0 %v11925_v47  ;;  %9167 = vmatprep.subr.mxu1 %v11472_v60  ;;  %15743 = vst [vmem:[#allocation32_spill] sm:$0xff] %v11940_v55  ;;  %15747 = vst [vmem:[#allocation37_spill] sm:$0xff] %v11953_v42 }
 0x481   :  { %1596 = vmatpush1.msra.mxu0 %v11930_v23  ;;  %9168 = vmatpush3.msra.mxu1 %v11933_v52  ;;  %v1366_v61 = vadd.f32 %v1365_v38, %v1207_v48  ;;  %v11956_v38 = vld [vmem:[#allocation6 + $0x278] sm:$0xff]  ;;  %v11960_v48 = vld [vmem:[#allocation6 + $0x270] sm:$0xff] }
 0x482   :  { %1597 = vmatprep.subr.mxu0 %v11936_v2  ;;  %9169 = vmatprep.subr.mxu1 %v11472_v60  ;;  %15748 = vst [vmem:[#allocation39_spill] sm:$0xff] %v11956_v38  ;;  %15749 = vst [vmem:[#allocation41_spill] sm:$0xff] %v11960_v48  ;;  %v12057_v2 = vld [vmem:[#allocation6 + $0x188] sm:$0xff] }
 0x483   :  { %1598 = vmatpush1.msra.mxu0 %v11940_v55  ;;  %9170 = vmatpush3.msra.mxu1 %v11943_v45  ;;  %10360 = vtanh.f32 %v1366_v61  ;;  %v11976_v61 = vld [vmem:[#allocation6 + $0x248] sm:$0xff]  ;;  %v12036_v45 = vld [vmem:[#allocation6 + $0x1b8] sm:$0xff]  ;;  %v12046_v55 = vld [vmem:[#allocation6 + $0x1a0] sm:$0xff] }
 0x484   :  { %1599 = vmatprep.subr.mxu0 %v11946_v10  ;;  %9171 = vmatprep.subr.mxu1 %v11472_v60  ;;  %15754 = vst [vmem:[#allocation47_spill] sm:$0xff] %v11976_v61  ;;  %v12026_v10 = vld [vmem:[#allocation6 + $0x1d0] sm:$0xff]  ;;  %15772 = vst [vmem:[#allocation68_spill] sm:$0xff] %v12036_v45 }
 0x485   :  { %1600 = vmatpush1.msra.mxu0 %v11950_v43  ;;  %9172 = vmatpush3.msra.mxu1 %v11953_v42  ;;  %v11966_v43 = vld [vmem:[#allocation6 + $0x260] sm:$0xff]  ;;  %v11970_v42 = vld [vmem:[#allocation6 + $0x258] sm:$0xff]  ;;  %15769 = vst [vmem:[#allocation64_spill] sm:$0xff] %v12026_v10 }
 0x486   :  { %1601 = vmatprep.subr.mxu0 %v11956_v38  ;;  %9173 = vmatprep.subr.mxu1 %v11472_v60  ;;  %15751 = vst [vmem:[#allocation44_spill] sm:$0xff] %v11966_v43  ;;  %15752 = vst [vmem:[#allocation46_spill] sm:$0xff] %v11970_v42  ;;  %v11973_v38 = vld [vmem:[#allocation6 + $0x268] sm:$0xff] }
 0x487   :  { %1602 = vmatpush1.msra.mxu0 %v11960_v48  ;;  %9174 = vmatpush3.msra.mxu1 %v11963_v50  ;;  %15753 = vst [vmem:[#allocation48_spill] sm:$0xff] %v11973_v38  ;;  %v11980_v50 = vld [vmem:[#allocation6 + $0x240] sm:$0xff]  ;;  %v11986_v48 = vld [vmem:[#allocation6 + $0x230] sm:$0xff] }
 0x488   :  { %1603 = vmatprep.subr.mxu0 %v11966_v43  ;;  %9175 = vmatprep.subr.mxu1 %v11472_v60  ;;  %15755 = vst [vmem:[#allocation49_spill] sm:$0xff] %v11980_v50  ;;  %v11983_v43 = vld [vmem:[#allocation6 + $0x250] sm:$0xff]  ;;  %15757 = vst [vmem:[#allocation50_spill] sm:$0xff] %v11986_v48 }
 0x489   :  { %1604 = vmatpush1.msra.mxu0 %v11970_v42  ;;  %9176 = vmatpush3.msra.mxu1 %v11973_v38  ;;  %15756 = vst [vmem:[#allocation51_spill] sm:$0xff] %v11983_v43  ;;  %v11990_v38 = vld [vmem:[#allocation6 + $0x228] sm:$0xff]  ;;  %v11996_v42 = vld [vmem:[#allocation6 + $0x218] sm:$0xff] }
 0x48a   :  { %1605 = vmatprep.subr.mxu0 %v11976_v61  ;;  %9177 = vmatprep.subr.mxu1 %v11472_v60  ;;  %15758 = vst [vmem:[#allocation52_spill] sm:$0xff] %v11990_v38  ;;  %v11993_v61 = vld [vmem:[#allocation6 + $0x238] sm:$0xff]  ;;  %15760 = vst [vmem:[#allocation53_spill] sm:$0xff] %v11996_v42 }
 0x48b   :  { %1606 = vmatpush1.msra.mxu0 %v11980_v50  ;;  %9178 = vmatpush3.msra.mxu1 %v11983_v43  ;;  %15759 = vst [vmem:[#allocation54_spill] sm:$0xff] %v11993_v61  ;;  %v12000_v43 = vld [vmem:[#allocation6 + $0x210] sm:$0xff]  ;;  %v12006_v50 = vld [vmem:[#allocation6 + $0x200] sm:$0xff] }
 0x48c   :  { %1607 = vmatprep.subr.mxu0 %v11986_v48  ;;  %9179 = vmatprep.subr.mxu1 %v11472_v60  ;;  %15761 = vst [vmem:[#allocation55_spill] sm:$0xff] %v12000_v43  ;;  %v12003_v48 = vld [vmem:[#allocation6 + $0x220] sm:$0xff]  ;;  %15763 = vst [vmem:[#allocation56_spill] sm:$0xff] %v12006_v50 }
 0x48d   :  { %1608 = vmatpush1.msra.mxu0 %v11990_v38  ;;  %9180 = vmatpush3.msra.mxu1 %v11993_v61  ;;  %15762 = vst [vmem:[#allocation57_spill] sm:$0xff] %v12003_v48  ;;  %v12010_v61 = vld [vmem:[#allocation6 + $0x1f8] sm:$0xff]  ;;  %v10359_v38 = vpop.eup %10358 }
 0x48e   :  { %1609 = vmatprep.subr.mxu0 %v11996_v42  ;;  %9181 = vmatprep.subr.mxu1 %v11472_v60  ;;  %15764 = vst [vmem:[#allocation58_spill] sm:$0xff] %v12010_v61  ;;  %v12013_v42 = vld [vmem:[#allocation6 + $0x208] sm:$0xff] }
 0x48f   :  { %1610 = vmatpush1.msra.mxu0 %v12000_v43  ;;  %9182 = vmatpush3.msra.mxu1 %v12003_v48  ;;  %15765 = vst [vmem:[#allocation60_spill] sm:$0xff] %v12013_v42  ;;  %v12016_v43 = vld [vmem:[#allocation6 + $0x1e8] sm:$0xff]  ;;  %v12020_v48 = vld [vmem:[#allocation6 + $0x1e0] sm:$0xff] }
 0x490   :  { %1611 = vmatprep.subr.mxu0 %v12006_v50  ;;  %9183 = vmatprep.subr.mxu1 %v11472_v60  ;;  %15766 = vst [vmem:[#allocation59_spill] sm:$0xff] %v12016_v43  ;;  %15767 = vst [vmem:[#allocation61_spill] sm:$0xff] %v12020_v48  ;;  %v12023_v50 = vld [vmem:[#allocation6 + $0x1f0] sm:$0xff] }
 0x491   :  { %1612 = vmatpush1.msra.mxu0 %v12010_v61  ;;  %9184 = vmatpush3.msra.mxu1 %v12013_v42  ;;  %15768 = vst [vmem:[#allocation62_spill] sm:$0xff] %v12023_v50  ;;  %v10361_v61 = vpop.eup %10360  ;;  %v12030_v42 = vld [vmem:[#allocation6 + $0x1c8] sm:$0xff] }
 0x492   :  { %1613 = vmatprep.subr.mxu0 %v12016_v43  ;;  %9185 = vmatprep.subr.mxu1 %v11472_v60  ;;  %15770 = vst [vmem:[#allocation65_spill] sm:$0xff] %v12030_v42  ;;  %v12033_v43 = vld [vmem:[#allocation6 + $0x1d8] sm:$0xff] }
 0x493   :  { %1614 = vmatpush1.msra.mxu0 %v12020_v48  ;;  %9186 = vmatpush3.msra.mxu1 %v12023_v50  ;;  %15771 = vst [vmem:[#allocation67_spill] sm:$0xff] %v12033_v43  ;;  %v1368_v48 = vsub.f32 1.0, %v10359_v38  ;;  %v12040_v50 = vld [vmem:[#allocation6 + $0x1b0] sm:$0xff] }
 0x494   :  { %1615 = vmatprep.subr.mxu0 %v12026_v10  ;;  %9187 = vmatprep.subr.mxu1 %v11472_v60  ;;  %15773 = vst [vmem:[#allocation71_spill] sm:$0xff] %v12040_v50  ;;  %v12043_v10 = vld [vmem:[#allocation6 + $0x1c0] sm:$0xff] }
 0x495   :  { %1616 = vmatpush1.msra.mxu0 %v12030_v42  ;;  %9188 = vmatpush3.msra.mxu1 %v12033_v43  ;;  %15774 = vst [vmem:[#allocation78_spill] sm:$0xff] %v12043_v10  ;;  %v1369_v42 = vmul.f32 %v10361_v61, %v1368_v48  ;;  %v12050_v43 = vld [vmem:[#allocation6 + $0x198] sm:$0xff]  ;;  %v12061_v48 = vld [vmem:[#allocation6 + $0x180] sm:$0xff] }
 0x496   :  { %1617 = vmatprep.subr.mxu0 %v12036_v45  ;;  %9189 = vmatprep.subr.mxu1 %v11472_v60  ;;  %15775 = vst [vmem:[#allocation79_spill] sm:$0xff] %v12050_v43  ;;  %v12053_v45 = vld [vmem:[#allocation6 + $0x1a8] sm:$0xff] }
 0x497   :  { %1618 = vmatpush1.msra.mxu0 %v12040_v50  ;;  %9190 = vmatpush3.msra.mxu1 %v12043_v10  ;;  %v1370_v50 = vmul.f32 %v10359_v38, %v11684_v56  ;;  %v15786_v56 = vmov 1.0   ;;  %v15788_v38 = vld [vmem:[#allocation14_spill] sm:$0xff] }
 0x498   :  { %1619 = vmatprep.subr.mxu0 %v12046_v55  ;;  %9191 = vmatprep.subr.mxu1 %v11472_v60 }
 0x499   :  { %1620 = vmatpush1.msra.mxu0 %v12050_v43  ;;  %9192 = vmatpush3.msra.mxu1 %v12053_v45  ;;  %v12065_v61 = vadd.f32 %v1370_v50, %v1369_v42  ;;  %v12067_v43 = vld [vmem:[#allocation6 + $0x190] sm:$0xff]  ;;  %v15787_v42 = vld [vmem:[#allocation12_spill] sm:$0xff]  ;;  %v15789_v50 = vld [vmem:[#allocation17_spill] sm:$0xff] }
 0x49a   :  { %1621 = vmatprep.subr.mxu0 %v12057_v2  ;;  %9193 = vmatprep.subr.mxu1 %v11472_v60 }
 0x49b   :  { %1622 = vmatpush1.msra.mxu0 %v12061_v48  ;;  %1655 = vmatprep.mubr.f32.mxu0 %v11472_v60 }
 0x49c   :  { %9194 = vmatpush3.msra.mxu1 %v12067_v43  ;;  %9195 = vmatprep.mubr.msk.f32.mxu1 %vm10791_vm0, %v11472_v60 }
 0x49d   :  { %1656 = vmatmul.mubr.f32.vlgmr.msra.gmra.mxu0 %v12065_v61  ;;  %9196 = vmatmul.mubr.f32.vlgmr.msra.gmra.mxu1 %v12065_v61 }
 0x49e   :  { %9198 = vmatprep.subr.mxu0 %v11472_v60  ;;  %9230 = vmatprep.mubr.msk.f32.mxu0 %vm10791_vm0, %v11472_v60 }
 0x49f   :  { %9199 = vmatpush3.msra.mxu0 %v11491_v3  ;;  %1831 = vmatprep.subr.mxu1 %v11695_v14  ;;  %v15776_v3 = vld [vmem:[#allocation40_spill] sm:$0xff] }
 0x4a0   :  { %9200 = vmatprep.subr.mxu0 %v11472_v60  ;;  %1832 = vmatpush1.msra.mxu1 %v11699_v58 }
 0x4a1   :  { %9201 = vmatpush3.msra.mxu0 %v11497_v59  ;;  %1833 = vmatprep.subr.mxu1 %v11703_v8  ;;  %v15777_v59 = vld [vmem:[#allocation42_spill] sm:$0xff] }
 0x4a2   :  { %9202 = vmatprep.subr.mxu0 %v11472_v60  ;;  %1834 = vmatpush1.msra.mxu1 %v11707_v54 }
 0x4a3   :  { %9203 = vmatpush3.msra.mxu0 %v11503_v1  ;;  %1835 = vmatprep.subr.mxu1 %v11711_v5  ;;  %v15778_v1 = vld [vmem:[#allocation43_spill] sm:$0xff] }
 0x4a4   :  { %9204 = vmatprep.subr.mxu0 %v11472_v60  ;;  %1836 = vmatpush1.msra.mxu1 %v11715_v0 }
 0x4a5   :  { %9205 = vmatpush3.msra.mxu0 %v11509_v11  ;;  %1837 = vmatprep.subr.mxu1 %v11719_v57  ;;  %v1757_v11 = vpop.permute.xlu0 %1756 }
 0x4a6   :  { %9206 = vmatprep.subr.mxu0 %v11472_v60  ;;  %1838 = vmatpush1.msra.mxu1 %v11723_v15 }
 0x4a7   :  { %9207 = vmatpush3.msra.mxu0 %v11515_v12  ;;  %1839 = vmatprep.subr.mxu1 %v11727_v6  ;;  %v15779_v12 = vld [vmem:[#allocation63_spill] sm:$0xff] }
 0x4a8   :  { %9208 = vmatprep.subr.mxu0 %v11472_v60  ;;  %1840 = vmatpush1.msra.mxu1 %v11731_v63 }
 0x4a9   :  { %9209 = vmatpush3.msra.mxu0 %v11521_v13  ;;  %1841 = vmatprep.subr.mxu1 %v11735_v24  ;;  %v15780_v13 = vld [vmem:[#allocation66_spill] sm:$0xff] }
 0x4aa   :  { %9210 = vmatprep.subr.mxu0 %v11472_v60  ;;  %1842 = vmatpush1.msra.mxu1 %v11739_v26 }
 0x4ab   :  { %9211 = vmatpush3.msra.mxu0 %v11527_v16  ;;  %1843 = vmatprep.subr.mxu1 %v11743_v51  ;;  %v15781_v16 = vld [vmem:[#allocation69_spill] sm:$0xff] }
 0x4ac   :  { %9212 = vmatprep.subr.mxu0 %v11472_v60  ;;  %1844 = vmatpush1.msra.mxu1 %v11747_v25 }
 0x4ad   :  { %9213 = vmatpush3.msra.mxu0 %v11533_v18  ;;  %1845 = vmatprep.subr.mxu1 %v11751_v28  ;;  %v15782_v18 = vld [vmem:[#allocation70_spill] sm:$0xff] }
 0x4ae   :  { %9214 = vmatprep.subr.mxu0 %v11472_v60  ;;  %1846 = vmatpush1.msra.mxu1 %v11755_v31 }
 0x4af   :  { %9215 = vmatpush3.msra.mxu0 %v11539_v19  ;;  %1847 = vmatprep.subr.mxu1 %v11759_v53  ;;  %v15783_v19 = vld [vmem:[#allocation16_spill] sm:$0xff] }
 0x4b0   :  { %9216 = vmatprep.subr.mxu0 %v11472_v60  ;;  %1848 = vmatpush1.msra.mxu1 %v11763_v49  ;;  %vm1758_vm5 = vcmp.eq.s32.totalorder %v1757_v11, %v15783_v19  ;;  %v15790_v11 = vld [vmem:[#allocation15_spill] sm:$0xff] }
 0x4b1   :  { %9217 = vmatpush3.msra.mxu0 %v11545_v21  ;;  %1849 = vmatprep.subr.mxu1 %v11767_v7  ;;  %v15784_v21 = vld [vmem:[#allocation72_spill] sm:$0xff] }
 0x4b2   :  { %9218 = vmatprep.subr.mxu0 %v11472_v60  ;;  %1850 = vmatpush1.msra.mxu1 %v11771_v62 }
 0x4b3   :  { %9219 = vmatpush3.msra.mxu0 %v11551_v22  ;;  %1851 = vmatprep.subr.mxu1 %v11775_v32  ;;  %v15785_v22 = vld [vmem:[#allocation13_spill] sm:$0xff] }
 0x4b4   :  { %9220 = vmatprep.subr.mxu0 %v11472_v60  ;;  %1852 = vmatpush1.msra.mxu1 %v11779_v17 }
 0x4b5   :  { %9221 = vmatpush3.msra.mxu0 %v11782_v33  ;;  %1853 = vmatprep.subr.mxu1 %v11785_v34 }
 0x4b6   :  { %9222 = vmatprep.subr.mxu0 %v11472_v60  ;;  %1854 = vmatpush1.msra.mxu1 %v11789_v35 }
 0x4b7   :  { %9223 = vmatpush3.msra.mxu0 %v11792_v36  ;;  %1855 = vmatprep.subr.mxu1 %v11795_v37 }
 0x4b8   :  { %9224 = vmatprep.subr.mxu0 %v11472_v60  ;;  %1856 = vmatpush1.msra.mxu1 %v15776_v3 }
 0x4b9   :  { %9225 = vmatpush3.msra.mxu0 %v15777_v59  ;;  %1857 = vmatprep.subr.mxu1 %v15778_v1 }
 0x4ba   :  { %9226 = vmatprep.subr.mxu0 %v11472_v60  ;;  %1858 = vmatpush1.msra.mxu1 %v15779_v12 }
 0x4bb   :  { %9227 = vmatpush3.msra.mxu0 %v15780_v13  ;;  %1859 = vmatprep.subr.mxu1 %v15781_v16 }
 0x4bc   :  { %9228 = vmatprep.subr.mxu0 %v11472_v60  ;;  %1860 = vmatpush1.msra.mxu1 %v15782_v18 }
 0x4bd   :  { %9229 = vmatpush3.msra.mxu0 %v15784_v21  ;;  %1861 = vmatprep.subr.mxu1 %v15785_v22  ;;  %v15794_v22 = vld [vmem:[#allocation20_spill] sm:$0xff] }
 0x4be   :  { %9231 = vmatmul.mubr.msk.f32.vlgmr.msra.gmra.mxu0 %vm1758_vm5, %v15786_v56  ;;  %9233 = vmatprep.subr.mxu0 %v11472_v60  ;;  %v15791_v56 = vld [vmem:[#allocation18_spill] sm:$0xff] }
 0x4bf   :  { %9234 = vmatpush3.msra.mxu0 %v15787_v42  ;;  %1862 = vmatpush1.msra.mxu1 %v15788_v38  ;;  %v15792_v42 = vld [vmem:[#allocation33_spill] sm:$0xff]  ;;  %v12157_v38 = vld [vmem:[%s15000_s7] sm:$0xff] }
 0x4c0   :  { %9235 = vmatprep.subr.mxu0 %v11472_v60  ;;  %1895 = vmatprep.mubr.f32.mxu1 %v11472_v60 }
 0x4c1   :  { %9236 = vmatpush3.msra.mxu0 %v15789_v50  ;;  %9265 = vmatprep.mubr.msk.f32.mxu0 %vm10791_vm0, %v11472_v60  ;;  %v15793_v50 = vld [vmem:[#allocation19_spill] sm:$0xff] }
 0x4c2   :  { %9237 = vmatprep.subr.mxu0 %v11472_v60  ;;  %1972 = vmatprep.subr.mxu1 %v15790_v11  ;;  %v15798_v11 = vld [vmem:[#allocation24_spill] sm:$0xff] }
 0x4c3   :  { %9238 = vmatpush3.msra.mxu0 %v15791_v56  ;;  %v15795_v56 = vld [vmem:[#allocation21_spill] sm:$0xff] }
 0x4c4   :  { %9239 = vmatprep.subr.mxu0 %v11472_v60  ;;  %v15796_v60 = vld [vmem:[#allocation22_spill] sm:$0xff] }
 0x4c5   :  { %9240 = vmatpush3.msra.mxu0 %v15792_v42  ;;  %v15797_v42 = vld [vmem:[#allocation23_spill] sm:$0xff] }
 0x4c6   :  { %9241 = vmatprep.subr.mxu0 %v12157_v38 }
 0x4c7   :  { %9242 = vmatpush3.msra.mxu0 %v15793_v50  ;;  %v15799_v50 = vld [vmem:[#allocation25_spill] sm:$0xff] }
 0x4c8   :  { %9243 = vmatprep.subr.mxu0 %v12157_v38 }
 0x4c9   :  { %9244 = vmatpush3.msra.mxu0 %v15794_v22  ;;  %v15800_v22 = vld [vmem:[#allocation26_spill] sm:$0xff] }
 0x4ca   :  { %9245 = vmatprep.subr.mxu0 %v12157_v38 }
 0x4cb   :  { %9246 = vmatpush3.msra.mxu0 %v15795_v56  ;;  %v15801_v56 = vld [vmem:[#allocation27_spill] sm:$0xff] }
 0x4cc   :  { %9247 = vmatprep.subr.mxu0 %v12157_v38 }
 0x4cd   :  { %9248 = vmatpush3.msra.mxu0 %v15796_v60  ;;  %v15802_v60 = vld [vmem:[#allocation28_spill] sm:$0xff] }
 0x4ce   :  { %9249 = vmatprep.subr.mxu0 %v12157_v38 }
 0x4cf   :  { %9250 = vmatpush3.msra.mxu0 %v15797_v42  ;;  %v15803_v42 = vld [vmem:[#allocation29_spill] sm:$0xff] }
 0x4d0   :  { %9251 = vmatprep.subr.mxu0 %v12157_v38 }
 0x4d1   :  { %9252 = vmatpush3.msra.mxu0 %v15798_v11  ;;  %v15804_v11 = vld [vmem:[#allocation30_spill] sm:$0xff] }
 0x4d2   :  { %9253 = vmatprep.subr.mxu0 %v12157_v38 }
 0x4d3   :  { %9254 = vmatpush3.msra.mxu0 %v15799_v50 }
 0x4d4   :  { %9255 = vmatprep.subr.mxu0 %v12157_v38 }
 0x4d5   :  { %9256 = vmatpush3.msra.mxu0 %v15800_v22 }
 0x4d6   :  { %9257 = vmatprep.subr.mxu0 %v12157_v38 }
 0x4d7   :  { %9258 = vmatpush3.msra.mxu0 %v15801_v56 }
 0x4d8   :  { %9259 = vmatprep.subr.mxu0 %v12157_v38 }
 0x4d9   :  { %9260 = vmatpush3.msra.mxu0 %v15802_v60 }
 0x4da   :  { %9261 = vmatprep.subr.mxu0 %v12157_v38 }
 0x4db   :  { %9262 = vmatpush3.msra.mxu0 %v15803_v42 }
 0x4dc   :  { %9263 = vmatprep.subr.mxu0 %v12157_v38 }
 0x4dd   :  { %9264 = vmatpush3.msra.mxu0 %v15804_v11 }
 0x4de   :  { %9268 = vmatprep.subr.mxu0 %v12157_v38 }
 0x53c   :  { %v1587_v50 = vpop.f32.mrf.mxu1  ;;  %v1516_v21 = vpop.f32.mrf.mxu0 }
 0x53d   :  { %v1517_v16 = vadd.f32 %v1516_v21, %v15682_v27 }
 0x53e   :  { %v9162_v22 = vpop.f32.mrf.mxu1  ;;  %v1518_v19 = vpop.f32.mrf.mxu0 }
 0x53f   :  { %v1519_v11 = vadd.f32 %v1518_v19, %v11400_v9  ;;  %v15808_v19 = vld [vmem:[#allocation75_spill] sm:$0xff] }
 0x55d   :  { %v1657_v18 = vpop.f32.mrf.mxu0  ;;  %v1728_v56 = vpop.f32.mrf.mxu1 }
 0x55e   :  { %v1658_v60 = vadd.f32 %v1657_v18, %v15683_v30  ;;  %v15807_v18 = vld [vmem:[#allocation74_spill] sm:$0xff] }
 0x55f   :  { %v9197_v13 = vpop.f32.mrf.mxu1  ;;  %v1659_v42 = vpop.f32.mrf.mxu0 }
 0x560   :  { %v1732_v12 = vadd.f32 %v1658_v60, %v1517_v16  ;;  %v1660_v59 = vadd.f32 %v1659_v42, %v11397_v4  ;;  %v1729_v13 = vadd.f32 %v1728_v56, %v11407_v20  ;;  %v15806_v16 = vld [vmem:[#allocation32_spill] sm:$0xff]  ;;  %v15809_v56 = vld [vmem:[#allocation35_spill] sm:$0xff]  ;;  %v15810_v42 = vld [vmem:[#allocation37_spill] sm:$0xff] }
 0x561   :  { %v15813_v60 = vld [vmem:[#allocation45_spill] sm:$0xff] }
 0x562   :  { %v7711_v1 = vmul.f32 -1.442695, %v1732_v12  ;;  %v1739_v3 = vadd.f32 %v1660_v59, %v1519_v11  ;;  %v15812_v11 = vld [vmem:[#allocation41_spill] sm:$0xff] }
 0x564   :  { %10362 = vpow2.f32 %v7711_v1  ;;  %v7712_v37 = vmul.f32 -1.442695, %v1739_v3 }
 0x566   :  { %10364 = vpow2.f32 %v7712_v37  ;;  %v15805_v37 = vld [vmem:[#allocation31_spill] sm:$0xff] }
 0x571   :  { %v10363_v22 = vpop.eup %10362 }
 0x572   :  { %v1736_v36 = vadd.f32 1.0, %v10363_v22  ;;  %v15814_v22 = vld [vmem:[#allocation44_spill] sm:$0xff] }
 0x573   :  { %v10365_v21 = vpop.eup %10364 }
 0x574   :  { %10366 = vrcp.f32 %v1736_v36  ;;  %v1743_v36 = vadd.f32 1.0, %v10365_v21  ;;  %v15815_v21 = vld [vmem:[#allocation46_spill] sm:$0xff] }
 0x576   :  { %10368 = vrcp.f32 %v1743_v36  ;;  %v15821_v36 = vld [vmem:[#allocation52_spill] sm:$0xff] }
 0x57e   :  { %v1827_v35 = vpop.f32.mrf.mxu0 }
 0x57f   :  { %1896 = vmatmul.mubr.f32.vlgmr.msra.gmra.mxu1 %v1827_v35  ;;  %9266 = vmatmul.mubr.f32.vlgmr.msra.gmra.mxu0 %v1827_v35  ;;  %v1588_v35 = vadd.f32 %v1587_v50, %v11411_v41  ;;  %v15811_v50 = vld [vmem:[#allocation39_spill] sm:$0xff] }
 0x580   :  { %1973 = vmatpush1.msra.mxu1 %v11909_v29  ;;  %9269 = vmatpush3.msra.mxu0 %v11912_v46  ;;  %v9232_v1 = vpop.f32.mrf.mxu0 }
 0x581   :  { %v10367_v12 = vpop.eup %10366  ;;  %1974 = vmatprep.subr.mxu1 %v11915_v44  ;;  %9270 = vmatprep.subr.mxu0 %v12157_v38  ;;  %v15817_v1 = vld [vmem:[#allocation47_spill] sm:$0xff] }
 0x582   :  { %v1746_v3 = vmul.f32 %v10367_v12, %v1729_v13  ;;  %1975 = vmatpush1.msra.mxu1 %v11919_v39  ;;  %9271 = vmatpush3.msra.mxu0 %v11922_v40  ;;  %v15816_v13 = vld [vmem:[#allocation48_spill] sm:$0xff]  ;;  %v15818_v12 = vld [vmem:[#allocation49_spill] sm:$0xff] }
 0x583   :  { %1976 = vmatprep.subr.mxu1 %v11925_v47  ;;  %9272 = vmatprep.subr.mxu0 %v12157_v38 }
 0x584   :  { %1977 = vmatpush1.msra.mxu1 %v11930_v23  ;;  %9273 = vmatpush3.msra.mxu0 %v11933_v52  ;;  %v1747_v59 = vadd.f32 %v1746_v3, %v1588_v35  ;;  %v15819_v3 = vld [vmem:[#allocation51_spill] sm:$0xff]  ;;  %v15820_v35 = vld [vmem:[#allocation50_spill] sm:$0xff] }
 0x585   :  { %1978 = vmatprep.subr.mxu1 %v15805_v37  ;;  %9274 = vmatprep.subr.mxu0 %v12157_v38 }
 0x586   :  { %1979 = vmatpush1.msra.mxu1 %v15806_v16  ;;  %9275 = vmatpush3.msra.mxu0 %v15807_v18  ;;  %10370 = vtanh.f32 %v1747_v59  ;;  %v15822_v59 = vld [vmem:[#allocation54_spill] sm:$0xff] }
 0x587   :  { %1980 = vmatprep.subr.mxu1 %v15808_v19  ;;  %9276 = vmatprep.subr.mxu0 %v12157_v38 }
 0x588   :  { %1981 = vmatpush1.msra.mxu1 %v15809_v56  ;;  %9277 = vmatpush3.msra.mxu0 %v15810_v42 }
 0x589   :  { %1982 = vmatprep.subr.mxu1 %v15811_v50  ;;  %9278 = vmatprep.subr.mxu0 %v12157_v38 }
 0x58a   :  { %1983 = vmatpush1.msra.mxu1 %v15812_v11  ;;  %9279 = vmatpush3.msra.mxu0 %v15813_v60  ;;  %v15832_v60 = vld [vmem:[#allocation64_spill] sm:$0xff] }
 0x58b   :  { %1984 = vmatprep.subr.mxu1 %v15814_v22  ;;  %9280 = vmatprep.subr.mxu0 %v12157_v38  ;;  %v15823_v22 = vld [vmem:[#allocation53_spill] sm:$0xff] }
 0x58c   :  { %1985 = vmatpush1.msra.mxu1 %v15815_v21  ;;  %9281 = vmatpush3.msra.mxu0 %v15816_v13  ;;  %v15824_v13 = vld [vmem:[#allocation55_spill] sm:$0xff]  ;;  %v15826_v21 = vld [vmem:[#allocation56_spill] sm:$0xff] }
 0x58d   :  { %1986 = vmatprep.subr.mxu1 %v15817_v1  ;;  %9282 = vmatprep.subr.mxu0 %v12157_v38  ;;  %v15825_v1 = vld [vmem:[#allocation57_spill] sm:$0xff] }
 0x58e   :  { %1987 = vmatpush1.msra.mxu1 %v15818_v12  ;;  %9283 = vmatpush3.msra.mxu0 %v15819_v3  ;;  %v15827_v3 = vld [vmem:[#allocation58_spill] sm:$0xff]  ;;  %v10369_v12 = vpop.eup %10368 }
 0x58f   :  { %1988 = vmatprep.subr.mxu1 %v15820_v35  ;;  %9284 = vmatprep.subr.mxu0 %v12157_v38  ;;  %v15828_v35 = vld [vmem:[#allocation60_spill] sm:$0xff] }
 0x590   :  { %1989 = vmatpush1.msra.mxu1 %v15821_v36  ;;  %9285 = vmatpush3.msra.mxu0 %v15822_v59  ;;  %v15829_v36 = vld [vmem:[#allocation59_spill] sm:$0xff]  ;;  %v15831_v59 = vld [vmem:[#allocation62_spill] sm:$0xff] }
 0x591   :  { %1990 = vmatprep.subr.mxu1 %v15823_v22  ;;  %9286 = vmatprep.subr.mxu0 %v12157_v38  ;;  %v15830_v22 = vld [vmem:[#allocation61_spill] sm:$0xff] }
 0x592   :  { %1991 = vmatpush1.msra.mxu1 %v15824_v13  ;;  %9287 = vmatpush3.msra.mxu0 %v15825_v1  ;;  %v15834_v1 = vld [vmem:[#allocation67_spill] sm:$0xff] }
 0x593   :  { %1992 = vmatprep.subr.mxu1 %v15826_v21  ;;  %9288 = vmatprep.subr.mxu0 %v12157_v38  ;;  %v10371_v13 = vpop.eup %10370  ;;  %v15833_v21 = vld [vmem:[#allocation65_spill] sm:$0xff] }
 0x594   :  { %1993 = vmatpush1.msra.mxu1 %v15827_v3  ;;  %9289 = vmatpush3.msra.mxu0 %v15828_v35  ;;  %v1749_v3 = vsub.f32 1.0, %v10369_v12  ;;  %v15835_v35 = vld [vmem:[#allocation68_spill] sm:$0xff] }
 0x595   :  { %1994 = vmatprep.subr.mxu1 %v15829_v36  ;;  %9290 = vmatprep.subr.mxu0 %v12157_v38  ;;  %v15836_v36 = vld [vmem:[#allocation71_spill] sm:$0xff] }
 0x596   :  { %1995 = vmatpush1.msra.mxu1 %v15830_v22  ;;  %9291 = vmatpush3.msra.mxu0 %v15831_v59  ;;  %v1750_v22 = vmul.f32 %v10371_v13, %v1749_v3  ;;  %v12275_v13 = vld [vmem:[#allocation5 + $0x68] sm:$0xff]  ;;  %v15855_v3 = vld [vmem:[#allocation15_spill] sm:$0xff] }
 0x597   :  { %1996 = vmatprep.subr.mxu1 %v15832_v60  ;;  %9292 = vmatprep.subr.mxu0 %v12157_v38  ;;  %v15837_v60 = vld [vmem:[#allocation79_spill] sm:$0xff] }
 0x598   :  { %1997 = vmatpush1.msra.mxu1 %v15833_v21  ;;  %9293 = vmatpush3.msra.mxu0 %v15834_v1  ;;  %v1751_v1 = vmul.f32 %v10369_v12, %v12065_v61  ;;  %v12263_v61 = vld [vmem:[#allocation5 + $0x78] sm:$0xff]  ;;  %v15854_v12 = vld [vmem:[#allocation17_spill] sm:$0xff] }
 0x599   :  { %1998 = vmatprep.subr.mxu1 %v15835_v35  ;;  %9294 = vmatprep.subr.mxu0 %v12157_v38 }
 0x59a   :  { %1999 = vmatpush1.msra.mxu1 %v15836_v36  ;;  %9295 = vmatpush3.msra.mxu0 %v12043_v10  ;;  %v12253_v10 = vadd.f32 %v1751_v1, %v1750_v22  ;;  %v12269_v22 = vld [vmem:[#allocation5 + $0x70] sm:$0xff] }
 0x59b   :  { %2000 = vmatprep.subr.mxu1 %v12046_v55  ;;  %9296 = vmatprep.subr.mxu0 %v12157_v38  ;;  %v15853_v1 = vld [vmem:[#allocation14_spill] sm:$0xff] }
 0x59c   :  { %2001 = vmatpush1.msra.mxu1 %v15837_v60  ;;  %9297 = vmatpush3.msra.mxu0 %v12053_v45 }
 0x59d   :  { %2002 = vmatprep.subr.mxu1 %v12057_v2  ;;  %9298 = vmatprep.subr.mxu0 %v12157_v38 }
 0x59e   :  { %2003 = vmatpush1.msra.mxu1 %v12061_v48  ;;  %2036 = vmatprep.mubr.f32.mxu1 %v12157_v38 }
 0x59f   :  { %9299 = vmatpush3.msra.mxu0 %v12067_v43  ;;  %9300 = vmatprep.mubr.msk.f32.mxu0 %vm10791_vm0, %v12157_v38 }
 0x5a0   :  { %2037 = vmatmul.mubr.f32.vlgmr.msra.gmra.mxu1 %v12253_v10  ;;  %9301 = vmatmul.mubr.f32.vlgmr.msra.gmra.mxu0 %v12253_v10 }
 0x5a1   :  { %9303 = vmatprep.subr.mxu1 %v12157_v38  ;;  %9335 = vmatprep.mubr.msk.f32.mxu1 %vm10791_vm0, %v12157_v38 }
 0x5a2   :  { %9304 = vmatpush3.msra.mxu1 %v12263_v61  ;;  %2212 = vmatprep.subr.mxu0 %v11695_v14  ;;  %v12281_v14 = vld [vmem:[#allocation5 + $0x60] sm:$0xff] }
 0x5a3   :  { %9305 = vmatprep.subr.mxu1 %v12157_v38  ;;  %2213 = vmatpush1.msra.mxu0 %v11699_v58  ;;  %v12287_v58 = vld [vmem:[#allocation5 + $0x58] sm:$0xff] }
 0x5a4   :  { %9306 = vmatpush3.msra.mxu1 %v12269_v22  ;;  %2214 = vmatprep.subr.mxu0 %v11703_v8  ;;  %v12293_v8 = vld [vmem:[#allocation5 + $0x50] sm:$0xff] }
 0x5a5   :  { %9307 = vmatprep.subr.mxu1 %v12157_v38  ;;  %2215 = vmatpush1.msra.mxu0 %v11707_v54  ;;  %v12299_v54 = vld [vmem:[#allocation5 + $0x48] sm:$0xff] }
 0x5a6   :  { %9308 = vmatpush3.msra.mxu1 %v12275_v13  ;;  %2216 = vmatprep.subr.mxu0 %v11711_v5  ;;  %v12305_v5 = vld [vmem:[#allocation5 + $0x40] sm:$0xff] }
 0x5a7   :  { %9309 = vmatprep.subr.mxu1 %v12157_v38  ;;  %2217 = vmatpush1.msra.mxu0 %v11715_v0  ;;  %v12311_v0 = vld [vmem:[#allocation5 + $0x38] sm:$0xff] }
 0x5a8   :  { %9310 = vmatpush3.msra.mxu1 %v12281_v14  ;;  %2218 = vmatprep.subr.mxu0 %v11719_v57  ;;  %v12317_v57 = vld [vmem:[#allocation5 + $0x30] sm:$0xff] }
 0x5a9   :  { %9311 = vmatprep.subr.mxu1 %v12157_v38  ;;  %2219 = vmatpush1.msra.mxu0 %v11723_v15  ;;  %v12323_v15 = vld [vmem:[#allocation5 + $0x28] sm:$0xff] }
 0x5aa   :  { %9312 = vmatpush3.msra.mxu1 %v12287_v58  ;;  %2220 = vmatprep.subr.mxu0 %v11727_v6  ;;  %v15838_v6 = vld [vmem:[#allocation34_spill] sm:$0xff] }
 0x5ab   :  { %9313 = vmatprep.subr.mxu1 %v12157_v38  ;;  %2221 = vmatpush1.msra.mxu0 %v11731_v63  ;;  %v15839_v63 = vld [vmem:[#allocation36_spill] sm:$0xff] }
 0x5ac   :  { %9314 = vmatpush3.msra.mxu1 %v12293_v8  ;;  %2222 = vmatprep.subr.mxu0 %v11735_v24  ;;  %v15840_v24 = vld [vmem:[#allocation38_spill] sm:$0xff] }
 0x5ad   :  { %9315 = vmatprep.subr.mxu1 %v12157_v38  ;;  %2223 = vmatpush1.msra.mxu0 %v11739_v26  ;;  %v15841_v26 = vld [vmem:[#allocation40_spill] sm:$0xff] }
 0x5ae   :  { %9316 = vmatpush3.msra.mxu1 %v12299_v54  ;;  %2224 = vmatprep.subr.mxu0 %v11743_v51  ;;  %v15842_v51 = vld [vmem:[#allocation42_spill] sm:$0xff] }
 0x5af   :  { %9317 = vmatprep.subr.mxu1 %v12157_v38  ;;  %2225 = vmatpush1.msra.mxu0 %v11747_v25  ;;  %v15843_v25 = vld [vmem:[#allocation43_spill] sm:$0xff] }
 0x5b0   :  { %9318 = vmatpush3.msra.mxu1 %v12305_v5  ;;  %2226 = vmatprep.subr.mxu0 %v11751_v28  ;;  %v15844_v28 = vld [vmem:[#allocation63_spill] sm:$0xff] }
 0x5b1   :  { %9319 = vmatprep.subr.mxu1 %v12157_v38  ;;  %2227 = vmatpush1.msra.mxu0 %v11755_v31  ;;  %v15845_v31 = vld [vmem:[#allocation66_spill] sm:$0xff] }
 0x5b2   :  { %9320 = vmatpush3.msra.mxu1 %v12311_v0  ;;  %2228 = vmatprep.subr.mxu0 %v11759_v53  ;;  %v15846_v53 = vld [vmem:[#allocation69_spill] sm:$0xff] }
 0x5b3   :  { %9321 = vmatprep.subr.mxu1 %v12157_v38  ;;  %2229 = vmatpush1.msra.mxu0 %v11763_v49  ;;  %v2138_v49 = vpop.permute.xlu1 %2137 }
 0x5b4   :  { %9322 = vmatpush3.msra.mxu1 %v12317_v57  ;;  %2230 = vmatprep.subr.mxu0 %v11767_v7  ;;  %v15847_v7 = vld [vmem:[#allocation70_spill] sm:$0xff] }
 0x5b5   :  { %9323 = vmatprep.subr.mxu1 %v12157_v38  ;;  %2231 = vmatpush1.msra.mxu0 %v11771_v62  ;;  %v15848_v62 = vld [vmem:[#allocation16_spill] sm:$0xff] }
 0x5b6   :  { %9324 = vmatpush3.msra.mxu1 %v12323_v15  ;;  %2232 = vmatprep.subr.mxu0 %v11775_v32  ;;  %vm2139_vm6 = vcmp.eq.s32.totalorder %v2138_v49, %v15848_v62  ;;  %v15849_v32 = vld [vmem:[#allocation72_spill] sm:$0xff]  ;;  %v15865_v49 = vld [vmem:[#allocation26_spill] sm:$0xff] }
 0x5b7   :  { %9325 = vmatprep.subr.mxu1 %v12157_v38  ;;  %2233 = vmatpush1.msra.mxu0 %v11779_v17  ;;  %v15850_v17 = vld [vmem:[#allocation13_spill] sm:$0xff] }
 0x5b8   :  { %9326 = vmatpush3.msra.mxu1 %v11782_v33  ;;  %2234 = vmatprep.subr.mxu0 %v11785_v34  ;;  %v15851_v33 = vmov 1.0   ;;  %v15852_v34 = vld [vmem:[#allocation12_spill] sm:$0xff] }
 0x5b9   :  { %9327 = vmatprep.subr.mxu1 %v12157_v38  ;;  %2235 = vmatpush1.msra.mxu0 %v15838_v6  ;;  %v15856_v6 = vld [vmem:[#allocation18_spill] sm:$0xff] }
 0x5ba   :  { %9328 = vmatpush3.msra.mxu1 %v15839_v63  ;;  %2236 = vmatprep.subr.mxu0 %v15840_v24  ;;  %v15857_v63 = vld [vmem:[#allocation33_spill] sm:$0xff]  ;;  %v15858_v24 = vld [vmem:[#allocation19_spill] sm:$0xff] }
 0x5bb   :  { %9329 = vmatprep.subr.mxu1 %v12157_v38  ;;  %2237 = vmatpush1.msra.mxu0 %v15841_v26  ;;  %v15859_v26 = vld [vmem:[#allocation20_spill] sm:$0xff] }
 0x5bc   :  { %9330 = vmatpush3.msra.mxu1 %v15842_v51  ;;  %2238 = vmatprep.subr.mxu0 %v15843_v25  ;;  %v15860_v51 = vld [vmem:[#allocation21_spill] sm:$0xff]  ;;  %v15861_v25 = vld [vmem:[#allocation22_spill] sm:$0xff] }
 0x5bd   :  { %9331 = vmatprep.subr.mxu1 %v12157_v38  ;;  %2239 = vmatpush1.msra.mxu0 %v15844_v28  ;;  %v15862_v28 = vld [vmem:[#allocation23_spill] sm:$0xff] }
 0x5be   :  { %9332 = vmatpush3.msra.mxu1 %v15845_v31  ;;  %2240 = vmatprep.subr.mxu0 %v15846_v53  ;;  %v15863_v31 = vld [vmem:[#allocation24_spill] sm:$0xff]  ;;  %v15864_v53 = vld [vmem:[#allocation25_spill] sm:$0xff] }
 0x5bf   :  { %9333 = vmatprep.subr.mxu1 %v12157_v38  ;;  %2241 = vmatpush1.msra.mxu0 %v15847_v7  ;;  %v15866_v7 = vld [vmem:[#allocation27_spill] sm:$0xff] }
 0x5c0   :  { %9334 = vmatpush3.msra.mxu1 %v15849_v32  ;;  %2242 = vmatprep.subr.mxu0 %v15850_v17  ;;  %v15867_v32 = vld [vmem:[#allocation28_spill] sm:$0xff]  ;;  %v15868_v17 = vld [vmem:[#allocation29_spill] sm:$0xff] }
 0x5c1   :  { %9336 = vmatmul.mubr.msk.f32.vlgmr.msra.gmra.mxu1 %vm2139_vm6, %v15851_v33  ;;  %9338 = vmatprep.subr.mxu1 %v12157_v38 }
 0x5c2   :  { %9339 = vmatpush3.msra.mxu1 %v15852_v34  ;;  %2243 = vmatpush1.msra.mxu0 %v15853_v1  ;;  %v15869_v34 = vld [vmem:[#allocation30_spill] sm:$0xff] }
 0x5c3   :  { %9340 = vmatprep.subr.mxu1 %v12157_v38  ;;  %2276 = vmatprep.mubr.f32.mxu0 %v12157_v38 }
 0x5c4   :  { %9341 = vmatpush3.msra.mxu1 %v15854_v12  ;;  %9370 = vmatprep.mubr.msk.f32.mxu1 %vm10791_vm0, %v12157_v38 }
 0x5c5   :  { %9342 = vmatprep.subr.mxu1 %v12157_v38  ;;  %2353 = vmatprep.subr.mxu0 %v15855_v3 }
 0x5c6   :  { %9343 = vmatpush3.msra.mxu1 %v15856_v6 }
 0x5c7   :  { %9344 = vmatprep.subr.mxu1 %v12157_v38 }
 0x5c8   :  { %9345 = vmatpush3.msra.mxu1 %v15857_v63 }
 0x5c9   :  { %9346 = vmatprep.subr.mxu1 %v12157_v38 }
 0x5ca   :  { %9347 = vmatpush3.msra.mxu1 %v15858_v24 }
 0x5cb   :  { %9348 = vmatprep.subr.mxu1 %v12157_v38 }
 0x5cc   :  { %9349 = vmatpush3.msra.mxu1 %v15859_v26 }
 0x5cd   :  { %9350 = vmatprep.subr.mxu1 %v12157_v38 }
 0x5ce   :  { %9351 = vmatpush3.msra.mxu1 %v15860_v51 }
 0x5cf   :  { %9352 = vmatprep.subr.mxu1 %v12157_v38 }
 0x5d0   :  { %9353 = vmatpush3.msra.mxu1 %v15861_v25 }
 0x5d1   :  { %9354 = vmatprep.subr.mxu1 %v12157_v38 }
 0x5d2   :  { %9355 = vmatpush3.msra.mxu1 %v15862_v28 }
 0x5d3   :  { %9356 = vmatprep.subr.mxu1 %v12157_v38 }
 0x5d4   :  { %9357 = vmatpush3.msra.mxu1 %v15863_v31 }
 0x5d5   :  { %9358 = vmatprep.subr.mxu1 %v12157_v38 }
 0x5d6   :  { %9359 = vmatpush3.msra.mxu1 %v15864_v53 }
 0x5d7   :  { %9360 = vmatprep.subr.mxu1 %v12157_v38 }
 0x5d8   :  { %9361 = vmatpush3.msra.mxu1 %v15865_v49 }
 0x5d9   :  { %9362 = vmatprep.subr.mxu1 %v12157_v38 }
 0x5da   :  { %9363 = vmatpush3.msra.mxu1 %v15866_v7 }
 0x5db   :  { %9364 = vmatprep.subr.mxu1 %v12157_v38 }
 0x5dc   :  { %9365 = vmatpush3.msra.mxu1 %v15867_v32 }
 0x5dd   :  { %9366 = vmatprep.subr.mxu1 %v12157_v38 }
 0x5de   :  { %9367 = vmatpush3.msra.mxu1 %v15868_v17 }
 0x5df   :  { %9368 = vmatprep.subr.mxu1 %v12157_v38 }
 0x5e0   :  { %9369 = vmatpush3.msra.mxu1 %v15869_v34 }
 0x5e1   :  { %9373 = vmatprep.subr.mxu1 %v12157_v38 }
 0x63f   :  { %v1968_v1 = vpop.f32.mrf.mxu0  ;;  %v1897_v3 = vpop.f32.mrf.mxu1 }
 0x640   :  { %v1898_v26 = vadd.f32 %v1897_v3, %v15682_v27 }
 0x641   :  { %v9267_v12 = vpop.f32.mrf.mxu0  ;;  %v1899_v6 = vpop.f32.mrf.mxu1 }
 0x642   :  { %v1900_v7 = vadd.f32 %v1899_v6, %v11400_v9 }
 0x660   :  { %v2038_v63 = vpop.f32.mrf.mxu1  ;;  %v2109_v24 = vpop.f32.mrf.mxu0 }
 0x661   :  { %v2039_v51 = vadd.f32 %v2038_v63, %v15683_v30  ;;  %v2110_v63 = vadd.f32 %v2109_v24, %v11407_v20  ;;  %v15885_v24 = vld [vmem:[#allocation60_spill] sm:$0xff] }
 0x662   :  { %v9302_v25 = vpop.f32.mrf.mxu0  ;;  %v2040_v53 = vpop.f32.mrf.mxu1 }
 0x663   :  { %v2113_v28 = vadd.f32 %v2039_v51, %v1898_v26  ;;  %v2041_v49 = vadd.f32 %v2040_v53, %v11397_v4 }
 0x665   :  { %v7716_v31 = vmul.f32 -1.442695, %v2113_v28  ;;  %v2120_v32 = vadd.f32 %v2041_v49, %v1900_v7  ;;  %v15886_v28 = vld [vmem:[#allocation59_spill] sm:$0xff]  ;;  %v15888_v49 = vld [vmem:[#allocation64_spill] sm:$0xff] }
 0x666   :  { %v15889_v7 = vld [vmem:[#allocation67_spill] sm:$0xff] }
 0x667   :  { %10372 = vpow2.f32 %v7716_v31  ;;  %v7717_v17 = vmul.f32 -1.442695, %v2120_v32  ;;  %v15887_v31 = vld [vmem:[#allocation61_spill] sm:$0xff] }
 0x669   :  { %10374 = vpow2.f32 %v7717_v17  ;;  %v15890_v17 = vld [vmem:[#allocation78_spill] sm:$0xff] }
 0x674   :  { %v10373_v34 = vpop.eup %10372 }
 0x675   :  { %v2117_v12 = vadd.f32 1.0, %v10373_v34 }
 0x676   :  { %v10375_v3 = vpop.eup %10374 }
 0x677   :  { %10376 = vrcp.f32 %v2117_v12  ;;  %v10611_v12 = vld [vmem:[#allocation6 + $0xc8] sm:$0xff] }
 0x681   :  { %v2208_v33 = vpop.f32.mrf.mxu1 }
 0x682   :  { %2277 = vmatmul.mubr.f32.vlgmr.msra.gmra.mxu0 %v2208_v33  ;;  %9371 = vmatmul.mubr.f32.vlgmr.msra.gmra.mxu1 %v2208_v33  ;;  %v1969_v33 = vadd.f32 %v1968_v1, %v11411_v41  ;;  %v15884_v1 = vld [vmem:[#allocation58_spill] sm:$0xff] }
 0x683   :  { %2354 = vmatpush1.msra.mxu0 %v11909_v29  ;;  %9374 = vmatpush3.msra.mxu1 %v11912_v46  ;;  %v9337_v26 = vpop.f32.mrf.mxu1  ;;  %v2124_v29 = vadd.f32 1.0, %v10375_v3  ;;  %v10613_v3 = vld [vmem:[#allocation6 + $0xb0] sm:$0xff] }
 0x684   :  { %v10377_v51 = vpop.eup %10376  ;;  %2355 = vmatprep.subr.mxu0 %v11915_v44  ;;  %9375 = vmatprep.subr.mxu1 %v12157_v38  ;;  %v15870_v44 = vld [vmem:[#allocation45_spill] sm:$0xff]  ;;  %v10617_v26 = vld [vmem:[#allocation6 + $0x80] sm:$0xff] }
 0x685   :  { %v2127_v6 = vmul.f32 %v10377_v51, %v2110_v63  ;;  %2356 = vmatpush1.msra.mxu0 %v11919_v39  ;;  %9376 = vmatpush3.msra.mxu1 %v11922_v40  ;;  %10378 = vrcp.f32 %v2124_v29  ;;  %v15871_v39 = vld [vmem:[#allocation44_spill] sm:$0xff]  ;;  %v15872_v40 = vld [vmem:[#allocation46_spill] sm:$0xff]  ;;  %v10615_v63 = vld [vmem:[#allocation6 + $0x98] sm:$0xff] }
 0x686   :  { %2357 = vmatprep.subr.mxu0 %v11925_v47  ;;  %9377 = vmatprep.subr.mxu1 %v12157_v38  ;;  %v15873_v47 = vld [vmem:[#allocation48_spill] sm:$0xff]  ;;  %v10623_v29 = vld [vmem:[#allocation6 + $0x50] sm:$0xff] }
 0x687   :  { %2358 = vmatpush1.msra.mxu0 %v11930_v23  ;;  %9378 = vmatpush3.msra.mxu1 %v11933_v52  ;;  %v2128_v46 = vadd.f32 %v2127_v6, %v1969_v33  ;;  %v15874_v23 = vld [vmem:[#allocation47_spill] sm:$0xff]  ;;  %v15875_v52 = vld [vmem:[#allocation49_spill] sm:$0xff]  ;;  %v10619_v51 = vld [vmem:[#allocation5 + $0x20] sm:$0xff] }
 0x688   :  { %2359 = vmatprep.subr.mxu0 %v15805_v37  ;;  %9379 = vmatprep.subr.mxu1 %v12157_v38  ;;  %v15876_v37 = vld [vmem:[#allocation51_spill] sm:$0xff]  ;;  %v10620_v6 = vld [vmem:[#allocation6 + $0x68] sm:$0xff] }
 0x689   :  { %2360 = vmatpush1.msra.mxu0 %v15806_v16  ;;  %9380 = vmatpush3.msra.mxu1 %v15807_v18  ;;  %10380 = vtanh.f32 %v2128_v46  ;;  %v15877_v16 = vld [vmem:[#allocation50_spill] sm:$0xff]  ;;  %v15878_v18 = vld [vmem:[#allocation52_spill] sm:$0xff]  ;;  %v10622_v33 = vld [vmem:[#allocation5 + $0x18] sm:$0xff] }
 0x68a   :  { %2361 = vmatprep.subr.mxu0 %v15808_v19  ;;  %9381 = vmatprep.subr.mxu1 %v12157_v38  ;;  %v15879_v19 = vld [vmem:[#allocation54_spill] sm:$0xff] }
 0x68b   :  { %2362 = vmatpush1.msra.mxu0 %v15809_v56  ;;  %9382 = vmatpush3.msra.mxu1 %v15810_v42  ;;  %v15880_v56 = vld [vmem:[#allocation53_spill] sm:$0xff]  ;;  %v15881_v42 = vld [vmem:[#allocation55_spill] sm:$0xff]  ;;  %v10625_v46 = vld [vmem:[#allocation5 + $0x10] sm:$0xff] }
 0x68c   :  { %2363 = vmatprep.subr.mxu0 %v15811_v50  ;;  %9383 = vmatprep.subr.mxu1 %v12157_v38  ;;  %v15882_v50 = vld [vmem:[#allocation57_spill] sm:$0xff] }
 0x68d   :  { %2364 = vmatpush1.msra.mxu0 %v15812_v11  ;;  %9384 = vmatpush3.msra.mxu1 %v15870_v44  ;;  %v15883_v11 = vld [vmem:[#allocation56_spill] sm:$0xff]  ;;  %v10626_v44 = vld [vmem:[#allocation6 + $0x38] sm:$0xff] }
 0x68e   :  { %2365 = vmatprep.subr.mxu0 %v15871_v39  ;;  %9385 = vmatprep.subr.mxu1 %v12157_v38  ;;  %v2519_v39 = vpop.permute.xlu0 %2518 }
 0x68f   :  { %2366 = vmatpush1.msra.mxu0 %v15872_v40  ;;  %9386 = vmatpush3.msra.mxu1 %v15873_v47  ;;  %v10627_v40 = vld [vmem:[#allocation6 + $0x30] sm:$0xff]  ;;  %v10628_v47 = vld [vmem:[#allocation5 + $0x8] sm:$0xff]  ;;  %vm2520_vm7 = vcmp.eq.s32.totalorder %v2519_v39, %v15848_v62  ;;  %v10656_v39 = vld [vmem:[#allocation6 + $0x2c0] sm:$0xff] }
 0x690   :  { %2367 = vmatprep.subr.mxu0 %v15874_v23  ;;  %9387 = vmatprep.subr.mxu1 %v12157_v38  ;;  %v10629_v23 = vld [vmem:[#allocation6 + $0x20] sm:$0xff] }
 0x691   :  { %2368 = vmatpush1.msra.mxu0 %v15875_v52  ;;  %9388 = vmatpush3.msra.mxu1 %v15876_v37  ;;  %v10630_v52 = vld [vmem:[#allocation6 + $0x18] sm:$0xff]  ;;  %v10631_v37 = vld [vmem:[#allocation5] sm:$0xff] }
 0x692   :  { %2369 = vmatprep.subr.mxu0 %v15877_v16  ;;  %9389 = vmatprep.subr.mxu1 %v12157_v38  ;;  %v10379_v25 = vpop.eup %10378  ;;  %v10632_v16 = vld [vmem:[#allocation6 + $0x8] sm:$0xff] }
 0x693   :  { %2370 = vmatpush1.msra.mxu0 %v15878_v18  ;;  %9390 = vmatpush3.msra.mxu1 %v15879_v19  ;;  %v2130_v32 = vsub.f32 1.0, %v10379_v25  ;;  %v15891_v18 = vmov 1.0   ;;  %v10633_v19 = vld [vmem:[#allocation6 + $0x178] sm:$0xff] }
 0x694   :  { %2371 = vmatprep.subr.mxu0 %v15880_v56  ;;  %9391 = vmatprep.subr.mxu1 %v12157_v38  ;;  %v10634_v56 = vld [vmem:[#allocation6] sm:$0xff] }
 0x695   :  { %2372 = vmatpush1.msra.mxu0 %v15881_v42  ;;  %9392 = vmatpush3.msra.mxu1 %v15882_v50  ;;  %v10635_v42 = vld [vmem:[#allocation6 + $0x160] sm:$0xff]  ;;  %v10636_v50 = vld [vmem:[#allocation6 + $0x2f0] sm:$0xff] }
 0x696   :  { %2373 = vmatprep.subr.mxu0 %v15883_v11  ;;  %9393 = vmatprep.subr.mxu1 %v12157_v38  ;;  %v10381_v53 = vpop.eup %10380  ;;  %v10637_v11 = vld [vmem:[#allocation6 + $0x148] sm:$0xff] }
 0x697   :  { %2374 = vmatpush1.msra.mxu0 %v15884_v1  ;;  %9394 = vmatpush3.msra.mxu1 %v15885_v24  ;;  %v2131_v34 = vmul.f32 %v10381_v53, %v2130_v32  ;;  %v10638_v1 = vld [vmem:[#allocation6 + $0x130] sm:$0xff]  ;;  %v10639_v24 = vld [vmem:[#allocation6 + $0x118] sm:$0xff] }
 0x698   :  { %2375 = vmatprep.subr.mxu0 %v15886_v28  ;;  %9395 = vmatprep.subr.mxu1 %v12157_v38  ;;  %v10641_v28 = vld [vmem:[#allocation6 + $0xe8] sm:$0xff]  ;;  %v10643_v53 = vld [vmem:[#allocation6 + $0xb8] sm:$0xff]  ;;  %v10646_v32 = vld [vmem:[#allocation6 + $0x70] sm:$0xff] }
 0x699   :  { %2376 = vmatpush1.msra.mxu0 %v15887_v31  ;;  %9396 = vmatpush3.msra.mxu1 %v15831_v59  ;;  %v10605_v59 = vld [vmem:[#allocation6 + $0x110] sm:$0xff] }
 0x69a   :  { %2377 = vmatprep.subr.mxu0 %v15888_v49  ;;  %9397 = vmatprep.subr.mxu1 %v12157_v38  ;;  %v10642_v31 = vld [vmem:[#allocation6 + $0xd0] sm:$0xff]  ;;  %v10644_v49 = vld [vmem:[#allocation6 + $0xa0] sm:$0xff] }
 0x69b   :  { %2378 = vmatpush1.msra.mxu0 %v15833_v21  ;;  %9398 = vmatpush3.msra.mxu1 %v15889_v7  ;;  %v2132_v21 = vmul.f32 %v10379_v25, %v12253_v10  ;;  %v10600_v10 = vld [vmem:[#allocation6 + $0x150] sm:$0xff]  ;;  %v10640_v25 = vld [vmem:[#allocation6 + $0x100] sm:$0xff]  ;;  %v10645_v7 = vld [vmem:[#allocation6 + $0x88] sm:$0xff] }
 0x69c   :  { %2379 = vmatprep.subr.mxu0 %v15835_v35  ;;  %9399 = vmatprep.subr.mxu1 %v12157_v38 }
 0x69d   :  { %2380 = vmatpush1.msra.mxu0 %v15836_v36  ;;  %9400 = vmatpush3.msra.mxu1 %v15890_v17  ;;  %v12456_v35 = vadd.f32 %v2132_v21, %v2131_v34  ;;  %v10604_v36 = vld [vmem:[#allocation6 + $0x120] sm:$0xff]  ;;  %v10647_v17 = vld [vmem:[#allocation6 + $0x58] sm:$0xff]  ;;  %v10649_v21 = vld [vmem:[#allocation6 + $0x28] sm:$0xff] }
 0x69e   :  { %2381 = vmatprep.subr.mxu0 %v12046_v55  ;;  %9401 = vmatprep.subr.mxu1 %v12157_v38  ;;  %v10598_v55 = vld [vmem:[#allocation6 + $0x168] sm:$0xff]  ;;  %v10648_v34 = vld [vmem:[#allocation6 + $0x40] sm:$0xff] }
 0x69f   :  { %2382 = vmatpush1.msra.mxu0 %v15837_v60  ;;  %9402 = vmatpush3.msra.mxu1 %v12053_v45  ;;  %v10599_v45 = vld [vmem:[#allocation6 + $0x158] sm:$0xff]  ;;  %v10603_v60 = vld [vmem:[#allocation6 + $0x128] sm:$0xff] }
 0x6a0   :  { %2383 = vmatprep.subr.mxu0 %v12057_v2  ;;  %9403 = vmatprep.subr.mxu1 %v12157_v38  ;;  %v10597_v2 = vld [vmem:[#allocation6 + $0x170] sm:$0xff] }
 0x6a1   :  { %2384 = vmatpush1.msra.mxu0 %v12061_v48  ;;  %2417 = vmatprep.mubr.f32.mxu0 %v12157_v38  ;;  %v10602_v48 = vld [vmem:[#allocation6 + $0x138] sm:$0xff] }
 0x6a2   :  { %9404 = vmatpush3.msra.mxu1 %v12067_v43  ;;  %9405 = vmatprep.mubr.msk.f32.mxu1 %vm10791_vm0, %v12157_v38  ;;  %v10601_v43 = vld [vmem:[#allocation6 + $0x140] sm:$0xff] }
 0x6a3   :  { %2418 = vmatmul.mubr.f32.vlgmr.msra.gmra.mxu0 %v12456_v35  ;;  %9406 = vmatmul.mubr.f32.vlgmr.msra.gmra.mxu1 %v12456_v35 }
 0x6a4   :  { %9408 = vmatprep.subr.mxu0 %v12157_v38  ;;  %9440 = vmatprep.mubr.msk.f32.mxu0 %vm10791_vm0, %v12157_v38 }
 0x6a5   :  { %9409 = vmatpush3.msra.mxu0 %v12263_v61  ;;  %2593 = vmatprep.subr.mxu1 %v10597_v2  ;;  %v10606_v61 = vld [vmem:[#allocation6 + $0x108] sm:$0xff]  ;;  %v10650_v2 = vld [vmem:[#allocation6 + $0x10] sm:$0xff] }
 0x6a6   :  { %9410 = vmatprep.subr.mxu0 %v12157_v38  ;;  %2594 = vmatpush1.msra.mxu1 %v10598_v55 }
 0x6a7   :  { %9411 = vmatpush3.msra.mxu0 %v12269_v22  ;;  %2595 = vmatprep.subr.mxu1 %v10599_v45  ;;  %v10607_v22 = vld [vmem:[#allocation6 + $0xf8] sm:$0xff] }
 0x6a8   :  { %9412 = vmatprep.subr.mxu0 %v12157_v38  ;;  %2596 = vmatpush1.msra.mxu1 %v10600_v10 }
 0x6a9   :  { %9413 = vmatpush3.msra.mxu0 %v12275_v13  ;;  %2597 = vmatprep.subr.mxu1 %v10601_v43  ;;  %v10608_v13 = vld [vmem:[#allocation6 + $0xf0] sm:$0xff] }
 0x6aa   :  { %9414 = vmatprep.subr.mxu0 %v12157_v38  ;;  %2598 = vmatpush1.msra.mxu1 %v10602_v48 }
 0x6ab   :  { %9415 = vmatpush3.msra.mxu0 %v12281_v14  ;;  %2599 = vmatprep.subr.mxu1 %v10603_v60  ;;  %v10609_v14 = vld [vmem:[#allocation6 + $0xe0] sm:$0xff] }
 0x6ac   :  { %9416 = vmatprep.subr.mxu0 %v12157_v38  ;;  %2600 = vmatpush1.msra.mxu1 %v10604_v36 }
 0x6ad   :  { %9417 = vmatpush3.msra.mxu0 %v12287_v58  ;;  %2601 = vmatprep.subr.mxu1 %v10605_v59  ;;  %v10610_v58 = vld [vmem:[#allocation6 + $0xd8] sm:$0xff] }
 0x6ae   :  { %9418 = vmatprep.subr.mxu0 %v12157_v38  ;;  %2602 = vmatpush1.msra.mxu1 %v10606_v61 }
 0x6af   :  { %9419 = vmatpush3.msra.mxu0 %v12293_v8  ;;  %2603 = vmatprep.subr.mxu1 %v10607_v22  ;;  %v10612_v8 = vld [vmem:[#allocation6 + $0xc0] sm:$0xff] }
 0x6b0   :  { %9420 = vmatprep.subr.mxu0 %v12157_v38  ;;  %2604 = vmatpush1.msra.mxu1 %v10608_v13 }
 0x6b1   :  { %9421 = vmatpush3.msra.mxu0 %v12299_v54  ;;  %2605 = vmatprep.subr.mxu1 %v10609_v14  ;;  %v10614_v54 = vld [vmem:[#allocation6 + $0xa8] sm:$0xff] }
 0x6b2   :  { %9422 = vmatprep.subr.mxu0 %v12157_v38  ;;  %2606 = vmatpush1.msra.mxu1 %v10610_v58 }
 0x6b3   :  { %9423 = vmatpush3.msra.mxu0 %v12305_v5  ;;  %2607 = vmatprep.subr.mxu1 %v10611_v12  ;;  %v10616_v5 = vld [vmem:[#allocation6 + $0x90] sm:$0xff] }
 0x6b4   :  { %9424 = vmatprep.subr.mxu0 %v12157_v38  ;;  %2608 = vmatpush1.msra.mxu1 %v10612_v8 }
 0x6b5   :  { %9425 = vmatpush3.msra.mxu0 %v12311_v0  ;;  %2609 = vmatprep.subr.mxu1 %v10613_v3  ;;  %v10618_v0 = vld [vmem:[#allocation6 + $0x78] sm:$0xff] }
 0x6b6   :  { %9426 = vmatprep.subr.mxu0 %v12157_v38  ;;  %2610 = vmatpush1.msra.mxu1 %v10614_v54 }
 0x6b7   :  { %9427 = vmatpush3.msra.mxu0 %v12317_v57  ;;  %2611 = vmatprep.subr.mxu1 %v10615_v63  ;;  %v10621_v57 = vld [vmem:[#allocation6 + $0x60] sm:$0xff] }
 0x6b8   :  { %9428 = vmatprep.subr.mxu0 %v12157_v38  ;;  %2612 = vmatpush1.msra.mxu1 %v10616_v5 }
 0x6b9   :  { %9429 = vmatpush3.msra.mxu0 %v12323_v15  ;;  %2613 = vmatprep.subr.mxu1 %v10617_v26  ;;  %v10624_v15 = vld [vmem:[#allocation6 + $0x48] sm:$0xff] }
 0x6ba   :  { %9430 = vmatprep.subr.mxu0 %v12157_v38  ;;  %2614 = vmatpush1.msra.mxu1 %v10618_v0 }
 0x6bb   :  { %9431 = vmatpush3.msra.mxu0 %v10619_v51  ;;  %2615 = vmatprep.subr.mxu1 %v10620_v6  ;;  %v10651_v51 = vld [vmem:[#allocation6 + $0x2e8] sm:$0xff]  ;;  %v10652_v6 = vld [vmem:[#allocation6 + $0x2f8] sm:$0xff] }
 0x6bc   :  { %9432 = vmatprep.subr.mxu0 %v12157_v38  ;;  %2616 = vmatpush1.msra.mxu1 %v10621_v57 }
 0x6bd   :  { %9433 = vmatpush3.msra.mxu0 %v10622_v33  ;;  %2617 = vmatprep.subr.mxu1 %v10623_v29  ;;  %v10653_v29 = vld [vmem:[#allocation6 + $0x2d8] sm:$0xff] }
 0x6be   :  { %9434 = vmatprep.subr.mxu0 %v12157_v38  ;;  %2618 = vmatpush1.msra.mxu1 %v10624_v15 }
 0x6bf   :  { %9435 = vmatpush3.msra.mxu0 %v10625_v46  ;;  %2619 = vmatprep.subr.mxu1 %v10626_v44  ;;  %v10654_v46 = vld [vmem:[#allocation6 + $0x2d0] sm:$0xff]  ;;  %v10655_v44 = vld [vmem:[#allocation6 + $0x2e0] sm:$0xff] }
 0x6c0   :  { %9436 = vmatprep.subr.mxu0 %v12157_v38  ;;  %2620 = vmatpush1.msra.mxu1 %v10627_v40 }
 0x6c1   :  { %9437 = vmatpush3.msra.mxu0 %v10628_v47  ;;  %2621 = vmatprep.subr.mxu1 %v10629_v23  ;;  %v10657_v23 = vld [vmem:[#allocation6 + $0x2b8] sm:$0xff] }
 0x6c2   :  { %9438 = vmatprep.subr.mxu0 %v12157_v38  ;;  %2622 = vmatpush1.msra.mxu1 %v10630_v52  ;;  %v10658_v52 = vld [vmem:[#allocation6 + $0x2c8] sm:$0xff] }
 0x6c3   :  { %9439 = vmatpush3.msra.mxu0 %v10631_v37  ;;  %2623 = vmatprep.subr.mxu1 %v10632_v16  ;;  %v10659_v37 = vld [vmem:[#allocation6 + $0x2a8] sm:$0xff] }
 0x6c4   :  { %9441 = vmatmul.mubr.msk.f32.vlgmr.msra.gmra.mxu0 %vm2520_vm7, %v15891_v18  ;;  %9443 = vmatprep.subr.mxu0 %v12157_v38 }
 0x6c5   :  { %9444 = vmatpush3.msra.mxu0 %v10633_v19  ;;  %2624 = vmatpush1.msra.mxu1 %v10634_v56  ;;  %v10660_v19 = vld [vmem:[#allocation6 + $0x2a0] sm:$0xff]  ;;  %v10661_v56 = vld [vmem:[#allocation6 + $0x2b0] sm:$0xff] }
 0x6c6   :  { %9445 = vmatprep.subr.mxu0 %v12157_v38  ;;  %2657 = vmatprep.mubr.f32.mxu1 %v12157_v38 }
 0x6c7   :  { %9446 = vmatpush3.msra.mxu0 %v10635_v42  ;;  %9475 = vmatprep.mubr.msk.f32.mxu0 %vm10791_vm0, %v12157_v38  ;;  %v10662_v42 = vld [vmem:[#allocation6 + $0x290] sm:$0xff] }
 0x6c8   :  { %9447 = vmatprep.subr.mxu0 %v12157_v38  ;;  %2734 = vmatprep.subr.mxu1 %v10636_v50  ;;  %v10663_v50 = vld [vmem:[#allocation6 + $0x288] sm:$0xff] }
 0x6c9   :  { %9448 = vmatpush3.msra.mxu0 %v10637_v11  ;;  %v10664_v11 = vld [vmem:[#allocation6 + $0x298] sm:$0xff] }
 0x6ca   :  { %9449 = vmatprep.subr.mxu0 %v12157_v38 }
 0x6cb   :  { %9450 = vmatpush3.msra.mxu0 %v10638_v1  ;;  %v10665_v1 = vld [vmem:[#allocation6 + $0x278] sm:$0xff] }
 0x6cc   :  { %9451 = vmatprep.subr.mxu0 %v12157_v38 }
 0x6cd   :  { %9452 = vmatpush3.msra.mxu0 %v10639_v24  ;;  %v10666_v24 = vld [vmem:[#allocation6 + $0x270] sm:$0xff] }
 0x6ce   :  { %9453 = vmatprep.subr.mxu0 %v12157_v38 }
 0x6cf   :  { %9454 = vmatpush3.msra.mxu0 %v10640_v25  ;;  %v10667_v25 = vld [vmem:[#allocation6 + $0x280] sm:$0xff] }
 0x6d0   :  { %9455 = vmatprep.subr.mxu0 %v12157_v38 }
 0x6d1   :  { %9456 = vmatpush3.msra.mxu0 %v10641_v28  ;;  %v10668_v28 = vld [vmem:[#allocation6 + $0x260] sm:$0xff] }
 0x6d2   :  { %9457 = vmatprep.subr.mxu0 %v12157_v38 }
 0x6d3   :  { %9458 = vmatpush3.msra.mxu0 %v10642_v31  ;;  %v10669_v31 = vld [vmem:[#allocation6 + $0x258] sm:$0xff] }
 0x6d4   :  { %9459 = vmatprep.subr.mxu0 %v12157_v38 }
 0x6d5   :  { %9460 = vmatpush3.msra.mxu0 %v10643_v53  ;;  %v10670_v53 = vld [vmem:[#allocation6 + $0x268] sm:$0xff] }
 0x6d6   :  { %9461 = vmatprep.subr.mxu0 %v12157_v38 }
 0x6d7   :  { %9462 = vmatpush3.msra.mxu0 %v10644_v49  ;;  %v10671_v49 = vld [vmem:[#allocation6 + $0x248] sm:$0xff] }
 0x6d8   :  { %9463 = vmatprep.subr.mxu0 %v12157_v38 }
 0x6d9   :  { %9464 = vmatpush3.msra.mxu0 %v10645_v7  ;;  %v10672_v7 = vld [vmem:[#allocation6 + $0x240] sm:$0xff] }
 0x6da   :  { %9465 = vmatprep.subr.mxu0 %v12157_v38 }
 0x6db   :  { %9466 = vmatpush3.msra.mxu0 %v10646_v32  ;;  %v10673_v32 = vld [vmem:[#allocation6 + $0x250] sm:$0xff] }
 0x6dc   :  { %9467 = vmatprep.subr.mxu0 %v12157_v38 }
 0x6dd   :  { %9468 = vmatpush3.msra.mxu0 %v10647_v17  ;;  %v10674_v17 = vld [vmem:[#allocation6 + $0x230] sm:$0xff] }
 0x6de   :  { %9469 = vmatprep.subr.mxu0 %v12157_v38 }
 0x6df   :  { %9470 = vmatpush3.msra.mxu0 %v10648_v34  ;;  %v10675_v34 = vld [vmem:[#allocation6 + $0x228] sm:$0xff] }
 0x6e0   :  { %9471 = vmatprep.subr.mxu0 %v12157_v38 }
 0x6e1   :  { %9472 = vmatpush3.msra.mxu0 %v10649_v21  ;;  %v10676_v21 = vld [vmem:[#allocation6 + $0x238] sm:$0xff] }
 0x6e2   :  { %9473 = vmatprep.subr.mxu0 %v12157_v38 }
 0x6e3   :  { %9474 = vmatpush3.msra.mxu0 %v10650_v2  ;;  %v10677_v2 = vld [vmem:[#allocation6 + $0x218] sm:$0xff] }
 0x6e4   :  { %9478 = vmatprep.subr.mxu0 %v12157_v38 }
 0x742   :  { %v2349_v55 = vpop.f32.mrf.mxu1  ;;  %v2278_v10 = vpop.f32.mrf.mxu0 }
 0x743   :  { %v2279_v36 = vadd.f32 %v2278_v10, %v15682_v27  ;;  %v2350_v40 = vadd.f32 %v2349_v55, %v11411_v41  ;;  %v12531_v55 = vld [vmem:[%s15000_s7] sm:$0xff] }
 0x744   :  { %v9372_v45 = vpop.f32.mrf.mxu1  ;;  %v2280_v43 = vpop.f32.mrf.mxu0  ;;  %v10680_v10 = vld [vmem:[#allocation6 + $0x220] sm:$0xff] }
 0x745   :  { %v2281_v12 = vadd.f32 %v2280_v43, %v11400_v9  ;;  %v10679_v45 = vld [vmem:[#allocation6 + $0x210] sm:$0xff]  ;;  %v10681_v43 = vld [vmem:[#allocation6 + $0x200] sm:$0xff] }
 0x763   :  { %v2419_v48 = vpop.f32.mrf.mxu0  ;;  %v2490_v60 = vpop.f32.mrf.mxu1 }
 0x764   :  { %v2420_v59 = vadd.f32 %v2419_v48, %v15683_v30  ;;  %v2491_v0 = vadd.f32 %v2490_v60, %v11407_v20  ;;  %v10683_v48 = vld [vmem:[#allocation6 + $0x208] sm:$0xff] }
 0x765   :  { %v9407_v61 = vpop.f32.mrf.mxu1  ;;  %v2421_v14 = vpop.f32.mrf.mxu0 }
 0x766   :  { %v2494_v22 = vadd.f32 %v2420_v59, %v2279_v36  ;;  %v2422_v58 = vadd.f32 %v2421_v14, %v11397_v4  ;;  %v10684_v36 = vld [vmem:[#allocation6 + $0x1e8] sm:$0xff]  ;;  %v10685_v59 = vld [vmem:[#allocation6 + $0x1e0] sm:$0xff]  ;;  %v10686_v61 = vld [vmem:[#allocation6 + $0x1f0] sm:$0xff] }
 0x767   :  { %v10688_v14 = vld [vmem:[#allocation6 + $0x1c8] sm:$0xff] }
 0x768   :  { %v7721_v13 = vmul.f32 -1.442695, %v2494_v22  ;;  %v2501_v8 = vadd.f32 %v2422_v58, %v2281_v12  ;;  %v10689_v58 = vld [vmem:[#allocation6 + $0x1d8] sm:$0xff] }
 0x76a   :  { %10382 = vpow2.f32 %v7721_v13  ;;  %v7722_v3 = vmul.f32 -1.442695, %v2501_v8  ;;  %v10687_v13 = vld [vmem:[#allocation6 + $0x1d0] sm:$0xff]  ;;  %v10690_v8 = vld [vmem:[#allocation6 + $0x1b8] sm:$0xff] }
 0x76c   :  { %10384 = vpow2.f32 %v7722_v3  ;;  %v10691_v3 = vld [vmem:[#allocation6 + $0x1b0] sm:$0xff] }
 0x777   :  { %v10383_v54 = vpop.eup %10382 }
 0x778   :  { %v2498_v63 = vadd.f32 1.0, %v10383_v54  ;;  %v10692_v54 = vld [vmem:[#allocation6 + $0x1c0] sm:$0xff] }
 0x779   :  { %v10385_v26 = vpop.eup %10384 }
 0x77a   :  { %10386 = vrcp.f32 %v2498_v63  ;;  %v2505_v47 = vadd.f32 1.0, %v10385_v26  ;;  %v10694_v26 = vld [vmem:[#allocation6 + $0x198] sm:$0xff] }
 0x77c   :  { %10388 = vrcp.f32 %v2505_v47  ;;  %v2938_v47 = vld [vmem:[#allocation6 + $0x5c0] sm:$0xff] }
 0x784   :  { %v2589_v5 = vpop.f32.mrf.mxu0 }
 0x785   :  { %2658 = vmatmul.mubr.f32.vlgmr.msra.gmra.mxu1 %v2589_v5  ;;  %9476 = vmatmul.mubr.f32.vlgmr.msra.gmra.mxu0 %v2589_v5  ;;  %v10693_v5 = vld [vmem:[#allocation6 + $0x1a0] sm:$0xff] }
 0x786   :  { %2735 = vmatpush1.msra.mxu1 %v10651_v51  ;;  %9479 = vmatpush3.msra.mxu0 %v10652_v6  ;;  %v9442_v57 = vpop.f32.mrf.mxu0  ;;  %v10696_v6 = vld [vmem:[#allocation6 + $0x188] sm:$0xff] }
 0x787   :  { %v10387_v33 = vpop.eup %10386  ;;  %2736 = vmatprep.subr.mxu1 %v10653_v29  ;;  %9480 = vmatprep.subr.mxu0 %v12157_v38  ;;  %v10697_v57 = vld [vmem:[#allocation6 + $0x180] sm:$0xff]  ;;  %v10698_v29 = vld [vmem:[#allocation6 + $0x190] sm:$0xff] }
 0x788   :  { %v2508_v15 = vmul.f32 %v10387_v33, %v2491_v0  ;;  %2737 = vmatpush1.msra.mxu1 %v10654_v46  ;;  %9481 = vmatpush3.msra.mxu0 %v10655_v44  ;;  %v10695_v0 = vld [vmem:[#allocation6 + $0x1a8] sm:$0xff]  ;;  %v2945_v46 = vld [vmem:[#allocation6 + $0x5f8] sm:$0xff] }
 0x789   :  { %2738 = vmatprep.subr.mxu1 %v10656_v39  ;;  %9482 = vmatprep.subr.mxu0 %v12157_v38  ;;  %v10389_v60 = vpop.eup %10388  ;;  %v2941_v44 = vld [vmem:[#allocation6 + $0x5d8] sm:$0xff]  ;;  %v2940_v39 = vld [vmem:[#allocation6 + $0x5d0] sm:$0xff] }
 0x78a   :  { %2739 = vmatpush1.msra.mxu1 %v10657_v23  ;;  %9483 = vmatpush3.msra.mxu0 %v10658_v52  ;;  %v2509_v16 = vadd.f32 %v2508_v15, %v2350_v40  ;;  %v2511_v12 = vsub.f32 1.0, %v10389_v60  ;;  %v2513_v51 = vmul.f32 %v10389_v60, %v12456_v35  ;;  %v2944_v35 = vld [vmem:[#allocation6 + $0x5f0] sm:$0xff]  ;;  %v2943_v15 = vld [vmem:[#allocation6 + $0x5e8] sm:$0xff]  ;;  %v2942_v40 = vld [vmem:[#allocation6 + $0x5e0] sm:$0xff] }
 0x78b   :  { %2740 = vmatprep.subr.mxu1 %v10659_v37  ;;  %9484 = vmatprep.subr.mxu0 %v12157_v38  ;;  %v2937_v23 = vld [vmem:[#allocation6 + $0x5b8] sm:$0xff]  ;;  %v2939_v52 = vld [vmem:[#allocation6 + $0x5c8] sm:$0xff]  ;;  %v2910_v60 = vld [vmem:[#allocation6 + $0x4e0] sm:$0xff] }
 0x78c   :  { %2741 = vmatpush1.msra.mxu1 %v10660_v19  ;;  %9485 = vmatpush3.msra.mxu0 %v10661_v56  ;;  %10390 = vtanh.f32 %v2509_v16  ;;  %v2935_v37 = vld [vmem:[#allocation6 + $0x5a8] sm:$0xff]  ;;  %v2934_v16 = vld [vmem:[#allocation6 + $0x5a0] sm:$0xff]  ;;  %v2936_v19 = vld [vmem:[#allocation6 + $0x5b0] sm:$0xff] }
 0x78d   :  { %2742 = vmatprep.subr.mxu1 %v10662_v42  ;;  %9486 = vmatprep.subr.mxu0 %v12157_v38  ;;  %v2932_v56 = vld [vmem:[#allocation6 + $0x590] sm:$0xff]  ;;  %v2931_v42 = vld [vmem:[#allocation6 + $0x588] sm:$0xff] }
 0x78e   :  { %2743 = vmatpush1.msra.mxu1 %v10663_v50  ;;  %9487 = vmatpush3.msra.mxu0 %v10664_v11  ;;  %v2933_v50 = vld [vmem:[#allocation6 + $0x598] sm:$0xff] }
 0x78f   :  { %2744 = vmatprep.subr.mxu1 %v10665_v1  ;;  %9488 = vmatprep.subr.mxu0 %v12157_v38  ;;  %v2929_v11 = vld [vmem:[#allocation6 + $0x578] sm:$0xff]  ;;  %v2928_v1 = vld [vmem:[#allocation6 + $0x570] sm:$0xff] }
 0x790   :  { %2745 = vmatpush1.msra.mxu1 %v10666_v24  ;;  %9489 = vmatpush3.msra.mxu0 %v10667_v25  ;;  %v2930_v24 = vld [vmem:[#allocation6 + $0x580] sm:$0xff] }
 0x791   :  { %2746 = vmatprep.subr.mxu1 %v10668_v28  ;;  %9490 = vmatprep.subr.mxu0 %v12157_v38  ;;  %v2926_v25 = vld [vmem:[#allocation6 + $0x560] sm:$0xff]  ;;  %v2925_v28 = vld [vmem:[#allocation6 + $0x558] sm:$0xff] }
 0x792   :  { %2747 = vmatpush1.msra.mxu1 %v10669_v31  ;;  %9491 = vmatpush3.msra.mxu0 %v10670_v53  ;;  %v2927_v31 = vld [vmem:[#allocation6 + $0x568] sm:$0xff] }
 0x793   :  { %2748 = vmatprep.subr.mxu1 %v10671_v49  ;;  %9492 = vmatprep.subr.mxu0 %v12157_v38  ;;  %v2923_v53 = vld [vmem:[#allocation6 + $0x548] sm:$0xff]  ;;  %v2922_v49 = vld [vmem:[#allocation6 + $0x540] sm:$0xff] }
 0x794   :  { %2749 = vmatpush1.msra.mxu1 %v10672_v7  ;;  %9493 = vmatpush3.msra.mxu0 %v10673_v32  ;;  %v2924_v7 = vld [vmem:[#allocation6 + $0x550] sm:$0xff] }
 0x795   :  { %2750 = vmatprep.subr.mxu1 %v10674_v17  ;;  %9494 = vmatprep.subr.mxu0 %v12157_v38  ;;  %v10682_v38 = vld [vmem:[#allocation6 + $0x1f8] sm:$0xff]  ;;  %v2920_v32 = vld [vmem:[#allocation6 + $0x530] sm:$0xff]  ;;  %v2919_v17 = vld [vmem:[#allocation6 + $0x528] sm:$0xff] }
 0x796   :  { %2751 = vmatpush1.msra.mxu1 %v10675_v34  ;;  %9495 = vmatpush3.msra.mxu0 %v10676_v21  ;;  %v2921_v34 = vld [vmem:[#allocation6 + $0x538] sm:$0xff] }
 0x797   :  { %2752 = vmatprep.subr.mxu1 %v10677_v2  ;;  %9496 = vmatprep.subr.mxu0 %v12531_v55  ;;  %v2917_v21 = vld [vmem:[#allocation6 + $0x518] sm:$0xff]  ;;  %v2916_v2 = vld [vmem:[#allocation6 + $0x510] sm:$0xff] }
 0x798   :  { %2753 = vmatpush1.msra.mxu1 %v10679_v45  ;;  %9497 = vmatpush3.msra.mxu0 %v10680_v10  ;;  %v2918_v45 = vld [vmem:[#allocation6 + $0x520] sm:$0xff] }
 0x799   :  { %2754 = vmatprep.subr.mxu1 %v10681_v43  ;;  %9498 = vmatprep.subr.mxu0 %v12531_v55  ;;  %v10391_v22 = vpop.eup %10390  ;;  %v2914_v10 = vld [vmem:[#allocation6 + $0x500] sm:$0xff]  ;;  %v2913_v43 = vld [vmem:[#allocation6 + $0x4f8] sm:$0xff] }
 0x79a   :  { %2755 = vmatpush1.msra.mxu1 %v10682_v38  ;;  %9499 = vmatpush3.msra.mxu0 %v10683_v48  ;;  %v2512_v63 = vmul.f32 %v10391_v22, %v2511_v12  ;;  %v2915_v38 = vld [vmem:[#allocation6 + $0x508] sm:$0xff]  ;;  %v2909_v22 = vld [vmem:[#allocation6 + $0x4d8] sm:$0xff]  ;;  %v2902_v12 = vld [vmem:[#allocation6 + $0x4a0] sm:$0xff] }
 0x79b   :  { %2756 = vmatprep.subr.mxu1 %v10684_v36  ;;  %9500 = vmatprep.subr.mxu0 %v12531_v55  ;;  %v2911_v48 = vld [vmem:[#allocation6 + $0x4e8] sm:$0xff]  ;;  %v2912_v36 = vld [vmem:[#allocation6 + $0x4f0] sm:$0xff] }
 0x79c   :  { %2757 = vmatpush1.msra.mxu1 %v10685_v59  ;;  %9501 = vmatpush3.msra.mxu0 %v10686_v61  ;;  %v12542_v33 = vadd.f32 %v2513_v51, %v2512_v63  ;;  %v2908_v59 = vld [vmem:[#allocation6 + $0x4d0] sm:$0xff]  ;;  %v2907_v61 = vld [vmem:[#allocation6 + $0x4c8] sm:$0xff]  ;;  %v2898_v63 = vld [vmem:[#allocation6 + $0x480] sm:$0xff] }
 0x79d   :  { %2758 = vmatprep.subr.mxu1 %v10687_v13  ;;  %9502 = vmatprep.subr.mxu0 %v12531_v55  ;;  %v2905_v13 = vld [vmem:[#allocation6 + $0x4b8] sm:$0xff] }
 0x79e   :  { %2759 = vmatpush1.msra.mxu1 %v10688_v14  ;;  %9503 = vmatpush3.msra.mxu0 %v10689_v58  ;;  %v2904_v14 = vld [vmem:[#allocation6 + $0x4b0] sm:$0xff]  ;;  %v2906_v58 = vld [vmem:[#allocation6 + $0x4c0] sm:$0xff] }
 0x79f   :  { %2760 = vmatprep.subr.mxu1 %v10690_v8  ;;  %9504 = vmatprep.subr.mxu0 %v12531_v55  ;;  %v2901_v8 = vld [vmem:[#allocation6 + $0x498] sm:$0xff] }
 0x7a0   :  { %2761 = vmatpush1.msra.mxu1 %v10691_v3  ;;  %9505 = vmatpush3.msra.mxu0 %v10692_v54  ;;  %v2903_v3 = vld [vmem:[#allocation6 + $0x4a8] sm:$0xff] }
 0x7a1   :  { %2762 = vmatprep.subr.mxu1 %v10693_v5  ;;  %9506 = vmatprep.subr.mxu0 %v12531_v55  ;;  %v2899_v54 = vld [vmem:[#allocation6 + $0x488] sm:$0xff]  ;;  %v2900_v5 = vld [vmem:[#allocation6 + $0x490] sm:$0xff] }
 0x7a2   :  { %2763 = vmatpush1.msra.mxu1 %v10694_v26  ;;  %9507 = vmatpush3.msra.mxu0 %v10695_v0 }
 0x7a3   :  { %2764 = vmatprep.subr.mxu1 %v10696_v6  ;;  %9508 = vmatprep.subr.mxu0 %v12531_v55 }
 0x7a4   :  { %2765 = vmatpush1.msra.mxu1 %v10697_v57  ;;  %2798 = vmatprep.mubr.f32.mxu1 %v12531_v55 }
 0x7a5   :  { %9509 = vmatpush3.msra.mxu0 %v10698_v29  ;;  %9510 = vmatprep.mubr.msk.f32.mxu0 %vm10791_vm0, %v12531_v55 }
 0x7a6   :  { %2799 = vmatmul.mubr.f32.vlgmr.msra.gmra.mxu1 %v12542_v33  ;;  %9511 = vmatmul.mubr.f32.vlgmr.msra.gmra.mxu0 %v12542_v33 }
 0x7a7   :  { %9513 = vmatprep.subr.mxu0 %v12531_v55  ;;  %3028 = vmatprep.mubr.f32.mxu1 %v12531_v55 }
 0x7a8   :  { %9545 = vmatprep.mubr.msk.f32.mxu0 %vm10791_vm0, %v12531_v55  ;;  %2964 = vmatprep.subr.mxu1 %v2944_v35 }
 0x7a9   :  { %2965 = vmatpush1.msra.mxu1 %v2943_v15  ;;  %9514 = vmatpush3.msra.mxu0 %v2945_v46 }
 0x7aa   :  { %2966 = vmatprep.subr.mxu1 %v2941_v44  ;;  %9515 = vmatprep.subr.mxu0 %v12531_v55 }
 0x7ab   :  { %2967 = vmatpush1.msra.mxu1 %v2940_v39  ;;  %9516 = vmatpush3.msra.mxu0 %v2942_v40 }
 0x7ac   :  { %2968 = vmatprep.subr.mxu1 %v2938_v47  ;;  %9517 = vmatprep.subr.mxu0 %v12531_v55 }
 0x7ad   :  { %2969 = vmatpush1.msra.mxu1 %v2937_v23  ;;  %9518 = vmatpush3.msra.mxu0 %v2939_v52 }
 0x7ae   :  { %2970 = vmatprep.subr.mxu1 %v2935_v37  ;;  %9519 = vmatprep.subr.mxu0 %v12531_v55 }
 0x7af   :  { %2971 = vmatpush1.msra.mxu1 %v2934_v16  ;;  %9520 = vmatpush3.msra.mxu0 %v2936_v19 }
 0x7b0   :  { %2972 = vmatprep.subr.mxu1 %v2932_v56  ;;  %9521 = vmatprep.subr.mxu0 %v12531_v55 }
 0x7b1   :  { %2973 = vmatpush1.msra.mxu1 %v2931_v42  ;;  %9522 = vmatpush3.msra.mxu0 %v2933_v50 }
 0x7b2   :  { %2974 = vmatprep.subr.mxu1 %v2929_v11  ;;  %9523 = vmatprep.subr.mxu0 %v12531_v55 }
 0x7b3   :  { %2975 = vmatpush1.msra.mxu1 %v2928_v1  ;;  %9524 = vmatpush3.msra.mxu0 %v2930_v24 }
 0x7b4   :  { %2976 = vmatprep.subr.mxu1 %v2926_v25  ;;  %9525 = vmatprep.subr.mxu0 %v12531_v55 }
 0x7b5   :  { %2977 = vmatpush1.msra.mxu1 %v2925_v28  ;;  %9526 = vmatpush3.msra.mxu0 %v2927_v31 }
 0x7b6   :  { %2978 = vmatprep.subr.mxu1 %v2923_v53  ;;  %9527 = vmatprep.subr.mxu0 %v12531_v55  ;;  %v3120_v53 = vld [vmem:[#allocation8 + $0x178] sm:$0xff] }
 0x7b7   :  { %2979 = vmatpush1.msra.mxu1 %v2922_v49  ;;  %9528 = vmatpush3.msra.mxu0 %v2924_v7  ;;  %v12578_v49 = vld [vmem:[#allocation5 + $0xf8] sm:$0xff]  ;;  %v12587_v7 = vld [vmem:[#allocation5 + $0xe8] sm:$0xff] }
 0x7b8   :  { %2980 = vmatprep.subr.mxu1 %v2920_v32  ;;  %9529 = vmatprep.subr.mxu0 %v12531_v55  ;;  %v3117_v32 = vld [vmem:[#allocation8 + $0x160] sm:$0xff] }
 0x7b9   :  { %2981 = vmatpush1.msra.mxu1 %v2919_v17  ;;  %9530 = vmatpush3.msra.mxu0 %v2921_v34  ;;  %v12592_v17 = vld [vmem:[#allocation5 + $0xe0] sm:$0xff]  ;;  %v3116_v34 = vld [vmem:[#allocation8 + $0x158] sm:$0xff] }
 0x7ba   :  { %2982 = vmatprep.subr.mxu1 %v2917_v21  ;;  %9531 = vmatprep.subr.mxu0 %v12531_v55  ;;  %v12597_v21 = vld [vmem:[#allocation5 + $0xd8] sm:$0xff] }
 0x7bb   :  { %2983 = vmatpush1.msra.mxu1 %v2916_v2  ;;  %9532 = vmatpush3.msra.mxu0 %v2918_v45  ;;  %v3115_v2 = vld [vmem:[#allocation8 + $0x150] sm:$0xff] }
 0x7bc   :  { %2984 = vmatprep.subr.mxu1 %v2914_v10  ;;  %9533 = vmatprep.subr.mxu0 %v12531_v55  ;;  %v12602_v45 = vld [vmem:[#allocation5 + $0xd0] sm:$0xff]  ;;  %v3114_v10 = vld [vmem:[#allocation8 + $0x148] sm:$0xff] }
 0x7bd   :  { %2985 = vmatpush1.msra.mxu1 %v2913_v43  ;;  %9534 = vmatpush3.msra.mxu0 %v2915_v38  ;;  %v12607_v43 = vld [vmem:[#allocation5 + $0xc8] sm:$0xff]  ;;  %v3113_v38 = vld [vmem:[#allocation8 + $0x140] sm:$0xff] }
 0x7be   :  { %2986 = vmatprep.subr.mxu1 %v2911_v48  ;;  %9535 = vmatprep.subr.mxu0 %v12531_v55  ;;  %v12612_v48 = vld [vmem:[#allocation5 + $0xc0] sm:$0xff] }
 0x7bf   :  { %2987 = vmatpush1.msra.mxu1 %v2910_v60  ;;  %9536 = vmatpush3.msra.mxu0 %v2912_v36  ;;  %v3112_v60 = vld [vmem:[#allocation8 + $0x138] sm:$0xff] }
 0x7c0   :  { %2988 = vmatprep.subr.mxu1 %v2908_v59  ;;  %9537 = vmatprep.subr.mxu0 %v12531_v55  ;;  %v12617_v36 = vld [vmem:[#allocation5 + $0xb8] sm:$0xff]  ;;  %v3111_v59 = vld [vmem:[#allocation8 + $0x130] sm:$0xff] }
 0x7c1   :  { %2989 = vmatpush1.msra.mxu1 %v2907_v61  ;;  %9538 = vmatpush3.msra.mxu0 %v2909_v22  ;;  %v12622_v61 = vld [vmem:[#allocation5 + $0xb0] sm:$0xff]  ;;  %v3110_v22 = vld [vmem:[#allocation8 + $0x128] sm:$0xff] }
 0x7c2   :  { %2990 = vmatprep.subr.mxu1 %v2905_v13  ;;  %9539 = vmatprep.subr.mxu0 %v12531_v55  ;;  %v12627_v13 = vld [vmem:[#allocation5 + $0xa8] sm:$0xff] }
 0x7c3   :  { %2991 = vmatpush1.msra.mxu1 %v2904_v14  ;;  %9540 = vmatpush3.msra.mxu0 %v2906_v58  ;;  %v3109_v14 = vld [vmem:[#allocation8 + $0x120] sm:$0xff] }
 0x7c4   :  { %2992 = vmatprep.subr.mxu1 %v2902_v12  ;;  %9541 = vmatprep.subr.mxu0 %v12531_v55  ;;  %v12632_v58 = vld [vmem:[#allocation5 + $0xa0] sm:$0xff]  ;;  %v3108_v12 = vld [vmem:[#allocation8 + $0x118] sm:$0xff] }
 0x7c5   :  { %2993 = vmatpush1.msra.mxu1 %v2901_v8  ;;  %9542 = vmatpush3.msra.mxu0 %v2903_v3  ;;  %v12637_v8 = vld [vmem:[#allocation5 + $0x98] sm:$0xff]  ;;  %v3107_v3 = vld [vmem:[#allocation8 + $0x110] sm:$0xff] }
 0x7c6   :  { %2994 = vmatprep.subr.mxu1 %v2899_v54  ;;  %9543 = vmatprep.subr.mxu0 %v12531_v55  ;;  %v12642_v54 = vld [vmem:[#allocation5 + $0x90] sm:$0xff] }
 0x7c7   :  { %2995 = vmatpush1.msra.mxu1 %v2898_v63  ;;  %9544 = vmatpush3.msra.mxu0 %v2900_v5  ;;  %v3106_v63 = vld [vmem:[#allocation8 + $0x108] sm:$0xff] }
 0x7c8   :  { %9548 = vmatprep.subr.mxu1 %v12531_v55  ;;  %9583 = vmatprep.subr.mxu0 %v12531_v55  ;;  %v12647_v5 = vld [vmem:[#allocation5 + $0x88] sm:$0xff] }
 0x845   :  { %v2730_v26 = vpop.f32.mrf.mxu0  ;;  %v2659_v51 = vpop.f32.mrf.mxu1 }
 0x846   :  { %v2660_v35 = vadd.f32 %v2659_v51, %v15682_v27  ;;  %v2731_v50 = vadd.f32 %v2730_v26, %v11411_v41  ;;  %v12582_v41 = vld [vmem:[#allocation5 + $0xf0] sm:$0xff]  ;;  %v3105_v26 = vld [vmem:[#allocation8 + $0x100] sm:$0xff] }
 0x847   :  { %v9477_v0 = vpop.f32.mrf.mxu0  ;;  %v2661_v6 = vpop.f32.mrf.mxu1  ;;  %v12653_v51 = vld [vmem:[#allocation5 + $0x80] sm:$0xff] }
 0x848   :  { %v2662_v23 = vadd.f32 %v2661_v6, %v11400_v9  ;;  %v3202_v0 = vpop.permute.xlu1 %3201  ;;  %v12659_v6 = vld [vmem:[#allocation6 + $0x470] sm:$0xff] }
 0x849   :  { %vm3203_vm8 = vcmp.eq.s32.totalorder %v3202_v0, %v15848_v62  ;;  %v12810_v0 = vld [vmem:[#allocation6 + $0x328] sm:$0xff]  ;;  %v12856_v62 = vld [vmem:[#allocation6 + $0x740] sm:$0xff] }
 0x84a   :  { %15906 = vst [vmem:[#allocation36_spill] sm:$0xff] %v12810_v0  ;;  %15914 = vst [vmem:[#allocation70_spill] sm:$0xff] %v12856_v62 }
 0x866   :  { %v2800_v57 = vpop.f32.mrf.mxu1  ;;  %v2871_v29 = vpop.f32.mrf.mxu0 }
 0x867   :  { %v2801_v15 = vadd.f32 %v2800_v57, %v15683_v30  ;;  %v2872_v27 = vadd.f32 %v2871_v29, %v11407_v20  ;;  %v3119_v20 = vld [vmem:[#allocation8 + $0x170] sm:$0xff]  ;;  %v12672_v57 = vld [vmem:[#allocation6 + $0x468] sm:$0xff]  ;;  %v12674_v29 = vld [vmem:[#allocation6 + $0x478] sm:$0xff] }
 0x868   :  { %v2802_v46 = vpop.f32.mrf.mxu1  ;;  %v9512_v44 = vpop.f32.mrf.mxu0  ;;  %15892 = vst [vmem:[#allocation31_spill] sm:$0xff] %v12674_v29 }
 0x869   :  { %v2875_v39 = vadd.f32 %v2801_v15, %v2660_v35  ;;  %v2803_v47 = vadd.f32 %v2802_v46, %v11397_v4  ;;  %v12676_v35 = vld [vmem:[#allocation6 + $0x458] sm:$0xff]  ;;  %v12684_v15 = vld [vmem:[#allocation6 + $0x460] sm:$0xff] }
 0x86a   :  { %15893 = vst [vmem:[#allocation32_spill] sm:$0xff] %v12684_v15  ;;  %v12686_v46 = vld [vmem:[#allocation6 + $0x440] sm:$0xff]  ;;  %v12690_v44 = vld [vmem:[#allocation6 + $0x438] sm:$0xff] }
 0x86b   :  { %v7726_v40 = vmul.f32 -1.442695, %v2875_v39  ;;  %v2882_v52 = vadd.f32 %v2803_v47, %v2662_v23  ;;  %v12692_v39 = vld [vmem:[#allocation6 + $0x448] sm:$0xff]  ;;  %v12698_v47 = vld [vmem:[#allocation6 + $0x420] sm:$0xff]  ;;  %v12700_v23 = vld [vmem:[#allocation6 + $0x430] sm:$0xff] }
 0x86c   :  { %15894 = vst [vmem:[#allocation74_spill] sm:$0xff] %v12692_v39  ;;  %15895 = vst [vmem:[#allocation75_spill] sm:$0xff] %v12700_v23 }
 0x86d   :  { %10392 = vpow2.f32 %v7726_v40  ;;  %v7727_v37 = vmul.f32 -1.442695, %v2882_v52  ;;  %v12694_v40 = vld [vmem:[#allocation6 + $0x428] sm:$0xff]  ;;  %v12704_v52 = vld [vmem:[#allocation6 + $0x410] sm:$0xff] }
 0x86f   :  { %10394 = vpow2.f32 %v7727_v37  ;;  %v12708_v37 = vld [vmem:[#allocation6 + $0x408] sm:$0xff] }
 0x87a   :  { %v10393_v16 = vpop.eup %10392 }
 0x87b   :  { %v2879_v19 = vadd.f32 1.0, %v10393_v16  ;;  %v12710_v16 = vld [vmem:[#allocation6 + $0x418] sm:$0xff] }
 0x87c   :  { %v10395_v56 = vpop.eup %10394  ;;  %15896 = vst [vmem:[#allocation35_spill] sm:$0xff] %v12710_v16 }
 0x87d   :  { %10396 = vrcp.f32 %v2879_v19  ;;  %v2886_v42 = vadd.f32 1.0, %v10395_v56  ;;  %v12714_v19 = vld [vmem:[#allocation6 + $0x3f8] sm:$0xff]  ;;  %v12718_v56 = vld [vmem:[#allocation6 + $0x3f0] sm:$0xff] }
 0x87f   :  { %10398 = vrcp.f32 %v2886_v42  ;;  %v12720_v42 = vld [vmem:[#allocation6 + $0x400] sm:$0xff] }
 0x880   :  { %15897 = vst [vmem:[#allocation37_spill] sm:$0xff] %v12720_v42 }
 0x88a   :  { %v10397_v30 = vpop.eup %10396 }
 0x88b   :  { %v2889_v11 = vmul.f32 %v10397_v30, %v2872_v27  ;;  %v12724_v27 = vld [vmem:[#allocation6 + $0x3e0] sm:$0xff]  ;;  %v12728_v30 = vld [vmem:[#allocation6 + $0x3d8] sm:$0xff] }
 0x88c   :  { %v10399_v4 = vpop.eup %10398 }
 0x88d   :  { %v2890_v1 = vadd.f32 %v2889_v11, %v2731_v50  ;;  %v2892_v9 = vsub.f32 1.0, %v10399_v4  ;;  %v2894_v28 = vmul.f32 %v10399_v4, %v12542_v33  ;;  %v3118_v33 = vld [vmem:[#allocation8 + $0x168] sm:$0xff]  ;;  %v12740_v4 = vld [vmem:[#allocation6 + $0x3d0] sm:$0xff] }
 0x88e   :  { %v12730_v50 = vld [vmem:[#allocation6 + $0x3e8] sm:$0xff]  ;;  %15899 = vst [vmem:[#allocation41_spill] sm:$0xff] %v12740_v4 }
 0x88f   :  { %10400 = vtanh.f32 %v2890_v1  ;;  %15898 = vst [vmem:[#allocation39_spill] sm:$0xff] %v12730_v50  ;;  %v12734_v11 = vld [vmem:[#allocation6 + $0x3c8] sm:$0xff]  ;;  %v12738_v1 = vld [vmem:[#allocation6 + $0x3c0] sm:$0xff] }
 0x89c   :  { %v10401_v24 = vpop.eup %10400 }
 0x89d   :  { %v2893_v25 = vmul.f32 %v10401_v24, %v2892_v9  ;;  %v12744_v9 = vld [vmem:[#allocation6 + $0x3b0] sm:$0xff]  ;;  %v12748_v24 = vld [vmem:[#allocation6 + $0x3a8] sm:$0xff] }
 0x89f   :  { %v12576_v31 = vadd.f32 %v2894_v28, %v2893_v25  ;;  %v12750_v25 = vld [vmem:[#allocation6 + $0x3b8] sm:$0xff] }
 0x8a0   :  { %15900 = vst [vmem:[#allocation62_spill] sm:$0xff] %v12750_v25  ;;  %v12754_v28 = vld [vmem:[#allocation6 + $0x398] sm:$0xff] }
 0x8a1   :  { %3029 = vmatmul.mubr.f32.vlgmr.msra.gmra.mxu1 %v12576_v31  ;;  %9546 = vmatmul.mubr.f32.vlgmr.msra.gmra.mxu0 %v12576_v31 }
 0x8a2   :  { %9549 = vmatpush3.msra.mxu1 %v3120_v53  ;;  %9584 = vmatpush3.msra.mxu0 %v12578_v49  ;;  %v12758_v53 = vld [vmem:[#allocation6 + $0x390] sm:$0xff] }
 0x8a3   :  { %9550 = vmatprep.subr.mxu1 %v12531_v55  ;;  %9585 = vmatprep.subr.mxu0 %v12531_v55 }
 0x8a4   :  { %9551 = vmatpush3.msra.mxu1 %v3119_v20  ;;  %9586 = vmatpush3.msra.mxu0 %v12582_v41  ;;  %v12760_v20 = vld [vmem:[#allocation6 + $0x3a0] sm:$0xff] }
 0x8a5   :  { %9552 = vmatprep.subr.mxu1 %v12531_v55  ;;  %9587 = vmatprep.subr.mxu0 %v12531_v55  ;;  %15901 = vst [vmem:[#allocation65_spill] sm:$0xff] %v12760_v20 }
 0x8a6   :  { %9553 = vmatpush3.msra.mxu1 %v3118_v33  ;;  %9588 = vmatpush3.msra.mxu0 %v12587_v7  ;;  %v12764_v33 = vld [vmem:[#allocation6 + $0x380] sm:$0xff] }
 0x8a7   :  { %9554 = vmatprep.subr.mxu1 %v12531_v55  ;;  %9589 = vmatprep.subr.mxu0 %v12531_v55 }
 0x8a8   :  { %9555 = vmatpush3.msra.mxu1 %v3117_v32  ;;  %9590 = vmatpush3.msra.mxu0 %v12592_v17  ;;  %v12768_v32 = vld [vmem:[#allocation6 + $0x378] sm:$0xff] }
 0x8a9   :  { %9556 = vmatprep.subr.mxu1 %v12531_v55  ;;  %9591 = vmatprep.subr.mxu0 %v12531_v55 }
 0x8aa   :  { %9557 = vmatpush3.msra.mxu1 %v3116_v34  ;;  %9592 = vmatpush3.msra.mxu0 %v12597_v21  ;;  %v12770_v34 = vld [vmem:[#allocation6 + $0x388] sm:$0xff] }
 0x8ab   :  { %9558 = vmatprep.subr.mxu1 %v12531_v55  ;;  %9593 = vmatprep.subr.mxu0 %v12531_v55  ;;  %15902 = vst [vmem:[#allocation68_spill] sm:$0xff] %v12770_v34 }
 0x8ac   :  { %9559 = vmatpush3.msra.mxu1 %v3115_v2  ;;  %9594 = vmatpush3.msra.mxu0 %v12602_v45  ;;  %v12774_v2 = vld [vmem:[#allocation6 + $0x368] sm:$0xff] }
 0x8ad   :  { %9560 = vmatprep.subr.mxu1 %v12531_v55  ;;  %9595 = vmatprep.subr.mxu0 %v12531_v55 }
 0x8ae   :  { %9561 = vmatpush3.msra.mxu1 %v3114_v10  ;;  %9596 = vmatpush3.msra.mxu0 %v12607_v43  ;;  %v12778_v10 = vld [vmem:[#allocation6 + $0x360] sm:$0xff] }
 0x8af   :  { %9562 = vmatprep.subr.mxu1 %v12531_v55  ;;  %9597 = vmatprep.subr.mxu0 %v12531_v55 }
 0x8b0   :  { %9563 = vmatpush3.msra.mxu1 %v3113_v38  ;;  %9598 = vmatpush3.msra.mxu0 %v12612_v48  ;;  %v12780_v38 = vld [vmem:[#allocation6 + $0x370] sm:$0xff] }
 0x8b1   :  { %9564 = vmatprep.subr.mxu1 %v12531_v55  ;;  %9599 = vmatprep.subr.mxu0 %v12531_v55  ;;  %15903 = vst [vmem:[#allocation71_spill] sm:$0xff] %v12780_v38 }
 0x8b2   :  { %9565 = vmatpush3.msra.mxu1 %v3112_v60  ;;  %9600 = vmatpush3.msra.mxu0 %v12617_v36  ;;  %v12784_v60 = vld [vmem:[#allocation6 + $0x350] sm:$0xff] }
 0x8b3   :  { %9566 = vmatprep.subr.mxu1 %v12531_v55  ;;  %9601 = vmatprep.subr.mxu0 %v12531_v55 }
 0x8b4   :  { %9567 = vmatpush3.msra.mxu1 %v3111_v59  ;;  %9602 = vmatpush3.msra.mxu0 %v12622_v61  ;;  %v12788_v59 = vld [vmem:[#allocation6 + $0x348] sm:$0xff] }
 0x8b5   :  { %9568 = vmatprep.subr.mxu1 %v12531_v55  ;;  %9603 = vmatprep.subr.mxu0 %v12531_v55 }
 0x8b6   :  { %9569 = vmatpush3.msra.mxu1 %v3110_v22  ;;  %9604 = vmatpush3.msra.mxu0 %v12627_v13  ;;  %v12790_v22 = vld [vmem:[#allocation6 + $0x358] sm:$0xff] }
 0x8b7   :  { %9570 = vmatprep.subr.mxu1 %v12531_v55  ;;  %9605 = vmatprep.subr.mxu0 %v12531_v55  ;;  %15904 = vst [vmem:[#allocation79_spill] sm:$0xff] %v12790_v22 }
 0x8b8   :  { %9571 = vmatpush3.msra.mxu1 %v3109_v14  ;;  %9606 = vmatpush3.msra.mxu0 %v12632_v58  ;;  %v12794_v14 = vld [vmem:[#allocation6 + $0x338] sm:$0xff] }
 0x8b9   :  { %9572 = vmatprep.subr.mxu1 %v12531_v55  ;;  %9607 = vmatprep.subr.mxu0 %v12531_v55 }
 0x8ba   :  { %9573 = vmatpush3.msra.mxu1 %v3108_v12  ;;  %9608 = vmatpush3.msra.mxu0 %v12637_v8  ;;  %v12798_v12 = vld [vmem:[#allocation6 + $0x330] sm:$0xff] }
 0x8bb   :  { %9574 = vmatprep.subr.mxu1 %v12531_v55  ;;  %9609 = vmatprep.subr.mxu0 %v12531_v55 }
 0x8bc   :  { %9575 = vmatpush3.msra.mxu1 %v3107_v3  ;;  %9610 = vmatpush3.msra.mxu0 %v12642_v54  ;;  %v12800_v3 = vld [vmem:[#allocation6 + $0x340] sm:$0xff] }
 0x8bd   :  { %9576 = vmatprep.subr.mxu1 %v12531_v55  ;;  %9611 = vmatprep.subr.mxu0 %v12531_v55  ;;  %15905 = vst [vmem:[#allocation34_spill] sm:$0xff] %v12800_v3 }
 0x8be   :  { %9577 = vmatpush3.msra.mxu1 %v3106_v63  ;;  %9612 = vmatpush3.msra.mxu0 %v12647_v5  ;;  %v12804_v63 = vld [vmem:[#allocation6 + $0x320] sm:$0xff] }
 0x8bf   :  { %9578 = vmatprep.subr.mxu1 %v12531_v55  ;;  %9613 = vmatprep.subr.mxu0 %v12531_v55 }
 0x8c0   :  { %9579 = vmatpush3.msra.mxu1 %v3105_v26  ;;  %9580 = vmatprep.mubr.msk.f32.mxu1 %vm10791_vm0, %v12531_v55  ;;  %v12808_v26 = vld [vmem:[#allocation6 + $0x318] sm:$0xff] }
 0x8c1   :  { %9614 = vmatpush3.msra.mxu0 %v12653_v51  ;;  %9615 = vmatprep.mubr.msk.f32.mxu0 %vm10791_vm0, %v12531_v55 }
 0x8c2   :  { %9581 = vmatmul.mubr.f32.vlgmr.msra.gmra.mxu1 %v12576_v31  ;;  %9616 = vmatmul.mubr.msk.f32.vlgmr.msra.gmra.mxu0 %vm3203_vm8, %v15891_v18  ;;  %v12682_v18 = vld [vmem:[#allocation6 + $0x450] sm:$0xff] }
 0x8c3   :  { %3342 = vmatprep.subr.mxu1 %v12659_v6  ;;  %9618 = vmatprep.subr.mxu0 %v12531_v55 }
 0x8c4   :  { %3406 = vmatprep.mubr.f32.mxu1 %v12531_v55  ;;  %9650 = vmatprep.mubr.msk.f32.mxu0 %vm10791_vm0, %v12531_v55 }
 0x8c5   :  { %3343 = vmatpush1.msra.mxu1 %v12672_v57  ;;  %9619 = vmatpush3.msra.mxu0 %v12674_v29 }
 0x8c6   :  { %3344 = vmatprep.subr.mxu1 %v12676_v35  ;;  %9620 = vmatprep.subr.mxu0 %v12531_v55 }
 0x8c7   :  { %3345 = vmatpush1.msra.mxu1 %v12682_v18  ;;  %9621 = vmatpush3.msra.mxu0 %v12684_v15 }
 0x8c8   :  { %3346 = vmatprep.subr.mxu1 %v12686_v46  ;;  %9622 = vmatprep.subr.mxu0 %v12531_v55 }
 0x8c9   :  { %3347 = vmatpush1.msra.mxu1 %v12690_v44  ;;  %9623 = vmatpush3.msra.mxu0 %v12692_v39  ;;  %v12850_v39 = vld [vmem:[#allocation6 + $0x750] sm:$0xff] }
 0x8ca   :  { %3348 = vmatprep.subr.mxu1 %v12694_v40  ;;  %9624 = vmatprep.subr.mxu0 %v12531_v55  ;;  %15912 = vst [vmem:[#allocation66_spill] sm:$0xff] %v12850_v39 }
 0x8cb   :  { %3349 = vmatpush1.msra.mxu1 %v12698_v47  ;;  %9625 = vmatpush3.msra.mxu0 %v12700_v23  ;;  %v12846_v23 = vld [vmem:[#allocation6 + $0x758] sm:$0xff] }
 0x8cc   :  { %3350 = vmatprep.subr.mxu1 %v12704_v52  ;;  %9626 = vmatprep.subr.mxu0 %v12531_v55  ;;  %15911 = vst [vmem:[#allocation63_spill] sm:$0xff] %v12846_v23 }
 0x8cd   :  { %3351 = vmatpush1.msra.mxu1 %v12708_v37  ;;  %9627 = vmatpush3.msra.mxu0 %v12710_v16 }
 0x8ce   :  { %3352 = vmatprep.subr.mxu1 %v12714_v19  ;;  %9628 = vmatprep.subr.mxu0 %v12531_v55 }
 0x8cf   :  { %3353 = vmatpush1.msra.mxu1 %v12718_v56  ;;  %9629 = vmatpush3.msra.mxu0 %v12720_v42  ;;  %v12840_v42 = vld [vmem:[#allocation6 + $0x778] sm:$0xff] }
 0x8d0   :  { %3354 = vmatprep.subr.mxu1 %v12724_v27  ;;  %9630 = vmatprep.subr.mxu0 %v12531_v55 }
 0x8d1   :  { %3355 = vmatpush1.msra.mxu1 %v12728_v30  ;;  %9631 = vmatpush3.msra.mxu0 %v12730_v50  ;;  %v12838_v50 = vld [vmem:[#allocation6 + $0x768] sm:$0xff] }
 0x8d2   :  { %3356 = vmatprep.subr.mxu1 %v12734_v11  ;;  %9632 = vmatprep.subr.mxu0 %v12531_v55 }
 0x8d3   :  { %3357 = vmatpush1.msra.mxu1 %v12738_v1  ;;  %9633 = vmatpush3.msra.mxu0 %v12740_v4 }
 0x8d4   :  { %3358 = vmatprep.subr.mxu1 %v12744_v9  ;;  %9634 = vmatprep.subr.mxu0 %v12531_v55 }
 0x8d5   :  { %3359 = vmatpush1.msra.mxu1 %v12748_v24  ;;  %9635 = vmatpush3.msra.mxu0 %v12750_v25 }
 0x8d6   :  { %3360 = vmatprep.subr.mxu1 %v12754_v28  ;;  %9636 = vmatprep.subr.mxu0 %v12531_v55 }
 0x8d7   :  { %3361 = vmatpush1.msra.mxu1 %v12758_v53  ;;  %9637 = vmatpush3.msra.mxu0 %v12760_v20 }
 0x8d8   :  { %3362 = vmatprep.subr.mxu1 %v12764_v33  ;;  %9638 = vmatprep.subr.mxu0 %v12531_v55 }
 0x8d9   :  { %3363 = vmatpush1.msra.mxu1 %v12768_v32  ;;  %9639 = vmatpush3.msra.mxu0 %v12770_v34  ;;  %v12820_v34 = vld [vmem:[#allocation6 + $0x310] sm:$0xff] }
 0x8da   :  { %3364 = vmatprep.subr.mxu1 %v12774_v2  ;;  %9640 = vmatprep.subr.mxu0 %v12531_v55  ;;  %15908 = vst [vmem:[#allocation40_spill] sm:$0xff] %v12820_v34 }
 0x8db   :  { %3365 = vmatpush1.msra.mxu1 %v12778_v10  ;;  %9641 = vmatpush3.msra.mxu0 %v12780_v38  ;;  %v12814_v38 = vld [vmem:[#allocation6 + $0x308] sm:$0xff] }
 0x8dc   :  { %3366 = vmatprep.subr.mxu1 %v12784_v60  ;;  %9642 = vmatprep.subr.mxu0 %v12531_v55 }
 0x8dd   :  { %3367 = vmatpush1.msra.mxu1 %v12788_v59  ;;  %9643 = vmatpush3.msra.mxu0 %v12790_v22  ;;  %v12818_v22 = vld [vmem:[#allocation6 + $0x300] sm:$0xff] }
 0x8de   :  { %3368 = vmatprep.subr.mxu1 %v12794_v14  ;;  %9644 = vmatprep.subr.mxu0 %v12531_v55  ;;  %15907 = vst [vmem:[#allocation38_spill] sm:$0xff] %v12818_v22 }
 0x8df   :  { %3369 = vmatpush1.msra.mxu1 %v12798_v12  ;;  %9645 = vmatpush3.msra.mxu0 %v12800_v3  ;;  %v12828_v3 = vld [vmem:[#allocation6 + $0x770] sm:$0xff] }
 0x8e0   :  { %3370 = vmatprep.subr.mxu1 %v12804_v63  ;;  %9646 = vmatprep.subr.mxu0 %v12531_v55  ;;  %15909 = vst [vmem:[#allocation42_spill] sm:$0xff] %v12828_v3 }
 0x8e1   :  { %3371 = vmatpush1.msra.mxu1 %v12808_v26  ;;  %9647 = vmatpush3.msra.mxu0 %v12810_v0 }
 0x8e2   :  { %3372 = vmatprep.subr.mxu1 %v12814_v38  ;;  %9648 = vmatprep.subr.mxu0 %v12531_v55 }
 0x8e3   :  { %3373 = vmatpush1.msra.mxu1 %v12818_v22  ;;  %9649 = vmatpush3.msra.mxu0 %v12820_v34  ;;  %v12866_v22 = vld [vmem:[#allocation6 + $0x728] sm:$0xff] }
 0x8e4   :  { %3550 = vmatprep.subr.mxu1 %v12828_v3  ;;  %9653 = vmatprep.subr.mxu0 %v12531_v55  ;;  %v12862_v3 = vld [vmem:[#allocation6 + $0x748] sm:$0xff]  ;;  %15917 = vst [vmem:[#allocation12_spill] sm:$0xff] %v12866_v22 }
 0x8e5   :  { %15916 = vst [vmem:[#allocation13_spill] sm:$0xff] %v12862_v3 }
 0x961   :  { %v12832_v20 = vpop.f32.mrf.mxu0  ;;  %v12834_v4 = vpop.f32.mrf.mxu1 }
 0x963   :  { %v9547_v25 = vpop.f32.mrf.mxu0  ;;  %v12836_v0 = vpop.f32.mrf.mxu1 }
 0x964   :  { %v12852_v25 = vld [vmem:[#allocation6 + $0x760] sm:$0xff] }
 0x965   :  { %15913 = vst [vmem:[#allocation69_spill] sm:$0xff] %v12852_v25 }
 0x982   :  { %v12842_v16 = vpop.f32.mrf.mxu1  ;;  %v12844_v34 = vpop.f32.mrf.mxu0 }
 0x983   :  { %15910 = vst [vmem:[#allocation43_spill] sm:$0xff] %v12842_v16  ;;  %3407 = vmatmul.mubr.f32.vlgmr.msra.gmra.mxu1 %v12844_v34  ;;  %9651 = vmatmul.mubr.f32.vlgmr.msra.gmra.mxu0 %v12844_v34  ;;  %v12860_v16 = vld [vmem:[#allocation6 + $0x738] sm:$0xff] }
 0x984   :  { %3551 = vmatpush1.msra.mxu1 %v12838_v50  ;;  %9654 = vmatpush3.msra.mxu0 %v12840_v42  ;;  %v9582_v15 = vpop.f32.mrf.mxu1  ;;  %v9617_v29 = vpop.f32.mrf.mxu0  ;;  %15915 = vst [vmem:[#allocation72_spill] sm:$0xff] %v12860_v16 }
 0x985   :  { %3552 = vmatprep.subr.mxu1 %v12846_v23  ;;  %9655 = vmatprep.subr.mxu0 %v12531_v55  ;;  %v12870_v29 = vld [vmem:[#allocation6 + $0x720] sm:$0xff]  ;;  %v12872_v15 = vld [vmem:[#allocation6 + $0x730] sm:$0xff] }
 0x986   :  { %3553 = vmatpush1.msra.mxu1 %v12850_v39  ;;  %9656 = vmatpush3.msra.mxu0 %v12852_v25  ;;  %15918 = vst [vmem:[#allocation14_spill] sm:$0xff] %v12870_v29  ;;  %15919 = vst [vmem:[#allocation17_spill] sm:$0xff] %v12872_v15  ;;  %v12876_v23 = vld [vmem:[#allocation6 + $0x710] sm:$0xff]  ;;  %v12880_v25 = vld [vmem:[#allocation6 + $0x708] sm:$0xff] }
 0x987   :  { %3554 = vmatprep.subr.mxu1 %v12856_v62  ;;  %9657 = vmatprep.subr.mxu0 %v12531_v55  ;;  %15920 = vst [vmem:[#allocation15_spill] sm:$0xff] %v12876_v23  ;;  %15921 = vst [vmem:[#allocation18_spill] sm:$0xff] %v12880_v25  ;;  %v12882_v39 = vld [vmem:[#allocation6 + $0x718] sm:$0xff] }
 0x988   :  { %3555 = vmatpush1.msra.mxu1 %v12860_v16  ;;  %9658 = vmatpush3.msra.mxu0 %v12862_v3  ;;  %15922 = vst [vmem:[#allocation33_spill] sm:$0xff] %v12882_v39  ;;  %v12886_v62 = vld [vmem:[#allocation6 + $0x6f8] sm:$0xff]  ;;  %v12890_v3 = vld [vmem:[#allocation6 + $0x6f0] sm:$0xff]  ;;  %v12892_v16 = vld [vmem:[#allocation6 + $0x700] sm:$0xff] }
 0x989   :  { %3556 = vmatprep.subr.mxu1 %v12866_v22  ;;  %9659 = vmatprep.subr.mxu0 %v12531_v55  ;;  %15923 = vst [vmem:[#allocation19_spill] sm:$0xff] %v12886_v62  ;;  %15924 = vst [vmem:[#allocation20_spill] sm:$0xff] %v12890_v3  ;;  %v12896_v22 = vld [vmem:[#allocation6 + $0x6e0] sm:$0xff] }
 0x98a   :  { %3557 = vmatpush1.msra.mxu1 %v12870_v29  ;;  %9660 = vmatpush3.msra.mxu0 %v12872_v15  ;;  %15925 = vst [vmem:[#allocation21_spill] sm:$0xff] %v12892_v16  ;;  %15926 = vst [vmem:[#allocation22_spill] sm:$0xff] %v12896_v22  ;;  %v12900_v15 = vld [vmem:[#allocation6 + $0x6d8] sm:$0xff]  ;;  %v12902_v29 = vld [vmem:[#allocation6 + $0x6e8] sm:$0xff] }
 0x98b   :  { %3558 = vmatprep.subr.mxu1 %v12876_v23  ;;  %9661 = vmatprep.subr.mxu0 %v12531_v55  ;;  %15927 = vst [vmem:[#allocation23_spill] sm:$0xff] %v12900_v15  ;;  %15928 = vst [vmem:[#allocation24_spill] sm:$0xff] %v12902_v29  ;;  %v12906_v23 = vld [vmem:[#allocation6 + $0x6c8] sm:$0xff] }
 0x98c   :  { %3559 = vmatpush1.msra.mxu1 %v12880_v25  ;;  %9662 = vmatpush3.msra.mxu0 %v12882_v39  ;;  %15929 = vst [vmem:[#allocation25_spill] sm:$0xff] %v12906_v23  ;;  %v12910_v39 = vld [vmem:[#allocation6 + $0x6c0] sm:$0xff]  ;;  %v12912_v25 = vld [vmem:[#allocation6 + $0x6d0] sm:$0xff] }
 0x98d   :  { %3560 = vmatprep.subr.mxu1 %v12886_v62  ;;  %9663 = vmatprep.subr.mxu0 %v12531_v55  ;;  %15930 = vst [vmem:[#allocation26_spill] sm:$0xff] %v12910_v39  ;;  %15931 = vst [vmem:[#allocation27_spill] sm:$0xff] %v12912_v25  ;;  %v12916_v62 = vld [vmem:[#allocation6 + $0x6b0] sm:$0xff] }
 0x98e   :  { %3561 = vmatpush1.msra.mxu1 %v12890_v3  ;;  %9664 = vmatpush3.msra.mxu0 %v12892_v16  ;;  %15932 = vst [vmem:[#allocation28_spill] sm:$0xff] %v12916_v62  ;;  %v12920_v16 = vld [vmem:[#allocation6 + $0x6a8] sm:$0xff]  ;;  %v12922_v3 = vld [vmem:[#allocation6 + $0x6b8] sm:$0xff] }
 0x98f   :  { %3562 = vmatprep.subr.mxu1 %v12896_v22  ;;  %9665 = vmatprep.subr.mxu0 %v12531_v55  ;;  %15933 = vst [vmem:[#allocation29_spill] sm:$0xff] %v12920_v16  ;;  %15934 = vst [vmem:[#allocation30_spill] sm:$0xff] %v12922_v3  ;;  %v12926_v22 = vld [vmem:[#allocation6 + $0x698] sm:$0xff] }
 0x990   :  { %3563 = vmatpush1.msra.mxu1 %v12900_v15  ;;  %9666 = vmatpush3.msra.mxu0 %v12902_v29  ;;  %15935 = vst [vmem:[#allocation45_spill] sm:$0xff] %v12926_v22  ;;  %v12930_v29 = vld [vmem:[#allocation6 + $0x690] sm:$0xff]  ;;  %v12932_v15 = vld [vmem:[#allocation6 + $0x6a0] sm:$0xff] }
 0x991   :  { %3564 = vmatprep.subr.mxu1 %v12906_v23  ;;  %9667 = vmatprep.subr.mxu0 %v12531_v55  ;;  %15936 = vst [vmem:[#allocation44_spill] sm:$0xff] %v12930_v29  ;;  %15937 = vst [vmem:[#allocation46_spill] sm:$0xff] %v12932_v15  ;;  %v12936_v23 = vld [vmem:[#allocation6 + $0x680] sm:$0xff] }
 0x992   :  { %3565 = vmatpush1.msra.mxu1 %v12910_v39  ;;  %9668 = vmatpush3.msra.mxu0 %v12912_v25  ;;  %15938 = vst [vmem:[#allocation48_spill] sm:$0xff] %v12936_v23  ;;  %v12940_v25 = vld [vmem:[#allocation6 + $0x678] sm:$0xff]  ;;  %v12942_v39 = vld [vmem:[#allocation6 + $0x688] sm:$0xff] }
 0x993   :  { %3566 = vmatprep.subr.mxu1 %v12916_v62  ;;  %9669 = vmatprep.subr.mxu0 %v12531_v55  ;;  %15939 = vst [vmem:[#allocation47_spill] sm:$0xff] %v12940_v25  ;;  %15940 = vst [vmem:[#allocation49_spill] sm:$0xff] %v12942_v39  ;;  %v12946_v62 = vld [vmem:[#allocation6 + $0x668] sm:$0xff] }
 0x994   :  { %3567 = vmatpush1.msra.mxu1 %v12920_v16  ;;  %9670 = vmatpush3.msra.mxu0 %v12922_v3  ;;  %15941 = vst [vmem:[#allocation51_spill] sm:$0xff] %v12946_v62  ;;  %v12950_v3 = vld [vmem:[#allocation6 + $0x660] sm:$0xff]  ;;  %v12952_v16 = vld [vmem:[#allocation6 + $0x670] sm:$0xff] }
 0x995   :  { %3568 = vmatprep.subr.mxu1 %v12926_v22  ;;  %9671 = vmatprep.subr.mxu0 %v12531_v55  ;;  %15942 = vst [vmem:[#allocation50_spill] sm:$0xff] %v12950_v3  ;;  %15943 = vst [vmem:[#allocation52_spill] sm:$0xff] %v12952_v16  ;;  %v12956_v22 = vld [vmem:[#allocation6 + $0x650] sm:$0xff] }
 0x996   :  { %3569 = vmatpush1.msra.mxu1 %v12930_v29  ;;  %9672 = vmatpush3.msra.mxu0 %v12932_v15  ;;  %15944 = vst [vmem:[#allocation54_spill] sm:$0xff] %v12956_v22  ;;  %v12960_v15 = vld [vmem:[#allocation6 + $0x648] sm:$0xff]  ;;  %v12962_v29 = vld [vmem:[#allocation6 + $0x658] sm:$0xff] }
 0x997   :  { %3570 = vmatprep.subr.mxu1 %v12936_v23  ;;  %9673 = vmatprep.subr.mxu0 %v12531_v55  ;;  %15945 = vst [vmem:[#allocation53_spill] sm:$0xff] %v12962_v29  ;;  %v12966_v23 = vld [vmem:[#allocation6 + $0x638] sm:$0xff] }
 0x998   :  { %3571 = vmatpush1.msra.mxu1 %v12940_v25  ;;  %9674 = vmatpush3.msra.mxu0 %v12942_v39  ;;  %v12970_v39 = vld [vmem:[#allocation6 + $0x630] sm:$0xff]  ;;  %v12972_v25 = vld [vmem:[#allocation6 + $0x640] sm:$0xff] }
 0x999   :  { %3572 = vmatprep.subr.mxu1 %v12946_v62  ;;  %9675 = vmatprep.subr.mxu0 %v12531_v55  ;;  %15946 = vst [vmem:[#allocation55_spill] sm:$0xff] %v12970_v39  ;;  %15947 = vst [vmem:[#allocation57_spill] sm:$0xff] %v12972_v25  ;;  %v12976_v62 = vld [vmem:[#allocation6 + $0x620] sm:$0xff] }
 0x99a   :  { %3573 = vmatpush1.msra.mxu1 %v12950_v3  ;;  %9676 = vmatpush3.msra.mxu0 %v12952_v16  ;;  %15948 = vst [vmem:[#allocation56_spill] sm:$0xff] %v12976_v62  ;;  %v12980_v16 = vld [vmem:[#allocation6 + $0x618] sm:$0xff]  ;;  %v12982_v3 = vld [vmem:[#allocation6 + $0x628] sm:$0xff] }
 0x99b   :  { %3574 = vmatprep.subr.mxu1 %v12956_v22  ;;  %9677 = vmatprep.subr.mxu0 %v12531_v55  ;;  %15949 = vst [vmem:[#allocation58_spill] sm:$0xff] %v12980_v16  ;;  %15950 = vst [vmem:[#allocation60_spill] sm:$0xff] %v12982_v3  ;;  %v12986_v22 = vld [vmem:[#allocation6 + $0x608] sm:$0xff] }
 0x99c   :  { %3575 = vmatpush1.msra.mxu1 %v12960_v15  ;;  %9678 = vmatpush3.msra.mxu0 %v12962_v29  ;;  %15951 = vst [vmem:[#allocation59_spill] sm:$0xff] %v12986_v22  ;;  %v12992_v29 = vld [vmem:[%s15000_s7] sm:$0xff] }
 0x99d   :  { %3576 = vmatprep.subr.mxu1 %v12966_v23  ;;  %9679 = vmatprep.subr.mxu0 %v12531_v55  ;;  %v12995_v55 = vld [vmem:[#allocation6 + $0x600] sm:$0xff] }
 0x99e   :  { %3577 = vmatpush1.msra.mxu1 %v12970_v39  ;;  %9680 = vmatpush3.msra.mxu0 %v12972_v25  ;;  %15952 = vst [vmem:[#allocation61_spill] sm:$0xff] %v12995_v55  ;;  %v12999_v39 = vld [vmem:[#allocation6 + $0x610] sm:$0xff] }
 0x99f   :  { %3578 = vmatprep.subr.mxu1 %v12976_v62  ;;  %9681 = vmatprep.subr.mxu0 %v12992_v29  ;;  %15953 = vst [vmem:[#allocation64_spill] sm:$0xff] %v12999_v39 }
 0x9a0   :  { %3579 = vmatpush1.msra.mxu1 %v12980_v16  ;;  %9682 = vmatpush3.msra.mxu0 %v12982_v3 }
 0x9a1   :  { %3580 = vmatprep.subr.mxu1 %v12986_v22  ;;  %9683 = vmatprep.subr.mxu0 %v12992_v29 }
 0x9a2   :  { %3581 = vmatpush1.msra.mxu1 %v12995_v55  ;;  %3614 = vmatprep.mubr.f32.mxu1 %v12992_v29 }
 0x9a3   :  { %9684 = vmatpush3.msra.mxu0 %v12999_v39  ;;  %9685 = vmatprep.mubr.msk.f32.mxu0 %vm10791_vm0, %v12992_v29 }
 0x9a4   :  { %3615 = vmatmul.mubr.f32.vlgmr.msra.gmra.mxu1 %v12576_v31  ;;  %9686 = vmatmul.mubr.f32.vlgmr.msra.gmra.mxu0 %v12576_v31 }
 0x9a5   :  { %9688 = vmatprep.subr.mxu0 %v12992_v29  ;;  %9720 = vmatprep.mubr.msk.f32.mxu0 %vm10791_vm0, %v12992_v29 }
 0x9a6   :  { %9689 = vmatpush3.msra.mxu0 %v12578_v49  ;;  %v13045_v49 = vld [vmem:[#allocation8 + $0xf8] sm:$0xff] }
 0x9a7   :  { %9690 = vmatprep.subr.mxu0 %v12992_v29  ;;  %15954 = vst [vmem:[#allocation67_spill] sm:$0xff] %v13045_v49  ;;  %8227 = vmatprep.subr.mxu1 %v13045_v49 }
 0x9a8   :  { %9691 = vmatpush3.msra.mxu0 %v12582_v41  ;;  %v13048_v41 = vld [vmem:[#allocation8 + $0x78] sm:$0xff] }
 0x9a9   :  { %9692 = vmatprep.subr.mxu0 %v12992_v29  ;;  %15955 = vst [vmem:[#allocation78_spill] sm:$0xff] %v13048_v41  ;;  %8228 = vmatpush3.msra.mxu1 %v13048_v41 }
 0x9aa   :  { %9693 = vmatpush3.msra.mxu0 %v12587_v7  ;;  %v13051_v7 = vld [vmem:[#allocation8 + $0xf0] sm:$0xff] }
 0x9ab   :  { %9694 = vmatprep.subr.mxu0 %v12992_v29  ;;  %15956 = vst [vmem:[#allocation80_spill] sm:$0xff] %v13051_v7  ;;  %8229 = vmatprep.subr.mxu1 %v13051_v7 }
 0x9ac   :  { %9695 = vmatpush3.msra.mxu0 %v12592_v17  ;;  %v13054_v17 = vld [vmem:[#allocation8 + $0x70] sm:$0xff] }
 0x9ad   :  { %9696 = vmatprep.subr.mxu0 %v12992_v29  ;;  %15957 = vst [vmem:[#allocation81_spill] sm:$0xff] %v13054_v17  ;;  %8230 = vmatpush3.msra.mxu1 %v13054_v17 }
 0x9ae   :  { %9697 = vmatpush3.msra.mxu0 %v12597_v21  ;;  %v13057_v21 = vld [vmem:[#allocation8 + $0xe8] sm:$0xff] }
 0x9af   :  { %9698 = vmatprep.subr.mxu0 %v12992_v29  ;;  %15958 = vst [vmem:[#allocation82_spill] sm:$0xff] %v13057_v21  ;;  %8231 = vmatprep.subr.mxu1 %v13057_v21 }
 0x9b0   :  { %9699 = vmatpush3.msra.mxu0 %v12602_v45  ;;  %v13060_v45 = vld [vmem:[#allocation8 + $0x68] sm:$0xff] }
 0x9b1   :  { %9700 = vmatprep.subr.mxu0 %v12992_v29  ;;  %15959 = vst [vmem:[#allocation83_spill] sm:$0xff] %v13060_v45  ;;  %8232 = vmatpush3.msra.mxu1 %v13060_v45 }
 0x9b2   :  { %9701 = vmatpush3.msra.mxu0 %v12607_v43  ;;  %v13063_v43 = vld [vmem:[#allocation8 + $0xe0] sm:$0xff] }
 0x9b3   :  { %9702 = vmatprep.subr.mxu0 %v12992_v29  ;;  %15960 = vst [vmem:[#allocation84_spill] sm:$0xff] %v13063_v43  ;;  %8233 = vmatprep.subr.mxu1 %v13063_v43 }
 0x9b4   :  { %9703 = vmatpush3.msra.mxu0 %v12612_v48  ;;  %v13066_v48 = vld [vmem:[#allocation8 + $0x60] sm:$0xff] }
 0x9b5   :  { %9704 = vmatprep.subr.mxu0 %v12992_v29  ;;  %15961 = vst [vmem:[#allocation85_spill] sm:$0xff] %v13066_v48  ;;  %8234 = vmatpush3.msra.mxu1 %v13066_v48  ;;  %v15986_v48 = vld [vmem:[#allocation73_spill] sm:$0xff] }
 0x9b6   :  { %9705 = vmatpush3.msra.mxu0 %v12617_v36  ;;  %v13069_v36 = vld [vmem:[#allocation8 + $0xd8] sm:$0xff] }
 0x9b7   :  { %9706 = vmatprep.subr.mxu0 %v12992_v29  ;;  %15962 = vst [vmem:[#allocation86_spill] sm:$0xff] %v13069_v36  ;;  %8235 = vmatprep.subr.mxu1 %v13069_v36  ;;  %v13106_v36 = vld [vmem:[#allocation8 + $0x28] sm:$0xff] }
 0x9b8   :  { %9707 = vmatpush3.msra.mxu0 %v12622_v61  ;;  %v13072_v61 = vld [vmem:[#allocation8 + $0x58] sm:$0xff]  ;;  %15975 = vst [vmem:[#allocation99_spill] sm:$0xff] %v13106_v36 }
 0x9b9   :  { %9708 = vmatprep.subr.mxu0 %v12992_v29  ;;  %15963 = vst [vmem:[#allocation87_spill] sm:$0xff] %v13072_v61  ;;  %8236 = vmatpush3.msra.mxu1 %v13072_v61  ;;  %v13091_v61 = vld [vmem:[#allocation8 + $0xb8] sm:$0xff] }
 0x9ba   :  { %9709 = vmatpush3.msra.mxu0 %v12627_v13  ;;  %v13075_v13 = vld [vmem:[#allocation8 + $0xd0] sm:$0xff]  ;;  %15970 = vst [vmem:[#allocation94_spill] sm:$0xff] %v13091_v61 }
 0x9bb   :  { %9710 = vmatprep.subr.mxu0 %v12992_v29  ;;  %15964 = vst [vmem:[#allocation88_spill] sm:$0xff] %v13075_v13  ;;  %8237 = vmatprep.subr.mxu1 %v13075_v13  ;;  %v13094_v13 = vld [vmem:[#allocation8 + $0x38] sm:$0xff] }
 0x9bc   :  { %9711 = vmatpush3.msra.mxu0 %v12632_v58  ;;  %v13078_v58 = vld [vmem:[#allocation8 + $0x50] sm:$0xff]  ;;  %15971 = vst [vmem:[#allocation95_spill] sm:$0xff] %v13094_v13 }
 0x9bd   :  { %9712 = vmatprep.subr.mxu0 %v12992_v29  ;;  %15965 = vst [vmem:[#allocation89_spill] sm:$0xff] %v13078_v58  ;;  %8238 = vmatpush3.msra.mxu1 %v13078_v58  ;;  %v13097_v58 = vld [vmem:[#allocation8 + $0xb0] sm:$0xff] }
 0x9be   :  { %9713 = vmatpush3.msra.mxu0 %v12637_v8  ;;  %v13081_v8 = vld [vmem:[#allocation8 + $0xc8] sm:$0xff]  ;;  %15972 = vst [vmem:[#allocation96_spill] sm:$0xff] %v13097_v58 }
 0x9bf   :  { %9714 = vmatprep.subr.mxu0 %v12992_v29  ;;  %15966 = vst [vmem:[#allocation90_spill] sm:$0xff] %v13081_v8  ;;  %8239 = vmatprep.subr.mxu1 %v13081_v8  ;;  %v13100_v8 = vld [vmem:[#allocation8 + $0x30] sm:$0xff] }
 0x9c0   :  { %9715 = vmatpush3.msra.mxu0 %v12642_v54  ;;  %v13084_v54 = vld [vmem:[#allocation8 + $0x48] sm:$0xff]  ;;  %15973 = vst [vmem:[#allocation97_spill] sm:$0xff] %v13100_v8 }
 0x9c1   :  { %9716 = vmatprep.subr.mxu0 %v12992_v29  ;;  %15967 = vst [vmem:[#allocation91_spill] sm:$0xff] %v13084_v54  ;;  %8240 = vmatpush3.msra.mxu1 %v13084_v54  ;;  %v13103_v54 = vld [vmem:[#allocation8 + $0xa8] sm:$0xff] }
 0x9c2   :  { %9717 = vmatpush3.msra.mxu0 %v12647_v5  ;;  %v13087_v5 = vld [vmem:[#allocation8 + $0xc0] sm:$0xff]  ;;  %15974 = vst [vmem:[#allocation98_spill] sm:$0xff] %v13103_v54 }
 0x9c3   :  { %9718 = vmatprep.subr.mxu0 %v12992_v29  ;;  %15968 = vst [vmem:[#allocation92_spill] sm:$0xff] %v13087_v5  ;;  %8241 = vmatprep.subr.mxu1 %v13087_v5  ;;  %v13109_v5 = vld [vmem:[#allocation8 + $0xa0] sm:$0xff] }
 0x9c4   :  { %9719 = vmatpush3.msra.mxu0 %v12653_v51  ;;  %v13089_v51 = vld [vmem:[#allocation8 + $0x40] sm:$0xff]  ;;  %15976 = vst [vmem:[#allocation100_spill] sm:$0xff] %v13109_v5 }
 0x9c5   :  { %9723 = vmatprep.subr.mxu0 %v12992_v29  ;;  %15969 = vst [vmem:[#allocation93_spill] sm:$0xff] %v13089_v51  ;;  %8242 = vmatpush3.msra.mxu1 %v13089_v51  ;;  %v13112_v51 = vld [vmem:[#allocation8 + $0x20] sm:$0xff] }
 0x9c6   :  { %8243 = vmatprep.subr.mxu1 %v13091_v61  ;;  %15977 = vst [vmem:[#allocation101_spill] sm:$0xff] %v13112_v51  ;;  %v13115_v61 = vld [vmem:[#allocation8 + $0x98] sm:$0xff] }
 0x9c7   :  { %8244 = vmatpush3.msra.mxu1 %v13094_v13  ;;  %15978 = vst [vmem:[#allocation102_spill] sm:$0xff] %v13115_v61  ;;  %v13118_v13 = vld [vmem:[#allocation8 + $0x18] sm:$0xff] }
 0x9c8   :  { %8245 = vmatprep.subr.mxu1 %v13097_v58  ;;  %15979 = vst [vmem:[#allocation103_spill] sm:$0xff] %v13118_v13  ;;  %v13121_v58 = vld [vmem:[#allocation8 + $0x90] sm:$0xff] }
 0x9c9   :  { %8246 = vmatpush3.msra.mxu1 %v13100_v8  ;;  %15980 = vst [vmem:[#allocation104_spill] sm:$0xff] %v13121_v58  ;;  %v13124_v8 = vld [vmem:[#allocation8 + $0x10] sm:$0xff] }
 0x9ca   :  { %8247 = vmatprep.subr.mxu1 %v13103_v54  ;;  %15981 = vst [vmem:[#allocation105_spill] sm:$0xff] %v13124_v8  ;;  %v13127_v54 = vld [vmem:[#allocation8 + $0x88] sm:$0xff] }
 0x9cb   :  { %8248 = vmatpush3.msra.mxu1 %v13106_v36  ;;  %15982 = vst [vmem:[#allocation106_spill] sm:$0xff] %v13127_v54  ;;  %v13130_v36 = vld [vmem:[#allocation8 + $0x8] sm:$0xff] }
 0x9cc   :  { %8249 = vmatprep.subr.mxu1 %v13109_v5  ;;  %15983 = vst [vmem:[#allocation107_spill] sm:$0xff] %v13130_v36  ;;  %v13133_v5 = vld [vmem:[#allocation8 + $0x80] sm:$0xff] }
 0x9cd   :  { %8250 = vmatpush3.msra.mxu1 %v13112_v51  ;;  %15984 = vst [vmem:[#allocation108_spill] sm:$0xff] %v13133_v5  ;;  %v13136_v51 = vld [vmem:[#allocation8] sm:$0xff] }
 0x9ce   :  { %8251 = vmatprep.subr.mxu1 %v13115_v61  ;;  %15985 = vst [vmem:[#allocation109_spill] sm:$0xff] %v13136_v51 }
 0x9cf   :  { %8252 = vmatpush3.msra.mxu1 %v13118_v13 }
 0x9d0   :  { %8253 = vmatprep.subr.mxu1 %v13121_v58 }
 0x9d1   :  { %8254 = vmatpush3.msra.mxu1 %v13124_v8  ;;  %v7728_v8 = vld [vmem:[%s14997_s4 + $0x6] sm:$0x7] }
 0x9d2   :  { %8255 = vmatprep.subr.mxu1 %v13127_v54  ;;  %v7733_v54 = vld [vmem:[%s14997_s4 + $0x9] sm:$0x7]  ;;  %v2952_v43 = vrot.slane %v7728_v8, %v15986_v48 }
 0x9d3   :  { %8256 = vmatpush3.msra.mxu1 %v13130_v36  ;;  %v3538_v36 = vrot.slane %v7733_v54, %v15986_v48 }
 0x9d4   :  { %8257 = vmatprep.subr.mxu1 %v13133_v5 }
 0x9d5   :  { %8258 = vmatpush3.msra.mxu1 %v13136_v51  ;;  %v13151_v51 = vadd.f32 %v12834_v4, %v2952_v43 }
 0x9d6   :  { %3989 = vmatprep.subr.mxu1 %v12659_v6 }
 0xa43   :  { %v3479_v13 = vpop.f32.mrf.mxu0  ;;  %v3408_v61 = vpop.f32.mrf.mxu1 }
 0xa44   :  { %v3409_v17 = vadd.f32 %v3408_v61, %v13151_v51  ;;  %v15988_v61 = vld [vmem:[#allocation77_spill] sm:$0xff] }
 0xa45   :  { %v9652_v58 = vpop.f32.mrf.mxu0  ;;  %v3410_v5 = vpop.f32.mrf.mxu1 }
 0xa46   :  { %v15987_v58 = vld [vmem:[#allocation76_spill] sm:$0xff] }
 0xa47   :  { %v2956_v21 = vrot.slane %v7728_v8, %v15987_v58  ;;  %v3542_v41 = vrot.slane %v7733_v54, %v15987_v58 }
 0xa49   :  { %v13157_v22 = vadd.f32 %v12836_v0, %v2956_v21 }
 0xa4b   :  { %v3411_v4 = vadd.f32 %v3410_v5, %v13157_v22  ;;  %v15998_v5 = vld [vmem:[#allocation35_spill] sm:$0xff] }
 0xa64   :  { %v3616_v6 = vpop.f32.mrf.mxu1  ;;  %v3687_v45 = vpop.f32.mrf.mxu0 }
 0xa65   :  { %v3617_v7 = vadd.f32 %v3616_v6, %v3538_v36  ;;  %v2960_v6 = vrot.slane %v7728_v8, %v15988_v61 }
 0xa66   :  { %v3618_v49 = vpop.f32.mrf.mxu1  ;;  %v9687_v39 = vpop.f32.mrf.mxu0 }
 0xa67   :  { %v3691_v55 = vadd.f32 %v3617_v7, %v3409_v17  ;;  %v3619_v3 = vadd.f32 %v3618_v49, %v3542_v41  ;;  %v3546_v39 = vrot.slane %v7733_v54, %v15988_v61  ;;  %v13163_v0 = vadd.f32 %v12832_v20, %v2960_v6  ;;  %v15997_v54 = vld [vmem:[#allocation75_spill] sm:$0xff]  ;;  %v16002_v6 = vld [vmem:[#allocation62_spill] sm:$0xff] }
 0xa69   :  { %v7734_v48 = vmul.f32 -1.442695, %v3691_v55  ;;  %v3698_v43 = vadd.f32 %v3619_v3, %v3411_v4  ;;  %v3688_v55 = vadd.f32 %v3687_v45, %v3546_v39  ;;  %v3480_v41 = vadd.f32 %v3479_v13, %v13163_v0  ;;  %v15995_v45 = vld [vmem:[#allocation32_spill] sm:$0xff]  ;;  %v15996_v13 = vld [vmem:[#allocation74_spill] sm:$0xff]  ;;  %v15999_v4 = vld [vmem:[#allocation37_spill] sm:$0xff] }
 0xa6a   :  { %v16003_v39 = vld [vmem:[#allocation65_spill] sm:$0xff] }
 0xa6b   :  { %10402 = vpow2.f32 %v7734_v48  ;;  %v7735_v16 = vmul.f32 -1.442695, %v3698_v43  ;;  %v16000_v43 = vld [vmem:[#allocation39_spill] sm:$0xff] }
 0xa6d   :  { %10404 = vpow2.f32 %v7735_v16 }
 0xa78   :  { %v10403_v62 = vpop.eup %10402 }
 0xa79   :  { %v3695_v25 = vadd.f32 1.0, %v10403_v62 }
 0xa7a   :  { %v10405_v36 = vpop.eup %10404 }
 0xa7b   :  { %10406 = vrcp.f32 %v3695_v25  ;;  %v3702_v7 = vadd.f32 1.0, %v10405_v36  ;;  %v16001_v36 = vld [vmem:[#allocation41_spill] sm:$0xff] }
 0xa7d   :  { %10408 = vrcp.f32 %v3702_v7  ;;  %v16004_v7 = vld [vmem:[#allocation68_spill] sm:$0xff] }
 0xa88   :  { %v10407_v49 = vpop.eup %10406 }
 0xa89   :  { %v3705_v17 = vmul.f32 %v10407_v49, %v3688_v55  ;;  %v16005_v55 = vld [vmem:[#allocation71_spill] sm:$0xff] }
 0xa8a   :  { %v10409_v16 = vpop.eup %10408  ;;  %v16006_v49 = vld [vmem:[#allocation79_spill] sm:$0xff] }
 0xa8b   :  { %v3706_v3 = vadd.f32 %v3705_v17, %v3480_v41  ;;  %v3708_v62 = vsub.f32 1.0, %v10409_v16  ;;  %v3710_v48 = vmul.f32 %v10409_v16, %v12576_v31  ;;  %v15989_v31 = vld [vmem:[#allocation38_spill] sm:$0xff]  ;;  %v16008_v17 = vld [vmem:[#allocation36_spill] sm:$0xff] }
 0xa8c   :  { %v16007_v41 = vld [vmem:[#allocation34_spill] sm:$0xff] }
 0xa8d   :  { %10410 = vtanh.f32 %v3706_v3  ;;  %v16009_v3 = vld [vmem:[#allocation40_spill] sm:$0xff] }
 0xa9a   :  { %v10411_v25 = vpop.eup %10410 }
 0xa9b   :  { %v3709_v21 = vmul.f32 %v10411_v25, %v3708_v62  ;;  %v16010_v25 = vld [vmem:[#allocation63_spill] sm:$0xff] }
 0xa9d   :  { %v13167_v8 = vadd.f32 %v3710_v48, %v3709_v21  ;;  %v16011_v21 = vld [vmem:[#allocation66_spill] sm:$0xff]  ;;  %v16012_v48 = vld [vmem:[#allocation69_spill] sm:$0xff] }
 0xa9f   :  { %3808 = vmatprep.mubr.f32.mxu1 %v13167_v8 }
 0xaa0   :  { %3809 = vmatmul.mubr.f32.vlgmr.msra.gmra.mxu1 %v12844_v34 }
 0xaa1   :  { %3990 = vmatpush1.msra.mxu1 %v12672_v57  ;;  %4053 = vmatprep.mubr.f32.mxu1 %v12992_v29  ;;  %v15990_v57 = vld [vmem:[#allocation42_spill] sm:$0xff] }
 0xaa2   :  { %3991 = vmatprep.subr.mxu1 %v12676_v35  ;;  %v7729_v35 = vld [vmem:[%s14999_s6] ss:$0 sm:$0xff] }
 0xaa3   :  { %3992 = vmatpush1.msra.mxu1 %v12682_v18 }
 0xaa4   :  { %3993 = vmatprep.subr.mxu1 %v12686_v46 }
 0xaa5   :  { %3994 = vmatpush1.msra.mxu1 %v12690_v44  ;;  %v15991_v44 = vld [vmem:[#allocation43_spill] sm:$0xff] }
 0xaa6   :  { %3995 = vmatprep.subr.mxu1 %v12694_v40  ;;  %v13208_v40 = vadd.f32 %v7729_v35, %v15991_v44  ;;  %v16015_v35 = vld [vmem:[#allocation13_spill] sm:$0xff]  ;;  %v16020_v44 = vld [vmem:[#allocation18_spill] sm:$0xff] }
 0xaa7   :  { %3996 = vmatpush1.msra.mxu1 %v12698_v47 }
 0xaa8   :  { %3997 = vmatprep.subr.mxu1 %v12704_v52  ;;  %15992 = vst [vmem:[#allocation77_spill] sm:$0xff] %v13208_v40 }
 0xaa9   :  { %3998 = vmatpush1.msra.mxu1 %v12708_v37 }
 0xaaa   :  { %3999 = vmatprep.subr.mxu1 %v12714_v19  ;;  %v15993_v19 = vld [vmem:[#allocation16_spill] sm:$0xff] }
 0xaab   :  { %4000 = vmatpush1.msra.mxu1 %v12718_v56 }
 0xaac   :  { %4001 = vmatprep.subr.mxu1 %v12724_v27 }
 0xaad   :  { %4002 = vmatpush1.msra.mxu1 %v12728_v30 }
 0xaae   :  { %4003 = vmatprep.subr.mxu1 %v12734_v11 }
 0xaaf   :  { %4004 = vmatpush1.msra.mxu1 %v12738_v1 }
 0xab0   :  { %4005 = vmatprep.subr.mxu1 %v12744_v9 }
 0xab1   :  { %4006 = vmatpush1.msra.mxu1 %v12748_v24 }
 0xab2   :  { %4007 = vmatprep.subr.mxu1 %v12754_v28  ;;  %v7739_v28 = vld [vmem:[%s14994_s1 + $0x40] sm:$0xff] }
 0xab3   :  { %4008 = vmatpush1.msra.mxu1 %v12758_v53 }
 0xab4   :  { %4009 = vmatprep.subr.mxu1 %v12764_v33 }
 0xab5   :  { %4010 = vmatpush1.msra.mxu1 %v12768_v32 }
 0xab6   :  { %4011 = vmatprep.subr.mxu1 %v12774_v2 }
 0xab7   :  { %4012 = vmatpush1.msra.mxu1 %v12778_v10  ;;  %v3849_v10 = vstv %s3840_s0 }
 0xab8   :  { %4013 = vmatprep.subr.mxu1 %v12784_v60 }
 0xab9   :  { %4014 = vmatpush1.msra.mxu1 %v12788_v59 }
 0xaba   :  { %4015 = vmatprep.subr.mxu1 %v12794_v14 }
 0xabb   :  { %4016 = vmatpush1.msra.mxu1 %v12798_v12 }
 0xabc   :  { %4017 = vmatprep.subr.mxu1 %v12804_v63 }
 0xabd   :  { %4018 = vmatpush1.msra.mxu1 %v12808_v26  ;;  %v15994_v26 = vld [vmem:[#allocation31_spill] sm:$0xff] }
 0xabe   :  { %4019 = vmatprep.subr.mxu1 %v12814_v38  ;;  %v3852_v38 = vstv %s3851_s12 }
 0xabf   :  { %4020 = vmatpush1.msra.mxu1 %v15989_v31  ;;  %v16013_v31 = vld [vmem:[#allocation70_spill] sm:$0xff] }
 0xac0   :  { %4195 = vmatprep.subr.mxu1 %v15990_v57  ;;  %v16014_v57 = vld [vmem:[#allocation72_spill] sm:$0xff] }
 0xb60   :  { %v8259_v18 = vpop.f32.mrf.mxu1 }
 0xb62   :  { %v8260_v46 = vpop.f32.mrf.mxu1 }
 0xb63   :  { %v8261_v47 = vadd.f32 %v8260_v46, %v8259_v18  ;;  %v16018_v18 = vld [vmem:[#allocation17_spill] sm:$0xff]  ;;  %v16019_v46 = vld [vmem:[#allocation15_spill] sm:$0xff] }
 0xb65   :  { %v3811_v52 = vadd.f32 %v8261_v47, %v13208_v40  ;;  %v16021_v47 = vld [vmem:[#allocation33_spill] sm:$0xff] }
 0xb67   :  { %7736 = vst [vmem:[%s15000_s7 + $0x8] sm:$0xff] %v3811_v52  ;;  %3816 = vmax.xlane.f32.xlu0 %v3811_v52 }
 0xbf0   :  { %v3817_v37 = vpop.xlane.xlu0 %3816 }
 0xbf1   :  { %vm3818_vm9 = vcmp.eq.f32.partialorder %v3811_v52, %v3817_v37  ;;  %v16022_v52 = vld [vmem:[#allocation19_spill] sm:$0xff]  ;;  %v16023_v37 = vld [vmem:[#allocation20_spill] sm:$0xff] }
 0xbf2   :  { %v3819_v56 = vsel %vm3818_vm9, %v15993_v19, 128 }
 0xbf3   :  { %v3821_v27 = vshra.s32 %v3819_v56, 16  ;;  %v3820_v11 = vand.u32 65535, %v3819_v56  ;;  %v16024_v56 = vld [vmem:[#allocation21_spill] sm:$0xff] }
 0xbf5   :  { %v3823_v30 = vcvt.s32.f32 %v3821_v27  ;;  %v3822_v9 = vcvt.s32.f32 %v3820_v11  ;;  %v16025_v27 = vld [vmem:[#allocation22_spill] sm:$0xff]  ;;  %v16027_v11 = vld [vmem:[#allocation24_spill] sm:$0xff] }
 0xbf7   :  { %3824 = vmin.xlane.f32.xlu1 %v3823_v30 }
 0xc80   :  { %v3825_v1 = vpop.xlane.xlu1 %3824 }
 0xc81   :  { %vm3826_vm10 = vcmp.eq.f32.partialorder %v3823_v30, %v3825_v1  ;;  %v3831_v53 = vcvt.f32.s32 %v3825_v1  ;;  %v16026_v30 = vld [vmem:[#allocation23_spill] sm:$0xff]  ;;  %v16028_v1 = vld [vmem:[#allocation25_spill] sm:$0xff] }
 0xc82   :  { %v3827_v24 = vsel %vm3826_vm10, %v3822_v9, inf  ;;  %v16029_v9 = vld [vmem:[#allocation26_spill] sm:$0xff] }
 0xc83   :  { %3828 = vmin.xlane.f32.xlu0 %v3827_v24  ;;  %v3832_v33 = vshll.u32 %v3831_v53, 16  ;;  %v16030_v24 = vld [vmem:[#allocation27_spill] sm:$0xff]  ;;  %v16032_v53 = vld [vmem:[#allocation29_spill] sm:$0xff] }
 0xc99   :  { %3844 = vperm.xlu0 %10330, %v7739_v28   ;;  %v16031_v28 = vld [vmem:[#allocation28_spill] sm:$0xff] }
 0xd0c   :  { %v3829_v20 = vpop.xlane.xlu0 %3828 }
 0xd0d   :  { %v3830_v32 = vcvt.f32.s32 %v3829_v20  ;;  %v16033_v20 = vld [vmem:[#allocation30_spill] sm:$0xff] }
 0xd0f   :  { %v3833_v34 = vadd.s32 %v3832_v33, %v3830_v32  ;;  %v16034_v33 = vld [vmem:[#allocation45_spill] sm:$0xff]  ;;  %v16035_v32 = vld [vmem:[#allocation44_spill] sm:$0xff] }
 0xd11   :  { %vm3834_vm11 = vcmp.eq.s32.totalorder %v15993_v19, %v3833_v34  ;;  %v16036_v34 = vld [vmem:[#allocation46_spill] sm:$0xff] }
 0xd12   :  { %v7737_v2 = vsel %vm3834_vm11, 1.0, %v12992_v29 }
 0xd13   :  { %v3853_v14 = vmul.f32 %v7737_v2, %v3852_v38  ;;  %v16037_v2 = vld [vmem:[#allocation48_spill] sm:$0xff]  ;;  %v16039_v38 = vld [vmem:[#allocation49_spill] sm:$0xff] }
 0xd14   :  { %v3845_v60 = vpop.permute.xlu0 %3844 }
 0xd15   :  { %vm3846_vm12 = vcmp.eq.s32.totalorder %v3845_v60, %v15993_v19  ;;  %v16040_v60 = vld [vmem:[#allocation51_spill] sm:$0xff] }
 0xd16   :  { %v7740_v59 = vsel %vm3846_vm12, 1.0, %v12992_v29 }
 0xd17   :  { %v3850_v12 = vmul.f32 %v7740_v59, %v3849_v10  ;;  %v16038_v10 = vld [vmem:[#allocation47_spill] sm:$0xff]  ;;  %v16041_v59 = vld [vmem:[#allocation50_spill] sm:$0xff] }
 0xd19   :  { %v3854_v63 = vadd.f32 %v3853_v14, %v3850_v12  ;;  %v16042_v14 = vld [vmem:[#allocation52_spill] sm:$0xff]  ;;  %v16043_v12 = vld [vmem:[#allocation54_spill] sm:$0xff] }
 0xd1b   :  { %9721 = vmatmul.mubr.f32.vlgmr.msra.gmra.mxu0 %v3854_v63  ;;  %v16044_v63 = vld [vmem:[#allocation53_spill] sm:$0xff] }
 0xd1c   :  { %9724 = vmatpush3.msra.mxu0 %v15994_v26  ;;  %9755 = vmatprep.mubr.msk.f32.mxu0 %vm10791_vm0, %v12992_v29  ;;  %v16045_v26 = vld [vmem:[#allocation55_spill] sm:$0xff] }
 0xd1d   :  { %9725 = vmatprep.subr.mxu0 %v12992_v29 }
 0xd1e   :  { %9726 = vmatpush3.msra.mxu0 %v15995_v45  ;;  %v16046_v45 = vld [vmem:[#allocation57_spill] sm:$0xff] }
 0xd1f   :  { %9727 = vmatprep.subr.mxu0 %v12992_v29 }
 0xd20   :  { %9728 = vmatpush3.msra.mxu0 %v15996_v13  ;;  %v16047_v13 = vld [vmem:[#allocation56_spill] sm:$0xff] }
 0xd21   :  { %9729 = vmatprep.subr.mxu0 %v12992_v29 }
 0xd22   :  { %9730 = vmatpush3.msra.mxu0 %v15997_v54  ;;  %v16048_v54 = vld [vmem:[#allocation58_spill] sm:$0xff] }
 0xd23   :  { %9731 = vmatprep.subr.mxu0 %v12992_v29 }
 0xd24   :  { %9732 = vmatpush3.msra.mxu0 %v15998_v5  ;;  %v16049_v5 = vld [vmem:[#allocation60_spill] sm:$0xff] }
 0xd25   :  { %9733 = vmatprep.subr.mxu0 %v12992_v29 }
 0xd26   :  { %9734 = vmatpush3.msra.mxu0 %v15999_v4  ;;  %v16050_v4 = vld [vmem:[#allocation59_spill] sm:$0xff] }
 0xd27   :  { %9735 = vmatprep.subr.mxu0 %v12992_v29 }
 0xd28   :  { %9736 = vmatpush3.msra.mxu0 %v16000_v43  ;;  %v16053_v43 = vld [vmem:[#allocation67_spill] sm:$0xff] }
 0xd29   :  { %9737 = vmatprep.subr.mxu0 %v12992_v29 }
 0xd2a   :  { %9738 = vmatpush3.msra.mxu0 %v16001_v36  ;;  %v16054_v36 = vld [vmem:[#allocation78_spill] sm:$0xff] }
 0xd2b   :  { %9739 = vmatprep.subr.mxu0 %v12992_v29 }
 0xd2c   :  { %9740 = vmatpush3.msra.mxu0 %v16002_v6  ;;  %v16055_v6 = vld [vmem:[#allocation80_spill] sm:$0xff] }
 0xd2d   :  { %9741 = vmatprep.subr.mxu0 %v12992_v29 }
 0xd2e   :  { %9742 = vmatpush3.msra.mxu0 %v16003_v39  ;;  %v16056_v39 = vld [vmem:[#allocation81_spill] sm:$0xff] }
 0xd2f   :  { %9743 = vmatprep.subr.mxu0 %v12992_v29 }
 0xd30   :  { %9744 = vmatpush3.msra.mxu0 %v16004_v7  ;;  %v16057_v7 = vld [vmem:[#allocation82_spill] sm:$0xff] }
 0xd31   :  { %9745 = vmatprep.subr.mxu0 %v12992_v29 }
 0xd32   :  { %9746 = vmatpush3.msra.mxu0 %v16005_v55  ;;  %v16058_v55 = vld [vmem:[#allocation83_spill] sm:$0xff] }
 0xd33   :  { %9747 = vmatprep.subr.mxu0 %v12992_v29 }
 0xd34   :  { %9748 = vmatpush3.msra.mxu0 %v16006_v49  ;;  %v16059_v49 = vld [vmem:[#allocation84_spill] sm:$0xff] }
 0xd35   :  { %9749 = vmatprep.subr.mxu0 %v12992_v29 }
 0xd36   :  { %9750 = vmatpush3.msra.mxu0 %v16007_v41  ;;  %v16060_v41 = vld [vmem:[#allocation85_spill] sm:$0xff] }
 0xd37   :  { %9751 = vmatprep.subr.mxu0 %v12992_v29 }
 0xd38   :  { %9752 = vmatpush3.msra.mxu0 %v16008_v17  ;;  %v16061_v17 = vld [vmem:[#allocation86_spill] sm:$0xff] }
 0xd39   :  { %9753 = vmatprep.subr.mxu0 %v12992_v29 }
 0xd3a   :  { %9754 = vmatpush3.msra.mxu0 %v16009_v3  ;;  %v16062_v3 = vld [vmem:[#allocation87_spill] sm:$0xff] }
 0xd3b   :  { %9758 = vmatprep.subr.mxu0 %v12992_v29 }
 0xddb   :  { %v13256_v16 = vpop.f32.mrf.mxu0 }
 0xddc   :  { %4054 = vmatmul.mubr.f32.vlgmr.msra.gmra.mxu1 %v13256_v16  ;;  %9756 = vmatmul.mubr.f32.vlgmr.msra.gmra.mxu0 %v13256_v16 }
 0xddd   :  { %4196 = vmatpush1.msra.mxu1 %v12838_v50  ;;  %9759 = vmatpush3.msra.mxu0 %v12840_v42  ;;  %v9722_v62 = vpop.f32.mrf.mxu0  ;;  %v16016_v50 = vld [vmem:[#allocation12_spill] sm:$0xff]  ;;  %v16017_v42 = vld [vmem:[#allocation14_spill] sm:$0xff] }
 0xdde   :  { %4197 = vmatprep.subr.mxu1 %v16010_v25  ;;  %9760 = vmatprep.subr.mxu0 %v12992_v29  ;;  %v16063_v62 = vld [vmem:[#allocation88_spill] sm:$0xff]  ;;  %v16064_v25 = vld [vmem:[#allocation89_spill] sm:$0xff] }
 0xddf   :  { %4198 = vmatpush1.msra.mxu1 %v16011_v21  ;;  %9761 = vmatpush3.msra.mxu0 %v16012_v48  ;;  %v16065_v21 = vld [vmem:[#allocation90_spill] sm:$0xff]  ;;  %v16066_v48 = vld [vmem:[#allocation91_spill] sm:$0xff] }
 0xde0   :  { %4199 = vmatprep.subr.mxu1 %v16013_v31  ;;  %9762 = vmatprep.subr.mxu0 %v12992_v29  ;;  %v16067_v31 = vld [vmem:[#allocation92_spill] sm:$0xff] }
 0xde1   :  { %4200 = vmatpush1.msra.mxu1 %v16014_v57  ;;  %9763 = vmatpush3.msra.mxu0 %v16015_v35  ;;  %v16068_v57 = vld [vmem:[#allocation93_spill] sm:$0xff]  ;;  %v16069_v35 = vld [vmem:[#allocation94_spill] sm:$0xff] }
 0xde2   :  { %4201 = vmatprep.subr.mxu1 %v16016_v50  ;;  %9764 = vmatprep.subr.mxu0 %v12992_v29  ;;  %v16070_v50 = vld [vmem:[#allocation95_spill] sm:$0xff] }
 0xde3   :  { %4202 = vmatpush1.msra.mxu1 %v16017_v42  ;;  %9765 = vmatpush3.msra.mxu0 %v16018_v18  ;;  %v16071_v42 = vld [vmem:[#allocation96_spill] sm:$0xff]  ;;  %v16072_v18 = vld [vmem:[#allocation97_spill] sm:$0xff] }
 0xde4   :  { %4203 = vmatprep.subr.mxu1 %v16019_v46  ;;  %9766 = vmatprep.subr.mxu0 %v12992_v29  ;;  %v16073_v46 = vld [vmem:[#allocation98_spill] sm:$0xff] }
 0xde5   :  { %4204 = vmatpush1.msra.mxu1 %v16020_v44  ;;  %9767 = vmatpush3.msra.mxu0 %v16021_v47  ;;  %v16074_v44 = vld [vmem:[#allocation99_spill] sm:$0xff]  ;;  %v16075_v47 = vld [vmem:[#allocation100_spill] sm:$0xff] }
 0xde6   :  { %4205 = vmatprep.subr.mxu1 %v16022_v52  ;;  %9768 = vmatprep.subr.mxu0 %v12992_v29  ;;  %v16076_v52 = vld [vmem:[#allocation101_spill] sm:$0xff] }
 0xde7   :  { %4206 = vmatpush1.msra.mxu1 %v16023_v37  ;;  %9769 = vmatpush3.msra.mxu0 %v16024_v56  ;;  %v16077_v37 = vld [vmem:[#allocation102_spill] sm:$0xff]  ;;  %v16078_v56 = vld [vmem:[#allocation103_spill] sm:$0xff] }
 0xde8   :  { %4207 = vmatprep.subr.mxu1 %v16025_v27  ;;  %9770 = vmatprep.subr.mxu0 %v12992_v29  ;;  %v16079_v27 = vld [vmem:[#allocation104_spill] sm:$0xff] }
 0xde9   :  { %4208 = vmatpush1.msra.mxu1 %v16026_v30  ;;  %9771 = vmatpush3.msra.mxu0 %v16027_v11  ;;  %v16080_v30 = vld [vmem:[#allocation105_spill] sm:$0xff]  ;;  %v16081_v11 = vld [vmem:[#allocation106_spill] sm:$0xff] }
 0xdea   :  { %4209 = vmatprep.subr.mxu1 %v16028_v1  ;;  %9772 = vmatprep.subr.mxu0 %v12992_v29  ;;  %v16082_v1 = vld [vmem:[#allocation107_spill] sm:$0xff] }
 0xdeb   :  { %4210 = vmatpush1.msra.mxu1 %v16029_v9  ;;  %9773 = vmatpush3.msra.mxu0 %v16030_v24  ;;  %v16083_v9 = vld [vmem:[#allocation108_spill] sm:$0xff]  ;;  %v16084_v24 = vld [vmem:[#allocation109_spill] sm:$0xff] }
 0xdec   :  { %4211 = vmatprep.subr.mxu1 %v16031_v28  ;;  %9774 = vmatprep.subr.mxu0 %v12992_v29 }
 0xded   :  { %4212 = vmatpush1.msra.mxu1 %v16032_v53  ;;  %9775 = vmatpush3.msra.mxu0 %v16033_v20 }
 0xdee   :  { %4213 = vmatprep.subr.mxu1 %v16034_v33  ;;  %9776 = vmatprep.subr.mxu0 %v12992_v29  ;;  %v7741_v33 = vld [vmem:[%s14997_s4 + $0x9] sm:$0x7] }
 0xdef   :  { %4214 = vmatpush1.msra.mxu1 %v16035_v32  ;;  %9777 = vmatpush3.msra.mxu0 %v16036_v34  ;;  %v16085_v32 = vld [vmem:[#allocation73_spill] sm:$0xff] }
 0xdf0   :  { %4215 = vmatprep.subr.mxu1 %v16037_v2  ;;  %9778 = vmatprep.subr.mxu0 %v12992_v29  ;;  %v4183_v34 = vrot.slane %v7741_v33, %v16085_v32 }
 0xdf1   :  { %4216 = vmatpush1.msra.mxu1 %v16038_v10  ;;  %9779 = vmatpush3.msra.mxu0 %v16039_v38 }
 0xdf2   :  { %4217 = vmatprep.subr.mxu1 %v16040_v60  ;;  %9780 = vmatprep.subr.mxu0 %v12992_v29 }
 0xdf3   :  { %4218 = vmatpush1.msra.mxu1 %v16041_v59  ;;  %9781 = vmatpush3.msra.mxu0 %v16042_v14  ;;  %v4187_v14 = vrot.slane %v7741_v33, %v15987_v58 }
 0xdf4   :  { %4219 = vmatprep.subr.mxu1 %v16043_v12  ;;  %9782 = vmatprep.subr.mxu0 %v12992_v29 }
 0xdf5   :  { %4220 = vmatpush1.msra.mxu1 %v12960_v15  ;;  %9783 = vmatpush3.msra.mxu0 %v16044_v63  ;;  %v16051_v15 = vld [vmem:[#allocation61_spill] sm:$0xff] }
 0xdf6   :  { %4221 = vmatprep.subr.mxu1 %v12966_v23  ;;  %9784 = vmatprep.subr.mxu0 %v12992_v29  ;;  %v16052_v23 = vld [vmem:[#allocation64_spill] sm:$0xff] }
 0xdf7   :  { %4222 = vmatpush1.msra.mxu1 %v16045_v26  ;;  %9785 = vmatpush3.msra.mxu0 %v16046_v45 }
 0xdf8   :  { %4223 = vmatprep.subr.mxu1 %v16047_v13  ;;  %9786 = vmatprep.subr.mxu0 %v12992_v29 }
 0xdf9   :  { %4224 = vmatpush1.msra.mxu1 %v16048_v54  ;;  %9787 = vmatpush3.msra.mxu0 %v16049_v5 }
 0xdfa   :  { %4225 = vmatprep.subr.mxu1 %v16050_v4  ;;  %9788 = vmatprep.subr.mxu0 %v12992_v29 }
 0xdfb   :  { %4226 = vmatpush1.msra.mxu1 %v16051_v15  ;;  %4259 = vmatprep.mubr.f32.mxu1 %v12992_v29 }
 0xdfc   :  { %9789 = vmatpush3.msra.mxu0 %v16052_v23  ;;  %9790 = vmatprep.mubr.msk.f32.mxu0 %vm10791_vm0, %v12992_v29 }
 0xdfd   :  { %4260 = vmatmul.mubr.f32.vlgmr.msra.gmra.mxu1 %v13167_v8  ;;  %9791 = vmatmul.mubr.f32.vlgmr.msra.gmra.mxu0 %v13167_v8 }
 0xdfe   :  { %8313 = vmatprep.subr.mxu1 %v16053_v43  ;;  %9793 = vmatprep.subr.mxu0 %v12992_v29 }
 0xdff   :  { %8314 = vmatpush3.msra.mxu1 %v16054_v36  ;;  %9825 = vmatprep.mubr.msk.f32.mxu0 %vm10791_vm0, %v12992_v29  ;;  %v4191_v36 = vrot.slane %v7741_v33, %v15988_v61  ;;  %v13429_v33 = vld [vmem:[#allocation5 + $0xa0] sm:$0xff] }
 0xe00   :  { %8315 = vmatprep.subr.mxu1 %v16055_v6 }
 0xe01   :  { %8316 = vmatpush3.msra.mxu1 %v16056_v39 }
 0xe02   :  { %8317 = vmatprep.subr.mxu1 %v16057_v7 }
 0xe03   :  { %8318 = vmatpush3.msra.mxu1 %v16058_v55 }
 0xe04   :  { %8319 = vmatprep.subr.mxu1 %v16059_v49 }
 0xe05   :  { %8320 = vmatpush3.msra.mxu1 %v16060_v41 }
 0xe06   :  { %8321 = vmatprep.subr.mxu1 %v16061_v17 }
 0xe07   :  { %8322 = vmatpush3.msra.mxu1 %v16062_v3 }
 0xe08   :  { %8323 = vmatprep.subr.mxu1 %v16063_v62 }
 0xe09   :  { %8324 = vmatpush3.msra.mxu1 %v16064_v25 }
 0xe0a   :  { %8325 = vmatprep.subr.mxu1 %v16065_v21 }
 0xe0b   :  { %8326 = vmatpush3.msra.mxu1 %v16066_v48 }
 0xe0c   :  { %8327 = vmatprep.subr.mxu1 %v16067_v31 }
 0xe0d   :  { %8328 = vmatpush3.msra.mxu1 %v16068_v57 }
 0xe0e   :  { %8329 = vmatprep.subr.mxu1 %v16069_v35 }
 0xe0f   :  { %8330 = vmatpush3.msra.mxu1 %v16070_v50 }
 0xe10   :  { %8331 = vmatprep.subr.mxu1 %v16071_v42 }
 0xe11   :  { %8332 = vmatpush3.msra.mxu1 %v16072_v18 }
 0xe12   :  { %8333 = vmatprep.subr.mxu1 %v16073_v46 }
 0xe13   :  { %8334 = vmatpush3.msra.mxu1 %v16074_v44  ;;  %v13384_v44 = vld [vmem:[#allocation5 + $0xf0] sm:$0xff] }
 0xe14   :  { %8335 = vmatprep.subr.mxu1 %v16075_v47  ;;  %v13388_v47 = vld [vmem:[#allocation5 + $0xe8] sm:$0xff] }
 0xe15   :  { %8336 = vmatpush3.msra.mxu1 %v16076_v52  ;;  %v13392_v52 = vld [vmem:[#allocation5 + $0xe0] sm:$0xff] }
 0xe16   :  { %8337 = vmatprep.subr.mxu1 %v16077_v37  ;;  %v13396_v37 = vld [vmem:[#allocation5 + $0xd8] sm:$0xff] }
 0xe17   :  { %8338 = vmatpush3.msra.mxu1 %v16078_v56  ;;  %v13400_v56 = vld [vmem:[#allocation5 + $0xd0] sm:$0xff] }
 0xe18   :  { %8339 = vmatprep.subr.mxu1 %v16079_v27  ;;  %v13404_v27 = vld [vmem:[#allocation5 + $0xc8] sm:$0xff] }
 0xe19   :  { %8340 = vmatpush3.msra.mxu1 %v16080_v30  ;;  %v13408_v30 = vld [vmem:[#allocation5 + $0xc0] sm:$0xff] }
 0xe1a   :  { %8341 = vmatprep.subr.mxu1 %v16081_v11  ;;  %v13412_v11 = vld [vmem:[#allocation5 + $0xb8] sm:$0xff] }
 0xe1b   :  { %8342 = vmatpush3.msra.mxu1 %v16082_v1  ;;  %v13416_v1 = vld [vmem:[#allocation5 + $0xb0] sm:$0xff] }
 0xe1c   :  { %8343 = vmatprep.subr.mxu1 %v16083_v9  ;;  %v13420_v9 = vld [vmem:[#allocation5 + $0xa8] sm:$0xff] }
 0xe1d   :  { %8344 = vmatpush3.msra.mxu1 %v16084_v24 }
 0xe9c   :  { %v4126_v28 = vpop.f32.mrf.mxu0  ;;  %v4055_v20 = vpop.f32.mrf.mxu1 }
 0xe9d   :  { %v4056_v60 = vadd.f32 %v4055_v20, %v13151_v51  ;;  %v4127_v55 = vadd.f32 %v4126_v28, %v13163_v0 }
 0xe9e   :  { %v9757_v53 = vpop.f32.mrf.mxu0  ;;  %v4057_v2 = vpop.f32.mrf.mxu1 }
 0xe9f   :  { %v4058_v54 = vadd.f32 %v4057_v2, %v13157_v22  ;;  %v7747_v2 = vld [vmem:[%s14994_s1 + $0x48] sm:$0xff] }
 0xebd   :  { %v4261_v10 = vpop.f32.mrf.mxu1  ;;  %v4332_v38 = vpop.f32.mrf.mxu0 }
 0xebe   :  { %v4262_v59 = vadd.f32 %v4261_v10, %v4183_v34  ;;  %v4333_v39 = vadd.f32 %v4332_v38, %v4191_v36  ;;  %v13433_v34 = vld [vmem:[#allocation5 + $0x98] sm:$0xff]  ;;  %v13440_v10 = vld [vmem:[#allocation5 + $0x90] sm:$0xff]  ;;  %v13444_v38 = vld [vmem:[#allocation5 + $0x88] sm:$0xff] }
 0xebf   :  { %v4263_v12 = vpop.f32.mrf.mxu1  ;;  %v9792_v63 = vpop.f32.mrf.mxu0  ;;  %v13493_v36 = vld [vmem:[#allocation6 + $0x3c8] sm:$0xff] }
 0xec0   :  { %v4336_v26 = vadd.f32 %v4262_v59, %v4056_v60  ;;  %v4264_v13 = vadd.f32 %v4263_v12, %v4187_v14  ;;  %v13448_v60 = vld [vmem:[#allocation5 + $0x80] sm:$0xff]  ;;  %v13451_v59 = vld [vmem:[#allocation6 + $0x470] sm:$0xff]  ;;  %v13454_v14 = vld [vmem:[#allocation6 + $0x468] sm:$0xff] }
 0xec1   :  { %4634 = vmatprep.subr.mxu1 %v13451_v59  ;;  %v13457_v12 = vld [vmem:[#allocation6 + $0x458] sm:$0xff]  ;;  %v13460_v63 = vld [vmem:[#allocation6 + $0x450] sm:$0xff] }
 0xec2   :  { %v7742_v45 = vmul.f32 -1.442695, %v4336_v26  ;;  %v4343_v5 = vadd.f32 %v4264_v13, %v4058_v54  ;;  %v13463_v26 = vld [vmem:[#allocation6 + $0x440] sm:$0xff]  ;;  %v13475_v54 = vld [vmem:[#allocation6 + $0x410] sm:$0xff] }
 0xec3   :  { %v13472_v13 = vld [vmem:[#allocation6 + $0x420] sm:$0xff] }
 0xec4   :  { %10412 = vpow2.f32 %v7742_v45  ;;  %v7743_v4 = vmul.f32 -1.442695, %v4343_v5  ;;  %v13466_v45 = vld [vmem:[#allocation6 + $0x438] sm:$0xff]  ;;  %v13478_v5 = vld [vmem:[#allocation6 + $0x408] sm:$0xff] }
 0xec6   :  { %10414 = vpow2.f32 %v7743_v4  ;;  %v13481_v4 = vld [vmem:[#allocation6 + $0x3f8] sm:$0xff] }
 0xed1   :  { %v10413_v15 = vpop.eup %10412 }
 0xed2   :  { %v4340_v23 = vadd.f32 1.0, %v10413_v15  ;;  %v13484_v15 = vld [vmem:[#allocation6 + $0x3f0] sm:$0xff] }
 0xed3   :  { %v10415_v43 = vpop.eup %10414 }
 0xed4   :  { %10416 = vrcp.f32 %v4340_v23  ;;  %v4347_v6 = vadd.f32 1.0, %v10415_v43  ;;  %v13487_v23 = vld [vmem:[#allocation6 + $0x3e0] sm:$0xff]  ;;  %v13490_v43 = vld [vmem:[#allocation6 + $0x3d8] sm:$0xff] }
 0xed6   :  { %10418 = vrcp.f32 %v4347_v6  ;;  %v13496_v6 = vld [vmem:[#allocation6 + $0x3c0] sm:$0xff] }
 0xee1   :  { %v10417_v7 = vpop.eup %10416 }
 0xee2   :  { %v4350_v49 = vmul.f32 %v10417_v7, %v4333_v39  ;;  %v13499_v39 = vld [vmem:[#allocation6 + $0x3b0] sm:$0xff]  ;;  %v13502_v7 = vld [vmem:[#allocation6 + $0x3a8] sm:$0xff] }
 0xee3   :  { %v10419_v17 = vpop.eup %10418 }
 0xee4   :  { %v4351_v41 = vadd.f32 %v4350_v49, %v4127_v55  ;;  %v4353_v3 = vsub.f32 1.0, %v10419_v17  ;;  %v4355_v21 = vmul.f32 %v10419_v17, %v13167_v8  ;;  %v13505_v55 = vld [vmem:[#allocation6 + $0x398] sm:$0xff]  ;;  %v13508_v49 = vld [vmem:[#allocation6 + $0x390] sm:$0xff] }
 0xee5   :  { %v13514_v17 = vld [vmem:[#allocation6 + $0x378] sm:$0xff] }
 0xee6   :  { %10420 = vtanh.f32 %v4351_v41  ;;  %v13511_v41 = vld [vmem:[#allocation6 + $0x380] sm:$0xff] }
 0xef3   :  { %v10421_v62 = vpop.eup %10420 }
 0xef4   :  { %v4354_v25 = vmul.f32 %v10421_v62, %v4353_v3  ;;  %v13517_v3 = vld [vmem:[#allocation6 + $0x368] sm:$0xff]  ;;  %v13520_v62 = vld [vmem:[#allocation6 + $0x360] sm:$0xff] }
 0xef6   :  { %v13372_v48 = vadd.f32 %v4355_v21, %v4354_v25  ;;  %v13523_v25 = vld [vmem:[#allocation6 + $0x350] sm:$0xff]  ;;  %v13526_v21 = vld [vmem:[#allocation6 + $0x348] sm:$0xff] }
 0xef8   :  { %4453 = vmatprep.mubr.f32.mxu1 %v13372_v48 }
 0xef9   :  { %4454 = vmatmul.mubr.f32.vlgmr.msra.gmra.mxu1 %v13256_v16  ;;  %v13382_v16 = vld [vmem:[#allocation5 + $0xf8] sm:$0xff] }
 0xefa   :  { %4698 = vmatprep.mubr.f32.mxu1 %v12992_v29  ;;  %9794 = vmatpush3.msra.mxu0 %v13382_v16 }
 0xefb   :  { %9795 = vmatprep.subr.mxu0 %v12992_v29  ;;  %4635 = vmatpush1.msra.mxu1 %v13454_v14 }
 0xefc   :  { %9796 = vmatpush3.msra.mxu0 %v13384_v44  ;;  %4636 = vmatprep.subr.mxu1 %v13457_v12 }
 0xefd   :  { %9797 = vmatprep.subr.mxu0 %v12992_v29  ;;  %4637 = vmatpush1.msra.mxu1 %v13460_v63 }
 0xefe   :  { %9798 = vmatpush3.msra.mxu0 %v13388_v47  ;;  %4638 = vmatprep.subr.mxu1 %v13463_v26 }
 0xeff   :  { %9799 = vmatprep.subr.mxu0 %v12992_v29  ;;  %4639 = vmatpush1.msra.mxu1 %v13466_v45 }
 0xf00   :  { %9800 = vmatpush3.msra.mxu0 %v13392_v52 }
 0xf01   :  { %9801 = vmatprep.subr.mxu0 %v12992_v29 }
 0xf02   :  { %9802 = vmatpush3.msra.mxu0 %v13396_v37 }
 0xf03   :  { %9803 = vmatprep.subr.mxu0 %v12992_v29 }
 0xf04   :  { %9804 = vmatpush3.msra.mxu0 %v13400_v56 }
 0xf05   :  { %9805 = vmatprep.subr.mxu0 %v12992_v29 }
 0xf06   :  { %9806 = vmatpush3.msra.mxu0 %v13404_v27 }
 0xf07   :  { %9807 = vmatprep.subr.mxu0 %v12992_v29 }
 0xf08   :  { %9808 = vmatpush3.msra.mxu0 %v13408_v30 }
 0xf09   :  { %9809 = vmatprep.subr.mxu0 %v12992_v29 }
 0xf0a   :  { %9810 = vmatpush3.msra.mxu0 %v13412_v11 }
 0xf0b   :  { %9811 = vmatprep.subr.mxu0 %v12992_v29 }
 0xf0c   :  { %9812 = vmatpush3.msra.mxu0 %v13416_v1 }
 0xf0d   :  { %9813 = vmatprep.subr.mxu0 %v12992_v29 }
 0xf0e   :  { %9814 = vmatpush3.msra.mxu0 %v13420_v9 }
 0xf0f   :  { %9815 = vmatprep.subr.mxu0 %v12992_v29 }
 0xf10   :  { %9816 = vmatpush3.msra.mxu0 %v13429_v33 }
 0xf11   :  { %9817 = vmatprep.subr.mxu0 %v12992_v29 }
 0xf12   :  { %9818 = vmatpush3.msra.mxu0 %v13433_v34 }
 0xf13   :  { %9819 = vmatprep.subr.mxu0 %v12992_v29 }
 0xf14   :  { %9820 = vmatpush3.msra.mxu0 %v13440_v10 }
 0xf15   :  { %9821 = vmatprep.subr.mxu0 %v12992_v29 }
 0xf16   :  { %9822 = vmatpush3.msra.mxu0 %v13444_v38 }
 0xf17   :  { %9823 = vmatprep.subr.mxu0 %v12992_v29 }
 0xf18   :  { %9824 = vmatpush3.msra.mxu0 %v13448_v60 }
 0xf19   :  { %9828 = vmatprep.subr.mxu0 %v12992_v29  ;;  %v13469_v29 = vld [vmem:[#allocation6 + $0x428] sm:$0xff] }
 0xf1a   :  { %4640 = vmatprep.subr.mxu1 %v13469_v29 }
 0xf1b   :  { %4641 = vmatpush1.msra.mxu1 %v13472_v13 }
 0xf1c   :  { %4642 = vmatprep.subr.mxu1 %v13475_v54 }
 0xf1d   :  { %4643 = vmatpush1.msra.mxu1 %v13478_v5 }
 0xf1e   :  { %4644 = vmatprep.subr.mxu1 %v13481_v4 }
 0xf1f   :  { %4645 = vmatpush1.msra.mxu1 %v13484_v15 }
 0xf20   :  { %4646 = vmatprep.subr.mxu1 %v13487_v23 }
 0xf21   :  { %4647 = vmatpush1.msra.mxu1 %v13490_v43 }
 0xf22   :  { %4648 = vmatprep.subr.mxu1 %v13493_v36 }
 0xf23   :  { %4649 = vmatpush1.msra.mxu1 %v13496_v6 }
 0xf24   :  { %4650 = vmatprep.subr.mxu1 %v13499_v39 }
 0xf25   :  { %4651 = vmatpush1.msra.mxu1 %v13502_v7 }
 0xf26   :  { %4652 = vmatprep.subr.mxu1 %v13505_v55 }
 0xf27   :  { %4653 = vmatpush1.msra.mxu1 %v13508_v49 }
 0xf28   :  { %4654 = vmatprep.subr.mxu1 %v13511_v41 }
 0xf29   :  { %4655 = vmatpush1.msra.mxu1 %v13514_v17 }
 0xf2a   :  { %4656 = vmatprep.subr.mxu1 %v13517_v3 }
 0xf2b   :  { %4657 = vmatpush1.msra.mxu1 %v13520_v62 }
 0xf2c   :  { %4658 = vmatprep.subr.mxu1 %v13523_v25 }
 0xf2d   :  { %4659 = vmatpush1.msra.mxu1 %v13526_v21 }
 0xfb9   :  { %v8345_v31 = vpop.f32.mrf.mxu1 }
 0xfbb   :  { %v8346_v57 = vpop.f32.mrf.mxu1 }
 0xfbc   :  { %v8347_v35 = vadd.f32 %v8346_v57, %v8345_v31  ;;  %v13529_v31 = vld [vmem:[#allocation6 + $0x338] sm:$0xff]  ;;  %v13532_v57 = vld [vmem:[#allocation6 + $0x330] sm:$0xff] }
 0xfbd   :  { %4660 = vmatprep.subr.mxu1 %v13529_v31 }
 0xfbe   :  { %v4456_v50 = vadd.f32 %v8347_v35, %v13208_v40  ;;  %v13535_v35 = vld [vmem:[#allocation6 + $0x320] sm:$0xff]  ;;  %4661 = vmatpush1.msra.mxu1 %v13532_v57  ;;  %v4497_v40 = vstv %s4496_s21 }
 0xfbf   :  { %16086 = vst [vmem:[#allocation38_spill] sm:$0xff] %v13535_v35  ;;  %4662 = vmatprep.subr.mxu1 %v13535_v35 }
 0xfc0   :  { %7744 = vst [vmem:[%s15000_s7 + $0x10] sm:$0xff] %v4456_v50  ;;  %4461 = vmax.xlane.f32.xlu1 %v4456_v50 }
0x1049   :  { %v4462_v42 = vpop.xlane.xlu1 %4461 }
0x104a   :  { %vm4463_vm13 = vcmp.eq.f32.partialorder %v4456_v50, %v4462_v42  ;;  %v13538_v50 = vld [vmem:[#allocation6 + $0x318] sm:$0xff]  ;;  %v13541_v42 = vld [vmem:[#allocation6 + $0x308] sm:$0xff] }
0x104b   :  { %v4464_v8 = vsel %vm4463_vm13, %v15993_v19, 128  ;;  %16087 = vst [vmem:[#allocation42_spill] sm:$0xff] %v13538_v50  ;;  %16088 = vst [vmem:[#allocation43_spill] sm:$0xff] %v13541_v42  ;;  %4663 = vmatpush1.msra.mxu1 %v13538_v50 }
0x104c   :  { %v4466_v18 = vshra.s32 %v4464_v8, 16  ;;  %v4465_v24 = vand.u32 65535, %v4464_v8  ;;  %v13544_v8 = vld [vmem:[#allocation6 + $0x300] sm:$0xff]  ;;  %4664 = vmatprep.subr.mxu1 %v13541_v42 }
0x104d   :  { %16089 = vst [vmem:[#allocation31_spill] sm:$0xff] %v13544_v8  ;;  %4665 = vmatpush1.msra.mxu1 %v13544_v8  ;;  %v13554_v8 = vld [vmem:[%s15000_s7] sm:$0xff] }
0x104e   :  { %v4468_v46 = vcvt.s32.f32 %v4466_v18  ;;  %v4467_v53 = vcvt.s32.f32 %v4465_v24 }
0x1050   :  { %4469 = vmin.xlane.f32.xlu1 %v4468_v46 }
0x10d9   :  { %v13426_v28 = vpop.xlane.xlu1 %4469 }
0x10da   :  { %vm4471_vm14 = vcmp.eq.f32.partialorder %v4468_v46, %v13426_v28  ;;  %v4476_v18 = vcvt.f32.s32 %v13426_v28 }
0x10db   :  { %v4472_v20 = vsel %vm4471_vm14, %v4467_v53, inf }
0x10dc   :  { %4473 = vmin.xlane.f32.xlu1 %v4472_v20  ;;  %v4477_v24 = vshll.u32 %v4476_v18, 16 }
0x10ed   :  { %4489 = vperm.xlu1 %10331, %v7747_v2   ;;  %v4494_v2 = vstv %s4485_s20 }
0x1165   :  { %v4474_v46 = vpop.xlane.xlu1 %4473 }
0x1166   :  { %v4475_v53 = vcvt.f32.s32 %v4474_v46 }
0x1168   :  { %v4478_v20 = vadd.s32 %v4477_v24, %v4475_v53  ;;  %v13558_v24 = vld [vmem:[#allocation6 + $0x478] sm:$0xff]  ;;  %v13560_v53 = vld [vmem:[#allocation6 + $0x460] sm:$0xff] }
0x1169   :  { %v4490_v50 = vpop.permute.xlu1 %4489  ;;  %16090 = vst [vmem:[#allocation32_spill] sm:$0xff] %v13558_v24  ;;  %16091 = vst [vmem:[#allocation74_spill] sm:$0xff] %v13560_v53 }
0x116a   :  { %vm4479_vm15 = vcmp.eq.s32.totalorder %v15993_v19, %v4478_v20  ;;  %vm4491_vm1 = vcmp.eq.s32.totalorder %v4490_v50, %v15993_v19  ;;  %v13566_v50 = vld [vmem:[#allocation6 + $0x448] sm:$0xff] }
0x116b   :  { %v7745_v42 = vsel %vm4479_vm15, 1.0, %v13554_v8  ;;  %v7748_v28 = vsel %vm4491_vm1, 1.0, %v13554_v8  ;;  %16092 = vst [vmem:[#allocation75_spill] sm:$0xff] %v13566_v50  ;;  %v13582_v20 = vld [vmem:[#allocation6 + $0x3e8] sm:$0xff] }
0x116c   :  { %v4498_v35 = vmul.f32 %v7745_v42, %v4497_v40  ;;  %v4495_v18 = vmul.f32 %v7748_v28, %v4494_v2  ;;  %v13570_v40 = vld [vmem:[#allocation6 + $0x430] sm:$0xff]  ;;  %v13578_v42 = vld [vmem:[#allocation6 + $0x400] sm:$0xff]  ;;  %16096 = vst [vmem:[#allocation41_spill] sm:$0xff] %v13582_v20  ;;  %v13590_v28 = vld [vmem:[#allocation6 + $0x3b8] sm:$0xff] }
0x116d   :  { %16093 = vst [vmem:[#allocation35_spill] sm:$0xff] %v13570_v40  ;;  %16095 = vst [vmem:[#allocation39_spill] sm:$0xff] %v13578_v42  ;;  %v13586_v2 = vld [vmem:[#allocation6 + $0x3d0] sm:$0xff]  ;;  %v13653_v19 = vld [vmem:[#allocation6 + $0x728] sm:$0xff] }
0x116e   :  { %v4499_v46 = vadd.f32 %v4498_v35, %v4495_v18  ;;  %v13574_v35 = vld [vmem:[#allocation6 + $0x418] sm:$0xff]  ;;  %16097 = vst [vmem:[#allocation62_spill] sm:$0xff] %v13586_v2  ;;  %16098 = vst [vmem:[#allocation65_spill] sm:$0xff] %v13590_v28  ;;  %v13594_v18 = vld [vmem:[#allocation6 + $0x3a0] sm:$0xff] }
0x116f   :  { %16094 = vst [vmem:[#allocation37_spill] sm:$0xff] %v13574_v35  ;;  %16099 = vst [vmem:[#allocation68_spill] sm:$0xff] %v13594_v18 }
0x1170   :  { %9826 = vmatmul.mubr.f32.vlgmr.msra.gmra.mxu0 %v4499_v46  ;;  %v13598_v46 = vld [vmem:[#allocation6 + $0x388] sm:$0xff]  ;;  %16113 = vst [vmem:[#allocation17_spill] sm:$0xff] %v13653_v19 }
0x1171   :  { %9829 = vmatpush3.msra.mxu0 %v13558_v24  ;;  %9860 = vmatprep.mubr.msk.f32.mxu0 %vm10791_vm0, %v13554_v8  ;;  %16100 = vst [vmem:[#allocation71_spill] sm:$0xff] %v13598_v46  ;;  %v13649_v24 = vld [vmem:[#allocation6 + $0x748] sm:$0xff] }
0x1172   :  { %9830 = vmatprep.subr.mxu0 %v13554_v8  ;;  %16112 = vst [vmem:[#allocation14_spill] sm:$0xff] %v13649_v24 }
0x1173   :  { %9831 = vmatpush3.msra.mxu0 %v13560_v53  ;;  %v13647_v53 = vld [vmem:[#allocation6 + $0x738] sm:$0xff] }
0x1174   :  { %9832 = vmatprep.subr.mxu0 %v13554_v8  ;;  %16111 = vst [vmem:[#allocation12_spill] sm:$0xff] %v13647_v53 }
0x1175   :  { %9833 = vmatpush3.msra.mxu0 %v13566_v50  ;;  %v13643_v50 = vld [vmem:[#allocation6 + $0x740] sm:$0xff] }
0x1176   :  { %9834 = vmatprep.subr.mxu0 %v13554_v8  ;;  %16110 = vst [vmem:[#allocation13_spill] sm:$0xff] %v13643_v50 }
0x1177   :  { %9835 = vmatpush3.msra.mxu0 %v13570_v40 }
0x1178   :  { %9836 = vmatprep.subr.mxu0 %v13554_v8 }
0x1179   :  { %9837 = vmatpush3.msra.mxu0 %v13574_v35  ;;  %v13633_v35 = vld [vmem:[#allocation6 + $0x758] sm:$0xff] }
0x117a   :  { %9838 = vmatprep.subr.mxu0 %v13554_v8  ;;  %16107 = vst [vmem:[#allocation69_spill] sm:$0xff] %v13633_v35 }
0x117b   :  { %9839 = vmatpush3.msra.mxu0 %v13578_v42  ;;  %v13629_v42 = vld [vmem:[#allocation6 + $0x778] sm:$0xff] }
0x117c   :  { %9840 = vmatprep.subr.mxu0 %v13554_v8  ;;  %16106 = vst [vmem:[#allocation66_spill] sm:$0xff] %v13629_v42 }
0x117d   :  { %9841 = vmatpush3.msra.mxu0 %v13582_v20  ;;  %v13602_v20 = vld [vmem:[#allocation6 + $0x370] sm:$0xff] }
0x117e   :  { %9842 = vmatprep.subr.mxu0 %v13554_v8  ;;  %16101 = vst [vmem:[#allocation79_spill] sm:$0xff] %v13602_v20 }
0x117f   :  { %9843 = vmatpush3.msra.mxu0 %v13586_v2  ;;  %v13606_v2 = vld [vmem:[#allocation6 + $0x358] sm:$0xff] }
0x1180   :  { %9844 = vmatprep.subr.mxu0 %v13554_v8  ;;  %16102 = vst [vmem:[#allocation34_spill] sm:$0xff] %v13606_v2 }
0x1181   :  { %9845 = vmatpush3.msra.mxu0 %v13590_v28  ;;  %v13610_v28 = vld [vmem:[#allocation6 + $0x340] sm:$0xff] }
0x1182   :  { %9846 = vmatprep.subr.mxu0 %v13554_v8  ;;  %16103 = vst [vmem:[#allocation36_spill] sm:$0xff] %v13610_v28 }
0x1183   :  { %9847 = vmatpush3.msra.mxu0 %v13594_v18  ;;  %v13614_v18 = vld [vmem:[#allocation6 + $0x328] sm:$0xff] }
0x1184   :  { %9848 = vmatprep.subr.mxu0 %v13554_v8  ;;  %16104 = vst [vmem:[#allocation40_spill] sm:$0xff] %v13614_v18 }
0x1185   :  { %9849 = vmatpush3.msra.mxu0 %v13598_v46  ;;  %v13618_v46 = vld [vmem:[#allocation6 + $0x310] sm:$0xff] }
0x1186   :  { %9850 = vmatprep.subr.mxu0 %v13554_v8  ;;  %16105 = vst [vmem:[#allocation63_spill] sm:$0xff] %v13618_v46 }
0x1187   :  { %9851 = vmatpush3.msra.mxu0 %v13602_v20  ;;  %v13624_v20 = vld [vmem:[#allocation6 + $0x770] sm:$0xff] }
0x1188   :  { %9852 = vmatprep.subr.mxu0 %v13554_v8  ;;  %4840 = vmatprep.subr.mxu1 %v13624_v20 }
0x1189   :  { %9853 = vmatpush3.msra.mxu0 %v13606_v2  ;;  %v13627_v2 = vld [vmem:[#allocation6 + $0x768] sm:$0xff] }
0x118a   :  { %9854 = vmatprep.subr.mxu0 %v13554_v8 }
0x118b   :  { %9855 = vmatpush3.msra.mxu0 %v13610_v28 }
0x118c   :  { %9856 = vmatprep.subr.mxu0 %v13554_v8 }
0x118d   :  { %9857 = vmatpush3.msra.mxu0 %v13614_v18  ;;  %v13637_v18 = vld [vmem:[#allocation6 + $0x750] sm:$0xff] }
0x118e   :  { %9858 = vmatprep.subr.mxu0 %v13554_v8  ;;  %16108 = vst [vmem:[#allocation70_spill] sm:$0xff] %v13637_v18 }
0x118f   :  { %9859 = vmatpush3.msra.mxu0 %v13618_v46  ;;  %v13639_v46 = vld [vmem:[#allocation6 + $0x760] sm:$0xff] }
0x1190   :  { %9863 = vmatprep.subr.mxu0 %v13554_v8  ;;  %16109 = vst [vmem:[#allocation72_spill] sm:$0xff] %v13639_v46 }
0x1230   :  { %v13631_v28 = vpop.f32.mrf.mxu0 }
0x1231   :  { %4699 = vmatmul.mubr.f32.vlgmr.msra.gmra.mxu1 %v13631_v28  ;;  %9861 = vmatmul.mubr.f32.vlgmr.msra.gmra.mxu0 %v13631_v28 }
0x1232   :  { %4841 = vmatpush1.msra.mxu1 %v13627_v2  ;;  %9864 = vmatpush3.msra.mxu0 %v13629_v42  ;;  %v9827_v40 = vpop.f32.mrf.mxu0  ;;  %v13659_v42 = vld [vmem:[#allocation6 + $0x730] sm:$0xff] }
0x1233   :  { %4842 = vmatprep.subr.mxu1 %v13633_v35  ;;  %9865 = vmatprep.subr.mxu0 %v13554_v8  ;;  %v13657_v40 = vld [vmem:[#allocation6 + $0x720] sm:$0xff]  ;;  %16115 = vst [vmem:[#allocation18_spill] sm:$0xff] %v13659_v42  ;;  %v13663_v35 = vld [vmem:[#allocation6 + $0x710] sm:$0xff] }
0x1234   :  { %4843 = vmatpush1.msra.mxu1 %v13637_v18  ;;  %9866 = vmatpush3.msra.mxu0 %v13639_v46  ;;  %16114 = vst [vmem:[#allocation15_spill] sm:$0xff] %v13657_v40  ;;  %16116 = vst [vmem:[#allocation33_spill] sm:$0xff] %v13663_v35  ;;  %v13667_v46 = vld [vmem:[#allocation6 + $0x708] sm:$0xff]  ;;  %v13669_v18 = vld [vmem:[#allocation6 + $0x718] sm:$0xff] }
0x1235   :  { %4844 = vmatprep.subr.mxu1 %v13643_v50  ;;  %9867 = vmatprep.subr.mxu0 %v13554_v8  ;;  %16117 = vst [vmem:[#allocation19_spill] sm:$0xff] %v13667_v46  ;;  %16118 = vst [vmem:[#allocation20_spill] sm:$0xff] %v13669_v18  ;;  %v13673_v50 = vld [vmem:[#allocation6 + $0x6f8] sm:$0xff] }
0x1236   :  { %4845 = vmatpush1.msra.mxu1 %v13647_v53  ;;  %9868 = vmatpush3.msra.mxu0 %v13649_v24  ;;  %16119 = vst [vmem:[#allocation21_spill] sm:$0xff] %v13673_v50  ;;  %v13677_v24 = vld [vmem:[#allocation6 + $0x6f0] sm:$0xff]  ;;  %v13679_v53 = vld [vmem:[#allocation6 + $0x700] sm:$0xff] }
0x1237   :  { %4846 = vmatprep.subr.mxu1 %v13653_v19  ;;  %9869 = vmatprep.subr.mxu0 %v13554_v8  ;;  %16120 = vst [vmem:[#allocation22_spill] sm:$0xff] %v13677_v24  ;;  %16121 = vst [vmem:[#allocation23_spill] sm:$0xff] %v13679_v53  ;;  %v13683_v19 = vld [vmem:[#allocation6 + $0x6e0] sm:$0xff] }
0x1238   :  { %4847 = vmatpush1.msra.mxu1 %v13657_v40  ;;  %9870 = vmatpush3.msra.mxu0 %v13659_v42  ;;  %16122 = vst [vmem:[#allocation24_spill] sm:$0xff] %v13683_v19  ;;  %v13687_v42 = vld [vmem:[#allocation6 + $0x6d8] sm:$0xff]  ;;  %v13689_v40 = vld [vmem:[#allocation6 + $0x6e8] sm:$0xff] }
0x1239   :  { %4848 = vmatprep.subr.mxu1 %v13663_v35  ;;  %9871 = vmatprep.subr.mxu0 %v13554_v8  ;;  %16123 = vst [vmem:[#allocation25_spill] sm:$0xff] %v13687_v42  ;;  %16124 = vst [vmem:[#allocation26_spill] sm:$0xff] %v13689_v40  ;;  %v13693_v35 = vld [vmem:[#allocation6 + $0x6c8] sm:$0xff] }
0x123a   :  { %4849 = vmatpush1.msra.mxu1 %v13667_v46  ;;  %9872 = vmatpush3.msra.mxu0 %v13669_v18  ;;  %16125 = vst [vmem:[#allocation27_spill] sm:$0xff] %v13693_v35  ;;  %v13697_v18 = vld [vmem:[#allocation6 + $0x6c0] sm:$0xff]  ;;  %v13699_v46 = vld [vmem:[#allocation6 + $0x6d0] sm:$0xff] }
0x123b   :  { %4850 = vmatprep.subr.mxu1 %v13673_v50  ;;  %9873 = vmatprep.subr.mxu0 %v13554_v8  ;;  %16126 = vst [vmem:[#allocation28_spill] sm:$0xff] %v13697_v18  ;;  %16127 = vst [vmem:[#allocation29_spill] sm:$0xff] %v13699_v46  ;;  %v13703_v50 = vld [vmem:[#allocation6 + $0x6b0] sm:$0xff] }
0x123c   :  { %4851 = vmatpush1.msra.mxu1 %v13677_v24  ;;  %9874 = vmatpush3.msra.mxu0 %v13679_v53  ;;  %16128 = vst [vmem:[#allocation30_spill] sm:$0xff] %v13703_v50  ;;  %v13707_v53 = vld [vmem:[#allocation6 + $0x6a8] sm:$0xff]  ;;  %v13709_v24 = vld [vmem:[#allocation6 + $0x6b8] sm:$0xff] }
0x123d   :  { %4852 = vmatprep.subr.mxu1 %v13683_v19  ;;  %9875 = vmatprep.subr.mxu0 %v13554_v8  ;;  %16129 = vst [vmem:[#allocation45_spill] sm:$0xff] %v13707_v53  ;;  %16130 = vst [vmem:[#allocation44_spill] sm:$0xff] %v13709_v24  ;;  %v13713_v19 = vld [vmem:[#allocation6 + $0x698] sm:$0xff] }
0x123e   :  { %4853 = vmatpush1.msra.mxu1 %v13687_v42  ;;  %9876 = vmatpush3.msra.mxu0 %v13689_v40  ;;  %16131 = vst [vmem:[#allocation46_spill] sm:$0xff] %v13713_v19  ;;  %v13717_v40 = vld [vmem:[#allocation6 + $0x690] sm:$0xff]  ;;  %v13719_v42 = vld [vmem:[#allocation6 + $0x6a0] sm:$0xff] }
0x123f   :  { %4854 = vmatprep.subr.mxu1 %v13693_v35  ;;  %9877 = vmatprep.subr.mxu0 %v13554_v8  ;;  %16132 = vst [vmem:[#allocation48_spill] sm:$0xff] %v13717_v40  ;;  %16133 = vst [vmem:[#allocation47_spill] sm:$0xff] %v13719_v42  ;;  %v13723_v35 = vld [vmem:[#allocation6 + $0x680] sm:$0xff] }
0x1240   :  { %4855 = vmatpush1.msra.mxu1 %v13697_v18  ;;  %9878 = vmatpush3.msra.mxu0 %v13699_v46  ;;  %16134 = vst [vmem:[#allocation49_spill] sm:$0xff] %v13723_v35  ;;  %v13727_v46 = vld [vmem:[#allocation6 + $0x678] sm:$0xff]  ;;  %v13729_v18 = vld [vmem:[#allocation6 + $0x688] sm:$0xff] }
0x1241   :  { %4856 = vmatprep.subr.mxu1 %v13703_v50  ;;  %9879 = vmatprep.subr.mxu0 %v13554_v8  ;;  %16135 = vst [vmem:[#allocation51_spill] sm:$0xff] %v13727_v46  ;;  %16136 = vst [vmem:[#allocation50_spill] sm:$0xff] %v13729_v18  ;;  %v13733_v50 = vld [vmem:[#allocation6 + $0x668] sm:$0xff] }
0x1242   :  { %4857 = vmatpush1.msra.mxu1 %v13707_v53  ;;  %9880 = vmatpush3.msra.mxu0 %v13709_v24  ;;  %16137 = vst [vmem:[#allocation52_spill] sm:$0xff] %v13733_v50  ;;  %v13737_v24 = vld [vmem:[#allocation6 + $0x660] sm:$0xff]  ;;  %v13739_v53 = vld [vmem:[#allocation6 + $0x670] sm:$0xff] }
0x1243   :  { %4858 = vmatprep.subr.mxu1 %v13713_v19  ;;  %9881 = vmatprep.subr.mxu0 %v13554_v8  ;;  %16138 = vst [vmem:[#allocation54_spill] sm:$0xff] %v13737_v24  ;;  %16139 = vst [vmem:[#allocation53_spill] sm:$0xff] %v13739_v53  ;;  %v13743_v19 = vld [vmem:[#allocation6 + $0x650] sm:$0xff] }
0x1244   :  { %4859 = vmatpush1.msra.mxu1 %v13717_v40  ;;  %9882 = vmatpush3.msra.mxu0 %v13719_v42  ;;  %16140 = vst [vmem:[#allocation55_spill] sm:$0xff] %v13743_v19  ;;  %v13747_v42 = vld [vmem:[#allocation6 + $0x648] sm:$0xff]  ;;  %v13749_v40 = vld [vmem:[#allocation6 + $0x658] sm:$0xff] }
0x1245   :  { %4860 = vmatprep.subr.mxu1 %v13723_v35  ;;  %9883 = vmatprep.subr.mxu0 %v13554_v8  ;;  %16141 = vst [vmem:[#allocation57_spill] sm:$0xff] %v13749_v40  ;;  %v13753_v35 = vld [vmem:[#allocation6 + $0x638] sm:$0xff] }
0x1246   :  { %4861 = vmatpush1.msra.mxu1 %v13727_v46  ;;  %9884 = vmatpush3.msra.mxu0 %v13729_v18  ;;  %16142 = vst [vmem:[#allocation56_spill] sm:$0xff] %v13753_v35  ;;  %v13757_v18 = vld [vmem:[#allocation6 + $0x630] sm:$0xff]  ;;  %v13759_v46 = vld [vmem:[#allocation6 + $0x640] sm:$0xff] }
0x1247   :  { %4862 = vmatprep.subr.mxu1 %v13733_v50  ;;  %9885 = vmatprep.subr.mxu0 %v13554_v8  ;;  %v13763_v50 = vld [vmem:[#allocation6 + $0x620] sm:$0xff] }
0x1248   :  { %4863 = vmatpush1.msra.mxu1 %v13737_v24  ;;  %9886 = vmatpush3.msra.mxu0 %v13739_v53  ;;  %v13767_v53 = vld [vmem:[#allocation6 + $0x618] sm:$0xff]  ;;  %v13769_v24 = vld [vmem:[#allocation6 + $0x628] sm:$0xff] }
0x1249   :  { %4864 = vmatprep.subr.mxu1 %v13743_v19  ;;  %9887 = vmatprep.subr.mxu0 %v13554_v8  ;;  %v13773_v19 = vld [vmem:[#allocation6 + $0x608] sm:$0xff] }
0x124a   :  { %4865 = vmatpush1.msra.mxu1 %v13747_v42  ;;  %9888 = vmatpush3.msra.mxu0 %v13749_v40  ;;  %16143 = vst [vmem:[#allocation58_spill] sm:$0xff] %v13773_v19  ;;  %v13777_v40 = vld [vmem:[#allocation6 + $0x600] sm:$0xff] }
0x124b   :  { %4866 = vmatprep.subr.mxu1 %v13753_v35  ;;  %9889 = vmatprep.subr.mxu0 %v13554_v8  ;;  %16144 = vst [vmem:[#allocation60_spill] sm:$0xff] %v13777_v40  ;;  %v13781_v35 = vld [vmem:[#allocation6 + $0x610] sm:$0xff] }
0x124c   :  { %4867 = vmatpush1.msra.mxu1 %v13757_v18  ;;  %9890 = vmatpush3.msra.mxu0 %v13759_v46  ;;  %16145 = vst [vmem:[#allocation59_spill] sm:$0xff] %v13781_v35 }
0x124d   :  { %4868 = vmatprep.subr.mxu1 %v13763_v50  ;;  %9891 = vmatprep.subr.mxu0 %v13554_v8 }
0x124e   :  { %4869 = vmatpush1.msra.mxu1 %v13767_v53  ;;  %9892 = vmatpush3.msra.mxu0 %v13769_v24 }
0x124f   :  { %4870 = vmatprep.subr.mxu1 %v13773_v19  ;;  %9893 = vmatprep.subr.mxu0 %v13554_v8 }
0x1250   :  { %4871 = vmatpush1.msra.mxu1 %v13777_v40  ;;  %4904 = vmatprep.mubr.f32.mxu1 %v13554_v8 }
0x1251   :  { %9894 = vmatpush3.msra.mxu0 %v13781_v35  ;;  %9895 = vmatprep.mubr.msk.f32.mxu0 %vm10791_vm0, %v13554_v8 }
0x1252   :  { %4905 = vmatmul.mubr.f32.vlgmr.msra.gmra.mxu1 %v13372_v48  ;;  %9896 = vmatmul.mubr.f32.vlgmr.msra.gmra.mxu0 %v13372_v48 }
0x1253   :  { %9898 = vmatprep.subr.mxu0 %v13554_v8  ;;  %9930 = vmatprep.mubr.msk.f32.mxu0 %vm10791_vm0, %v13554_v8 }
0x1254   :  { %9899 = vmatpush3.msra.mxu0 %v13382_v16  ;;  %v13827_v16 = vld [vmem:[#allocation8 + $0xf8] sm:$0xff] }
0x1255   :  { %9900 = vmatprep.subr.mxu0 %v13554_v8  ;;  %16146 = vst [vmem:[#allocation61_spill] sm:$0xff] %v13827_v16  ;;  %8399 = vmatprep.subr.mxu1 %v13827_v16 }
0x1256   :  { %9901 = vmatpush3.msra.mxu0 %v13384_v44  ;;  %v13830_v44 = vld [vmem:[#allocation8 + $0x78] sm:$0xff] }
0x1257   :  { %9902 = vmatprep.subr.mxu0 %v13554_v8  ;;  %16147 = vst [vmem:[#allocation64_spill] sm:$0xff] %v13830_v44  ;;  %8400 = vmatpush3.msra.mxu1 %v13830_v44 }
0x1258   :  { %9903 = vmatpush3.msra.mxu0 %v13388_v47  ;;  %v13833_v47 = vld [vmem:[#allocation8 + $0xf0] sm:$0xff] }
0x1259   :  { %9904 = vmatprep.subr.mxu0 %v13554_v8  ;;  %16148 = vst [vmem:[#allocation67_spill] sm:$0xff] %v13833_v47  ;;  %8401 = vmatprep.subr.mxu1 %v13833_v47 }
0x125a   :  { %9905 = vmatpush3.msra.mxu0 %v13392_v52  ;;  %v13836_v52 = vld [vmem:[#allocation8 + $0x70] sm:$0xff] }
0x125b   :  { %9906 = vmatprep.subr.mxu0 %v13554_v8  ;;  %16149 = vst [vmem:[#allocation78_spill] sm:$0xff] %v13836_v52  ;;  %8402 = vmatpush3.msra.mxu1 %v13836_v52 }
0x125c   :  { %9907 = vmatpush3.msra.mxu0 %v13396_v37  ;;  %v13839_v37 = vld [vmem:[#allocation8 + $0xe8] sm:$0xff] }
0x125d   :  { %9908 = vmatprep.subr.mxu0 %v13554_v8  ;;  %16150 = vst [vmem:[#allocation80_spill] sm:$0xff] %v13839_v37  ;;  %8403 = vmatprep.subr.mxu1 %v13839_v37 }
0x125e   :  { %9909 = vmatpush3.msra.mxu0 %v13400_v56  ;;  %v13842_v56 = vld [vmem:[#allocation8 + $0x68] sm:$0xff] }
0x125f   :  { %9910 = vmatprep.subr.mxu0 %v13554_v8  ;;  %16151 = vst [vmem:[#allocation81_spill] sm:$0xff] %v13842_v56  ;;  %8404 = vmatpush3.msra.mxu1 %v13842_v56 }
0x1260   :  { %9911 = vmatpush3.msra.mxu0 %v13404_v27  ;;  %v13845_v27 = vld [vmem:[#allocation8 + $0xe0] sm:$0xff] }
0x1261   :  { %9912 = vmatprep.subr.mxu0 %v13554_v8  ;;  %16152 = vst [vmem:[#allocation82_spill] sm:$0xff] %v13845_v27  ;;  %8405 = vmatprep.subr.mxu1 %v13845_v27 }
0x1262   :  { %9913 = vmatpush3.msra.mxu0 %v13408_v30  ;;  %v13848_v30 = vld [vmem:[#allocation8 + $0x60] sm:$0xff] }
0x1263   :  { %9914 = vmatprep.subr.mxu0 %v13554_v8  ;;  %16153 = vst [vmem:[#allocation83_spill] sm:$0xff] %v13848_v30  ;;  %8406 = vmatpush3.msra.mxu1 %v13848_v30 }
0x1264   :  { %9915 = vmatpush3.msra.mxu0 %v13412_v11  ;;  %v13851_v11 = vld [vmem:[#allocation8 + $0xd8] sm:$0xff] }
0x1265   :  { %9916 = vmatprep.subr.mxu0 %v13554_v8  ;;  %16154 = vst [vmem:[#allocation84_spill] sm:$0xff] %v13851_v11  ;;  %8407 = vmatprep.subr.mxu1 %v13851_v11  ;;  %v13888_v11 = vld [vmem:[#allocation8 + $0x28] sm:$0xff] }
0x1266   :  { %9917 = vmatpush3.msra.mxu0 %v13416_v1  ;;  %v13854_v1 = vld [vmem:[#allocation8 + $0x58] sm:$0xff]  ;;  %16167 = vst [vmem:[#allocation97_spill] sm:$0xff] %v13888_v11 }
0x1267   :  { %9918 = vmatprep.subr.mxu0 %v13554_v8  ;;  %16155 = vst [vmem:[#allocation85_spill] sm:$0xff] %v13854_v1  ;;  %8408 = vmatpush3.msra.mxu1 %v13854_v1  ;;  %v13873_v1 = vld [vmem:[#allocation8 + $0xb8] sm:$0xff] }
0x1268   :  { %9919 = vmatpush3.msra.mxu0 %v13420_v9  ;;  %v13857_v9 = vld [vmem:[#allocation8 + $0xd0] sm:$0xff]  ;;  %16162 = vst [vmem:[#allocation92_spill] sm:$0xff] %v13873_v1 }
0x1269   :  { %9920 = vmatprep.subr.mxu0 %v13554_v8  ;;  %16156 = vst [vmem:[#allocation86_spill] sm:$0xff] %v13857_v9  ;;  %8409 = vmatprep.subr.mxu1 %v13857_v9  ;;  %v13876_v9 = vld [vmem:[#allocation8 + $0x38] sm:$0xff] }
0x126a   :  { %9921 = vmatpush3.msra.mxu0 %v13429_v33  ;;  %v13860_v33 = vld [vmem:[#allocation8 + $0x50] sm:$0xff]  ;;  %16163 = vst [vmem:[#allocation93_spill] sm:$0xff] %v13876_v9 }
0x126b   :  { %9922 = vmatprep.subr.mxu0 %v13554_v8  ;;  %16157 = vst [vmem:[#allocation87_spill] sm:$0xff] %v13860_v33  ;;  %8410 = vmatpush3.msra.mxu1 %v13860_v33  ;;  %v13879_v33 = vld [vmem:[#allocation8 + $0xb0] sm:$0xff] }
0x126c   :  { %9923 = vmatpush3.msra.mxu0 %v13433_v34  ;;  %v13863_v34 = vld [vmem:[#allocation8 + $0xc8] sm:$0xff]  ;;  %16164 = vst [vmem:[#allocation94_spill] sm:$0xff] %v13879_v33 }
0x126d   :  { %9924 = vmatprep.subr.mxu0 %v13554_v8  ;;  %16158 = vst [vmem:[#allocation88_spill] sm:$0xff] %v13863_v34  ;;  %8411 = vmatprep.subr.mxu1 %v13863_v34  ;;  %v13882_v34 = vld [vmem:[#allocation8 + $0x30] sm:$0xff] }
0x126e   :  { %9925 = vmatpush3.msra.mxu0 %v13440_v10  ;;  %v13866_v10 = vld [vmem:[#allocation8 + $0x48] sm:$0xff]  ;;  %16165 = vst [vmem:[#allocation95_spill] sm:$0xff] %v13882_v34 }
0x126f   :  { %9926 = vmatprep.subr.mxu0 %v13554_v8  ;;  %16159 = vst [vmem:[#allocation89_spill] sm:$0xff] %v13866_v10  ;;  %8412 = vmatpush3.msra.mxu1 %v13866_v10  ;;  %v13885_v10 = vld [vmem:[#allocation8 + $0xa8] sm:$0xff] }
0x1270   :  { %9927 = vmatpush3.msra.mxu0 %v13444_v38  ;;  %v13869_v38 = vld [vmem:[#allocation8 + $0xc0] sm:$0xff]  ;;  %16166 = vst [vmem:[#allocation96_spill] sm:$0xff] %v13885_v10 }
0x1271   :  { %9928 = vmatprep.subr.mxu0 %v13554_v8  ;;  %16160 = vst [vmem:[#allocation90_spill] sm:$0xff] %v13869_v38  ;;  %8413 = vmatprep.subr.mxu1 %v13869_v38  ;;  %v13891_v38 = vld [vmem:[#allocation8 + $0xa0] sm:$0xff] }
0x1272   :  { %9929 = vmatpush3.msra.mxu0 %v13448_v60  ;;  %v13871_v60 = vld [vmem:[#allocation8 + $0x40] sm:$0xff]  ;;  %16168 = vst [vmem:[#allocation98_spill] sm:$0xff] %v13891_v38 }
0x1273   :  { %9933 = vmatprep.subr.mxu0 %v13554_v8  ;;  %16161 = vst [vmem:[#allocation91_spill] sm:$0xff] %v13871_v60  ;;  %8414 = vmatpush3.msra.mxu1 %v13871_v60  ;;  %v13894_v60 = vld [vmem:[#allocation8 + $0x20] sm:$0xff] }
0x1274   :  { %8415 = vmatprep.subr.mxu1 %v13873_v1  ;;  %16169 = vst [vmem:[#allocation99_spill] sm:$0xff] %v13894_v60  ;;  %v13897_v1 = vld [vmem:[#allocation8 + $0x98] sm:$0xff] }
0x1275   :  { %8416 = vmatpush3.msra.mxu1 %v13876_v9  ;;  %16170 = vst [vmem:[#allocation100_spill] sm:$0xff] %v13897_v1  ;;  %v13900_v9 = vld [vmem:[#allocation8 + $0x18] sm:$0xff] }
0x1276   :  { %8417 = vmatprep.subr.mxu1 %v13879_v33  ;;  %16171 = vst [vmem:[#allocation101_spill] sm:$0xff] %v13900_v9  ;;  %v13903_v33 = vld [vmem:[#allocation8 + $0x90] sm:$0xff] }
0x1277   :  { %8418 = vmatpush3.msra.mxu1 %v13882_v34  ;;  %16172 = vst [vmem:[#allocation102_spill] sm:$0xff] %v13903_v33  ;;  %v13906_v34 = vld [vmem:[#allocation8 + $0x10] sm:$0xff] }
0x1278   :  { %8419 = vmatprep.subr.mxu1 %v13885_v10  ;;  %16173 = vst [vmem:[#allocation103_spill] sm:$0xff] %v13906_v34  ;;  %v13909_v10 = vld [vmem:[#allocation8 + $0x88] sm:$0xff] }
0x1279   :  { %8420 = vmatpush3.msra.mxu1 %v13888_v11  ;;  %16174 = vst [vmem:[#allocation104_spill] sm:$0xff] %v13909_v10  ;;  %v13912_v11 = vld [vmem:[#allocation8 + $0x8] sm:$0xff] }
0x127a   :  { %8421 = vmatprep.subr.mxu1 %v13891_v38  ;;  %16175 = vst [vmem:[#allocation105_spill] sm:$0xff] %v13912_v11  ;;  %v13915_v38 = vld [vmem:[#allocation8 + $0x80] sm:$0xff] }
0x127b   :  { %8422 = vmatpush3.msra.mxu1 %v13894_v60  ;;  %16176 = vst [vmem:[#allocation106_spill] sm:$0xff] %v13915_v38  ;;  %v13918_v60 = vld [vmem:[#allocation8] sm:$0xff] }
0x127c   :  { %8423 = vmatprep.subr.mxu1 %v13897_v1  ;;  %16177 = vst [vmem:[#allocation107_spill] sm:$0xff] %v13918_v60 }
0x127d   :  { %8424 = vmatpush3.msra.mxu1 %v13900_v9 }
0x127e   :  { %8425 = vmatprep.subr.mxu1 %v13903_v33 }
0x127f   :  { %8426 = vmatpush3.msra.mxu1 %v13906_v34  ;;  %v7749_v34 = vld [vmem:[%s14997_s4 + $0x9] sm:$0x7] }
0x1280   :  { %8427 = vmatprep.subr.mxu1 %v13909_v10  ;;  %v4828_v30 = vrot.slane %v7749_v34, %v16085_v32 }
0x1281   :  { %8428 = vmatpush3.msra.mxu1 %v13912_v11 }
0x1282   :  { %8429 = vmatprep.subr.mxu1 %v13915_v38  ;;  %v4832_v38 = vrot.slane %v7749_v34, %v15987_v58 }
0x1283   :  { %8430 = vmatpush3.msra.mxu1 %v13918_v60 }
0x1284   :  { %5279 = vmatprep.subr.mxu1 %v13451_v59 }
0x12f1   :  { %v4771_v9 = vpop.f32.mrf.mxu0  ;;  %v4700_v1 = vpop.f32.mrf.mxu1 }
0x12f2   :  { %v4701_v11 = vadd.f32 %v4700_v1, %v13151_v51  ;;  %v4836_v1 = vrot.slane %v7749_v34, %v15988_v61  ;;  %v16187_v34 = vld [vmem:[#allocation35_spill] sm:$0xff] }
0x12f3   :  { %v9862_v33 = vpop.f32.mrf.mxu0  ;;  %v4702_v10 = vpop.f32.mrf.mxu1 }
0x12f4   :  { %v4703_v44 = vadd.f32 %v4702_v10, %v13157_v22 }
0x1312   :  { %v4906_v27 = vpop.f32.mrf.mxu1  ;;  %v4977_v56 = vpop.f32.mrf.mxu0 }
0x1313   :  { %v4907_v37 = vadd.f32 %v4906_v27, %v4828_v30  ;;  %v4978_v30 = vadd.f32 %v4977_v56, %v4836_v1  ;;  %v16185_v56 = vld [vmem:[#allocation74_spill] sm:$0xff]  ;;  %v16192_v1 = vld [vmem:[#allocation65_spill] sm:$0xff] }
0x1314   :  { %v4908_v60 = vpop.f32.mrf.mxu1  ;;  %v9897_v52 = vpop.f32.mrf.mxu0 }
0x1315   :  { %v4981_v59 = vadd.f32 %v4907_v37, %v4701_v11  ;;  %v4909_v33 = vadd.f32 %v4908_v60, %v4832_v38  ;;  %v4772_v52 = vadd.f32 %v4771_v9, %v13163_v0  ;;  %v16186_v9 = vld [vmem:[#allocation75_spill] sm:$0xff]  ;;  %v16188_v38 = vld [vmem:[#allocation37_spill] sm:$0xff] }
0x1316   :  { %v16189_v60 = vld [vmem:[#allocation39_spill] sm:$0xff] }
0x1317   :  { %v7750_v47 = vmul.f32 -1.442695, %v4981_v59  ;;  %v4988_v16 = vadd.f32 %v4909_v33, %v4703_v44  ;;  %v16190_v59 = vld [vmem:[#allocation41_spill] sm:$0xff]  ;;  %v16191_v33 = vld [vmem:[#allocation62_spill] sm:$0xff] }
0x1319   :  { %10422 = vpow2.f32 %v7750_v47  ;;  %v7751_v35 = vmul.f32 -1.442695, %v4988_v16 }
0x131b   :  { %10424 = vpow2.f32 %v7751_v35 }
0x1326   :  { %v10423_v32 = vpop.eup %10422 }
0x1327   :  { %v4985_v40 = vadd.f32 1.0, %v10423_v32 }
0x1328   :  { %v10425_v19 = vpop.eup %10424 }
0x1329   :  { %10426 = vrcp.f32 %v4985_v40  ;;  %v4992_v27 = vadd.f32 1.0, %v10425_v19  ;;  %v16179_v19 = vld [vmem:[#allocation42_spill] sm:$0xff]  ;;  %v16184_v40 = vld [vmem:[#allocation32_spill] sm:$0xff] }
0x132b   :  { %10428 = vrcp.f32 %v4992_v27  ;;  %v16193_v27 = vld [vmem:[#allocation68_spill] sm:$0xff] }
0x1336   :  { %v10427_v58 = vpop.eup %10426 }
0x1337   :  { %v4995_v37 = vmul.f32 %v10427_v58, %v4978_v30  ;;  %v16178_v58 = vld [vmem:[#allocation38_spill] sm:$0xff]  ;;  %v16194_v30 = vld [vmem:[#allocation71_spill] sm:$0xff] }
0x1338   :  { %v10429_v10 = vpop.eup %10428 }
0x1339   :  { %v4996_v11 = vadd.f32 %v4995_v37, %v4772_v52  ;;  %v4998_v47 = vsub.f32 1.0, %v10429_v10  ;;  %v5000_v35 = vmul.f32 %v10429_v10, %v13372_v48  ;;  %v16180_v48 = vld [vmem:[#allocation43_spill] sm:$0xff]  ;;  %v16196_v37 = vld [vmem:[#allocation34_spill] sm:$0xff]  ;;  %v16198_v10 = vld [vmem:[#allocation40_spill] sm:$0xff] }
0x133a   :  { %v16195_v52 = vld [vmem:[#allocation79_spill] sm:$0xff] }
0x133b   :  { %10430 = vtanh.f32 %v4996_v11  ;;  %v16197_v11 = vld [vmem:[#allocation36_spill] sm:$0xff] }
0x1348   :  { %v10431_v44 = vpop.eup %10430 }
0x1349   :  { %v4999_v16 = vmul.f32 %v10431_v44, %v4998_v47  ;;  %v16199_v47 = vld [vmem:[#allocation63_spill] sm:$0xff] }
0x134b   :  { %v13934_v32 = vadd.f32 %v5000_v35, %v4999_v16  ;;  %v16200_v16 = vld [vmem:[#allocation66_spill] sm:$0xff] }
0x134d   :  { %5098 = vmatprep.mubr.f32.mxu1 %v13934_v32 }
0x134e   :  { %5099 = vmatmul.mubr.f32.vlgmr.msra.gmra.mxu1 %v13631_v28 }
0x134f   :  { %5280 = vmatpush1.msra.mxu1 %v13454_v14  ;;  %5343 = vmatprep.mubr.f32.mxu1 %v13554_v8  ;;  %v16181_v14 = vld [vmem:[#allocation31_spill] sm:$0xff] }
0x1350   :  { %5281 = vmatprep.subr.mxu1 %v13457_v12 }
0x1351   :  { %5282 = vmatpush1.msra.mxu1 %v13460_v63 }
0x1352   :  { %5283 = vmatprep.subr.mxu1 %v13463_v26 }
0x1353   :  { %5284 = vmatpush1.msra.mxu1 %v13466_v45  ;;  %v16182_v45 = vld [vmem:[#allocation77_spill] sm:$0xff] }
0x1354   :  { %5285 = vmatprep.subr.mxu1 %v13469_v29 }
0x1355   :  { %5286 = vmatpush1.msra.mxu1 %v13472_v13 }
0x1356   :  { %5287 = vmatprep.subr.mxu1 %v13475_v54  ;;  %v16183_v54 = vld [vmem:[#allocation16_spill] sm:$0xff] }
0x1357   :  { %5288 = vmatpush1.msra.mxu1 %v13478_v5 }
0x1358   :  { %5289 = vmatprep.subr.mxu1 %v13481_v4 }
0x1359   :  { %5290 = vmatpush1.msra.mxu1 %v13484_v15 }
0x135a   :  { %5291 = vmatprep.subr.mxu1 %v13487_v23 }
0x135b   :  { %5292 = vmatpush1.msra.mxu1 %v13490_v43 }
0x135c   :  { %5293 = vmatprep.subr.mxu1 %v13493_v36 }
0x135d   :  { %5294 = vmatpush1.msra.mxu1 %v13496_v6 }
0x135e   :  { %5295 = vmatprep.subr.mxu1 %v13499_v39  ;;  %v7755_v39 = vld [vmem:[%s14994_s1 + $0x50] sm:$0xff] }
0x135f   :  { %5296 = vmatpush1.msra.mxu1 %v13502_v7 }
0x1360   :  { %5297 = vmatprep.subr.mxu1 %v13505_v55 }
0x1361   :  { %5298 = vmatpush1.msra.mxu1 %v13508_v49 }
0x1362   :  { %5299 = vmatprep.subr.mxu1 %v13511_v41 }
0x1363   :  { %5300 = vmatpush1.msra.mxu1 %v13514_v17 }
0x1364   :  { %5301 = vmatprep.subr.mxu1 %v13517_v3 }
0x1365   :  { %5302 = vmatpush1.msra.mxu1 %v13520_v62  ;;  %v5139_v62 = vstv %s5130_s30 }
0x1366   :  { %5303 = vmatprep.subr.mxu1 %v13523_v25  ;;  %v5142_v25 = vstv %s5141_s8 }
0x1367   :  { %5304 = vmatpush1.msra.mxu1 %v13526_v21 }
0x1368   :  { %5305 = vmatprep.subr.mxu1 %v13529_v31 }
0x1369   :  { %5306 = vmatpush1.msra.mxu1 %v13532_v57 }
0x136a   :  { %5307 = vmatprep.subr.mxu1 %v16178_v58  ;;  %v16201_v58 = vld [vmem:[#allocation69_spill] sm:$0xff] }
0x136b   :  { %5308 = vmatpush1.msra.mxu1 %v16179_v19  ;;  %v16202_v19 = vld [vmem:[#allocation70_spill] sm:$0xff] }
0x136c   :  { %5309 = vmatprep.subr.mxu1 %v16180_v48  ;;  %v16203_v48 = vld [vmem:[#allocation72_spill] sm:$0xff] }
0x136d   :  { %5310 = vmatpush1.msra.mxu1 %v16181_v14  ;;  %v16204_v14 = vld [vmem:[#allocation13_spill] sm:$0xff] }
0x136e   :  { %5485 = vmatprep.subr.mxu1 %v13624_v20 }
0x140e   :  { %v8431_v12 = vpop.f32.mrf.mxu1 }
0x1410   :  { %v8432_v63 = vpop.f32.mrf.mxu1 }
0x1411   :  { %v8433_v26 = vadd.f32 %v8432_v63, %v8431_v12  ;;  %v16205_v12 = vld [vmem:[#allocation12_spill] sm:$0xff]  ;;  %v16206_v63 = vld [vmem:[#allocation14_spill] sm:$0xff] }
0x1413   :  { %v5101_v29 = vadd.f32 %v8433_v26, %v16182_v45  ;;  %v16208_v26 = vld [vmem:[#allocation15_spill] sm:$0xff] }
0x1415   :  { %7752 = vst [vmem:[%s15000_s7 + $0x18] sm:$0xff] %v5101_v29  ;;  %5106 = vmax.xlane.f32.xlu0 %v5101_v29 }
0x149e   :  { %v5107_v13 = vpop.xlane.xlu0 %5106 }
0x149f   :  { %vm5108_vm2 = vcmp.eq.f32.partialorder %v5101_v29, %v5107_v13  ;;  %v16209_v29 = vld [vmem:[#allocation18_spill] sm:$0xff]  ;;  %v16210_v13 = vld [vmem:[#allocation33_spill] sm:$0xff] }
0x14a0   :  { %v5109_v5 = vsel %vm5108_vm2, %v16183_v54, 128 }
0x14a1   :  { %v5111_v4 = vshra.s32 %v5109_v5, 16  ;;  %v5110_v23 = vand.u32 65535, %v5109_v5  ;;  %v16211_v5 = vld [vmem:[#allocation19_spill] sm:$0xff] }
0x14a3   :  { %v5113_v15 = vcvt.s32.f32 %v5111_v4  ;;  %v5112_v36 = vcvt.s32.f32 %v5110_v23  ;;  %v16212_v4 = vld [vmem:[#allocation20_spill] sm:$0xff]  ;;  %v16214_v23 = vld [vmem:[#allocation22_spill] sm:$0xff] }
0x14a5   :  { %5114 = vmin.xlane.f32.xlu1 %v5113_v15 }
0x152e   :  { %v5115_v43 = vpop.xlane.xlu1 %5114 }
0x152f   :  { %vm5116_vm3 = vcmp.eq.f32.partialorder %v5113_v15, %v5115_v43  ;;  %v5121_v7 = vcvt.f32.s32 %v5115_v43  ;;  %v16213_v15 = vld [vmem:[#allocation21_spill] sm:$0xff]  ;;  %v16215_v43 = vld [vmem:[#allocation23_spill] sm:$0xff] }
0x1530   :  { %v5117_v6 = vsel %vm5116_vm3, %v5112_v36, inf  ;;  %v16216_v36 = vld [vmem:[#allocation24_spill] sm:$0xff] }
0x1531   :  { %5118 = vmin.xlane.f32.xlu0 %v5117_v6  ;;  %v5122_v49 = vshll.u32 %v5121_v7, 16  ;;  %v16217_v6 = vld [vmem:[#allocation25_spill] sm:$0xff]  ;;  %v16219_v7 = vld [vmem:[#allocation27_spill] sm:$0xff] }
0x1547   :  { %5134 = vperm.xlu0 %10330, %v7755_v39   ;;  %v16218_v39 = vld [vmem:[#allocation26_spill] sm:$0xff] }
0x15ba   :  { %v5119_v55 = vpop.xlane.xlu0 %5118 }
0x15bb   :  { %v5120_v41 = vcvt.f32.s32 %v5119_v55  ;;  %v16220_v55 = vld [vmem:[#allocation28_spill] sm:$0xff] }
0x15bd   :  { %v5123_v17 = vadd.s32 %v5122_v49, %v5120_v41  ;;  %v16221_v49 = vld [vmem:[#allocation29_spill] sm:$0xff]  ;;  %v16222_v41 = vld [vmem:[#allocation30_spill] sm:$0xff] }
0x15bf   :  { %vm5124_vm4 = vcmp.eq.s32.totalorder %v16183_v54, %v5123_v17  ;;  %v16223_v17 = vld [vmem:[#allocation45_spill] sm:$0xff] }
0x15c0   :  { %v7753_v3 = vsel %vm5124_vm4, 1.0, %v13554_v8 }
0x15c1   :  { %v5143_v57 = vmul.f32 %v7753_v3, %v5142_v25  ;;  %v16224_v3 = vld [vmem:[#allocation44_spill] sm:$0xff] }
0x15c2   :  { %v5135_v21 = vpop.permute.xlu0 %5134  ;;  %v16226_v25 = vld [vmem:[#allocation48_spill] sm:$0xff] }
0x15c3   :  { %vm5136_vm5 = vcmp.eq.s32.totalorder %v5135_v21, %v16183_v54  ;;  %v16227_v21 = vld [vmem:[#allocation47_spill] sm:$0xff] }
0x15c4   :  { %v7756_v31 = vsel %vm5136_vm5, 1.0, %v13554_v8 }
0x15c5   :  { %v5140_v20 = vmul.f32 %v7756_v31, %v5139_v62  ;;  %v16225_v62 = vld [vmem:[#allocation46_spill] sm:$0xff]  ;;  %v16228_v31 = vld [vmem:[#allocation49_spill] sm:$0xff] }
0x15c7   :  { %v5144_v28 = vadd.f32 %v5143_v57, %v5140_v20  ;;  %v16229_v57 = vld [vmem:[#allocation51_spill] sm:$0xff]  ;;  %v16230_v20 = vld [vmem:[#allocation50_spill] sm:$0xff] }
0x15c9   :  { %9931 = vmatmul.mubr.f32.vlgmr.msra.gmra.mxu0 %v5144_v28  ;;  %v16231_v28 = vld [vmem:[#allocation52_spill] sm:$0xff] }
0x15ca   :  { %9934 = vmatpush3.msra.mxu0 %v16184_v40  ;;  %9965 = vmatprep.mubr.msk.f32.mxu0 %vm10791_vm0, %v13554_v8  ;;  %v16232_v40 = vld [vmem:[#allocation54_spill] sm:$0xff] }
0x15cb   :  { %9935 = vmatprep.subr.mxu0 %v13554_v8 }
0x15cc   :  { %9936 = vmatpush3.msra.mxu0 %v16185_v56  ;;  %v16233_v56 = vld [vmem:[#allocation53_spill] sm:$0xff] }
0x15cd   :  { %9937 = vmatprep.subr.mxu0 %v13554_v8 }
0x15ce   :  { %9938 = vmatpush3.msra.mxu0 %v16186_v9  ;;  %v16234_v9 = vld [vmem:[#allocation55_spill] sm:$0xff] }
0x15cf   :  { %9939 = vmatprep.subr.mxu0 %v13554_v8 }
0x15d0   :  { %9940 = vmatpush3.msra.mxu0 %v16187_v34  ;;  %v16235_v34 = vld [vmem:[#allocation57_spill] sm:$0xff] }
0x15d1   :  { %9941 = vmatprep.subr.mxu0 %v13554_v8 }
0x15d2   :  { %9942 = vmatpush3.msra.mxu0 %v16188_v38  ;;  %v16236_v38 = vld [vmem:[#allocation56_spill] sm:$0xff] }
0x15d3   :  { %9943 = vmatprep.subr.mxu0 %v13554_v8 }
0x15d4   :  { %9944 = vmatpush3.msra.mxu0 %v16189_v60  ;;  %v16237_v60 = vld [vmem:[#allocation58_spill] sm:$0xff] }
0x15d5   :  { %9945 = vmatprep.subr.mxu0 %v13554_v8 }
0x15d6   :  { %9946 = vmatpush3.msra.mxu0 %v16190_v59  ;;  %v16239_v59 = vld [vmem:[#allocation59_spill] sm:$0xff] }
0x15d7   :  { %9947 = vmatprep.subr.mxu0 %v13554_v8 }
0x15d8   :  { %9948 = vmatpush3.msra.mxu0 %v16191_v33  ;;  %v16245_v33 = vld [vmem:[#allocation81_spill] sm:$0xff] }
0x15d9   :  { %9949 = vmatprep.subr.mxu0 %v13554_v8 }
0x15da   :  { %9950 = vmatpush3.msra.mxu0 %v16192_v1  ;;  %v16246_v1 = vld [vmem:[#allocation82_spill] sm:$0xff] }
0x15db   :  { %9951 = vmatprep.subr.mxu0 %v13554_v8 }
0x15dc   :  { %9952 = vmatpush3.msra.mxu0 %v16193_v27  ;;  %v16247_v27 = vld [vmem:[#allocation83_spill] sm:$0xff] }
0x15dd   :  { %9953 = vmatprep.subr.mxu0 %v13554_v8 }
0x15de   :  { %9954 = vmatpush3.msra.mxu0 %v16194_v30  ;;  %v16248_v30 = vld [vmem:[#allocation84_spill] sm:$0xff] }
0x15df   :  { %9955 = vmatprep.subr.mxu0 %v13554_v8 }
0x15e0   :  { %9956 = vmatpush3.msra.mxu0 %v16195_v52  ;;  %v16249_v52 = vld [vmem:[#allocation85_spill] sm:$0xff] }
0x15e1   :  { %9957 = vmatprep.subr.mxu0 %v13554_v8 }
0x15e2   :  { %9958 = vmatpush3.msra.mxu0 %v16196_v37  ;;  %v16250_v37 = vld [vmem:[#allocation86_spill] sm:$0xff] }
0x15e3   :  { %9959 = vmatprep.subr.mxu0 %v13554_v8 }
0x15e4   :  { %9960 = vmatpush3.msra.mxu0 %v16197_v11  ;;  %v16251_v11 = vld [vmem:[#allocation87_spill] sm:$0xff] }
0x15e5   :  { %9961 = vmatprep.subr.mxu0 %v13554_v8 }
0x15e6   :  { %9962 = vmatpush3.msra.mxu0 %v16198_v10  ;;  %v16253_v10 = vld [vmem:[#allocation89_spill] sm:$0xff] }
0x15e7   :  { %9963 = vmatprep.subr.mxu0 %v13554_v8 }
0x15e8   :  { %9964 = vmatpush3.msra.mxu0 %v16199_v47  ;;  %v16254_v47 = vld [vmem:[#allocation90_spill] sm:$0xff] }
0x15e9   :  { %9968 = vmatprep.subr.mxu0 %v13554_v8 }
0x1689   :  { %v14017_v44 = vpop.f32.mrf.mxu0 }
0x168a   :  { %5344 = vmatmul.mubr.f32.vlgmr.msra.gmra.mxu1 %v14017_v44  ;;  %9966 = vmatmul.mubr.f32.vlgmr.msra.gmra.mxu0 %v14017_v44 }
0x168b   :  { %5486 = vmatpush1.msra.mxu1 %v13627_v2  ;;  %9969 = vmatpush3.msra.mxu0 %v16200_v16  ;;  %v9932_v35 = vpop.f32.mrf.mxu0  ;;  %v16207_v2 = vld [vmem:[#allocation17_spill] sm:$0xff]  ;;  %v16255_v16 = vld [vmem:[#allocation91_spill] sm:$0xff] }
0x168c   :  { %5487 = vmatprep.subr.mxu1 %v16201_v58  ;;  %9970 = vmatprep.subr.mxu0 %v13554_v8  ;;  %v16256_v35 = vld [vmem:[#allocation92_spill] sm:$0xff]  ;;  %v16257_v58 = vld [vmem:[#allocation93_spill] sm:$0xff] }
0x168d   :  { %5488 = vmatpush1.msra.mxu1 %v16202_v19  ;;  %9971 = vmatpush3.msra.mxu0 %v16203_v48  ;;  %v16258_v19 = vld [vmem:[#allocation94_spill] sm:$0xff]  ;;  %v16259_v48 = vld [vmem:[#allocation95_spill] sm:$0xff] }
0x168e   :  { %5489 = vmatprep.subr.mxu1 %v16204_v14  ;;  %9972 = vmatprep.subr.mxu0 %v13554_v8  ;;  %v16260_v14 = vld [vmem:[#allocation96_spill] sm:$0xff] }
0x168f   :  { %5490 = vmatpush1.msra.mxu1 %v16205_v12  ;;  %9973 = vmatpush3.msra.mxu0 %v16206_v63  ;;  %v16261_v12 = vld [vmem:[#allocation97_spill] sm:$0xff]  ;;  %v16262_v63 = vld [vmem:[#allocation98_spill] sm:$0xff] }
0x1690   :  { %5491 = vmatprep.subr.mxu1 %v16207_v2  ;;  %9974 = vmatprep.subr.mxu0 %v13554_v8  ;;  %v16263_v2 = vld [vmem:[#allocation99_spill] sm:$0xff] }
0x1691   :  { %5492 = vmatpush1.msra.mxu1 %v16208_v26  ;;  %9975 = vmatpush3.msra.mxu0 %v16209_v29  ;;  %v16264_v26 = vld [vmem:[#allocation100_spill] sm:$0xff]  ;;  %v16265_v29 = vld [vmem:[#allocation101_spill] sm:$0xff] }
0x1692   :  { %5493 = vmatprep.subr.mxu1 %v16210_v13  ;;  %9976 = vmatprep.subr.mxu0 %v13554_v8  ;;  %v16266_v13 = vld [vmem:[#allocation102_spill] sm:$0xff] }
0x1693   :  { %5494 = vmatpush1.msra.mxu1 %v16211_v5  ;;  %9977 = vmatpush3.msra.mxu0 %v16212_v4  ;;  %v16267_v5 = vld [vmem:[#allocation103_spill] sm:$0xff]  ;;  %v16268_v4 = vld [vmem:[#allocation104_spill] sm:$0xff] }
0x1694   :  { %5495 = vmatprep.subr.mxu1 %v16213_v15  ;;  %9978 = vmatprep.subr.mxu0 %v13554_v8  ;;  %v16269_v15 = vld [vmem:[#allocation105_spill] sm:$0xff] }
0x1695   :  { %5496 = vmatpush1.msra.mxu1 %v16214_v23  ;;  %9979 = vmatpush3.msra.mxu0 %v16215_v43  ;;  %v16270_v23 = vld [vmem:[#allocation106_spill] sm:$0xff]  ;;  %v16271_v43 = vld [vmem:[#allocation107_spill] sm:$0xff] }
0x1696   :  { %5497 = vmatprep.subr.mxu1 %v16216_v36  ;;  %9980 = vmatprep.subr.mxu0 %v13554_v8 }
0x1697   :  { %5498 = vmatpush1.msra.mxu1 %v16217_v6  ;;  %9981 = vmatpush3.msra.mxu0 %v16218_v39 }
0x1698   :  { %5499 = vmatprep.subr.mxu1 %v16219_v7  ;;  %9982 = vmatprep.subr.mxu0 %v13554_v8  ;;  %v7757_v7 = vld [vmem:[%s14997_s4 + $0x9] sm:$0x7] }
0x1699   :  { %5500 = vmatpush1.msra.mxu1 %v16220_v55  ;;  %9983 = vmatpush3.msra.mxu0 %v16221_v49  ;;  %v16272_v55 = vld [vmem:[#allocation73_spill] sm:$0xff] }
0x169a   :  { %5501 = vmatprep.subr.mxu1 %v16222_v41  ;;  %9984 = vmatprep.subr.mxu0 %v13554_v8  ;;  %v5473_v49 = vrot.slane %v7757_v7, %v16272_v55 }
0x169b   :  { %5502 = vmatpush1.msra.mxu1 %v16223_v17  ;;  %9985 = vmatpush3.msra.mxu0 %v16224_v3 }
0x169c   :  { %5503 = vmatprep.subr.mxu1 %v16225_v62  ;;  %9986 = vmatprep.subr.mxu0 %v13554_v8 }
0x169d   :  { %5504 = vmatpush1.msra.mxu1 %v16226_v25  ;;  %9987 = vmatpush3.msra.mxu0 %v16227_v21  ;;  %v16273_v21 = vld [vmem:[#allocation76_spill] sm:$0xff] }
0x169e   :  { %5505 = vmatprep.subr.mxu1 %v16228_v31  ;;  %9988 = vmatprep.subr.mxu0 %v13554_v8  ;;  %v5477_v31 = vrot.slane %v7757_v7, %v16273_v21 }
0x169f   :  { %5506 = vmatpush1.msra.mxu1 %v16229_v57  ;;  %9989 = vmatpush3.msra.mxu0 %v16230_v20 }
0x16a0   :  { %5507 = vmatprep.subr.mxu1 %v16231_v28  ;;  %9990 = vmatprep.subr.mxu0 %v13554_v8 }
0x16a1   :  { %5508 = vmatpush1.msra.mxu1 %v16232_v40  ;;  %9991 = vmatpush3.msra.mxu0 %v16233_v56 }
0x16a2   :  { %5509 = vmatprep.subr.mxu1 %v16234_v9  ;;  %9992 = vmatprep.subr.mxu0 %v13554_v8 }
0x16a3   :  { %5510 = vmatpush1.msra.mxu1 %v13747_v42  ;;  %9993 = vmatpush3.msra.mxu0 %v16235_v34  ;;  %v16238_v42 = vld [vmem:[#allocation60_spill] sm:$0xff] }
0x16a4   :  { %5511 = vmatprep.subr.mxu1 %v16236_v38  ;;  %9994 = vmatprep.subr.mxu0 %v13554_v8 }
0x16a5   :  { %5512 = vmatpush1.msra.mxu1 %v13757_v18  ;;  %9995 = vmatpush3.msra.mxu0 %v13759_v46  ;;  %v16243_v18 = vld [vmem:[#allocation78_spill] sm:$0xff]  ;;  %v16244_v46 = vld [vmem:[#allocation80_spill] sm:$0xff] }
0x16a6   :  { %5513 = vmatprep.subr.mxu1 %v13763_v50  ;;  %9996 = vmatprep.subr.mxu0 %v13554_v8  ;;  %v16242_v50 = vld [vmem:[#allocation67_spill] sm:$0xff] }
0x16a7   :  { %5514 = vmatpush1.msra.mxu1 %v13767_v53  ;;  %9997 = vmatpush3.msra.mxu0 %v13769_v24  ;;  %v16240_v53 = vld [vmem:[#allocation61_spill] sm:$0xff]  ;;  %v16241_v24 = vld [vmem:[#allocation64_spill] sm:$0xff] }
0x16a8   :  { %5515 = vmatprep.subr.mxu1 %v16237_v60  ;;  %9998 = vmatprep.subr.mxu0 %v13554_v8 }
0x16a9   :  { %5516 = vmatpush1.msra.mxu1 %v16238_v42  ;;  %5549 = vmatprep.mubr.f32.mxu1 %v13554_v8 }
0x16aa   :  { %9999 = vmatpush3.msra.mxu0 %v16239_v59  ;;  %10000 = vmatprep.mubr.msk.f32.mxu0 %vm10791_vm0, %v13554_v8 }
0x16ab   :  { %5550 = vmatmul.mubr.f32.vlgmr.msra.gmra.mxu1 %v13934_v32  ;;  %10001 = vmatmul.mubr.f32.vlgmr.msra.gmra.mxu0 %v13934_v32 }
0x16ac   :  { %8485 = vmatprep.subr.mxu1 %v16240_v53  ;;  %10003 = vmatprep.subr.mxu0 %v13554_v8  ;;  %v5481_v53 = vrot.slane %v7757_v7, %v15988_v61  ;;  %v14195_v7 = vld [vmem:[#allocation5 + $0xa0] sm:$0xff] }
0x16ad   :  { %8486 = vmatpush3.msra.mxu1 %v16241_v24  ;;  %10035 = vmatprep.mubr.msk.f32.mxu0 %vm10791_vm0, %v13554_v8  ;;  %v16252_v8 = vld [vmem:[#allocation88_spill] sm:$0xff] }
0x16ae   :  { %8487 = vmatprep.subr.mxu1 %v16242_v50 }
0x16af   :  { %8488 = vmatpush3.msra.mxu1 %v16243_v18 }
0x16b0   :  { %8489 = vmatprep.subr.mxu1 %v16244_v46 }
0x16b1   :  { %8490 = vmatpush3.msra.mxu1 %v16245_v33 }
0x16b2   :  { %8491 = vmatprep.subr.mxu1 %v16246_v1 }
0x16b3   :  { %8492 = vmatpush3.msra.mxu1 %v16247_v27 }
0x16b4   :  { %8493 = vmatprep.subr.mxu1 %v16248_v30 }
0x16b5   :  { %8494 = vmatpush3.msra.mxu1 %v16249_v52 }
0x16b6   :  { %8495 = vmatprep.subr.mxu1 %v16250_v37 }
0x16b7   :  { %8496 = vmatpush3.msra.mxu1 %v16251_v11 }
0x16b8   :  { %8497 = vmatprep.subr.mxu1 %v16252_v8 }
0x16b9   :  { %8498 = vmatpush3.msra.mxu1 %v16253_v10  ;;  %v14140_v10 = vld [vmem:[%s15000_s7] sm:$0xff] }
0x16ba   :  { %8499 = vmatprep.subr.mxu1 %v16254_v47 }
0x16bb   :  { %8500 = vmatpush3.msra.mxu1 %v16255_v16 }
0x16bc   :  { %8501 = vmatprep.subr.mxu1 %v16256_v35 }
0x16bd   :  { %8502 = vmatpush3.msra.mxu1 %v16257_v58 }
0x16be   :  { %8503 = vmatprep.subr.mxu1 %v16258_v19 }
0x16bf   :  { %8504 = vmatpush3.msra.mxu1 %v16259_v48 }
0x16c0   :  { %8505 = vmatprep.subr.mxu1 %v16260_v14  ;;  %v14148_v14 = vld [vmem:[#allocation5 + $0xf8] sm:$0xff] }
0x16c1   :  { %8506 = vmatpush3.msra.mxu1 %v16261_v12  ;;  %v14150_v12 = vld [vmem:[#allocation5 + $0xf0] sm:$0xff]  ;;  %10004 = vmatpush3.msra.mxu0 %v14148_v14 }
0x16c2   :  { %8507 = vmatprep.subr.mxu1 %v16262_v63  ;;  %10005 = vmatprep.subr.mxu0 %v14140_v10  ;;  %v14154_v63 = vld [vmem:[#allocation5 + $0xe8] sm:$0xff] }
0x16c3   :  { %8508 = vmatpush3.msra.mxu1 %v16263_v2  ;;  %10006 = vmatpush3.msra.mxu0 %v14150_v12  ;;  %v14158_v2 = vld [vmem:[#allocation5 + $0xe0] sm:$0xff] }
0x16c4   :  { %8509 = vmatprep.subr.mxu1 %v16264_v26  ;;  %10007 = vmatprep.subr.mxu0 %v14140_v10  ;;  %v14162_v26 = vld [vmem:[#allocation5 + $0xd8] sm:$0xff] }
0x16c5   :  { %8510 = vmatpush3.msra.mxu1 %v16265_v29  ;;  %10008 = vmatpush3.msra.mxu0 %v14154_v63  ;;  %v14166_v29 = vld [vmem:[#allocation5 + $0xd0] sm:$0xff] }
0x16c6   :  { %8511 = vmatprep.subr.mxu1 %v16266_v13  ;;  %10009 = vmatprep.subr.mxu0 %v14140_v10  ;;  %v14170_v13 = vld [vmem:[#allocation5 + $0xc8] sm:$0xff] }
0x16c7   :  { %8512 = vmatpush3.msra.mxu1 %v16267_v5  ;;  %10010 = vmatpush3.msra.mxu0 %v14158_v2  ;;  %v14174_v5 = vld [vmem:[#allocation5 + $0xc0] sm:$0xff] }
0x16c8   :  { %8513 = vmatprep.subr.mxu1 %v16268_v4  ;;  %10011 = vmatprep.subr.mxu0 %v14140_v10  ;;  %v14178_v4 = vld [vmem:[#allocation5 + $0xb8] sm:$0xff] }
0x16c9   :  { %8514 = vmatpush3.msra.mxu1 %v16269_v15  ;;  %10012 = vmatpush3.msra.mxu0 %v14162_v26  ;;  %v14182_v15 = vld [vmem:[#allocation5 + $0xb0] sm:$0xff] }
0x16ca   :  { %8515 = vmatprep.subr.mxu1 %v16270_v23  ;;  %10013 = vmatprep.subr.mxu0 %v14140_v10  ;;  %v14186_v23 = vld [vmem:[#allocation5 + $0xa8] sm:$0xff] }
0x16cb   :  { %8516 = vmatpush3.msra.mxu1 %v16271_v43  ;;  %10014 = vmatpush3.msra.mxu0 %v14166_v29 }
0x16cc   :  { %10015 = vmatprep.subr.mxu0 %v14140_v10 }
0x16cd   :  { %10016 = vmatpush3.msra.mxu0 %v14170_v13 }
0x16ce   :  { %10017 = vmatprep.subr.mxu0 %v14140_v10 }
0x16cf   :  { %10018 = vmatpush3.msra.mxu0 %v14174_v5 }
0x16d0   :  { %10019 = vmatprep.subr.mxu0 %v14140_v10 }
0x16d1   :  { %10020 = vmatpush3.msra.mxu0 %v14178_v4 }
0x16d2   :  { %10021 = vmatprep.subr.mxu0 %v14140_v10 }
0x16d3   :  { %10022 = vmatpush3.msra.mxu0 %v14182_v15 }
0x16d4   :  { %10023 = vmatprep.subr.mxu0 %v14140_v10 }
0x16d5   :  { %10024 = vmatpush3.msra.mxu0 %v14186_v23 }
0x16d6   :  { %10025 = vmatprep.subr.mxu0 %v14140_v10 }
0x16d7   :  { %10026 = vmatpush3.msra.mxu0 %v14195_v7 }
0x16d8   :  { %10027 = vmatprep.subr.mxu0 %v14140_v10 }
0x174a   :  { %v5416_v36 = vpop.f32.mrf.mxu0  ;;  %v5345_v39 = vpop.f32.mrf.mxu1 }
0x174b   :  { %v5346_v62 = vadd.f32 %v5345_v39, %v13151_v51  ;;  %v5417_v46 = vadd.f32 %v5416_v36, %v13163_v0 }
0x174c   :  { %v9967_v6 = vpop.f32.mrf.mxu0  ;;  %v5347_v41 = vpop.f32.mrf.mxu1 }
0x174d   :  { %v5348_v9 = vadd.f32 %v5347_v41, %v13157_v22  ;;  %v7763_v41 = vld [vmem:[%s14994_s1 + $0x58] sm:$0xff] }
0x176b   :  { %v5551_v17 = vpop.f32.mrf.mxu1  ;;  %v5622_v3 = vpop.f32.mrf.mxu0 }
0x176c   :  { %v5552_v25 = vadd.f32 %v5551_v17, %v5473_v49  ;;  %v5623_v50 = vadd.f32 %v5622_v3, %v5481_v53  ;;  %v14199_v49 = vld [vmem:[#allocation5 + $0x98] sm:$0xff]  ;;  %v14206_v17 = vld [vmem:[#allocation5 + $0x90] sm:$0xff]  ;;  %v14210_v3 = vld [vmem:[#allocation5 + $0x88] sm:$0xff] }
0x176d   :  { %v5553_v57 = vpop.f32.mrf.mxu1  ;;  %v10002_v20 = vpop.f32.mrf.mxu0  ;;  %10028 = vmatpush3.msra.mxu0 %v14199_v49  ;;  %v14256_v53 = vld [vmem:[#allocation6 + $0x3d8] sm:$0xff] }
0x176e   :  { %v5626_v28 = vadd.f32 %v5552_v25, %v5346_v62  ;;  %v5554_v56 = vadd.f32 %v5553_v57, %v5477_v31  ;;  %10029 = vmatprep.subr.mxu0 %v14140_v10  ;;  %v14214_v62 = vld [vmem:[#allocation5 + $0x80] sm:$0xff]  ;;  %v14217_v25 = vld [vmem:[#allocation6 + $0x470] sm:$0xff]  ;;  %v14220_v31 = vld [vmem:[#allocation6 + $0x468] sm:$0xff] }
0x176f   :  { %10030 = vmatpush3.msra.mxu0 %v14206_v17  ;;  %5924 = vmatprep.subr.mxu1 %v14217_v25  ;;  %v14223_v57 = vld [vmem:[#allocation6 + $0x458] sm:$0xff]  ;;  %v14226_v20 = vld [vmem:[#allocation6 + $0x450] sm:$0xff] }
0x1770   :  { %v7758_v40 = vmul.f32 -1.442695, %v5626_v28  ;;  %v5633_v34 = vadd.f32 %v5554_v56, %v5348_v9  ;;  %10031 = vmatprep.subr.mxu0 %v14140_v10  ;;  %v14229_v28 = vld [vmem:[#allocation6 + $0x440] sm:$0xff]  ;;  %v14235_v56 = vld [vmem:[#allocation6 + $0x428] sm:$0xff] }
0x1771   :  { %10032 = vmatpush3.msra.mxu0 %v14210_v3  ;;  %v14238_v9 = vld [vmem:[#allocation6 + $0x420] sm:$0xff] }
0x1772   :  { %10432 = vpow2.f32 %v7758_v40  ;;  %v7759_v38 = vmul.f32 -1.442695, %v5633_v34  ;;  %10033 = vmatprep.subr.mxu0 %v14140_v10  ;;  %v14232_v40 = vld [vmem:[#allocation6 + $0x438] sm:$0xff]  ;;  %v14241_v34 = vld [vmem:[#allocation6 + $0x410] sm:$0xff] }
0x1773   :  { %10034 = vmatpush3.msra.mxu0 %v14214_v62 }
0x1774   :  { %10434 = vpow2.f32 %v7759_v38  ;;  %10038 = vmatprep.subr.mxu0 %v14140_v10  ;;  %v14244_v38 = vld [vmem:[#allocation6 + $0x408] sm:$0xff] }
0x177f   :  { %v10433_v60 = vpop.eup %10432 }
0x1780   :  { %v5630_v42 = vadd.f32 1.0, %v10433_v60  ;;  %v14247_v60 = vld [vmem:[#allocation6 + $0x3f8] sm:$0xff] }
0x1781   :  { %v10435_v59 = vpop.eup %10434 }
0x1782   :  { %10436 = vrcp.f32 %v5630_v42  ;;  %v5637_v24 = vadd.f32 1.0, %v10435_v59  ;;  %v14250_v42 = vld [vmem:[#allocation6 + $0x3f0] sm:$0xff]  ;;  %v14253_v59 = vld [vmem:[#allocation6 + $0x3e0] sm:$0xff] }
0x1784   :  { %10438 = vrcp.f32 %v5637_v24  ;;  %v14259_v24 = vld [vmem:[#allocation6 + $0x3c8] sm:$0xff] }
0x178f   :  { %v10437_v18 = vpop.eup %10436 }
0x1790   :  { %v5640_v33 = vmul.f32 %v10437_v18, %v5623_v50  ;;  %v14262_v50 = vld [vmem:[#allocation6 + $0x3c0] sm:$0xff]  ;;  %v14265_v18 = vld [vmem:[#allocation6 + $0x3b0] sm:$0xff] }
0x1791   :  { %v10439_v27 = vpop.eup %10438 }
0x1792   :  { %v5641_v1 = vadd.f32 %v5640_v33, %v5417_v46  ;;  %v5643_v30 = vsub.f32 1.0, %v10439_v27  ;;  %v5645_v11 = vmul.f32 %v10439_v27, %v13934_v32  ;;  %v14268_v46 = vld [vmem:[#allocation6 + $0x3a8] sm:$0xff]  ;;  %v14271_v33 = vld [vmem:[#allocation6 + $0x398] sm:$0xff]  ;;  %v14277_v27 = vld [vmem:[#allocation6 + $0x380] sm:$0xff] }
0x1794   :  { %10440 = vtanh.f32 %v5641_v1  ;;  %v14274_v1 = vld [vmem:[#allocation6 + $0x390] sm:$0xff] }
0x17a1   :  { %v10441_v52 = vpop.eup %10440 }
0x17a2   :  { %v5644_v37 = vmul.f32 %v10441_v52, %v5643_v30  ;;  %v14280_v30 = vld [vmem:[#allocation6 + $0x378] sm:$0xff]  ;;  %v14283_v52 = vld [vmem:[#allocation6 + $0x368] sm:$0xff] }
0x17a4   :  { %v14133_v8 = vadd.f32 %v5645_v11, %v5644_v37  ;;  %v14286_v37 = vld [vmem:[#allocation6 + $0x360] sm:$0xff]  ;;  %v14289_v11 = vld [vmem:[#allocation6 + $0x350] sm:$0xff] }
0x17a6   :  { %5743 = vmatprep.mubr.f32.mxu1 %v14133_v8 }
0x17a7   :  { %5744 = vmatmul.mubr.f32.vlgmr.msra.gmra.mxu1 %v14017_v44 }
0x17a8   :  { %5988 = vmatprep.mubr.f32.mxu1 %v14140_v10  ;;  %5925 = vmatpush1.msra.mxu1 %v14220_v31 }
0x17a9   :  { %5926 = vmatprep.subr.mxu1 %v14223_v57 }
0x17aa   :  { %5927 = vmatpush1.msra.mxu1 %v14226_v20 }
0x17ab   :  { %5928 = vmatprep.subr.mxu1 %v14229_v28 }
0x17ac   :  { %5929 = vmatpush1.msra.mxu1 %v14232_v40 }
0x17ad   :  { %5930 = vmatprep.subr.mxu1 %v14235_v56 }
0x17ae   :  { %5931 = vmatpush1.msra.mxu1 %v14238_v9 }
0x17af   :  { %5932 = vmatprep.subr.mxu1 %v14241_v34 }
0x17b0   :  { %5933 = vmatpush1.msra.mxu1 %v14244_v38 }
0x17b1   :  { %5934 = vmatprep.subr.mxu1 %v14247_v60 }
0x17b2   :  { %5935 = vmatpush1.msra.mxu1 %v14250_v42 }
0x17b3   :  { %5936 = vmatprep.subr.mxu1 %v14253_v59 }
0x17b4   :  { %5937 = vmatpush1.msra.mxu1 %v14256_v53 }
0x17b5   :  { %5938 = vmatprep.subr.mxu1 %v14259_v24 }
0x17b6   :  { %5939 = vmatpush1.msra.mxu1 %v14262_v50 }
0x17b7   :  { %5940 = vmatprep.subr.mxu1 %v14265_v18 }
0x17b8   :  { %5941 = vmatpush1.msra.mxu1 %v14268_v46 }
0x17b9   :  { %5942 = vmatprep.subr.mxu1 %v14271_v33 }
0x17ba   :  { %5943 = vmatpush1.msra.mxu1 %v14274_v1 }
0x17bb   :  { %5944 = vmatprep.subr.mxu1 %v14277_v27 }
0x17bc   :  { %5945 = vmatpush1.msra.mxu1 %v14280_v30 }
0x17bd   :  { %5946 = vmatprep.subr.mxu1 %v14283_v52 }
0x17be   :  { %5947 = vmatpush1.msra.mxu1 %v14286_v37 }
0x17bf   :  { %5948 = vmatprep.subr.mxu1 %v14289_v11 }
0x1867   :  { %v8517_v47 = vpop.f32.mrf.mxu1 }
0x1869   :  { %v8518_v16 = vpop.f32.mrf.mxu1 }
0x186a   :  { %v8519_v35 = vadd.f32 %v8518_v16, %v8517_v47  ;;  %v14292_v47 = vld [vmem:[#allocation6 + $0x348] sm:$0xff]  ;;  %v14295_v16 = vld [vmem:[#allocation6 + $0x338] sm:$0xff] }
0x186b   :  { %16274 = vst [vmem:[#allocation108_spill] sm:$0xff] %v14292_v47  ;;  %16275 = vst [vmem:[#allocation109_spill] sm:$0xff] %v14295_v16  ;;  %5949 = vmatpush1.msra.mxu1 %v14292_v47 }
0x186c   :  { %v5746_v58 = vadd.f32 %v8519_v35, %v16182_v45  ;;  %v14298_v35 = vld [vmem:[#allocation6 + $0x330] sm:$0xff]  ;;  %5950 = vmatprep.subr.mxu1 %v14295_v16  ;;  %v5784_v45 = vstv %s5775_s16 }
0x186d   :  { %16276 = vst [vmem:[#allocation38_spill] sm:$0xff] %v14298_v35  ;;  %5951 = vmatpush1.msra.mxu1 %v14298_v35 }
0x186e   :  { %7760 = vst [vmem:[%s15000_s7 + $0x20] sm:$0xff] %v5746_v58  ;;  %5751 = vmax.xlane.f32.xlu1 %v5746_v58 }
0x18f7   :  { %v5752_v32 = vpop.xlane.xlu1 %5751 }
0x18f8   :  { %vm5753_vm6 = vcmp.eq.f32.partialorder %v5746_v58, %v5752_v32  ;;  %v14301_v58 = vld [vmem:[#allocation6 + $0x320] sm:$0xff]  ;;  %v14304_v32 = vld [vmem:[#allocation6 + $0x318] sm:$0xff] }
0x18f9   :  { %v5754_v44 = vsel %vm5753_vm6, %v16183_v54, 128  ;;  %16277 = vst [vmem:[#allocation42_spill] sm:$0xff] %v14301_v58  ;;  %16278 = vst [vmem:[#allocation43_spill] sm:$0xff] %v14304_v32  ;;  %5952 = vmatprep.subr.mxu1 %v14301_v58  ;;  %v5787_v58 = vstv %s5786_s17 }
0x18fa   :  { %v5756_v19 = vshra.s32 %v5754_v44, 16  ;;  %v5755_v43 = vand.u32 65535, %v5754_v44  ;;  %v14307_v44 = vld [vmem:[#allocation6 + $0x308] sm:$0xff]  ;;  %5953 = vmatpush1.msra.mxu1 %v14304_v32 }
0x18fb   :  { %16279 = vst [vmem:[#allocation31_spill] sm:$0xff] %v14307_v44  ;;  %5954 = vmatprep.subr.mxu1 %v14307_v44 }
0x18fc   :  { %v5758_v48 = vcvt.s32.f32 %v5756_v19  ;;  %v5757_v6 = vcvt.s32.f32 %v5755_v43  ;;  %v14310_v19 = vld [vmem:[#allocation6 + $0x300] sm:$0xff] }
0x18fd   :  { %16280 = vst [vmem:[#allocation16_spill] sm:$0xff] %v14310_v19  ;;  %5955 = vmatpush1.msra.mxu1 %v14310_v19 }
0x18fe   :  { %5759 = vmin.xlane.f32.xlu1 %v5758_v48 }
0x1987   :  { %v14192_v36 = vpop.xlane.xlu1 %5759 }
0x1988   :  { %vm5761_vm7 = vcmp.eq.f32.partialorder %v5758_v48, %v14192_v36  ;;  %v5766_v48 = vcvt.f32.s32 %v14192_v36  ;;  %v14319_v36 = vld [vmem:[#allocation6 + $0x478] sm:$0xff] }
0x1989   :  { %v5762_v39 = vsel %vm5761_vm7, %v5757_v6, inf }
0x198a   :  { %5763 = vmin.xlane.f32.xlu1 %v5762_v39  ;;  %v5767_v6 = vshll.u32 %v5766_v48, 16  ;;  %v14321_v48 = vld [vmem:[#allocation6 + $0x460] sm:$0xff] }
0x199b   :  { %5779 = vperm.xlu1 %10331, %v7763_v41  }
0x1a13   :  { %v5764_v43 = vpop.xlane.xlu1 %5763 }
0x1a14   :  { %v5765_v39 = vcvt.f32.s32 %v5764_v43  ;;  %v14359_v43 = vld [vmem:[#allocation6 + $0x388] sm:$0xff] }
0x1a15   :  { %16289 = vst [vmem:[#allocation65_spill] sm:$0xff] %v14359_v43 }
0x1a16   :  { %v5768_v41 = vadd.s32 %v5767_v6, %v5765_v39  ;;  %v14363_v6 = vld [vmem:[#allocation6 + $0x370] sm:$0xff]  ;;  %v14367_v39 = vld [vmem:[#allocation6 + $0x358] sm:$0xff] }
0x1a17   :  { %v5780_v32 = vpop.permute.xlu1 %5779  ;;  %16290 = vst [vmem:[#allocation68_spill] sm:$0xff] %v14363_v6  ;;  %16291 = vst [vmem:[#allocation71_spill] sm:$0xff] %v14367_v39 }
0x1a18   :  { %vm5769_vm8 = vcmp.eq.s32.totalorder %v16183_v54, %v5768_v41  ;;  %vm5781_vm9 = vcmp.eq.s32.totalorder %v5780_v32, %v16183_v54  ;;  %v14327_v32 = vld [vmem:[#allocation6 + $0x448] sm:$0xff]  ;;  %v14371_v41 = vld [vmem:[#allocation6 + $0x340] sm:$0xff] }
0x1a19   :  { %v7761_v19 = vsel %vm5769_vm8, 1.0, %v14140_v10  ;;  %v7764_v44 = vsel %vm5781_vm9, 1.0, %v14140_v10  ;;  %16281 = vst [vmem:[#allocation32_spill] sm:$0xff] %v14327_v32  ;;  %16292 = vst [vmem:[#allocation79_spill] sm:$0xff] %v14371_v41 }
0x1a1a   :  { %v5788_v35 = vmul.f32 %v7761_v19, %v5787_v58  ;;  %v5785_v16 = vmul.f32 %v7764_v44, %v5784_v45  ;;  %v14331_v45 = vld [vmem:[#allocation6 + $0x430] sm:$0xff]  ;;  %v14351_v44 = vld [vmem:[#allocation6 + $0x3b8] sm:$0xff]  ;;  %v14355_v19 = vld [vmem:[#allocation6 + $0x3a0] sm:$0xff] }
0x1a1b   :  { %16282 = vst [vmem:[#allocation74_spill] sm:$0xff] %v14331_v45  ;;  %v14347_v58 = vld [vmem:[#allocation6 + $0x3d0] sm:$0xff]  ;;  %16287 = vst [vmem:[#allocation41_spill] sm:$0xff] %v14351_v44 }
0x1a1c   :  { %v5789_v47 = vadd.f32 %v5788_v35, %v5785_v16  ;;  %v14339_v16 = vld [vmem:[#allocation6 + $0x400] sm:$0xff]  ;;  %v14343_v35 = vld [vmem:[#allocation6 + $0x3e8] sm:$0xff]  ;;  %16286 = vst [vmem:[#allocation39_spill] sm:$0xff] %v14347_v58  ;;  %16288 = vst [vmem:[#allocation62_spill] sm:$0xff] %v14355_v19 }
0x1a1d   :  { %16284 = vst [vmem:[#allocation35_spill] sm:$0xff] %v14339_v16  ;;  %16285 = vst [vmem:[#allocation37_spill] sm:$0xff] %v14343_v35 }
0x1a1e   :  { %10036 = vmatmul.mubr.f32.vlgmr.msra.gmra.mxu0 %v5789_v47  ;;  %v14335_v47 = vld [vmem:[#allocation6 + $0x418] sm:$0xff] }
0x1a1f   :  { %10039 = vmatpush3.msra.mxu0 %v14319_v36  ;;  %10070 = vmatprep.mubr.msk.f32.mxu0 %vm10791_vm0, %v14140_v10  ;;  %16283 = vst [vmem:[#allocation75_spill] sm:$0xff] %v14335_v47 }
0x1a20   :  { %10040 = vmatprep.subr.mxu0 %v14140_v10 }
0x1a21   :  { %10041 = vmatpush3.msra.mxu0 %v14321_v48 }
0x1a22   :  { %10042 = vmatprep.subr.mxu0 %v14140_v10 }
0x1a23   :  { %10043 = vmatpush3.msra.mxu0 %v14327_v32  ;;  %v14414_v32 = vld [vmem:[#allocation6 + $0x728] sm:$0xff] }
0x1a24   :  { %10044 = vmatprep.subr.mxu0 %v14140_v10  ;;  %16302 = vst [vmem:[#allocation12_spill] sm:$0xff] %v14414_v32 }
0x1a25   :  { %10045 = vmatpush3.msra.mxu0 %v14331_v45  ;;  %v14410_v45 = vld [vmem:[#allocation6 + $0x748] sm:$0xff] }
0x1a26   :  { %10046 = vmatprep.subr.mxu0 %v14140_v10  ;;  %16301 = vst [vmem:[#allocation13_spill] sm:$0xff] %v14410_v45 }
0x1a27   :  { %10047 = vmatpush3.msra.mxu0 %v14335_v47  ;;  %v14408_v47 = vld [vmem:[#allocation6 + $0x738] sm:$0xff] }
0x1a28   :  { %10048 = vmatprep.subr.mxu0 %v14140_v10  ;;  %16300 = vst [vmem:[#allocation72_spill] sm:$0xff] %v14408_v47 }
0x1a29   :  { %10049 = vmatpush3.msra.mxu0 %v14339_v16  ;;  %v14404_v16 = vld [vmem:[#allocation6 + $0x740] sm:$0xff] }
0x1a2a   :  { %10050 = vmatprep.subr.mxu0 %v14140_v10  ;;  %16299 = vst [vmem:[#allocation70_spill] sm:$0xff] %v14404_v16 }
0x1a2b   :  { %10051 = vmatpush3.msra.mxu0 %v14343_v35 }
0x1a2c   :  { %10052 = vmatprep.subr.mxu0 %v14140_v10 }
0x1a2d   :  { %10053 = vmatpush3.msra.mxu0 %v14347_v58  ;;  %v14394_v58 = vld [vmem:[#allocation6 + $0x758] sm:$0xff] }
0x1a2e   :  { %10054 = vmatprep.subr.mxu0 %v14140_v10  ;;  %16296 = vst [vmem:[#allocation63_spill] sm:$0xff] %v14394_v58 }
0x1a2f   :  { %10055 = vmatpush3.msra.mxu0 %v14351_v44  ;;  %v14390_v44 = vld [vmem:[#allocation6 + $0x778] sm:$0xff] }
0x1a30   :  { %10056 = vmatprep.subr.mxu0 %v14140_v10  ;;  %16295 = vst [vmem:[#allocation40_spill] sm:$0xff] %v14390_v44 }
0x1a31   :  { %10057 = vmatpush3.msra.mxu0 %v14355_v19  ;;  %v14375_v19 = vld [vmem:[#allocation6 + $0x328] sm:$0xff] }
0x1a32   :  { %10058 = vmatprep.subr.mxu0 %v14140_v10  ;;  %16293 = vst [vmem:[#allocation34_spill] sm:$0xff] %v14375_v19 }
0x1a33   :  { %10059 = vmatpush3.msra.mxu0 %v14359_v43  ;;  %v14379_v43 = vld [vmem:[#allocation6 + $0x310] sm:$0xff] }
0x1a34   :  { %10060 = vmatprep.subr.mxu0 %v14140_v10  ;;  %16294 = vst [vmem:[#allocation36_spill] sm:$0xff] %v14379_v43 }
0x1a35   :  { %10061 = vmatpush3.msra.mxu0 %v14363_v6  ;;  %v14385_v6 = vld [vmem:[#allocation6 + $0x770] sm:$0xff] }
0x1a36   :  { %10062 = vmatprep.subr.mxu0 %v14140_v10  ;;  %6130 = vmatprep.subr.mxu1 %v14385_v6 }
0x1a37   :  { %10063 = vmatpush3.msra.mxu0 %v14367_v39  ;;  %v14388_v39 = vld [vmem:[#allocation6 + $0x768] sm:$0xff] }
0x1a38   :  { %10064 = vmatprep.subr.mxu0 %v14140_v10 }
0x1a39   :  { %10065 = vmatpush3.msra.mxu0 %v14371_v41 }
0x1a3a   :  { %10066 = vmatprep.subr.mxu0 %v14140_v10 }
0x1a3b   :  { %10067 = vmatpush3.msra.mxu0 %v14375_v19  ;;  %v14398_v19 = vld [vmem:[#allocation6 + $0x750] sm:$0xff] }
0x1a3c   :  { %10068 = vmatprep.subr.mxu0 %v14140_v10  ;;  %16297 = vst [vmem:[#allocation66_spill] sm:$0xff] %v14398_v19 }
0x1a3d   :  { %10069 = vmatpush3.msra.mxu0 %v14379_v43  ;;  %v14400_v43 = vld [vmem:[#allocation6 + $0x760] sm:$0xff] }
0x1a3e   :  { %10073 = vmatprep.subr.mxu0 %v14140_v10  ;;  %16298 = vst [vmem:[#allocation69_spill] sm:$0xff] %v14400_v43 }
0x1ade   :  { %v14392_v41 = vpop.f32.mrf.mxu0 }
0x1adf   :  { %5989 = vmatmul.mubr.f32.vlgmr.msra.gmra.mxu1 %v14392_v41  ;;  %10071 = vmatmul.mubr.f32.vlgmr.msra.gmra.mxu0 %v14392_v41 }
0x1ae0   :  { %6131 = vmatpush1.msra.mxu1 %v14388_v39  ;;  %10074 = vmatpush3.msra.mxu0 %v14390_v44  ;;  %v10037_v35 = vpop.f32.mrf.mxu0  ;;  %v14420_v44 = vld [vmem:[#allocation6 + $0x730] sm:$0xff] }
0x1ae1   :  { %6132 = vmatprep.subr.mxu1 %v14394_v58  ;;  %10075 = vmatprep.subr.mxu0 %v14140_v10  ;;  %v14418_v35 = vld [vmem:[#allocation6 + $0x720] sm:$0xff]  ;;  %16304 = vst [vmem:[#allocation17_spill] sm:$0xff] %v14420_v44  ;;  %v14424_v58 = vld [vmem:[#allocation6 + $0x710] sm:$0xff] }
0x1ae2   :  { %6133 = vmatpush1.msra.mxu1 %v14398_v19  ;;  %10076 = vmatpush3.msra.mxu0 %v14400_v43  ;;  %16303 = vst [vmem:[#allocation14_spill] sm:$0xff] %v14418_v35  ;;  %16305 = vst [vmem:[#allocation15_spill] sm:$0xff] %v14424_v58  ;;  %v14428_v43 = vld [vmem:[#allocation6 + $0x708] sm:$0xff]  ;;  %v14430_v19 = vld [vmem:[#allocation6 + $0x718] sm:$0xff] }
0x1ae3   :  { %6134 = vmatprep.subr.mxu1 %v14404_v16  ;;  %10077 = vmatprep.subr.mxu0 %v14140_v10  ;;  %16306 = vst [vmem:[#allocation18_spill] sm:$0xff] %v14428_v43  ;;  %16307 = vst [vmem:[#allocation33_spill] sm:$0xff] %v14430_v19  ;;  %v14434_v16 = vld [vmem:[#allocation6 + $0x6f8] sm:$0xff] }
0x1ae4   :  { %6135 = vmatpush1.msra.mxu1 %v14408_v47  ;;  %10078 = vmatpush3.msra.mxu0 %v14410_v45  ;;  %16308 = vst [vmem:[#allocation19_spill] sm:$0xff] %v14434_v16  ;;  %v14438_v45 = vld [vmem:[#allocation6 + $0x6f0] sm:$0xff]  ;;  %v14440_v47 = vld [vmem:[#allocation6 + $0x700] sm:$0xff] }
0x1ae5   :  { %6136 = vmatprep.subr.mxu1 %v14414_v32  ;;  %10079 = vmatprep.subr.mxu0 %v14140_v10  ;;  %16309 = vst [vmem:[#allocation20_spill] sm:$0xff] %v14438_v45  ;;  %16310 = vst [vmem:[#allocation21_spill] sm:$0xff] %v14440_v47  ;;  %v14444_v32 = vld [vmem:[#allocation6 + $0x6e0] sm:$0xff] }
0x1ae6   :  { %6137 = vmatpush1.msra.mxu1 %v14418_v35  ;;  %10080 = vmatpush3.msra.mxu0 %v14420_v44  ;;  %16311 = vst [vmem:[#allocation22_spill] sm:$0xff] %v14444_v32  ;;  %v14448_v44 = vld [vmem:[#allocation6 + $0x6d8] sm:$0xff]  ;;  %v14450_v35 = vld [vmem:[#allocation6 + $0x6e8] sm:$0xff] }
0x1ae7   :  { %6138 = vmatprep.subr.mxu1 %v14424_v58  ;;  %10081 = vmatprep.subr.mxu0 %v14140_v10  ;;  %16312 = vst [vmem:[#allocation23_spill] sm:$0xff] %v14448_v44  ;;  %16313 = vst [vmem:[#allocation24_spill] sm:$0xff] %v14450_v35  ;;  %v14454_v58 = vld [vmem:[#allocation6 + $0x6c8] sm:$0xff] }
0x1ae8   :  { %6139 = vmatpush1.msra.mxu1 %v14428_v43  ;;  %10082 = vmatpush3.msra.mxu0 %v14430_v19  ;;  %16314 = vst [vmem:[#allocation25_spill] sm:$0xff] %v14454_v58  ;;  %v14458_v19 = vld [vmem:[#allocation6 + $0x6c0] sm:$0xff]  ;;  %v14460_v43 = vld [vmem:[#allocation6 + $0x6d0] sm:$0xff] }
0x1ae9   :  { %6140 = vmatprep.subr.mxu1 %v14434_v16  ;;  %10083 = vmatprep.subr.mxu0 %v14140_v10  ;;  %16315 = vst [vmem:[#allocation26_spill] sm:$0xff] %v14458_v19  ;;  %16316 = vst [vmem:[#allocation27_spill] sm:$0xff] %v14460_v43  ;;  %v14464_v16 = vld [vmem:[#allocation6 + $0x6b0] sm:$0xff] }
0x1aea   :  { %6141 = vmatpush1.msra.mxu1 %v14438_v45  ;;  %10084 = vmatpush3.msra.mxu0 %v14440_v47  ;;  %16317 = vst [vmem:[#allocation28_spill] sm:$0xff] %v14464_v16  ;;  %v14468_v47 = vld [vmem:[#allocation6 + $0x6a8] sm:$0xff]  ;;  %v14470_v45 = vld [vmem:[#allocation6 + $0x6b8] sm:$0xff] }
0x1aeb   :  { %6142 = vmatprep.subr.mxu1 %v14444_v32  ;;  %10085 = vmatprep.subr.mxu0 %v14140_v10  ;;  %16318 = vst [vmem:[#allocation29_spill] sm:$0xff] %v14468_v47  ;;  %16319 = vst [vmem:[#allocation30_spill] sm:$0xff] %v14470_v45  ;;  %v14474_v32 = vld [vmem:[#allocation6 + $0x698] sm:$0xff] }
0x1aec   :  { %6143 = vmatpush1.msra.mxu1 %v14448_v44  ;;  %10086 = vmatpush3.msra.mxu0 %v14450_v35  ;;  %16320 = vst [vmem:[#allocation45_spill] sm:$0xff] %v14474_v32  ;;  %v14478_v35 = vld [vmem:[#allocation6 + $0x690] sm:$0xff]  ;;  %v14480_v44 = vld [vmem:[#allocation6 + $0x6a0] sm:$0xff] }
0x1aed   :  { %6144 = vmatprep.subr.mxu1 %v14454_v58  ;;  %10087 = vmatprep.subr.mxu0 %v14140_v10  ;;  %16321 = vst [vmem:[#allocation44_spill] sm:$0xff] %v14478_v35  ;;  %16322 = vst [vmem:[#allocation46_spill] sm:$0xff] %v14480_v44  ;;  %v14484_v58 = vld [vmem:[#allocation6 + $0x680] sm:$0xff] }
0x1aee   :  { %6145 = vmatpush1.msra.mxu1 %v14458_v19  ;;  %10088 = vmatpush3.msra.mxu0 %v14460_v43  ;;  %16323 = vst [vmem:[#allocation48_spill] sm:$0xff] %v14484_v58  ;;  %v14488_v43 = vld [vmem:[#allocation6 + $0x678] sm:$0xff]  ;;  %v14490_v19 = vld [vmem:[#allocation6 + $0x688] sm:$0xff] }
0x1aef   :  { %6146 = vmatprep.subr.mxu1 %v14464_v16  ;;  %10089 = vmatprep.subr.mxu0 %v14140_v10  ;;  %16324 = vst [vmem:[#allocation47_spill] sm:$0xff] %v14488_v43  ;;  %16325 = vst [vmem:[#allocation49_spill] sm:$0xff] %v14490_v19  ;;  %v14494_v16 = vld [vmem:[#allocation6 + $0x668] sm:$0xff] }
0x1af0   :  { %6147 = vmatpush1.msra.mxu1 %v14468_v47  ;;  %10090 = vmatpush3.msra.mxu0 %v14470_v45  ;;  %16326 = vst [vmem:[#allocation51_spill] sm:$0xff] %v14494_v16  ;;  %v14498_v45 = vld [vmem:[#allocation6 + $0x660] sm:$0xff]  ;;  %v14500_v47 = vld [vmem:[#allocation6 + $0x670] sm:$0xff] }
0x1af1   :  { %6148 = vmatprep.subr.mxu1 %v14474_v32  ;;  %10091 = vmatprep.subr.mxu0 %v14140_v10  ;;  %16327 = vst [vmem:[#allocation50_spill] sm:$0xff] %v14498_v45  ;;  %16328 = vst [vmem:[#allocation52_spill] sm:$0xff] %v14500_v47  ;;  %v14504_v32 = vld [vmem:[#allocation6 + $0x650] sm:$0xff] }
0x1af2   :  { %6149 = vmatpush1.msra.mxu1 %v14478_v35  ;;  %10092 = vmatpush3.msra.mxu0 %v14480_v44  ;;  %16329 = vst [vmem:[#allocation54_spill] sm:$0xff] %v14504_v32  ;;  %v14508_v44 = vld [vmem:[#allocation6 + $0x648] sm:$0xff]  ;;  %v14510_v35 = vld [vmem:[#allocation6 + $0x658] sm:$0xff] }
0x1af3   :  { %6150 = vmatprep.subr.mxu1 %v14484_v58  ;;  %10093 = vmatprep.subr.mxu0 %v14140_v10  ;;  %16330 = vst [vmem:[#allocation53_spill] sm:$0xff] %v14510_v35  ;;  %v14514_v58 = vld [vmem:[#allocation6 + $0x638] sm:$0xff] }
0x1af4   :  { %6151 = vmatpush1.msra.mxu1 %v14488_v43  ;;  %10094 = vmatpush3.msra.mxu0 %v14490_v19  ;;  %16331 = vst [vmem:[#allocation55_spill] sm:$0xff] %v14514_v58  ;;  %v14518_v19 = vld [vmem:[#allocation6 + $0x630] sm:$0xff]  ;;  %v14520_v43 = vld [vmem:[#allocation6 + $0x640] sm:$0xff] }
0x1af5   :  { %6152 = vmatprep.subr.mxu1 %v14494_v16  ;;  %10095 = vmatprep.subr.mxu0 %v14140_v10  ;;  %v14524_v16 = vld [vmem:[#allocation6 + $0x620] sm:$0xff] }
0x1af6   :  { %6153 = vmatpush1.msra.mxu1 %v14498_v45  ;;  %10096 = vmatpush3.msra.mxu0 %v14500_v47  ;;  %v14528_v47 = vld [vmem:[#allocation6 + $0x618] sm:$0xff]  ;;  %v14530_v45 = vld [vmem:[#allocation6 + $0x628] sm:$0xff] }
0x1af7   :  { %6154 = vmatprep.subr.mxu1 %v14504_v32  ;;  %10097 = vmatprep.subr.mxu0 %v14140_v10  ;;  %v14534_v32 = vld [vmem:[#allocation6 + $0x608] sm:$0xff] }
0x1af8   :  { %6155 = vmatpush1.msra.mxu1 %v14508_v44  ;;  %10098 = vmatpush3.msra.mxu0 %v14510_v35  ;;  %16332 = vst [vmem:[#allocation57_spill] sm:$0xff] %v14534_v32  ;;  %v14538_v35 = vld [vmem:[#allocation6 + $0x600] sm:$0xff] }
0x1af9   :  { %6156 = vmatprep.subr.mxu1 %v14514_v58  ;;  %10099 = vmatprep.subr.mxu0 %v14140_v10  ;;  %16333 = vst [vmem:[#allocation56_spill] sm:$0xff] %v14538_v35  ;;  %v14542_v58 = vld [vmem:[#allocation6 + $0x610] sm:$0xff] }
0x1afa   :  { %6157 = vmatpush1.msra.mxu1 %v14518_v19  ;;  %10100 = vmatpush3.msra.mxu0 %v14520_v43  ;;  %16334 = vst [vmem:[#allocation58_spill] sm:$0xff] %v14542_v58 }
0x1afb   :  { %6158 = vmatprep.subr.mxu1 %v14524_v16  ;;  %10101 = vmatprep.subr.mxu0 %v14140_v10 }
0x1afc   :  { %6159 = vmatpush1.msra.mxu1 %v14528_v47  ;;  %10102 = vmatpush3.msra.mxu0 %v14530_v45 }
0x1afd   :  { %6160 = vmatprep.subr.mxu1 %v14534_v32  ;;  %10103 = vmatprep.subr.mxu0 %v14140_v10 }
0x1afe   :  { %6161 = vmatpush1.msra.mxu1 %v14538_v35  ;;  %6194 = vmatprep.mubr.f32.mxu1 %v14140_v10 }
0x1aff   :  { %10104 = vmatpush3.msra.mxu0 %v14542_v58  ;;  %10105 = vmatprep.mubr.msk.f32.mxu0 %vm10791_vm0, %v14140_v10 }
0x1b00   :  { %6195 = vmatmul.mubr.f32.vlgmr.msra.gmra.mxu1 %v14133_v8  ;;  %10106 = vmatmul.mubr.f32.vlgmr.msra.gmra.mxu0 %v14133_v8 }
0x1b01   :  { %10108 = vmatprep.subr.mxu0 %v14140_v10  ;;  %10140 = vmatprep.mubr.msk.f32.mxu0 %vm10791_vm0, %v14140_v10 }
0x1b02   :  { %10109 = vmatpush3.msra.mxu0 %v14148_v14  ;;  %v14588_v14 = vld [vmem:[#allocation8 + $0xf8] sm:$0xff] }
0x1b03   :  { %10110 = vmatprep.subr.mxu0 %v14140_v10  ;;  %16335 = vst [vmem:[#allocation60_spill] sm:$0xff] %v14588_v14  ;;  %8571 = vmatprep.subr.mxu1 %v14588_v14 }
0x1b04   :  { %10111 = vmatpush3.msra.mxu0 %v14150_v12  ;;  %v14591_v12 = vld [vmem:[#allocation8 + $0x78] sm:$0xff] }
0x1b05   :  { %10112 = vmatprep.subr.mxu0 %v14140_v10  ;;  %16336 = vst [vmem:[#allocation59_spill] sm:$0xff] %v14591_v12  ;;  %8572 = vmatpush3.msra.mxu1 %v14591_v12 }
0x1b06   :  { %10113 = vmatpush3.msra.mxu0 %v14154_v63  ;;  %v14594_v63 = vld [vmem:[#allocation8 + $0xf0] sm:$0xff] }
0x1b07   :  { %10114 = vmatprep.subr.mxu0 %v14140_v10  ;;  %16337 = vst [vmem:[#allocation61_spill] sm:$0xff] %v14594_v63  ;;  %8573 = vmatprep.subr.mxu1 %v14594_v63 }
0x1b08   :  { %10115 = vmatpush3.msra.mxu0 %v14158_v2  ;;  %v14597_v2 = vld [vmem:[#allocation8 + $0x70] sm:$0xff] }
0x1b09   :  { %10116 = vmatprep.subr.mxu0 %v14140_v10  ;;  %16338 = vst [vmem:[#allocation64_spill] sm:$0xff] %v14597_v2  ;;  %8574 = vmatpush3.msra.mxu1 %v14597_v2 }
0x1b0a   :  { %10117 = vmatpush3.msra.mxu0 %v14162_v26  ;;  %v14600_v26 = vld [vmem:[#allocation8 + $0xe8] sm:$0xff] }
0x1b0b   :  { %10118 = vmatprep.subr.mxu0 %v14140_v10  ;;  %16339 = vst [vmem:[#allocation67_spill] sm:$0xff] %v14600_v26  ;;  %8575 = vmatprep.subr.mxu1 %v14600_v26 }
0x1b0c   :  { %10119 = vmatpush3.msra.mxu0 %v14166_v29  ;;  %v14603_v29 = vld [vmem:[#allocation8 + $0x68] sm:$0xff] }
0x1b0d   :  { %10120 = vmatprep.subr.mxu0 %v14140_v10  ;;  %16340 = vst [vmem:[#allocation78_spill] sm:$0xff] %v14603_v29  ;;  %8576 = vmatpush3.msra.mxu1 %v14603_v29 }
0x1b0e   :  { %10121 = vmatpush3.msra.mxu0 %v14170_v13  ;;  %v14606_v13 = vld [vmem:[#allocation8 + $0xe0] sm:$0xff] }
0x1b0f   :  { %10122 = vmatprep.subr.mxu0 %v14140_v10  ;;  %16341 = vst [vmem:[#allocation80_spill] sm:$0xff] %v14606_v13  ;;  %8577 = vmatprep.subr.mxu1 %v14606_v13 }
0x1b10   :  { %10123 = vmatpush3.msra.mxu0 %v14174_v5  ;;  %v14609_v5 = vld [vmem:[#allocation8 + $0x60] sm:$0xff] }
0x1b11   :  { %10124 = vmatprep.subr.mxu0 %v14140_v10  ;;  %16342 = vst [vmem:[#allocation81_spill] sm:$0xff] %v14609_v5  ;;  %8578 = vmatpush3.msra.mxu1 %v14609_v5 }
0x1b12   :  { %10125 = vmatpush3.msra.mxu0 %v14178_v4  ;;  %v14612_v4 = vld [vmem:[#allocation8 + $0xd8] sm:$0xff] }
0x1b13   :  { %10126 = vmatprep.subr.mxu0 %v14140_v10  ;;  %16343 = vst [vmem:[#allocation82_spill] sm:$0xff] %v14612_v4  ;;  %8579 = vmatprep.subr.mxu1 %v14612_v4  ;;  %v14649_v4 = vld [vmem:[#allocation8 + $0x28] sm:$0xff] }
0x1b14   :  { %10127 = vmatpush3.msra.mxu0 %v14182_v15  ;;  %v14615_v15 = vld [vmem:[#allocation8 + $0x58] sm:$0xff]  ;;  %16356 = vst [vmem:[#allocation95_spill] sm:$0xff] %v14649_v4 }
0x1b15   :  { %10128 = vmatprep.subr.mxu0 %v14140_v10  ;;  %16344 = vst [vmem:[#allocation83_spill] sm:$0xff] %v14615_v15  ;;  %8580 = vmatpush3.msra.mxu1 %v14615_v15  ;;  %v14634_v15 = vld [vmem:[#allocation8 + $0xb8] sm:$0xff] }
0x1b16   :  { %10129 = vmatpush3.msra.mxu0 %v14186_v23  ;;  %v14618_v23 = vld [vmem:[#allocation8 + $0xd0] sm:$0xff]  ;;  %16351 = vst [vmem:[#allocation90_spill] sm:$0xff] %v14634_v15 }
0x1b17   :  { %10130 = vmatprep.subr.mxu0 %v14140_v10  ;;  %16345 = vst [vmem:[#allocation84_spill] sm:$0xff] %v14618_v23  ;;  %8581 = vmatprep.subr.mxu1 %v14618_v23  ;;  %v14637_v23 = vld [vmem:[#allocation8 + $0x38] sm:$0xff] }
0x1b18   :  { %10131 = vmatpush3.msra.mxu0 %v14195_v7  ;;  %v14621_v7 = vld [vmem:[#allocation8 + $0x50] sm:$0xff]  ;;  %16352 = vst [vmem:[#allocation91_spill] sm:$0xff] %v14637_v23 }
0x1b19   :  { %10132 = vmatprep.subr.mxu0 %v14140_v10  ;;  %16346 = vst [vmem:[#allocation85_spill] sm:$0xff] %v14621_v7  ;;  %8582 = vmatpush3.msra.mxu1 %v14621_v7  ;;  %v14640_v7 = vld [vmem:[#allocation8 + $0xb0] sm:$0xff] }
0x1b1a   :  { %10133 = vmatpush3.msra.mxu0 %v14199_v49  ;;  %v14624_v49 = vld [vmem:[#allocation8 + $0xc8] sm:$0xff]  ;;  %16353 = vst [vmem:[#allocation92_spill] sm:$0xff] %v14640_v7 }
0x1b1b   :  { %10134 = vmatprep.subr.mxu0 %v14140_v10  ;;  %16347 = vst [vmem:[#allocation86_spill] sm:$0xff] %v14624_v49  ;;  %8583 = vmatprep.subr.mxu1 %v14624_v49  ;;  %v14643_v49 = vld [vmem:[#allocation8 + $0x30] sm:$0xff] }
0x1b1c   :  { %10135 = vmatpush3.msra.mxu0 %v14206_v17  ;;  %v14627_v17 = vld [vmem:[#allocation8 + $0x48] sm:$0xff]  ;;  %16354 = vst [vmem:[#allocation93_spill] sm:$0xff] %v14643_v49 }
0x1b1d   :  { %10136 = vmatprep.subr.mxu0 %v14140_v10  ;;  %16348 = vst [vmem:[#allocation87_spill] sm:$0xff] %v14627_v17  ;;  %8584 = vmatpush3.msra.mxu1 %v14627_v17  ;;  %v14646_v17 = vld [vmem:[#allocation8 + $0xa8] sm:$0xff] }
0x1b1e   :  { %10137 = vmatpush3.msra.mxu0 %v14210_v3  ;;  %v14630_v3 = vld [vmem:[#allocation8 + $0xc0] sm:$0xff]  ;;  %16355 = vst [vmem:[#allocation94_spill] sm:$0xff] %v14646_v17 }
0x1b1f   :  { %10138 = vmatprep.subr.mxu0 %v14140_v10  ;;  %16349 = vst [vmem:[#allocation88_spill] sm:$0xff] %v14630_v3  ;;  %8585 = vmatprep.subr.mxu1 %v14630_v3  ;;  %v14652_v3 = vld [vmem:[#allocation8 + $0xa0] sm:$0xff] }
0x1b20   :  { %10139 = vmatpush3.msra.mxu0 %v14214_v62  ;;  %v14632_v62 = vld [vmem:[#allocation8 + $0x40] sm:$0xff]  ;;  %16357 = vst [vmem:[#allocation96_spill] sm:$0xff] %v14652_v3 }
0x1b21   :  { %10143 = vmatprep.subr.mxu0 %v14140_v10  ;;  %16350 = vst [vmem:[#allocation89_spill] sm:$0xff] %v14632_v62  ;;  %8586 = vmatpush3.msra.mxu1 %v14632_v62  ;;  %v14655_v62 = vld [vmem:[#allocation8 + $0x20] sm:$0xff] }
0x1b22   :  { %8587 = vmatprep.subr.mxu1 %v14634_v15  ;;  %16358 = vst [vmem:[#allocation97_spill] sm:$0xff] %v14655_v62  ;;  %v14658_v15 = vld [vmem:[#allocation8 + $0x98] sm:$0xff] }
0x1b23   :  { %8588 = vmatpush3.msra.mxu1 %v14637_v23  ;;  %16359 = vst [vmem:[#allocation98_spill] sm:$0xff] %v14658_v15  ;;  %v14661_v23 = vld [vmem:[#allocation8 + $0x18] sm:$0xff] }
0x1b24   :  { %8589 = vmatprep.subr.mxu1 %v14640_v7  ;;  %16360 = vst [vmem:[#allocation99_spill] sm:$0xff] %v14661_v23  ;;  %v14664_v7 = vld [vmem:[#allocation8 + $0x90] sm:$0xff] }
0x1b25   :  { %8590 = vmatpush3.msra.mxu1 %v14643_v49  ;;  %16361 = vst [vmem:[#allocation100_spill] sm:$0xff] %v14664_v7  ;;  %v14667_v49 = vld [vmem:[#allocation8 + $0x10] sm:$0xff] }
0x1b26   :  { %8591 = vmatprep.subr.mxu1 %v14646_v17  ;;  %16362 = vst [vmem:[#allocation101_spill] sm:$0xff] %v14667_v49  ;;  %v14670_v17 = vld [vmem:[#allocation8 + $0x88] sm:$0xff] }
0x1b27   :  { %8592 = vmatpush3.msra.mxu1 %v14649_v4  ;;  %16363 = vst [vmem:[#allocation102_spill] sm:$0xff] %v14670_v17  ;;  %v14673_v4 = vld [vmem:[#allocation8 + $0x8] sm:$0xff] }
0x1b28   :  { %8593 = vmatprep.subr.mxu1 %v14652_v3  ;;  %16364 = vst [vmem:[#allocation103_spill] sm:$0xff] %v14673_v4  ;;  %v14676_v3 = vld [vmem:[#allocation8 + $0x80] sm:$0xff] }
0x1b29   :  { %8594 = vmatpush3.msra.mxu1 %v14655_v62  ;;  %16365 = vst [vmem:[#allocation104_spill] sm:$0xff] %v14676_v3  ;;  %v14679_v62 = vld [vmem:[#allocation8] sm:$0xff] }
0x1b2a   :  { %8595 = vmatprep.subr.mxu1 %v14658_v15  ;;  %16366 = vst [vmem:[#allocation105_spill] sm:$0xff] %v14679_v62 }
0x1b2b   :  { %8596 = vmatpush3.msra.mxu1 %v14661_v23 }
0x1b2c   :  { %8597 = vmatprep.subr.mxu1 %v14664_v7 }
0x1b2d   :  { %8598 = vmatpush3.msra.mxu1 %v14667_v49  ;;  %v7765_v49 = vld [vmem:[%s14997_s4 + $0x9] sm:$0x7] }
0x1b2e   :  { %8599 = vmatprep.subr.mxu1 %v14670_v17  ;;  %v6118_v5 = vrot.slane %v7765_v49, %v16272_v55 }
0x1b2f   :  { %8600 = vmatpush3.msra.mxu1 %v14673_v4 }
0x1b30   :  { %8601 = vmatprep.subr.mxu1 %v14676_v3  ;;  %v6122_v3 = vrot.slane %v7765_v49, %v16273_v21 }
0x1b31   :  { %8602 = vmatpush3.msra.mxu1 %v14679_v62 }
0x1b32   :  { %6569 = vmatprep.subr.mxu1 %v14217_v25 }
0x1b9f   :  { %v6061_v23 = vpop.f32.mrf.mxu0  ;;  %v5990_v15 = vpop.f32.mrf.mxu1 }
0x1ba0   :  { %v5991_v4 = vadd.f32 %v5990_v15, %v13151_v51  ;;  %v6126_v15 = vrot.slane %v7765_v49, %v15988_v61 }
0x1ba1   :  { %v10072_v7 = vpop.f32.mrf.mxu0  ;;  %v5992_v17 = vpop.f32.mrf.mxu1 }
0x1ba2   :  { %v5993_v12 = vadd.f32 %v5992_v17, %v13157_v22 }
0x1bc0   :  { %v6196_v13 = vpop.f32.mrf.mxu1  ;;  %v6267_v29 = vpop.f32.mrf.mxu0 }
0x1bc1   :  { %v6197_v26 = vadd.f32 %v6196_v13, %v6118_v5  ;;  %v6268_v5 = vadd.f32 %v6267_v29, %v6126_v15  ;;  %v16379_v15 = vld [vmem:[#allocation37_spill] sm:$0xff] }
0x1bc2   :  { %v6198_v62 = vpop.f32.mrf.mxu1  ;;  %v10107_v2 = vpop.f32.mrf.mxu0 }
0x1bc3   :  { %v6271_v25 = vadd.f32 %v6197_v26, %v5991_v4  ;;  %v6199_v7 = vadd.f32 %v6198_v62, %v6122_v3  ;;  %v6062_v2 = vadd.f32 %v6061_v23, %v13163_v0  ;;  %v16375_v62 = vld [vmem:[#allocation32_spill] sm:$0xff] }
0x1bc5   :  { %v7766_v63 = vmul.f32 -1.442695, %v6271_v25  ;;  %v6278_v14 = vadd.f32 %v6199_v7, %v5993_v12  ;;  %v16376_v25 = vld [vmem:[#allocation74_spill] sm:$0xff]  ;;  %v16377_v7 = vld [vmem:[#allocation75_spill] sm:$0xff] }
0x1bc7   :  { %10442 = vpow2.f32 %v7766_v63  ;;  %v7767_v58 = vmul.f32 -1.442695, %v6278_v14 }
0x1bc9   :  { %10444 = vpow2.f32 %v7767_v58 }
0x1bd4   :  { %v10443_v55 = vpop.eup %10442 }
0x1bd5   :  { %v6275_v35 = vadd.f32 1.0, %v10443_v55 }
0x1bd6   :  { %v10445_v32 = vpop.eup %10444 }
0x1bd7   :  { %10446 = vrcp.f32 %v6275_v35  ;;  %v6282_v13 = vadd.f32 1.0, %v10445_v32 }
0x1bd9   :  { %10448 = vrcp.f32 %v6282_v13  ;;  %v16381_v13 = vld [vmem:[#allocation41_spill] sm:$0xff] }
0x1be4   :  { %v10447_v21 = vpop.eup %10446 }
0x1be5   :  { %v6285_v26 = vmul.f32 %v10447_v21, %v6268_v5  ;;  %v16367_v21 = vld [vmem:[#allocation108_spill] sm:$0xff]  ;;  %v16382_v5 = vld [vmem:[#allocation62_spill] sm:$0xff] }
0x1be6   :  { %v10449_v17 = vpop.eup %10448 }
0x1be7   :  { %v6286_v4 = vadd.f32 %v6285_v26, %v6062_v2  ;;  %v6288_v63 = vsub.f32 1.0, %v10449_v17  ;;  %v6290_v58 = vmul.f32 %v10449_v17, %v14133_v8  ;;  %v16368_v8 = vld [vmem:[#allocation109_spill] sm:$0xff]  ;;  %v16384_v26 = vld [vmem:[#allocation68_spill] sm:$0xff]  ;;  %v16386_v17 = vld [vmem:[#allocation79_spill] sm:$0xff] }
0x1be8   :  { %v16383_v2 = vld [vmem:[#allocation65_spill] sm:$0xff] }
0x1be9   :  { %10450 = vtanh.f32 %v6286_v4  ;;  %v16385_v4 = vld [vmem:[#allocation71_spill] sm:$0xff] }
0x1bf6   :  { %v10451_v12 = vpop.eup %10450 }
0x1bf7   :  { %v6289_v14 = vmul.f32 %v10451_v12, %v6288_v63  ;;  %v16387_v63 = vld [vmem:[#allocation34_spill] sm:$0xff]  ;;  %v16388_v12 = vld [vmem:[#allocation36_spill] sm:$0xff] }
0x1bf9   :  { %v14695_v55 = vadd.f32 %v6290_v58, %v6289_v14  ;;  %v16389_v58 = vld [vmem:[#allocation40_spill] sm:$0xff] }
0x1bfb   :  { %6388 = vmatprep.mubr.f32.mxu1 %v14695_v55 }
0x1bfc   :  { %6389 = vmatmul.mubr.f32.vlgmr.msra.gmra.mxu1 %v14392_v41  ;;  %v6432_v41 = vstv %s6431_s5 }
0x1bfd   :  { %6570 = vmatpush1.msra.mxu1 %v14220_v31  ;;  %6633 = vmatprep.mubr.f32.mxu1 %v14140_v10  ;;  %v16369_v10 = vld [vmem:[#allocation38_spill] sm:$0xff] }
0x1bfe   :  { %6571 = vmatprep.subr.mxu1 %v14223_v57  ;;  %v16370_v31 = vld [vmem:[#allocation42_spill] sm:$0xff]  ;;  %v16371_v57 = vld [vmem:[#allocation43_spill] sm:$0xff] }
0x1bff   :  { %6572 = vmatpush1.msra.mxu1 %v14226_v20  ;;  %v16372_v20 = vld [vmem:[#allocation31_spill] sm:$0xff] }
0x1c00   :  { %6573 = vmatprep.subr.mxu1 %v14229_v28  ;;  %v16373_v28 = vld [vmem:[#allocation16_spill] sm:$0xff] }
0x1c01   :  { %6574 = vmatpush1.msra.mxu1 %v14232_v40 }
0x1c02   :  { %6575 = vmatprep.subr.mxu1 %v14235_v56 }
0x1c03   :  { %6576 = vmatpush1.msra.mxu1 %v14238_v9 }
0x1c04   :  { %6577 = vmatprep.subr.mxu1 %v14241_v34  ;;  %v16374_v34 = vld [vmem:[#allocation77_spill] sm:$0xff] }
0x1c05   :  { %6578 = vmatpush1.msra.mxu1 %v14244_v38 }
0x1c06   :  { %6579 = vmatprep.subr.mxu1 %v14247_v60 }
0x1c07   :  { %6580 = vmatpush1.msra.mxu1 %v14250_v42 }
0x1c08   :  { %6581 = vmatprep.subr.mxu1 %v14253_v59 }
0x1c09   :  { %6582 = vmatpush1.msra.mxu1 %v14256_v53 }
0x1c0a   :  { %6583 = vmatprep.subr.mxu1 %v14259_v24 }
0x1c0b   :  { %6584 = vmatpush1.msra.mxu1 %v14262_v50 }
0x1c0c   :  { %6585 = vmatprep.subr.mxu1 %v14265_v18 }
0x1c0d   :  { %6586 = vmatpush1.msra.mxu1 %v14268_v46 }
0x1c0e   :  { %6587 = vmatprep.subr.mxu1 %v14271_v33  ;;  %v7771_v33 = vld [vmem:[%s14994_s1 + $0x60] sm:$0xff] }
0x1c0f   :  { %6588 = vmatpush1.msra.mxu1 %v14274_v1 }
0x1c10   :  { %6589 = vmatprep.subr.mxu1 %v14277_v27 }
0x1c11   :  { %6590 = vmatpush1.msra.mxu1 %v14280_v30 }
0x1c12   :  { %6591 = vmatprep.subr.mxu1 %v14283_v52 }
0x1c13   :  { %6592 = vmatpush1.msra.mxu1 %v14286_v37 }
0x1c14   :  { %6593 = vmatprep.subr.mxu1 %v14289_v11  ;;  %v14744_v11 = vld [vmem:[%s15000_s7] sm:$0xff] }
0x1c15   :  { %6594 = vmatpush1.msra.mxu1 %v16367_v21 }
0x1c16   :  { %6595 = vmatprep.subr.mxu1 %v16368_v8  ;;  %v16390_v8 = vld [vmem:[#allocation63_spill] sm:$0xff] }
0x1c17   :  { %6596 = vmatpush1.msra.mxu1 %v16369_v10  ;;  %v16391_v10 = vld [vmem:[#allocation66_spill] sm:$0xff] }
0x1c18   :  { %6597 = vmatprep.subr.mxu1 %v16370_v31  ;;  %v16392_v31 = vld [vmem:[#allocation69_spill] sm:$0xff] }
0x1c19   :  { %6598 = vmatpush1.msra.mxu1 %v16371_v57  ;;  %v16393_v57 = vld [vmem:[#allocation70_spill] sm:$0xff] }
0x1c1a   :  { %6599 = vmatprep.subr.mxu1 %v16372_v20  ;;  %v16394_v20 = vld [vmem:[#allocation72_spill] sm:$0xff] }
0x1c1b   :  { %6600 = vmatpush1.msra.mxu1 %v16373_v28  ;;  %v16395_v28 = vld [vmem:[#allocation13_spill] sm:$0xff] }
0x1c1c   :  { %6775 = vmatprep.subr.mxu1 %v14385_v6  ;;  %v6429_v6 = vstv %s6420_s25 }
0x1cbc   :  { %v8603_v40 = vpop.f32.mrf.mxu1 }
0x1cbe   :  { %v8604_v56 = vpop.f32.mrf.mxu1 }
0x1cbf   :  { %v8605_v9 = vadd.f32 %v8604_v56, %v8603_v40  ;;  %v16397_v40 = vld [vmem:[#allocation14_spill] sm:$0xff]  ;;  %v16398_v56 = vld [vmem:[#allocation17_spill] sm:$0xff] }
0x1cc1   :  { %v6391_v38 = vadd.f32 %v8605_v9, %v16374_v34  ;;  %v16399_v9 = vld [vmem:[#allocation15_spill] sm:$0xff] }
0x1cc3   :  { %7768 = vst [vmem:[%s15000_s7 + $0x28] sm:$0xff] %v6391_v38  ;;  %6396 = vmax.xlane.f32.xlu0 %v6391_v38 }
0x1d4c   :  { %v6397_v60 = vpop.xlane.xlu0 %6396 }
0x1d4d   :  { %vm6398_vm10 = vcmp.eq.f32.partialorder %v6391_v38, %v6397_v60  ;;  %v16400_v38 = vld [vmem:[#allocation18_spill] sm:$0xff]  ;;  %v16401_v60 = vld [vmem:[#allocation33_spill] sm:$0xff] }
0x1d4e   :  { %v6399_v42 = vsel %vm6398_vm10, %v16183_v54, 128 }
0x1d4f   :  { %v6401_v59 = vshra.s32 %v6399_v42, 16  ;;  %v6400_v24 = vand.u32 65535, %v6399_v42  ;;  %v16402_v42 = vld [vmem:[#allocation19_spill] sm:$0xff] }
0x1d51   :  { %v6403_v53 = vcvt.s32.f32 %v6401_v59  ;;  %v6402_v18 = vcvt.s32.f32 %v6400_v24  ;;  %v16403_v59 = vld [vmem:[#allocation20_spill] sm:$0xff]  ;;  %v16405_v24 = vld [vmem:[#allocation22_spill] sm:$0xff] }
0x1d53   :  { %6404 = vmin.xlane.f32.xlu1 %v6403_v53 }
0x1ddc   :  { %v6405_v50 = vpop.xlane.xlu1 %6404 }
0x1ddd   :  { %vm6406_vm11 = vcmp.eq.f32.partialorder %v6403_v53, %v6405_v50  ;;  %v6411_v1 = vcvt.f32.s32 %v6405_v50  ;;  %v16404_v53 = vld [vmem:[#allocation21_spill] sm:$0xff]  ;;  %v16406_v50 = vld [vmem:[#allocation23_spill] sm:$0xff] }
0x1dde   :  { %v6407_v46 = vsel %vm6406_vm11, %v6402_v18, inf  ;;  %v16407_v18 = vld [vmem:[#allocation24_spill] sm:$0xff] }
0x1ddf   :  { %6408 = vmin.xlane.f32.xlu0 %v6407_v46  ;;  %v6412_v30 = vshll.u32 %v6411_v1, 16  ;;  %v16408_v46 = vld [vmem:[#allocation25_spill] sm:$0xff]  ;;  %v16410_v1 = vld [vmem:[#allocation27_spill] sm:$0xff] }
0x1df5   :  { %6424 = vperm.xlu0 %10330, %v7771_v33   ;;  %v16409_v33 = vld [vmem:[#allocation26_spill] sm:$0xff] }
0x1e68   :  { %v6409_v27 = vpop.xlane.xlu0 %6408 }
0x1e69   :  { %v6410_v52 = vcvt.f32.s32 %v6409_v27  ;;  %v16411_v27 = vld [vmem:[#allocation28_spill] sm:$0xff] }
0x1e6b   :  { %v6413_v37 = vadd.s32 %v6412_v30, %v6410_v52  ;;  %v16412_v30 = vld [vmem:[#allocation29_spill] sm:$0xff]  ;;  %v16413_v52 = vld [vmem:[#allocation30_spill] sm:$0xff] }
0x1e6d   :  { %vm6414_vm12 = vcmp.eq.s32.totalorder %v16183_v54, %v6413_v37  ;;  %v16414_v37 = vld [vmem:[#allocation45_spill] sm:$0xff] }
0x1e6e   :  { %v7769_v32 = vsel %vm6414_vm12, 1.0, %v14744_v11 }
0x1e6f   :  { %v6433_v23 = vmul.f32 %v7769_v32, %v6432_v41  ;;  %v16415_v32 = vld [vmem:[#allocation44_spill] sm:$0xff] }
0x1e70   :  { %v6425_v35 = vpop.permute.xlu0 %6424  ;;  %v16417_v41 = vld [vmem:[#allocation48_spill] sm:$0xff] }
0x1e71   :  { %vm6426_vm13 = vcmp.eq.s32.totalorder %v6425_v35, %v16183_v54  ;;  %v16418_v35 = vld [vmem:[#allocation47_spill] sm:$0xff] }
0x1e72   :  { %v7772_v29 = vsel %vm6426_vm13, 1.0, %v14744_v11 }
0x1e73   :  { %v6430_v49 = vmul.f32 %v7772_v29, %v6429_v6  ;;  %v16416_v6 = vld [vmem:[#allocation46_spill] sm:$0xff]  ;;  %v16419_v29 = vld [vmem:[#allocation49_spill] sm:$0xff] }
0x1e75   :  { %v6434_v3 = vadd.f32 %v6433_v23, %v6430_v49  ;;  %v16420_v23 = vld [vmem:[#allocation51_spill] sm:$0xff]  ;;  %v16421_v49 = vld [vmem:[#allocation50_spill] sm:$0xff] }
0x1e77   :  { %10141 = vmatmul.mubr.f32.vlgmr.msra.gmra.mxu0 %v6434_v3  ;;  %v16422_v3 = vld [vmem:[#allocation52_spill] sm:$0xff] }
0x1e78   :  { %10144 = vmatpush3.msra.mxu0 %v14319_v36  ;;  %10175 = vmatprep.mubr.msk.f32.mxu0 %vm10791_vm0, %v14744_v11  ;;  %v16378_v36 = vld [vmem:[#allocation35_spill] sm:$0xff] }
0x1e79   :  { %10145 = vmatprep.subr.mxu0 %v14744_v11 }
0x1e7a   :  { %10146 = vmatpush3.msra.mxu0 %v14321_v48  ;;  %v16380_v48 = vld [vmem:[#allocation39_spill] sm:$0xff] }
0x1e7b   :  { %10147 = vmatprep.subr.mxu0 %v14744_v11 }
0x1e7c   :  { %10148 = vmatpush3.msra.mxu0 %v16375_v62  ;;  %v16423_v62 = vld [vmem:[#allocation54_spill] sm:$0xff] }
0x1e7d   :  { %10149 = vmatprep.subr.mxu0 %v14744_v11 }
0x1e7e   :  { %10150 = vmatpush3.msra.mxu0 %v16376_v25  ;;  %v16424_v25 = vld [vmem:[#allocation53_spill] sm:$0xff] }
0x1e7f   :  { %10151 = vmatprep.subr.mxu0 %v14744_v11 }
0x1e80   :  { %10152 = vmatpush3.msra.mxu0 %v16377_v7  ;;  %v16425_v7 = vld [vmem:[#allocation55_spill] sm:$0xff] }
0x1e81   :  { %10153 = vmatprep.subr.mxu0 %v14744_v11 }
0x1e82   :  { %10154 = vmatpush3.msra.mxu0 %v16378_v36  ;;  %v16426_v36 = vld [vmem:[#allocation57_spill] sm:$0xff] }
0x1e83   :  { %10155 = vmatprep.subr.mxu0 %v14744_v11 }
0x1e84   :  { %10156 = vmatpush3.msra.mxu0 %v16379_v15  ;;  %v16428_v15 = vld [vmem:[#allocation58_spill] sm:$0xff] }
0x1e85   :  { %10157 = vmatprep.subr.mxu0 %v14744_v11 }
0x1e86   :  { %10158 = vmatpush3.msra.mxu0 %v16380_v48  ;;  %v16434_v48 = vld [vmem:[#allocation78_spill] sm:$0xff] }
0x1e87   :  { %10159 = vmatprep.subr.mxu0 %v14744_v11 }
0x1e88   :  { %10160 = vmatpush3.msra.mxu0 %v16381_v13  ;;  %v16435_v13 = vld [vmem:[#allocation80_spill] sm:$0xff] }
0x1e89   :  { %10161 = vmatprep.subr.mxu0 %v14744_v11 }
0x1e8a   :  { %10162 = vmatpush3.msra.mxu0 %v16382_v5  ;;  %v16436_v5 = vld [vmem:[#allocation81_spill] sm:$0xff] }
0x1e8b   :  { %10163 = vmatprep.subr.mxu0 %v14744_v11 }
0x1e8c   :  { %10164 = vmatpush3.msra.mxu0 %v16383_v2  ;;  %v16437_v2 = vld [vmem:[#allocation82_spill] sm:$0xff] }
0x1e8d   :  { %10165 = vmatprep.subr.mxu0 %v14744_v11 }
0x1e8e   :  { %10166 = vmatpush3.msra.mxu0 %v16384_v26  ;;  %v16438_v26 = vld [vmem:[#allocation83_spill] sm:$0xff] }
0x1e8f   :  { %10167 = vmatprep.subr.mxu0 %v14744_v11 }
0x1e90   :  { %10168 = vmatpush3.msra.mxu0 %v16385_v4  ;;  %v16439_v4 = vld [vmem:[#allocation84_spill] sm:$0xff] }
0x1e91   :  { %10169 = vmatprep.subr.mxu0 %v14744_v11 }
0x1e92   :  { %10170 = vmatpush3.msra.mxu0 %v16386_v17  ;;  %v16440_v17 = vld [vmem:[#allocation85_spill] sm:$0xff] }
0x1e93   :  { %10171 = vmatprep.subr.mxu0 %v14744_v11 }
0x1e94   :  { %10172 = vmatpush3.msra.mxu0 %v16387_v63  ;;  %v16441_v63 = vld [vmem:[#allocation86_spill] sm:$0xff] }
0x1e95   :  { %10173 = vmatprep.subr.mxu0 %v14744_v11 }
0x1e96   :  { %10174 = vmatpush3.msra.mxu0 %v16388_v12  ;;  %v16442_v12 = vld [vmem:[#allocation87_spill] sm:$0xff] }
0x1e97   :  { %10178 = vmatprep.subr.mxu0 %v14744_v11 }
0x1f37   :  { %v14783_v14 = vpop.f32.mrf.mxu0 }
0x1f38   :  { %6634 = vmatmul.mubr.f32.vlgmr.msra.gmra.mxu1 %v14783_v14  ;;  %10176 = vmatmul.mubr.f32.vlgmr.msra.gmra.mxu0 %v14783_v14 }
0x1f39   :  { %6776 = vmatpush1.msra.mxu1 %v14388_v39  ;;  %10179 = vmatpush3.msra.mxu0 %v16389_v58  ;;  %v10142_v21 = vpop.f32.mrf.mxu0  ;;  %v16396_v39 = vld [vmem:[#allocation12_spill] sm:$0xff] }
0x1f3a   :  { %6777 = vmatprep.subr.mxu1 %v16390_v8  ;;  %10180 = vmatprep.subr.mxu0 %v14744_v11  ;;  %v16443_v58 = vld [vmem:[#allocation88_spill] sm:$0xff]  ;;  %v16444_v21 = vld [vmem:[#allocation89_spill] sm:$0xff]  ;;  %v16445_v8 = vld [vmem:[#allocation90_spill] sm:$0xff] }
0x1f3b   :  { %6778 = vmatpush1.msra.mxu1 %v16391_v10  ;;  %10181 = vmatpush3.msra.mxu0 %v16392_v31  ;;  %v16446_v10 = vld [vmem:[#allocation91_spill] sm:$0xff]  ;;  %v16447_v31 = vld [vmem:[#allocation92_spill] sm:$0xff] }
0x1f3c   :  { %6779 = vmatprep.subr.mxu1 %v16393_v57  ;;  %10182 = vmatprep.subr.mxu0 %v14744_v11  ;;  %v16448_v57 = vld [vmem:[#allocation93_spill] sm:$0xff] }
0x1f3d   :  { %6780 = vmatpush1.msra.mxu1 %v16394_v20  ;;  %10183 = vmatpush3.msra.mxu0 %v16395_v28  ;;  %v16449_v20 = vld [vmem:[#allocation94_spill] sm:$0xff]  ;;  %v16450_v28 = vld [vmem:[#allocation95_spill] sm:$0xff] }
0x1f3e   :  { %6781 = vmatprep.subr.mxu1 %v16396_v39  ;;  %10184 = vmatprep.subr.mxu0 %v14744_v11  ;;  %v16451_v39 = vld [vmem:[#allocation96_spill] sm:$0xff] }
0x1f3f   :  { %6782 = vmatpush1.msra.mxu1 %v16397_v40  ;;  %10185 = vmatpush3.msra.mxu0 %v16398_v56  ;;  %v16452_v40 = vld [vmem:[#allocation97_spill] sm:$0xff]  ;;  %v16453_v56 = vld [vmem:[#allocation98_spill] sm:$0xff] }
0x1f40   :  { %6783 = vmatprep.subr.mxu1 %v16399_v9  ;;  %10186 = vmatprep.subr.mxu0 %v14744_v11  ;;  %v16454_v9 = vld [vmem:[#allocation99_spill] sm:$0xff] }
0x1f41   :  { %6784 = vmatpush1.msra.mxu1 %v16400_v38  ;;  %10187 = vmatpush3.msra.mxu0 %v16401_v60  ;;  %v16455_v38 = vld [vmem:[#allocation100_spill] sm:$0xff]  ;;  %v16456_v60 = vld [vmem:[#allocation101_spill] sm:$0xff] }
0x1f42   :  { %6785 = vmatprep.subr.mxu1 %v16402_v42  ;;  %10188 = vmatprep.subr.mxu0 %v14744_v11  ;;  %v16457_v42 = vld [vmem:[#allocation102_spill] sm:$0xff] }
0x1f43   :  { %6786 = vmatpush1.msra.mxu1 %v16403_v59  ;;  %10189 = vmatpush3.msra.mxu0 %v16404_v53  ;;  %v16458_v59 = vld [vmem:[#allocation103_spill] sm:$0xff]  ;;  %v16459_v53 = vld [vmem:[#allocation104_spill] sm:$0xff] }
0x1f44   :  { %6787 = vmatprep.subr.mxu1 %v16405_v24  ;;  %10190 = vmatprep.subr.mxu0 %v14744_v11  ;;  %v16460_v24 = vld [vmem:[#allocation105_spill] sm:$0xff] }
0x1f45   :  { %6788 = vmatpush1.msra.mxu1 %v16406_v50  ;;  %10191 = vmatpush3.msra.mxu0 %v16407_v18 }
0x1f46   :  { %6789 = vmatprep.subr.mxu1 %v16408_v46  ;;  %10192 = vmatprep.subr.mxu0 %v14744_v11 }
0x1f47   :  { %6790 = vmatpush1.msra.mxu1 %v16409_v33  ;;  %10193 = vmatpush3.msra.mxu0 %v16410_v1  ;;  %v7773_v33 = vld [vmem:[%s14997_s4 + $0x9] sm:$0x7] }
0x1f48   :  { %6791 = vmatprep.subr.mxu1 %v16411_v27  ;;  %10194 = vmatprep.subr.mxu0 %v14744_v11  ;;  %v16461_v1 = vld [vmem:[#allocation73_spill] sm:$0xff] }
0x1f49   :  { %6792 = vmatpush1.msra.mxu1 %v16412_v30  ;;  %10195 = vmatpush3.msra.mxu0 %v16413_v52  ;;  %v6763_v27 = vrot.slane %v7773_v33, %v16461_v1 }
0x1f4a   :  { %6793 = vmatprep.subr.mxu1 %v16414_v37  ;;  %10196 = vmatprep.subr.mxu0 %v14744_v11 }
0x1f4b   :  { %6794 = vmatpush1.msra.mxu1 %v16415_v32  ;;  %10197 = vmatpush3.msra.mxu0 %v16416_v6 }
0x1f4c   :  { %6795 = vmatprep.subr.mxu1 %v16417_v41  ;;  %10198 = vmatprep.subr.mxu0 %v14744_v11  ;;  %v16462_v41 = vld [vmem:[#allocation76_spill] sm:$0xff] }
0x1f4d   :  { %6796 = vmatpush1.msra.mxu1 %v16418_v35  ;;  %10199 = vmatpush3.msra.mxu0 %v16419_v29  ;;  %v6767_v35 = vrot.slane %v7773_v33, %v16462_v41 }
0x1f4e   :  { %6797 = vmatprep.subr.mxu1 %v16420_v23  ;;  %10200 = vmatprep.subr.mxu0 %v14744_v11 }
0x1f4f   :  { %6798 = vmatpush1.msra.mxu1 %v16421_v49  ;;  %10201 = vmatpush3.msra.mxu0 %v16422_v3 }
0x1f50   :  { %6799 = vmatprep.subr.mxu1 %v16423_v62  ;;  %10202 = vmatprep.subr.mxu0 %v14744_v11 }
0x1f51   :  { %6800 = vmatpush1.msra.mxu1 %v14508_v44  ;;  %10203 = vmatpush3.msra.mxu0 %v16424_v25  ;;  %v16427_v44 = vld [vmem:[#allocation56_spill] sm:$0xff] }
0x1f52   :  { %6801 = vmatprep.subr.mxu1 %v16425_v7  ;;  %10204 = vmatprep.subr.mxu0 %v14744_v11 }
0x1f53   :  { %6802 = vmatpush1.msra.mxu1 %v14518_v19  ;;  %10205 = vmatpush3.msra.mxu0 %v14520_v43  ;;  %v16432_v19 = vld [vmem:[#allocation64_spill] sm:$0xff]  ;;  %v16433_v43 = vld [vmem:[#allocation67_spill] sm:$0xff] }
0x1f54   :  { %6803 = vmatprep.subr.mxu1 %v14524_v16  ;;  %10206 = vmatprep.subr.mxu0 %v14744_v11  ;;  %v16431_v16 = vld [vmem:[#allocation61_spill] sm:$0xff] }
0x1f55   :  { %6804 = vmatpush1.msra.mxu1 %v14528_v47  ;;  %10207 = vmatpush3.msra.mxu0 %v14530_v45  ;;  %v16429_v47 = vld [vmem:[#allocation60_spill] sm:$0xff]  ;;  %v16430_v45 = vld [vmem:[#allocation59_spill] sm:$0xff] }
0x1f56   :  { %6805 = vmatprep.subr.mxu1 %v16426_v36  ;;  %10208 = vmatprep.subr.mxu0 %v14744_v11 }
0x1f57   :  { %6806 = vmatpush1.msra.mxu1 %v16427_v44  ;;  %6839 = vmatprep.mubr.f32.mxu1 %v14744_v11 }
0x1f58   :  { %10209 = vmatpush3.msra.mxu0 %v16428_v15  ;;  %10210 = vmatprep.mubr.msk.f32.mxu0 %vm10791_vm0, %v14744_v11 }
0x1f59   :  { %6840 = vmatmul.mubr.f32.vlgmr.msra.gmra.mxu1 %v14695_v55  ;;  %10211 = vmatmul.mubr.f32.vlgmr.msra.gmra.mxu0 %v14695_v55 }
0x1f5a   :  { %8657 = vmatprep.subr.mxu1 %v16429_v47  ;;  %10213 = vmatprep.subr.mxu0 %v14744_v11 }
0x1f5b   :  { %8658 = vmatpush3.msra.mxu1 %v16430_v45  ;;  %10245 = vmatprep.mubr.msk.f32.mxu0 %vm10791_vm0, %v14744_v11  ;;  %v6771_v45 = vrot.slane %v7773_v33, %v15988_v61 }
0x1f5c   :  { %8659 = vmatprep.subr.mxu1 %v16431_v16 }
0x1f5d   :  { %8660 = vmatpush3.msra.mxu1 %v16432_v19 }
0x1f5e   :  { %8661 = vmatprep.subr.mxu1 %v16433_v43 }
0x1f5f   :  { %8662 = vmatpush3.msra.mxu1 %v16434_v48 }
0x1f60   :  { %8663 = vmatprep.subr.mxu1 %v16435_v13 }
0x1f61   :  { %8664 = vmatpush3.msra.mxu1 %v16436_v5 }
0x1f62   :  { %8665 = vmatprep.subr.mxu1 %v16437_v2 }
0x1f63   :  { %8666 = vmatpush3.msra.mxu1 %v16438_v26 }
0x1f64   :  { %8667 = vmatprep.subr.mxu1 %v16439_v4 }
0x1f65   :  { %8668 = vmatpush3.msra.mxu1 %v16440_v17 }
0x1f66   :  { %8669 = vmatprep.subr.mxu1 %v16441_v63 }
0x1f67   :  { %8670 = vmatpush3.msra.mxu1 %v16442_v12 }
0x1f68   :  { %8671 = vmatprep.subr.mxu1 %v16443_v58 }
0x1f69   :  { %8672 = vmatpush3.msra.mxu1 %v16444_v21 }
0x1f6a   :  { %8673 = vmatprep.subr.mxu1 %v16445_v8 }
0x1f6b   :  { %8674 = vmatpush3.msra.mxu1 %v16446_v10 }
0x1f6c   :  { %8675 = vmatprep.subr.mxu1 %v16447_v31 }
0x1f6d   :  { %8676 = vmatpush3.msra.mxu1 %v16448_v57 }
0x1f6e   :  { %8677 = vmatprep.subr.mxu1 %v16449_v20 }
0x1f6f   :  { %8678 = vmatpush3.msra.mxu1 %v16450_v28  ;;  %v7095_v28 = vld [vmem:[#allocation5 + $0xf8] sm:$0xff] }
0x1f70   :  { %8679 = vmatprep.subr.mxu1 %v16451_v39  ;;  %v7094_v39 = vld [vmem:[#allocation5 + $0xf0] sm:$0xff]  ;;  %10214 = vmatpush3.msra.mxu0 %v7095_v28 }
0x1f71   :  { %8680 = vmatpush3.msra.mxu1 %v16452_v40  ;;  %10215 = vmatprep.subr.mxu0 %v14744_v11  ;;  %v7093_v40 = vld [vmem:[#allocation5 + $0xe8] sm:$0xff] }
0x1f72   :  { %8681 = vmatprep.subr.mxu1 %v16453_v56  ;;  %10216 = vmatpush3.msra.mxu0 %v7094_v39  ;;  %v7092_v56 = vld [vmem:[#allocation5 + $0xe0] sm:$0xff] }
0x1f73   :  { %8682 = vmatpush3.msra.mxu1 %v16454_v9  ;;  %10217 = vmatprep.subr.mxu0 %v14744_v11  ;;  %v7091_v9 = vld [vmem:[#allocation5 + $0xd8] sm:$0xff] }
0x1f74   :  { %8683 = vmatprep.subr.mxu1 %v16455_v38  ;;  %10218 = vmatpush3.msra.mxu0 %v7093_v40  ;;  %v7090_v38 = vld [vmem:[#allocation5 + $0xd0] sm:$0xff] }
0x1f75   :  { %8684 = vmatpush3.msra.mxu1 %v16456_v60  ;;  %10219 = vmatprep.subr.mxu0 %v14744_v11  ;;  %v7089_v60 = vld [vmem:[#allocation5 + $0xc8] sm:$0xff] }
0x1f76   :  { %8685 = vmatprep.subr.mxu1 %v16457_v42  ;;  %10220 = vmatpush3.msra.mxu0 %v7092_v56  ;;  %v7088_v42 = vld [vmem:[#allocation5 + $0xc0] sm:$0xff] }
0x1f77   :  { %8686 = vmatpush3.msra.mxu1 %v16458_v59  ;;  %10221 = vmatprep.subr.mxu0 %v14744_v11  ;;  %v7087_v59 = vld [vmem:[#allocation5 + $0xb8] sm:$0xff] }
0x1f78   :  { %8687 = vmatprep.subr.mxu1 %v16459_v53  ;;  %10222 = vmatpush3.msra.mxu0 %v7091_v9  ;;  %v7086_v53 = vld [vmem:[#allocation5 + $0xb0] sm:$0xff] }
0x1f79   :  { %8688 = vmatpush3.msra.mxu1 %v16460_v24  ;;  %10223 = vmatprep.subr.mxu0 %v14744_v11  ;;  %v7085_v24 = vld [vmem:[#allocation5 + $0xa8] sm:$0xff] }
0x1f7a   :  { %10224 = vmatpush3.msra.mxu0 %v7090_v38 }
0x1f7b   :  { %10225 = vmatprep.subr.mxu0 %v14744_v11 }
0x1f7c   :  { %10226 = vmatpush3.msra.mxu0 %v7089_v60 }
0x1f7d   :  { %10227 = vmatprep.subr.mxu0 %v14744_v11 }
0x1f7e   :  { %10228 = vmatpush3.msra.mxu0 %v7088_v42 }
0x1f7f   :  { %10229 = vmatprep.subr.mxu0 %v14744_v11 }
0x1f80   :  { %10230 = vmatpush3.msra.mxu0 %v7087_v59 }
0x1f81   :  { %10231 = vmatprep.subr.mxu0 %v14744_v11 }
0x1f82   :  { %10232 = vmatpush3.msra.mxu0 %v7086_v53 }
0x1f83   :  { %10233 = vmatprep.subr.mxu0 %v14744_v11 }
0x1f84   :  { %10234 = vmatpush3.msra.mxu0 %v7085_v24 }
0x1f85   :  { %10235 = vmatprep.subr.mxu0 %v14744_v11 }
0x1ff8   :  { %v6706_v50 = vpop.f32.mrf.mxu0  ;;  %v6635_v46 = vpop.f32.mrf.mxu1 }
0x1ff9   :  { %v6636_v32 = vadd.f32 %v6635_v46, %v13151_v51  ;;  %v6707_v48 = vadd.f32 %v6706_v50, %v13163_v0 }
0x1ffa   :  { %v10177_v18 = vpop.f32.mrf.mxu0  ;;  %v6637_v30 = vpop.f32.mrf.mxu1 }
0x1ffb   :  { %v6638_v25 = vadd.f32 %v6637_v30, %v13157_v22  ;;  %v7083_v30 = vld [vmem:[#allocation5 + $0x98] sm:$0xff] }
0x2019   :  { %v6841_v52 = vpop.f32.mrf.mxu1  ;;  %v6912_v37 = vpop.f32.mrf.mxu0 }
0x201a   :  { %v6842_v6 = vadd.f32 %v6841_v52, %v6763_v27  ;;  %v6913_v19 = vadd.f32 %v6912_v37, %v6771_v45  ;;  %v7084_v27 = vld [vmem:[#allocation5 + $0xa0] sm:$0xff]  ;;  %v7082_v52 = vld [vmem:[#allocation5 + $0x90] sm:$0xff]  ;;  %v7081_v37 = vld [vmem:[#allocation5 + $0x88] sm:$0xff] }
0x201b   :  { %v6843_v29 = vpop.f32.mrf.mxu1  ;;  %v10212_v23 = vpop.f32.mrf.mxu0  ;;  %10236 = vmatpush3.msra.mxu0 %v7084_v27  ;;  %v7193_v45 = vld [vmem:[#allocation6 + $0x3d8] sm:$0xff]  ;;  %v7198_v27 = vld [vmem:[#allocation6 + $0x400] sm:$0xff] }
0x201c   :  { %v6916_v49 = vadd.f32 %v6842_v6, %v6636_v32  ;;  %v6844_v62 = vadd.f32 %v6843_v29, %v6767_v35  ;;  %10237 = vmatprep.subr.mxu0 %v14744_v11  ;;  %v7080_v32 = vld [vmem:[#allocation5 + $0x80] sm:$0xff]  ;;  %v7212_v6 = vld [vmem:[#allocation6 + $0x470] sm:$0xff]  ;;  %v7211_v35 = vld [vmem:[#allocation6 + $0x468] sm:$0xff] }
0x201d   :  { %10238 = vmatpush3.msra.mxu0 %v7083_v30  ;;  %7214 = vmatprep.subr.mxu1 %v7212_v6  ;;  %v7209_v29 = vld [vmem:[#allocation6 + $0x458] sm:$0xff]  ;;  %v7208_v23 = vld [vmem:[#allocation6 + $0x450] sm:$0xff]  ;;  %v7195_v30 = vld [vmem:[#allocation6 + $0x3e8] sm:$0xff] }
0x201e   :  { %v7774_v3 = vmul.f32 -1.442695, %v6916_v49  ;;  %v6923_v7 = vadd.f32 %v6844_v62, %v6638_v25  ;;  %10239 = vmatprep.subr.mxu0 %v14744_v11  ;;  %v7206_v49 = vld [vmem:[#allocation6 + $0x440] sm:$0xff]  ;;  %v7203_v62 = vld [vmem:[#allocation6 + $0x428] sm:$0xff] }
0x201f   :  { %10240 = vmatpush3.msra.mxu0 %v7082_v52  ;;  %v7202_v25 = vld [vmem:[#allocation6 + $0x420] sm:$0xff]  ;;  %v7192_v52 = vld [vmem:[#allocation6 + $0x3d0] sm:$0xff]  ;;  %v7183_v6 = vld [vmem:[#allocation6 + $0x388] sm:$0xff] }
0x2020   :  { %10452 = vpow2.f32 %v7774_v3  ;;  %v7775_v36 = vmul.f32 -1.442695, %v6923_v7  ;;  %10241 = vmatprep.subr.mxu0 %v14744_v11  ;;  %v7205_v3 = vld [vmem:[#allocation6 + $0x438] sm:$0xff]  ;;  %v7200_v7 = vld [vmem:[#allocation6 + $0x410] sm:$0xff] }
0x2021   :  { %10242 = vmatpush3.msra.mxu0 %v7081_v37  ;;  %v7189_v37 = vld [vmem:[#allocation6 + $0x3b8] sm:$0xff] }
0x2022   :  { %10454 = vpow2.f32 %v7775_v36  ;;  %10243 = vmatprep.subr.mxu0 %v14744_v11  ;;  %v7199_v36 = vld [vmem:[#allocation6 + $0x408] sm:$0xff] }
0x2023   :  { %10244 = vmatpush3.msra.mxu0 %v7080_v32  ;;  %v7186_v32 = vld [vmem:[#allocation6 + $0x3a0] sm:$0xff] }
0x2024   :  { %10248 = vmatprep.subr.mxu0 %v14744_v11 }
0x202d   :  { %v10453_v44 = vpop.eup %10452 }
0x202e   :  { %v6920_v15 = vadd.f32 1.0, %v10453_v44  ;;  %v7197_v44 = vld [vmem:[#allocation6 + $0x3f8] sm:$0xff] }
0x202f   :  { %v10455_v47 = vpop.eup %10454 }
0x2030   :  { %10456 = vrcp.f32 %v6920_v15  ;;  %v6927_v16 = vadd.f32 1.0, %v10455_v47  ;;  %v7196_v15 = vld [vmem:[#allocation6 + $0x3f0] sm:$0xff]  ;;  %v7194_v47 = vld [vmem:[#allocation6 + $0x3e0] sm:$0xff] }
0x2032   :  { %10458 = vrcp.f32 %v6927_v16  ;;  %v7191_v16 = vld [vmem:[#allocation6 + $0x3c8] sm:$0xff] }
0x203d   :  { %v10457_v43 = vpop.eup %10456 }
0x203e   :  { %v6930_v13 = vmul.f32 %v10457_v43, %v6913_v19  ;;  %v7190_v19 = vld [vmem:[#allocation6 + $0x3c0] sm:$0xff]  ;;  %v7188_v43 = vld [vmem:[#allocation6 + $0x3b0] sm:$0xff] }
0x203f   :  { %v10459_v2 = vpop.eup %10458 }
0x2040   :  { %v6931_v5 = vadd.f32 %v6930_v13, %v6707_v48  ;;  %v6933_v26 = vsub.f32 1.0, %v10459_v2  ;;  %v6935_v63 = vmul.f32 %v10459_v2, %v14695_v55  ;;  %v7187_v48 = vld [vmem:[#allocation6 + $0x3a8] sm:$0xff]  ;;  %v7185_v13 = vld [vmem:[#allocation6 + $0x398] sm:$0xff]  ;;  %v7182_v2 = vld [vmem:[#allocation6 + $0x380] sm:$0xff] }
0x2042   :  { %10460 = vtanh.f32 %v6931_v5  ;;  %v7184_v5 = vld [vmem:[#allocation6 + $0x390] sm:$0xff] }
0x204f   :  { %v10461_v4 = vpop.eup %10460 }
0x2050   :  { %v6934_v17 = vmul.f32 %v10461_v4, %v6933_v26  ;;  %v7181_v26 = vld [vmem:[#allocation6 + $0x378] sm:$0xff]  ;;  %v7179_v4 = vld [vmem:[#allocation6 + $0x368] sm:$0xff] }
0x2052   :  { %v14899_v12 = vadd.f32 %v6935_v63, %v6934_v17  ;;  %v7178_v17 = vld [vmem:[#allocation6 + $0x360] sm:$0xff]  ;;  %v7176_v63 = vld [vmem:[#allocation6 + $0x350] sm:$0xff] }
0x2054   :  { %7033 = vmatprep.mubr.f32.mxu1 %v14899_v12 }
0x2055   :  { %7034 = vmatmul.mubr.f32.vlgmr.msra.gmra.mxu1 %v14783_v14  ;;  %v7779_v14 = vld [vmem:[%s14994_s1 + $0x68] sm:$0xff]  ;;  %s7778_s1 = sld [smem:[#allocation2 + $0x6]] }
0x2056   :  { %7278 = vmatprep.mubr.f32.mxu1 %v14744_v11  ;;  %7215 = vmatpush1.msra.mxu1 %v7211_v35  ;;  %v7180_v35 = vld [vmem:[#allocation6 + $0x370] sm:$0xff] }
0x2057   :  { %7216 = vmatprep.subr.mxu1 %v7209_v29  ;;  %v7177_v29 = vld [vmem:[#allocation6 + $0x358] sm:$0xff] }
0x2058   :  { %7217 = vmatpush1.msra.mxu1 %v7208_v23  ;;  %v7174_v23 = vld [vmem:[#allocation6 + $0x340] sm:$0xff] }
0x2059   :  { %7218 = vmatprep.subr.mxu1 %v7206_v49  ;;  %v7171_v49 = vld [vmem:[#allocation6 + $0x328] sm:$0xff] }
0x205a   :  { %7219 = vmatpush1.msra.mxu1 %v7205_v3  ;;  %v7168_v3 = vld [vmem:[#allocation6 + $0x310] sm:$0xff] }
0x205b   :  { %7220 = vmatprep.subr.mxu1 %v7203_v62  ;;  %p7063_p11 = scmp.ne.s32.totalorder %s7778_s1, 0  ;;  %v7401_v62 = vld [vmem:[#allocation6 + $0x770] sm:$0xff] }
0x205c   :  { %7221 = vmatpush1.msra.mxu1 %v7202_v25  ;;  %v7400_v25 = vld [vmem:[#allocation6 + $0x768] sm:$0xff] }
0x205d   :  { %7222 = vmatprep.subr.mxu1 %v7200_v7  ;;  %s7064_s10 = scalar_select %p7063_p11, 1, 0  ;;  %v7402_v7 = vld [vmem:[#allocation6 + $0x778] sm:$0xff] }
0x205e   :  { %7223 = vmatpush1.msra.mxu1 %v7199_v36 }
0x205f   :  { %7224 = vmatprep.subr.mxu1 %v7197_v44  ;;  %s7065_s11 = scvt.s32.f32 %s7064_s10  ;;  %v7398_v44 = vld [vmem:[#allocation6 + $0x758] sm:$0xff] }
0x2060   :  { %7225 = vmatpush1.msra.mxu1 %v7196_v15  ;;  %v7397_v15 = vld [vmem:[#allocation6 + $0x750] sm:$0xff] }
0x2061   :  { %7226 = vmatprep.subr.mxu1 %v7194_v47  ;;  %s7076_s0 = ssub.f32 1.0, %s7065_s11  ;;  %v7074_v9 = vstv %s7065_s11  ;;  %v7399_v47 = vld [vmem:[#allocation6 + $0x760] sm:$0xff] }
0x2062   :  { %7227 = vmatpush1.msra.mxu1 %v7193_v45 }
0x2063   :  { %7228 = vmatprep.subr.mxu1 %v7191_v16  ;;  %v7077_v60 = vstv %s7076_s0  ;;  %v7395_v16 = vld [vmem:[#allocation6 + $0x740] sm:$0xff] }
0x2064   :  { %7229 = vmatpush1.msra.mxu1 %v7190_v19  ;;  %v7394_v19 = vld [vmem:[#allocation6 + $0x738] sm:$0xff] }
0x2065   :  { %7230 = vmatprep.subr.mxu1 %v7188_v43  ;;  %v7396_v43 = vld [vmem:[#allocation6 + $0x748] sm:$0xff] }
0x2066   :  { %7231 = vmatpush1.msra.mxu1 %v7187_v48  ;;  %v7392_v48 = vld [vmem:[#allocation6 + $0x728] sm:$0xff] }
0x2067   :  { %7232 = vmatprep.subr.mxu1 %v7185_v13  ;;  %v7391_v13 = vld [vmem:[#allocation6 + $0x720] sm:$0xff] }
0x2068   :  { %7233 = vmatpush1.msra.mxu1 %v7184_v5  ;;  %v7393_v5 = vld [vmem:[#allocation6 + $0x730] sm:$0xff] }
0x2069   :  { %7234 = vmatprep.subr.mxu1 %v7182_v2  ;;  %v7389_v2 = vld [vmem:[#allocation6 + $0x710] sm:$0xff] }
0x206a   :  { %7235 = vmatpush1.msra.mxu1 %v7181_v26  ;;  %v7388_v26 = vld [vmem:[#allocation6 + $0x708] sm:$0xff] }
0x206b   :  { %7236 = vmatprep.subr.mxu1 %v7179_v4  ;;  %v7390_v4 = vld [vmem:[#allocation6 + $0x718] sm:$0xff] }
0x206c   :  { %7237 = vmatpush1.msra.mxu1 %v7178_v17  ;;  %v7386_v17 = vld [vmem:[#allocation6 + $0x6f8] sm:$0xff] }
0x206d   :  { %7238 = vmatprep.subr.mxu1 %v7176_v63  ;;  %v7385_v63 = vld [vmem:[#allocation6 + $0x6f0] sm:$0xff] }
0x2115   :  { %v8689_v58 = vpop.f32.mrf.mxu1 }
0x2117   :  { %v8690_v21 = vpop.f32.mrf.mxu1 }
0x2118   :  { %v8691_v8 = vadd.f32 %v8690_v21, %v8689_v58  ;;  %v7175_v58 = vld [vmem:[#allocation6 + $0x348] sm:$0xff]  ;;  %v7173_v21 = vld [vmem:[#allocation6 + $0x338] sm:$0xff] }
0x2119   :  { %7239 = vmatpush1.msra.mxu1 %v7175_v58  ;;  %v7387_v58 = vld [vmem:[#allocation6 + $0x700] sm:$0xff] }
0x211a   :  { %v7036_v10 = vadd.f32 %v8691_v8, %v16374_v34  ;;  %v7172_v8 = vld [vmem:[#allocation6 + $0x330] sm:$0xff]  ;;  %7240 = vmatprep.subr.mxu1 %v7173_v21  ;;  %v7383_v21 = vld [vmem:[#allocation6 + $0x6e0] sm:$0xff] }
0x211b   :  { %7241 = vmatpush1.msra.mxu1 %v7172_v8  ;;  %v7382_v8 = vld [vmem:[#allocation6 + $0x6d8] sm:$0xff] }
0x211c   :  { %7776 = vst [vmem:[%s15000_s7 + $0x30] sm:$0xff] %v7036_v10  ;;  %7041 = vmax.xlane.f32.xlu1 %v7036_v10 }
0x21a5   :  { %v7042_v31 = vpop.xlane.xlu1 %7041 }
0x21a6   :  { %vm7043_vm14 = vcmp.eq.f32.partialorder %v7036_v10, %v7042_v31  ;;  %v7170_v10 = vld [vmem:[#allocation6 + $0x320] sm:$0xff]  ;;  %v7169_v31 = vld [vmem:[#allocation6 + $0x318] sm:$0xff] }
0x21a7   :  { %v7044_v55 = vsel %vm7043_vm14, %v16183_v54, 128  ;;  %7242 = vmatprep.subr.mxu1 %v7170_v10  ;;  %v7384_v10 = vld [vmem:[#allocation6 + $0x6e8] sm:$0xff] }
0x21a8   :  { %v7046_v57 = vshra.s32 %v7044_v55, 16  ;;  %v7045_v50 = vand.u32 65535, %v7044_v55  ;;  %v7167_v55 = vld [vmem:[#allocation6 + $0x308] sm:$0xff]  ;;  %7243 = vmatpush1.msra.mxu1 %v7169_v31 }
0x21a9   :  { %7244 = vmatprep.subr.mxu1 %v7167_v55  ;;  %v7380_v31 = vld [vmem:[#allocation6 + $0x6c8] sm:$0xff]  ;;  %v7379_v55 = vld [vmem:[#allocation6 + $0x6c0] sm:$0xff] }
0x21aa   :  { %v7048_v20 = vcvt.s32.f32 %v7046_v57  ;;  %v7047_v46 = vcvt.s32.f32 %v7045_v50  ;;  %v7166_v57 = vld [vmem:[#allocation6 + $0x300] sm:$0xff]  ;;  %v7213_v50 = vld [vmem:[#allocation6 + $0x478] sm:$0xff] }
0x21ab   :  { %7245 = vmatpush1.msra.mxu1 %v7166_v57  ;;  %v7381_v57 = vld [vmem:[#allocation6 + $0x6d0] sm:$0xff] }
0x21ac   :  { %7049 = vmin.xlane.f32.xlu1 %v7048_v20  ;;  %7420 = vmatprep.subr.mxu1 %v7401_v62  ;;  %v7595_v62 = vld [vmem:[#allocation8 + $0x68] sm:$0xff] }
0x21bd   :  { %7069 = vperm.xlu1 %10331, %v7779_v14  }
0x2235   :  { %v14923_v18 = vpop.xlane.xlu1 %7049 }
0x2236   :  { %vm7051_vm15 = vcmp.eq.f32.partialorder %v7048_v20, %v14923_v18  ;;  %v7056_v20 = vcvt.f32.s32 %v14923_v18  ;;  %v7210_v18 = vld [vmem:[#allocation6 + $0x460] sm:$0xff] }
0x2237   :  { %v7052_v33 = vsel %vm7051_vm15, %v7047_v46, inf  ;;  %v7207_v46 = vld [vmem:[#allocation6 + $0x448] sm:$0xff] }
0x2238   :  { %7053 = vmin.xlane.f32.xlu0 %v7052_v33  ;;  %v7057_v39 = vshll.u32 %v7056_v20, 16  ;;  %v7204_v33 = vld [vmem:[#allocation6 + $0x430] sm:$0xff] }
0x2239   :  { %v7070_v14 = vpop.permute.xlu1 %7069  ;;  %v7377_v20 = vld [vmem:[#allocation6 + $0x6b0] sm:$0xff] }
0x223a   :  { %vm7071_vm1 = vcmp.eq.s32.totalorder %v7070_v14, %v16183_v54  ;;  %v7376_v14 = vld [vmem:[#allocation6 + $0x6a8] sm:$0xff] }
0x223b   :  { %v7780_v38 = vsel %vm7071_vm1, 1.0, %v14744_v11 }
0x223c   :  { %v7075_v59 = vmul.f32 %v7780_v38, %v7074_v9  ;;  %v7371_v9 = vld [vmem:[#allocation6 + $0x680] sm:$0xff]  ;;  %v7370_v38 = vld [vmem:[#allocation6 + $0x678] sm:$0xff] }
0x22c1   :  { %v7054_v28 = vpop.xlane.xlu0 %7053 }
0x22c2   :  { %v7055_v40 = vcvt.f32.s32 %v7054_v28  ;;  %v7378_v28 = vld [vmem:[#allocation6 + $0x6b8] sm:$0xff] }
0x22c4   :  { %v7058_v56 = vadd.s32 %v7057_v39, %v7055_v40  ;;  %v7374_v39 = vld [vmem:[#allocation6 + $0x698] sm:$0xff]  ;;  %v7373_v40 = vld [vmem:[#allocation6 + $0x690] sm:$0xff] }
0x22c6   :  { %vm7059_vm2 = vcmp.eq.s32.totalorder %v16183_v54, %v7058_v56  ;;  %v7201_v54 = vld [vmem:[#allocation6 + $0x418] sm:$0xff]  ;;  %v7375_v56 = vld [vmem:[#allocation6 + $0x6a0] sm:$0xff] }
0x22c7   :  { %v7777_v42 = vsel %vm7059_vm2, 1.0, %v14744_v11 }
0x22c8   :  { %v7078_v53 = vmul.f32 %v7777_v42, %v7077_v60  ;;  %v7372_v60 = vld [vmem:[#allocation6 + $0x688] sm:$0xff] }
0x22c9   :  { %v7368_v42 = vld [vmem:[#allocation6 + $0x668] sm:$0xff] }
0x22ca   :  { %v7079_v24 = vadd.f32 %v7078_v53, %v7075_v59  ;;  %v7367_v59 = vld [vmem:[#allocation6 + $0x660] sm:$0xff]  ;;  %v7369_v53 = vld [vmem:[#allocation6 + $0x670] sm:$0xff] }
0x22cc   :  { %10246 = vmatmul.mubr.f32.vlgmr.msra.gmra.mxu0 %v7079_v24  ;;  %v7365_v24 = vld [vmem:[#allocation6 + $0x650] sm:$0xff] }
0x22cd   :  { %10249 = vmatpush3.msra.mxu0 %v7213_v50  ;;  %10280 = vmatprep.mubr.msk.f32.mxu0 %vm10791_vm0, %v14744_v11  ;;  %v7364_v50 = vld [vmem:[#allocation6 + $0x648] sm:$0xff] }
0x22ce   :  { %10250 = vmatprep.subr.mxu0 %v14744_v11 }
0x22cf   :  { %10251 = vmatpush3.msra.mxu0 %v7210_v18  ;;  %v7366_v18 = vld [vmem:[#allocation6 + $0x658] sm:$0xff] }
0x22d0   :  { %10252 = vmatprep.subr.mxu0 %v14744_v11 }
0x22d1   :  { %10253 = vmatpush3.msra.mxu0 %v7207_v46  ;;  %v7362_v46 = vld [vmem:[#allocation6 + $0x638] sm:$0xff] }
0x22d2   :  { %10254 = vmatprep.subr.mxu0 %v14744_v11 }
0x22d3   :  { %10255 = vmatpush3.msra.mxu0 %v7204_v33  ;;  %v7361_v33 = vld [vmem:[#allocation6 + $0x630] sm:$0xff] }
0x22d4   :  { %10256 = vmatprep.subr.mxu0 %v14744_v11 }
0x22d5   :  { %10257 = vmatpush3.msra.mxu0 %v7201_v54  ;;  %v7363_v54 = vld [vmem:[#allocation6 + $0x640] sm:$0xff] }
0x22d6   :  { %10258 = vmatprep.subr.mxu0 %v14744_v11 }
0x22d7   :  { %10259 = vmatpush3.msra.mxu0 %v7198_v27  ;;  %v7359_v27 = vld [vmem:[#allocation6 + $0x620] sm:$0xff] }
0x22d8   :  { %10260 = vmatprep.subr.mxu0 %v14744_v11 }
0x22d9   :  { %10261 = vmatpush3.msra.mxu0 %v7195_v30  ;;  %v7358_v30 = vld [vmem:[#allocation6 + $0x618] sm:$0xff] }
0x22da   :  { %10262 = vmatprep.subr.mxu0 %v14744_v11 }
0x22db   :  { %10263 = vmatpush3.msra.mxu0 %v7192_v52  ;;  %v7360_v52 = vld [vmem:[#allocation6 + $0x628] sm:$0xff] }
0x22dc   :  { %10264 = vmatprep.subr.mxu0 %v14744_v11 }
0x22dd   :  { %10265 = vmatpush3.msra.mxu0 %v7189_v37  ;;  %v7356_v37 = vld [vmem:[#allocation6 + $0x608] sm:$0xff] }
0x22de   :  { %10266 = vmatprep.subr.mxu0 %v14744_v11 }
0x22df   :  { %10267 = vmatpush3.msra.mxu0 %v7186_v32  ;;  %v7355_v32 = vld [vmem:[#allocation6 + $0x600] sm:$0xff] }
0x22e0   :  { %10268 = vmatprep.subr.mxu0 %v14744_v11 }
0x22e1   :  { %10269 = vmatpush3.msra.mxu0 %v7183_v6  ;;  %v7357_v6 = vld [vmem:[#allocation6 + $0x610] sm:$0xff] }
0x22e2   :  { %10270 = vmatprep.subr.mxu0 %v14744_v11 }
0x22e3   :  { %10271 = vmatpush3.msra.mxu0 %v7180_v35  ;;  %v7613_v35 = vld [vmem:[#allocation8 + $0xf8] sm:$0xff] }
0x22e4   :  { %10272 = vmatprep.subr.mxu0 %v14744_v11 }
0x22e5   :  { %10273 = vmatpush3.msra.mxu0 %v7177_v29  ;;  %v7597_v29 = vld [vmem:[#allocation8 + $0x78] sm:$0xff] }
0x22e6   :  { %10274 = vmatprep.subr.mxu0 %v14744_v11 }
0x22e7   :  { %10275 = vmatpush3.msra.mxu0 %v7174_v23  ;;  %v7612_v23 = vld [vmem:[#allocation8 + $0xf0] sm:$0xff] }
0x22e8   :  { %10276 = vmatprep.subr.mxu0 %v14744_v11 }
0x22e9   :  { %10277 = vmatpush3.msra.mxu0 %v7171_v49  ;;  %v7596_v49 = vld [vmem:[#allocation8 + $0x70] sm:$0xff] }
0x22ea   :  { %10278 = vmatprep.subr.mxu0 %v14744_v11 }
0x22eb   :  { %10279 = vmatpush3.msra.mxu0 %v7168_v3  ;;  %v7611_v3 = vld [vmem:[#allocation8 + $0xe8] sm:$0xff] }
0x22ec   :  { %10283 = vmatprep.subr.mxu0 %v14744_v11 }
0x238c   :  { %v14954_v36 = vpop.f32.mrf.mxu0 }
0x238d   :  { %7279 = vmatmul.mubr.f32.vlgmr.msra.gmra.mxu1 %v14954_v36  ;;  %10281 = vmatmul.mubr.f32.vlgmr.msra.gmra.mxu0 %v14954_v36 }
0x238e   :  { %7421 = vmatpush1.msra.mxu1 %v7400_v25  ;;  %10284 = vmatpush3.msra.mxu0 %v7402_v7  ;;  %v10247_v45 = vpop.f32.mrf.mxu0  ;;  %v7610_v25 = vld [vmem:[#allocation8 + $0xe0] sm:$0xff] }
0x238f   :  { %7422 = vmatprep.subr.mxu1 %v7398_v44  ;;  %10285 = vmatprep.subr.mxu0 %v14744_v11  ;;  %v7594_v7 = vld [vmem:[#allocation8 + $0x60] sm:$0xff]  ;;  %v7593_v44 = vld [vmem:[#allocation8 + $0x58] sm:$0xff]  ;;  %v7607_v45 = vld [vmem:[#allocation8 + $0xc8] sm:$0xff] }
0x2390   :  { %7423 = vmatpush1.msra.mxu1 %v7397_v15  ;;  %10286 = vmatpush3.msra.mxu0 %v7399_v47  ;;  %v7608_v15 = vld [vmem:[#allocation8 + $0xd0] sm:$0xff] }
0x2391   :  { %7424 = vmatprep.subr.mxu1 %v7395_v16  ;;  %10287 = vmatprep.subr.mxu0 %v14744_v11  ;;  %v7592_v47 = vld [vmem:[#allocation8 + $0x50] sm:$0xff]  ;;  %v7591_v16 = vld [vmem:[#allocation8 + $0x48] sm:$0xff] }
0x2392   :  { %7425 = vmatpush1.msra.mxu1 %v7394_v19  ;;  %10288 = vmatpush3.msra.mxu0 %v7396_v43  ;;  %v7606_v19 = vld [vmem:[#allocation8 + $0xc0] sm:$0xff] }
0x2393   :  { %7426 = vmatprep.subr.mxu1 %v7392_v48  ;;  %10289 = vmatprep.subr.mxu0 %v14744_v11  ;;  %v7590_v43 = vld [vmem:[#allocation8 + $0x40] sm:$0xff]  ;;  %v7605_v48 = vld [vmem:[#allocation8 + $0xb8] sm:$0xff] }
0x2394   :  { %7427 = vmatpush1.msra.mxu1 %v7391_v13  ;;  %10290 = vmatpush3.msra.mxu0 %v7393_v5  ;;  %v7589_v13 = vld [vmem:[#allocation8 + $0x38] sm:$0xff]  ;;  %v7604_v5 = vld [vmem:[#allocation8 + $0xb0] sm:$0xff] }
0x2395   :  { %7428 = vmatprep.subr.mxu1 %v7389_v2  ;;  %10291 = vmatprep.subr.mxu0 %v14744_v11  ;;  %v7588_v2 = vld [vmem:[#allocation8 + $0x30] sm:$0xff] }
0x2396   :  { %7429 = vmatpush1.msra.mxu1 %v7388_v26  ;;  %10292 = vmatpush3.msra.mxu0 %v7390_v4  ;;  %v7603_v26 = vld [vmem:[#allocation8 + $0xa8] sm:$0xff] }
0x2397   :  { %7430 = vmatprep.subr.mxu1 %v7386_v17  ;;  %10293 = vmatprep.subr.mxu0 %v14744_v11  ;;  %v7587_v4 = vld [vmem:[#allocation8 + $0x28] sm:$0xff]  ;;  %v7602_v17 = vld [vmem:[#allocation8 + $0xa0] sm:$0xff] }
0x2398   :  { %7431 = vmatpush1.msra.mxu1 %v7385_v63  ;;  %10294 = vmatpush3.msra.mxu0 %v7387_v58  ;;  %v7586_v63 = vld [vmem:[#allocation8 + $0x20] sm:$0xff]  ;;  %v7601_v58 = vld [vmem:[#allocation8 + $0x98] sm:$0xff] }
0x2399   :  { %7432 = vmatprep.subr.mxu1 %v7383_v21  ;;  %10295 = vmatprep.subr.mxu0 %v14744_v11  ;;  %v7585_v21 = vld [vmem:[#allocation8 + $0x18] sm:$0xff] }
0x239a   :  { %7433 = vmatpush1.msra.mxu1 %v7382_v8  ;;  %10296 = vmatpush3.msra.mxu0 %v7384_v10  ;;  %v7600_v8 = vld [vmem:[#allocation8 + $0x90] sm:$0xff] }
0x239b   :  { %7434 = vmatprep.subr.mxu1 %v7380_v31  ;;  %10297 = vmatprep.subr.mxu0 %v14744_v11  ;;  %v7584_v10 = vld [vmem:[#allocation8 + $0x10] sm:$0xff]  ;;  %v7599_v31 = vld [vmem:[#allocation8 + $0x88] sm:$0xff] }
0x239c   :  { %7435 = vmatpush1.msra.mxu1 %v7379_v55  ;;  %10298 = vmatpush3.msra.mxu0 %v7381_v57  ;;  %v7583_v55 = vld [vmem:[#allocation8 + $0x8] sm:$0xff]  ;;  %v7598_v57 = vld [vmem:[#allocation8 + $0x80] sm:$0xff] }
0x239d   :  { %7436 = vmatprep.subr.mxu1 %v7377_v20  ;;  %10299 = vmatprep.subr.mxu0 %v14744_v11  ;;  %v7582_v20 = vld [vmem:[#allocation8] sm:$0xff] }
0x239e   :  { %7437 = vmatpush1.msra.mxu1 %v7376_v14  ;;  %10300 = vmatpush3.msra.mxu0 %v7378_v28 }
0x239f   :  { %7438 = vmatprep.subr.mxu1 %v7374_v39  ;;  %10301 = vmatprep.subr.mxu0 %v14744_v11 }
0x23a0   :  { %7439 = vmatpush1.msra.mxu1 %v7373_v40  ;;  %10302 = vmatpush3.msra.mxu0 %v7375_v56  ;;  %v7781_v40 = vld [vmem:[%s14997_s4 + $0x9] sm:$0x7] }
0x23a1   :  { %7440 = vmatprep.subr.mxu1 %v7371_v9  ;;  %10303 = vmatprep.subr.mxu0 %v14744_v11  ;;  %v7408_v56 = vrot.slane %v7781_v40, %v16461_v1 }
0x23a2   :  { %7441 = vmatpush1.msra.mxu1 %v7370_v38  ;;  %10304 = vmatpush3.msra.mxu0 %v7372_v60 }
0x23a3   :  { %7442 = vmatprep.subr.mxu1 %v7368_v42  ;;  %10305 = vmatprep.subr.mxu0 %v14744_v11 }
0x23a4   :  { %7443 = vmatpush1.msra.mxu1 %v7367_v59  ;;  %10306 = vmatpush3.msra.mxu0 %v7369_v53  ;;  %v7412_v53 = vrot.slane %v7781_v40, %v16462_v41 }
0x23a5   :  { %7444 = vmatprep.subr.mxu1 %v7365_v24  ;;  %10307 = vmatprep.subr.mxu0 %v14744_v11 }
0x23a6   :  { %7445 = vmatpush1.msra.mxu1 %v7364_v50  ;;  %10308 = vmatpush3.msra.mxu0 %v7366_v18 }
0x23a7   :  { %7446 = vmatprep.subr.mxu1 %v7362_v46  ;;  %10309 = vmatprep.subr.mxu0 %v14744_v11 }
0x23a8   :  { %7447 = vmatpush1.msra.mxu1 %v7361_v33  ;;  %10310 = vmatpush3.msra.mxu0 %v7363_v54 }
0x23a9   :  { %7448 = vmatprep.subr.mxu1 %v7359_v27  ;;  %10311 = vmatprep.subr.mxu0 %v14744_v11 }
0x23aa   :  { %7449 = vmatpush1.msra.mxu1 %v7358_v30  ;;  %10312 = vmatpush3.msra.mxu0 %v7360_v52 }
0x23ab   :  { %7450 = vmatprep.subr.mxu1 %v7356_v37  ;;  %10313 = vmatprep.subr.mxu0 %v14744_v11 }
0x23ac   :  { %7451 = vmatpush1.msra.mxu1 %v7355_v32  ;;  %7484 = vmatprep.mubr.f32.mxu1 %v14744_v11 }
0x23ad   :  { %10314 = vmatpush3.msra.mxu0 %v7357_v6  ;;  %10315 = vmatprep.mubr.msk.f32.mxu0 %vm10791_vm0, %v14744_v11  ;;  %v7609_v11 = vld [vmem:[#allocation8 + $0xd8] sm:$0xff] }
0x23ae   :  { %7485 = vmatmul.mubr.f32.vlgmr.msra.gmra.mxu1 %v14899_v12  ;;  %10316 = vmatmul.mubr.f32.vlgmr.msra.gmra.mxu0 %v14899_v12 }
0x23af   :  { %8743 = vmatprep.subr.mxu1 %v7613_v35 }
0x23b0   :  { %8744 = vmatpush3.msra.mxu1 %v7597_v29 }
0x23b1   :  { %8745 = vmatprep.subr.mxu1 %v7612_v23 }
0x23b2   :  { %8746 = vmatpush3.msra.mxu1 %v7596_v49 }
0x23b3   :  { %8747 = vmatprep.subr.mxu1 %v7611_v3 }
0x23b4   :  { %8748 = vmatpush3.msra.mxu1 %v7595_v62 }
0x23b5   :  { %8749 = vmatprep.subr.mxu1 %v7610_v25 }
0x23b6   :  { %8750 = vmatpush3.msra.mxu1 %v7594_v7 }
0x23b7   :  { %8751 = vmatprep.subr.mxu1 %v7609_v11 }
0x23b8   :  { %8752 = vmatpush3.msra.mxu1 %v7593_v44 }
0x23b9   :  { %8753 = vmatprep.subr.mxu1 %v7608_v15 }
0x23ba   :  { %8754 = vmatpush3.msra.mxu1 %v7592_v47 }
0x23bb   :  { %8755 = vmatprep.subr.mxu1 %v7607_v45 }
0x23bc   :  { %8756 = vmatpush3.msra.mxu1 %v7591_v16 }
0x23bd   :  { %8757 = vmatprep.subr.mxu1 %v7606_v19 }
0x23be   :  { %8758 = vmatpush3.msra.mxu1 %v7590_v43 }
0x23bf   :  { %8759 = vmatprep.subr.mxu1 %v7605_v48 }
0x23c0   :  { %8760 = vmatpush3.msra.mxu1 %v7589_v13 }
0x23c1   :  { %8761 = vmatprep.subr.mxu1 %v7604_v5 }
0x23c2   :  { %8762 = vmatpush3.msra.mxu1 %v7588_v2 }
0x23c3   :  { %8763 = vmatprep.subr.mxu1 %v7603_v26 }
0x23c4   :  { %8764 = vmatpush3.msra.mxu1 %v7587_v4 }
0x23c5   :  { %8765 = vmatprep.subr.mxu1 %v7602_v17 }
0x23c6   :  { %8766 = vmatpush3.msra.mxu1 %v7586_v63 }
0x23c7   :  { %8767 = vmatprep.subr.mxu1 %v7601_v58 }
0x23c8   :  { %8768 = vmatpush3.msra.mxu1 %v7585_v21 }
0x23c9   :  { %8769 = vmatprep.subr.mxu1 %v7600_v8 }
0x23ca   :  { %8770 = vmatpush3.msra.mxu1 %v7584_v10 }
0x23cb   :  { %8771 = vmatprep.subr.mxu1 %v7599_v31 }
0x23cc   :  { %8772 = vmatpush3.msra.mxu1 %v7583_v55 }
0x23cd   :  { %8773 = vmatprep.subr.mxu1 %v7598_v57 }
0x23ce   :  { %8774 = vmatpush3.msra.mxu1 %v7582_v20 }
0x244d   :  { %v7351_v14 = vpop.f32.mrf.mxu0  ;;  %v7280_v39 = vpop.f32.mrf.mxu1 }
0x244e   :  { %v7281_v42 = vadd.f32 %v7280_v39, %v13151_v51  ;;  %v7416_v51 = vrot.slane %v7781_v40, %v15988_v61  ;;  %v7352_v35 = vadd.f32 %v7351_v14, %v13163_v0 }
0x244f   :  { %v10282_v28 = vpop.f32.mrf.mxu0  ;;  %v7282_v9 = vpop.f32.mrf.mxu1 }
0x2450   :  { %v7283_v54 = vadd.f32 %v7282_v9, %v13157_v22 }
0x246e   :  { %v7486_v38 = vpop.f32.mrf.mxu1  ;;  %v7557_v60 = vpop.f32.mrf.mxu0 }
0x246f   :  { %v7487_v59 = vadd.f32 %v7486_v38, %v7408_v56  ;;  %v7558_v6 = vadd.f32 %v7557_v60, %v7416_v51 }
0x2470   :  { %v7488_v24 = vpop.f32.mrf.mxu1  ;;  %v10317_v50 = vpop.f32.mrf.mxu0 }
0x2471   :  { %v7561_v18 = vadd.f32 %v7487_v59, %v7281_v42  ;;  %v7489_v33 = vadd.f32 %v7488_v24, %v7412_v53 }
0x2473   :  { %v7782_v46 = vmul.f32 -1.442695, %v7561_v18  ;;  %v7568_v27 = vadd.f32 %v7489_v33, %v7283_v54 }
0x2475   :  { %10462 = vpow2.f32 %v7782_v46  ;;  %v7783_v30 = vmul.f32 -1.442695, %v7568_v27 }
0x2477   :  { %10464 = vpow2.f32 %v7783_v30 }
0x2482   :  { %v10463_v1 = vpop.eup %10462 }
0x2483   :  { %v7565_v52 = vadd.f32 1.0, %v10463_v1 }
0x2484   :  { %v10465_v37 = vpop.eup %10464 }
0x2485   :  { %10466 = vrcp.f32 %v7565_v52  ;;  %v7572_v32 = vadd.f32 1.0, %v10465_v37 }
0x2487   :  { %10468 = vrcp.f32 %v7572_v32 }
0x2492   :  { %v10467_v41 = vpop.eup %10466 }
0x2493   :  { %v7575_v29 = vmul.f32 %v10467_v41, %v7558_v6 }
0x2494   :  { %v10469_v22 = vpop.eup %10468 }
0x2495   :  { %v7576_v23 = vadd.f32 %v7575_v29, %v7352_v35  ;;  %v7578_v49 = vsub.f32 1.0, %v10469_v22  ;;  %v7580_v25 = vmul.f32 %v10469_v22, %v14899_v12 }
0x2497   :  { %10470 = vtanh.f32 %v7576_v23 }
0x24a4   :  { %v10471_v3 = vpop.eup %10470 }
0x24a5   :  { %v7579_v62 = vmul.f32 %v10471_v3, %v7578_v49 }
0x24a7   :  { %v7581_v7 = vadd.f32 %v7580_v25, %v7579_v62 }
0x24a9   :  { %7678 = vmatprep.mubr.f32.mxu1 %v7581_v7 }
0x24aa   :  { %7679 = vmatmul.mubr.f32.vlgmr.msra.gmra.mxu1 %v14954_v36 }
0x256a   :  { %v8775_v61 = vpop.f32.mrf.mxu1 }
0x256c   :  { %v8776_v11 = vpop.f32.mrf.mxu1 }
0x256d   :  { %v8777_v44 = vadd.f32 %v8776_v11, %v8775_v61 }
0x256f   :  { %v7681_v15 = vadd.f32 %v8777_v44, %v16374_v34 }
0x2571   :  { %7784 = vst [vmem:[%s15000_s7 + $0x38] sm:$0xff] %v7681_v15 }
0x2572   :  { %7690 = vsyncpa [#allocation3], 1 }
0x2573   :  { %7691 = vsyncpa [#allocation7], 1 }
0x2574   :  { %7692 = vsyncpa [#allocation4], 1 }

</bundles_post_ra>
